<compile_context>
chip_gen: v7x
topology: tpu7x:2x2x1
jax: 0.10.0
libtpu: 0.0.40
codegen_flags: <defaults>
</compile_context>

<pallas_src>
import jax
import jax.numpy as jnp
from jax.experimental import pallas as pl
from jax.experimental.pallas import tpu as pltpu

# ----------------------- small, deterministic config -----------------------
VOCAB = 128
TYPE_VOCAB = 2
MAX_POS = 128
EMB = 128                      # ALBERT factorized embedding size (real value)
HIDDEN = 256                   # stands in for 2048 of albert-xlarge
NUM_HEADS = 2                  # stands in for 16
HEAD_DIM = HIDDEN // NUM_HEADS # = 128, same as real albert-xlarge => lane-aligned heads
INTERMEDIATE = 1024            # stands in for 8192 (4*hidden ratio preserved)
NUM_LAYERS = 2                 # ALBERT shares one set of layer params across layers
NUM_CLASS = 3
FC_PAD = 128                   # classifier output padded to a full 128-lane row
LN_EPS = 1e-12

BATCH = 4
SEQ = 128
TM = 256                       # row tile for the M-tiled (token-parallel) kernels
TI = 512                       # INTERMEDIATE K-tile for the FFN accumulator pipeline


def _vmem_limit_bytes():
    # Explicit scoped-VMEM limit with headroom: ~54 MiB on v7x (64 MiB physical),
    # ~109 MiB on v5e/v6e (128 MiB physical).  Falls back conservatively.
    try:
        cap = pltpu.get_tpu_info().vmem_capacity_bytes
    except Exception:
        cap = 64 << 20
    return int(cap * 0.85)


VMEM_LIMIT = _vmem_limit_bytes()


# ------------------------------ in-kernel helpers ------------------------------
def _layernorm_f32(x, g, b):
    mu = jnp.mean(x, axis=-1, keepdims=True)
    var = jnp.mean((x - mu) * (x - mu), axis=-1, keepdims=True)
    return (x - mu) * jax.lax.rsqrt(var + LN_EPS) * g + b


def _gelu_new_f32(x):
    return 0.5 * x * (1.0 + jnp.tanh(0.7978845608028654 * (x + 0.044715 * x * x * x)))


# ------------------------------ Pallas kernels ------------------------------
def _embed_kernel(e_ref, g_ref, b_ref, pw_ref, pb_ref, o_ref):
    # LayerNorm over EMB, then project to HIDDEN.  Elementwise in f32, matmul bf16xbf16.
    x = e_ref[...].astype(jnp.float32)                       # (TM, EMB)
    y = _layernorm_f32(x, g_ref[...], b_ref[...])
    o_ref[...] = (
        jnp.dot(y.astype(jnp.bfloat16), pw_ref[...], preferred_element_type=jnp.float32)
        + pb_ref[...]
    ).astype(o_ref.dtype)


def _attn_block_kernel(h_ref, m_ref, qkvw_ref, qkvb_ref, aow_ref, aob_ref,
                       g_ref, bb_ref, o_ref):
    # Whole self-attention block for one batch element, fused in a single kernel.
    # All MXU matmuls are bf16 x bf16 with f32 accumulation.
    h_bf = h_ref[0]                                           # (S, HIDDEN) bf16
    qkv = jnp.dot(h_bf, qkvw_ref[...], preferred_element_type=jnp.float32) + qkvb_ref[...]
    qkv_bf = qkv.astype(jnp.bfloat16)                         # (S, 3*HIDDEN) bf16
    m = m_ref[0]                                              # (1, S) additive mask, f32

    # Per-head attention.  HEAD_DIM == 128 so every slice is 128-lane aligned
    # (no relayout copies); the batched contraction would lower to the same
    # per-head MXU matmuls, so the static loop costs nothing extra here.
    # TODO(synk): at real albert-xlarge sizes, switch the score/context stage to a
    # flash-style KV-tiled inner loop so the full (S, 3H) activation is never
    # materialized and qkv_w can be N-tiled over its output columns.
    ctx_heads = []
    for hd in range(NUM_HEADS):
        lo = hd * HEAD_DIM
        q = qkv_bf[:, lo:lo + HEAD_DIM]
        k = qkv_bf[:, HIDDEN + lo:HIDDEN + lo + HEAD_DIM]
        v = qkv_bf[:, 2 * HIDDEN + lo:2 * HIDDEN + lo + HEAD_DIM]
        # scores = q @ k^T + mask  (1/sqrt(dh) already folded into the q weights)
        s = jax.lax.dot_general(
            q, k, (((1,), (1,)), ((), ())), preferred_element_type=jnp.float32
        ) + m
        s = s - jnp.max(s, axis=-1, keepdims=True)
        p = jnp.exp(s)
        p = p * pl.reciprocal(jnp.sum(p, axis=-1, keepdims=True), approx=True)
        ctx = jnp.dot(p.astype(jnp.bfloat16), v, preferred_element_type=jnp.float32)
        ctx_heads.append(ctx.astype(jnp.bfloat16))            # (S, HEAD_DIM)

    # Re-join heads along lanes (128-aligned pieces) and do ONE weight-stationary
    # (S, HIDDEN) @ (HIDDEN, HIDDEN) output projection.
    ctx_all = jnp.concatenate(ctx_heads, axis=-1)             # (S, HIDDEN) bf16
    attn_out = jnp.dot(ctx_all, aow_ref[...], preferred_element_type=jnp.float32)

    # bias + residual + LayerNorm, all fused here (no HBM round-trips).
    x = attn_out + aob_ref[...] + h_bf.astype(jnp.float32)
    o_ref[0] = _layernorm_f32(x, g_ref[...], bb_ref[...]).astype(o_ref.dtype)


def _ffn_block_kernel(h_ref, w1_ref, b1_ref, w2_ref, b2_ref, g_ref, bb_ref,
                      o_ref, acc_ref):
    # K-tiled FFN: acc += gelu_new(x @ W1[:, kt]) @ W2[kt, :], accumulator resident
    # in VMEM; bias + residual + LayerNorm applied on the final K tile.
    k = pl.program_id(1)

    @pl.when(k == 0)
    def _():
        acc_ref[...] = jnp.zeros_like(acc_ref)

    h_bf = h_ref[...]                                         # (TM, HIDDEN) bf16
    u = jnp.dot(h_bf, w1_ref[...], preferred_element_type=jnp.float32) + b1_ref[...]
    u = _gelu_new_f32(u)                                      # (TM, TI) f32, stays in VMEM
    acc_ref[...] += jnp.dot(u.astype(jnp.bfloat16), w2_ref[...],
                            preferred_element_type=jnp.float32)

    @pl.when(k == pl.num_programs(1) - 1)
    def _():
        x = acc_ref[...] + b2_ref[...] + h_bf.astype(jnp.float32)
        o_ref[...] = _layernorm_f32(x, g_ref[...], bb_ref[...]).astype(o_ref.dtype)


def _pool_fc_kernel(cls_ref, pw_ref, pb_ref, fw_ref, fb_ref, o_ref):
    # pooler tanh + classifier fused; Dropout(0.5) is identity in eval mode.
    p = jnp.tanh(
        jnp.dot(cls_ref[...], pw_ref[...], preferred_element_type=jnp.float32) + pb_ref[...]
    )
    o_ref[...] = (
        jnp.dot(p.astype(jnp.bfloat16), fw_ref[...], preferred_element_type=jnp.float32)
        + fb_ref[...]
    ).astype(o_ref.dtype)


# ------------------------------ kernel wrappers ------------------------------
# NOTE: at real albert-xlarge sizes, the grid-invariant weight specs below should be
# single-buffered (pipeline_mode=pl.Buffered(1)) or staged once into VMEM scratch to
# avoid paying 2x VMEM for constant-index inputs; unnecessary at these toy sizes.
def embed_project(e2d, ln_g, ln_b, pw, pb):
    M = e2d.shape[0]
    tm = min(TM, M)
    assert M % tm == 0
    return pl.pallas_call(
        _embed_kernel,
        out_shape=jax.ShapeDtypeStruct((M, HIDDEN), jnp.bfloat16),
        grid=(M // tm,),
        in_specs=[
            pl.BlockSpec((tm, EMB), lambda i: (i, 0)),
            pl.BlockSpec((1, EMB), lambda i: (0, 0)),
            pl.BlockSpec((1, EMB), lambda i: (0, 0)),
            pl.BlockSpec((EMB, HIDDEN), lambda i: (0, 0)),
            pl.BlockSpec((1, HIDDEN), lambda i: (0, 0)),
        ],
        out_specs=pl.BlockSpec((tm, HIDDEN), lambda i: (i, 0)),
        compiler_params=pltpu.CompilerParams(
            dimension_semantics=("parallel",), vmem_limit_bytes=VMEM_LIMIT),
    )(e2d, ln_g, ln_b, pw, pb)


def attention_block(h3d, add_mask, qkv_w, qkv_b, ao_w, ao_b, ln_g, ln_b):
    B, S, H = h3d.shape
    return pl.pallas_call(
        _attn_block_kernel,
        out_shape=jax.ShapeDtypeStruct((B, S, H), jnp.bfloat16),
        grid=(B,),
        in_specs=[
            pl.BlockSpec((1, S, H), lambda b: (b, 0, 0)),
            pl.BlockSpec((1, 1, S), lambda b: (b, 0, 0)),
            pl.BlockSpec((H, 3 * H), lambda b: (0, 0)),
            pl.BlockSpec((1, 3 * H), lambda b: (0, 0)),
            pl.BlockSpec((H, H), lambda b: (0, 0)),
            pl.BlockSpec((1, H), lambda b: (0, 0)),
            pl.BlockSpec((1, H), lambda b: (0, 0)),
            pl.BlockSpec((1, H), lambda b: (0, 0)),
        ],
        out_specs=pl.BlockSpec((1, S, H), lambda b: (b, 0, 0)),
        compiler_params=pltpu.CompilerParams(
            dimension_semantics=("parallel",), vmem_limit_bytes=VMEM_LIMIT),
    )(h3d, add_mask, qkv_w, qkv_b, ao_w, ao_b, ln_g, ln_b)


def ffn_block(h2d, w1, b1, w2, b2, ln_g, ln_b):
    M, H = h2d.shape
    inter = w1.shape[1]
    tm = min(TM, M)
    ti = min(TI, inter)
    assert M % tm == 0 and inter % ti == 0
    return pl.pallas_call(
        _ffn_block_kernel,
        out_shape=jax.ShapeDtypeStruct((M, H), jnp.bfloat16),
        grid=(M // tm, inter // ti),
        in_specs=[
            pl.BlockSpec((tm, H), lambda i, k: (i, 0)),
            pl.BlockSpec((H, ti), lambda i, k: (0, k)),
            pl.BlockSpec((1, ti), lambda i, k: (0, k)),
            pl.BlockSpec((ti, H), lambda i, k: (k, 0)),
            pl.BlockSpec((1, H), lambda i, k: (0, 0)),
            pl.BlockSpec((1, H), lambda i, k: (0, 0)),
            pl.BlockSpec((1, H), lambda i, k: (0, 0)),
        ],
        out_specs=pl.BlockSpec((tm, H), lambda i, k: (i, 0)),
        scratch_shapes=[pltpu.VMEM((tm, H), jnp.float32)],
        compiler_params=pltpu.CompilerParams(
            dimension_semantics=("parallel", "arbitrary"), vmem_limit_bytes=VMEM_LIMIT),
    )(h2d, w1, b1, w2, b2, ln_g, ln_b)


def pool_and_classify(cls_bf, pool_w, pool_b, fc_w_pad, fc_b_pad):
    B = cls_bf.shape[0]
    return pl.pallas_call(
        _pool_fc_kernel,
        out_shape=jax.ShapeDtypeStruct((B, FC_PAD), jnp.float32),
        compiler_params=pltpu.CompilerParams(vmem_limit_bytes=VMEM_LIMIT),
    )(cls_bf, pool_w, pool_b, fc_w_pad, fc_b_pad)


# ------------------------------ parameter setup ------------------------------
def init_params(key):
    def nrm(k, shape, scale=0.02):
        return scale * jax.random.normal(k, shape, dtype=jnp.float32)

    ks = jax.random.split(key, 16)
    return {
        "word_emb": nrm(ks[0], (VOCAB, EMB)),
        "pos_emb": nrm(ks[1], (MAX_POS, EMB)),
        "tok_emb": nrm(ks[2], (TYPE_VOCAB, EMB)),
        "emb_ln_g": jnp.ones((EMB,), jnp.float32),
        "emb_ln_b": jnp.zeros((EMB,), jnp.float32),
        "emb_proj_w": nrm(ks[3], (EMB, HIDDEN)),
        "emb_proj_b": jnp.zeros((HIDDEN,), jnp.float32),
        "q_w": nrm(ks[4], (HIDDEN, HIDDEN)), "q_b": jnp.zeros((HIDDEN,), jnp.float32),
        "k_w": nrm(ks[5], (HIDDEN, HIDDEN)), "k_b": jnp.zeros((HIDDEN,), jnp.float32),
        "v_w": nrm(ks[6], (HIDDEN, HIDDEN)), "v_b": jnp.zeros((HIDDEN,), jnp.float32),
        "ao_w": nrm(ks[7], (HIDDEN, HIDDEN)), "ao_b": jnp.zeros((HIDDEN,), jnp.float32),
        "attn_ln_g": jnp.ones((HIDDEN,), jnp.float32),
        "attn_ln_b": jnp.zeros((HIDDEN,), jnp.float32),
        "ffn_w": nrm(ks[8], (HIDDEN, INTERMEDIATE)),
        "ffn_b": jnp.zeros((INTERMEDIATE,), jnp.float32),
        "ffn_o_w": nrm(ks[9], (INTERMEDIATE, HIDDEN)),
        "ffn_o_b": jnp.zeros((HIDDEN,), jnp.float32),
        "ffn_ln_g": jnp.ones((HIDDEN,), jnp.float32),
        "ffn_ln_b": jnp.zeros((HIDDEN,), jnp.float32),
        "pool_w": nrm(ks[10], (HIDDEN, HIDDEN)),
        "pool_b": jnp.zeros((HIDDEN,), jnp.float32),
        "fc_w": nrm(ks[11], (HIDDEN, NUM_CLASS)),
        "fc_b": jnp.zeros((NUM_CLASS,), jnp.float32),
    }


def prepare_params(p):
    """One-time fusion / casting: fold 1/sqrt(dh) into q columns, concat QKV, pad fc to
    128 lanes, cast MXU weights to bf16, reshape biases/LN params to (1, N) rows."""
    scale = 1.0 / float(HEAD_DIM) ** 0.5
    qkv_w = jnp.concatenate([p["q_w"] * scale, p["k_w"], p["v_w"]], axis=1)
    qkv_b = jnp.concatenate([p["q_b"] * scale, p["k_b"], p["v_b"]], axis=0)
    fc_w = jnp.zeros((HIDDEN, FC_PAD), jnp.float32).at[:, :NUM_CLASS].set(p["fc_w"])
    fc_b = jnp.zeros((FC_PAD,), jnp.float32).at[:NUM_CLASS].set(p["fc_b"])
    return {
        "word_emb": p["word_emb"], "pos_emb": p["pos_emb"], "tok_emb": p["tok_emb"],
        "emb_ln_g": p["emb_ln_g"].reshape(1, -1), "emb_ln_b": p["emb_ln_b"].reshape(1, -1),
        "emb_proj_w": p["emb_proj_w"].astype(jnp.bfloat16),
        "emb_proj_b": p["emb_proj_b"].reshape(1, -1),
        "qkv_w": qkv_w.astype(jnp.bfloat16), "qkv_b": qkv_b.reshape(1, -1),
        "ao_w": p["ao_w"].astype(jnp.bfloat16), "ao_b": p["ao_b"].reshape(1, -1),
        "attn_ln_g": p["attn_ln_g"].reshape(1, -1), "attn_ln_b": p["attn_ln_b"].reshape(1, -1),
        "ffn_w": p["ffn_w"].astype(jnp.bfloat16), "ffn_b": p["ffn_b"].reshape(1, -1),
        "ffn_o_w": p["ffn_o_w"].astype(jnp.bfloat16), "ffn_o_b": p["ffn_o_b"].reshape(1, -1),
        "ffn_ln_g": p["ffn_ln_g"].reshape(1, -1), "ffn_ln_b": p["ffn_ln_b"].reshape(1, -1),
        "pool_w": p["pool_w"].astype(jnp.bfloat16), "pool_b": p["pool_b"].reshape(1, -1),
        "fc_w": fc_w.astype(jnp.bfloat16), "fc_b": fc_b.reshape(1, -1),
    }


# ------------------------------ forward pass ------------------------------
def albert_origin_xlarge_forward(fp, input_ids, segment_ids, input_mask):
    B, S = input_ids.shape

    # ---- embeddings (table gathers are plain-JAX glue) ----
    # TODO(synk): embedding gathers could be a scalar-prefetch DMA-gather kernel.
    emb = (
        jnp.take(fp["word_emb"], input_ids, axis=0)
        + fp["pos_emb"][:S][None, :, :]
        + jnp.take(fp["tok_emb"], segment_ids, axis=0)
    )  # (B, S, EMB) f32
    h2d = embed_project(
        emb.reshape(B * S, EMB).astype(jnp.bfloat16),
        fp["emb_ln_g"], fp["emb_ln_b"], fp["emb_proj_w"], fp["emb_proj_b"],
    )
    h = h2d.reshape(B, S, HIDDEN)

    # additive attention mask, built once, (B, 1, S)
    add_mask = ((1.0 - input_mask.astype(jnp.float32)) * -1e9).reshape(B, 1, S)

    # ---- shared transformer layer applied NUM_LAYERS times (2 fused kernels each) ----
    for _ in range(NUM_LAYERS):
        h = attention_block(
            h, add_mask, fp["qkv_w"], fp["qkv_b"], fp["ao_w"], fp["ao_b"],
            fp["attn_ln_g"], fp["attn_ln_b"],
        )
        h = ffn_block(
            h.reshape(B * S, HIDDEN),
            fp["ffn_w"], fp["ffn_b"], fp["ffn_o_w"], fp["ffn_o_b"],
            fp["ffn_ln_g"], fp["ffn_ln_b"],
        ).reshape(B, S, HIDDEN)

    # ---- pooler tanh + (eval-mode) Dropout + classifier, fused & lane-padded ----
    cls = h[:, 0, :]                                          # (B, HIDDEN) bf16
    logits_pad = pool_and_classify(cls, fp["pool_w"], fp["pool_b"], fp["fc_w"], fp["fc_b"])
    return logits_pad[:, :NUM_CLASS]


# ------------------------------ main ------------------------------
if __name__ == "__main__":
    key = jax.random.PRNGKey(0)
    k_param, k_ids, k_seg = jax.random.split(key, 3)

    params = prepare_params(init_params(k_param))

    input_ids = jax.random.randint(k_ids, (BATCH, SEQ), 0, VOCAB, dtype=jnp.int32)
    segment_ids = jax.random.randint(k_seg, (BATCH, SEQ), 0, TYPE_VOCAB, dtype=jnp.int32)
    input_mask = jnp.ones((BATCH, SEQ), dtype=jnp.int32)
    input_mask = input_mask.at[1, -16:].set(0)   # mask out last 16 positions of example 1

    fwd = jax.jit(albert_origin_xlarge_forward)
    logits = fwd(params, input_ids, segment_ids, input_mask)
    logits = jax.block_until_ready(logits)

    assert logits.shape == (BATCH, NUM_CLASS)
    assert bool(jnp.all(jnp.isfinite(logits)))
    print("KERNEL_OK")
</pallas_src>

<mosaic_0001>
module attributes {stable_mosaic.version = 11 : i64} {
  func.func @_embed_kernel(%arg0: i32, %arg1: memref<256x128xbf16, #tpu.memory_space<vmem>>, %arg2: memref<1x128xf32, #tpu.memory_space<vmem>>, %arg3: memref<1x128xf32, #tpu.memory_space<vmem>>, %arg4: memref<128x256xbf16, #tpu.memory_space<vmem>>, %arg5: memref<1x256xf32, #tpu.memory_space<vmem>>, %arg6: memref<256x256xbf16, #tpu.memory_space<vmem>>) attributes {dimension_semantics = [#tpu.dimension_semantics<parallel>], iteration_bounds = array<i64: 2>, scalar_prefetch = 0 : i64, scratch_operands = 0 : i64, tpu.core_type = #tpu.core_type<tc>, window_params = [{transform_indices = @transform_0, window_bounds = array<i64: 256, 128>}, {pipeline_mode = #tpu.pipeline_mode<synchronous>, transform_indices = @transform_1, window_bounds = array<i64: 1, 128>}, {pipeline_mode = #tpu.pipeline_mode<synchronous>, transform_indices = @transform_2, window_bounds = array<i64: 1, 128>}, {pipeline_mode = #tpu.pipeline_mode<synchronous>, transform_indices = @transform_3, window_bounds = array<i64: 128, 256>}, {pipeline_mode = #tpu.pipeline_mode<synchronous>, transform_indices = @transform_4, window_bounds = array<i64: 1, 256>}, {transform_indices = @transform_5, window_bounds = array<i64: 256, 256>}]} {
    %c0 = arith.constant 0 : index
    %c0_0 = arith.constant 0 : index
    %0 = vector.load %arg1[%c0, %c0_0] : memref<256x128xbf16, #tpu.memory_space<vmem>>, vector<256x128xbf16>
    %1 = arith.extf %0 : vector<256x128xbf16> to vector<256x128xf32>
    %c0_1 = arith.constant 0 : index
    %c0_2 = arith.constant 0 : index
    %2 = vector.load %arg2[%c0_1, %c0_2] : memref<1x128xf32, #tpu.memory_space<vmem>>, vector<1x128xf32>
    %c0_3 = arith.constant 0 : index
    %c0_4 = arith.constant 0 : index
    %3 = vector.load %arg3[%c0_3, %c0_4] : memref<1x128xf32, #tpu.memory_space<vmem>>, vector<1x128xf32>
    %cst = arith.constant dense<0.000000e+00> : vector<256xf32>
    %4 = vector.multi_reduction <add>, %1, %cst [1] : vector<256x128xf32> to vector<256xf32>
    %5 = vector.shape_cast %4 : vector<256xf32> to vector<256x1xf32>
    %cst_5 = arith.constant 1.280000e+02 : f32
    %6 = vector.broadcast %cst_5 : f32 to vector<256x1xf32>
    %7 = arith.divf %5, %6 : vector<256x1xf32>
    %8 = vector.broadcast %7 : vector<256x1xf32> to vector<256x128xf32>
    %9 = arith.subf %1, %8 : vector<256x128xf32>
    %10 = vector.broadcast %7 : vector<256x1xf32> to vector<256x128xf32>
    %11 = arith.subf %1, %10 : vector<256x128xf32>
    %12 = arith.mulf %9, %11 : vector<256x128xf32>
    %cst_6 = arith.constant dense<0.000000e+00> : vector<256xf32>
    %13 = vector.multi_reduction <add>, %12, %cst_6 [1] : vector<256x128xf32> to vector<256xf32>
    %14 = vector.shape_cast %13 : vector<256xf32> to vector<256x1xf32>
    %cst_7 = arith.constant 1.280000e+02 : f32
    %15 = vector.broadcast %cst_7 : f32 to vector<256x1xf32>
    %16 = arith.divf %14, %15 : vector<256x1xf32>
    %17 = vector.broadcast %7 : vector<256x1xf32> to vector<256x128xf32>
    %18 = arith.subf %1, %17 : vector<256x128xf32>
    %cst_8 = arith.constant 9.99999996E-13 : f32
    %19 = vector.broadcast %cst_8 : f32 to vector<256x1xf32>
    %20 = arith.addf %16, %19 : vector<256x1xf32>
    %21 = math.rsqrt %20 : vector<256x1xf32>
    %22 = vector.broadcast %21 : vector<256x1xf32> to vector<256x128xf32>
    %23 = arith.mulf %18, %22 : vector<256x128xf32>
    %24 = vector.broadcast %2 : vector<1x128xf32> to vector<256x128xf32>
    %25 = arith.mulf %23, %24 : vector<256x128xf32>
    %26 = vector.broadcast %3 : vector<1x128xf32> to vector<256x128xf32>
    %27 = arith.addf %25, %26 : vector<256x128xf32>
    %28 = arith.truncf %27 : vector<256x128xf32> to vector<256x128xbf16>
    %c0_9 = arith.constant 0 : index
    %c0_10 = arith.constant 0 : index
    %29 = vector.load %arg4[%c0_9, %c0_10] : memref<128x256xbf16, #tpu.memory_space<vmem>>, vector<128x256xbf16>
    %cst_11 = arith.constant dense<0.000000e+00> : vector<256x256xf32>
    %30 = tpu.matmul %28, %29, %cst_11 {dimension_numbers = #tpu.dot_dimension_numbers<[1], [0], [0], [1], [0, 0, 1, 1], [], []>} : vector<256x128xbf16>, vector<128x256xbf16>, vector<256x256xf32> -> vector<256x256xf32>
    %c0_12 = arith.constant 0 : index
    %c0_13 = arith.constant 0 : index
    %31 = vector.load %arg5[%c0_12, %c0_13] : memref<1x256xf32, #tpu.memory_space<vmem>>, vector<1x256xf32>
    %32 = vector.broadcast %31 : vector<1x256xf32> to vector<256x256xf32>
    %33 = arith.addf %30, %32 : vector<256x256xf32>
    %34 = arith.truncf %33 : vector<256x256xf32> to vector<256x256xbf16>
    %c0_14 = arith.constant 0 : index
    %c0_15 = arith.constant 0 : index
    %35 = vector.load %arg6[%c0_14, %c0_15] : memref<256x256xbf16, #tpu.memory_space<vmem>>, vector<256x256xbf16>
    tpu.vector_store %arg6[%c0_14, %c0_15], %34 {strides = array<i32>} : memref<256x256xbf16, #tpu.memory_space<vmem>>, vector<256x256xbf16>,
    return
  }
  func.func @transform_0(%arg0: i32) -> (i32, i32) {
    %c0_i32 = arith.constant 0 : i32
    %c0_i32_0 = arith.constant 0 : i32
    return %arg0, %c0_i32 : i32, i32
  }
  func.func @transform_1(%arg0: i32) -> (i32, i32) {
    %c0_i32 = arith.constant 0 : i32
    %c0_i32_0 = arith.constant 0 : i32
    %c0_i32_1 = arith.constant 0 : i32
    return %c0_i32, %c0_i32_0 : i32, i32
  }
  func.func @transform_2(%arg0: i32) -> (i32, i32) {
    %c0_i32 = arith.constant 0 : i32
    %c0_i32_0 = arith.constant 0 : i32
    %c0_i32_1 = arith.constant 0 : i32
    return %c0_i32, %c0_i32_0 : i32, i32
  }
  func.func @transform_3(%arg0: i32) -> (i32, i32) {
    %c0_i32 = arith.constant 0 : i32
    %c0_i32_0 = arith.constant 0 : i32
    %c0_i32_1 = arith.constant 0 : i32
    return %c0_i32, %c0_i32_0 : i32, i32
  }
  func.func @transform_4(%arg0: i32) -> (i32, i32) {
    %c0_i32 = arith.constant 0 : i32
    %c0_i32_0 = arith.constant 0 : i32
    %c0_i32_1 = arith.constant 0 : i32
    return %c0_i32, %c0_i32_0 : i32, i32
  }
  func.func @transform_5(%arg0: i32) -> (i32, i32) {
    %c0_i32 = arith.constant 0 : i32
    %c0_i32_0 = arith.constant 0 : i32
    return %arg0, %c0_i32 : i32, i32
  }
}

module attributes {stable_mosaic.version = 11 : i64} {
  func.func @_attn_block_kernel(%arg0: i32, %arg1: memref<1x128x256xbf16, #tpu.memory_space<vmem>>, %arg2: memref<1x1x128xf32, #tpu.memory_space<vmem>>, %arg3: memref<256x768xbf16, #tpu.memory_space<vmem>>, %arg4: memref<1x768xf32, #tpu.memory_space<vmem>>, %arg5: memref<256x256xbf16, #tpu.memory_space<vmem>>, %arg6: memref<1x256xf32, #tpu.memory_space<vmem>>, %arg7: memref<1x256xf32, #tpu.memory_space<vmem>>, %arg8: memref<1x256xf32, #tpu.memory_space<vmem>>, %arg9: memref<1x128x256xbf16, #tpu.memory_space<vmem>>) attributes {dimension_semantics = [#tpu.dimension_semantics<parallel>], iteration_bounds = array<i64: 4>, scalar_prefetch = 0 : i64, scratch_operands = 0 : i64, tpu.core_type = #tpu.core_type<tc>, window_params = [{transform_indices = @transform_0, window_bounds = array<i64: 1, 128, 256>}, {transform_indices = @transform_1, window_bounds = array<i64: 1, 1, 128>}, {pipeline_mode = #tpu.pipeline_mode<synchronous>, transform_indices = @transform_2, window_bounds = array<i64: 256, 768>}, {pipeline_mode = #tpu.pipeline_mode<synchronous>, transform_indices = @transform_3, window_bounds = array<i64: 1, 768>}, {pipeline_mode = #tpu.pipeline_mode<synchronous>, transform_indices = @transform_4, window_bounds = array<i64: 256, 256>}, {pipeline_mode = #tpu.pipeline_mode<synchronous>, transform_indices = @transform_5, window_bounds = array<i64: 1, 256>}, {pipeline_mode = #tpu.pipeline_mode<synchronous>, transform_indices = @transform_6, window_bounds = array<i64: 1, 256>}, {pipeline_mode = #tpu.pipeline_mode<synchronous>, transform_indices = @transform_7, window_bounds = array<i64: 1, 256>}, {transform_indices = @transform_8, window_bounds = array<i64: 1, 128, 256>}]} {
    %c0 = arith.constant 0 : index
    %c0_0 = arith.constant 0 : index
    %c0_1 = arith.constant 0 : index
    %0 = vector.load %arg1[%c0, %c0_0, %c0_1] : memref<1x128x256xbf16, #tpu.memory_space<vmem>>, vector<1x128x256xbf16>
    %1 = vector.shape_cast %0 : vector<1x128x256xbf16> to vector<128x256xbf16>
    %c0_2 = arith.constant 0 : index
    %c0_3 = arith.constant 0 : index
    %2 = vector.load %arg3[%c0_2, %c0_3] : memref<256x768xbf16, #tpu.memory_space<vmem>>, vector<256x768xbf16>
    %cst = arith.constant dense<0.000000e+00> : vector<128x768xf32>
    %3 = tpu.matmul %1, %2, %cst {dimension_numbers = #tpu.dot_dimension_numbers<[1], [0], [0], [1], [0, 0, 1, 1], [], []>} : vector<128x256xbf16>, vector<256x768xbf16>, vector<128x768xf32> -> vector<128x768xf32>
    %c0_4 = arith.constant 0 : index
    %c0_5 = arith.constant 0 : index
    %4 = vector.load %arg4[%c0_4, %c0_5] : memref<1x768xf32, #tpu.memory_space<vmem>>, vector<1x768xf32>
    %5 = vector.broadcast %4 : vector<1x768xf32> to vector<128x768xf32>
    %6 = arith.addf %3, %5 : vector<128x768xf32>
    %7 = arith.truncf %6 : vector<128x768xf32> to vector<128x768xbf16>
    %c0_6 = arith.constant 0 : index
    %c0_7 = arith.constant 0 : index
    %c0_8 = arith.constant 0 : index
    %8 = vector.load %arg2[%c0_6, %c0_7, %c0_8] : memref<1x1x128xf32, #tpu.memory_space<vmem>>, vector<1x1x128xf32>
    %9 = vector.shape_cast %8 : vector<1x1x128xf32> to vector<1x128xf32>
    %10 = vector.extract_strided_slice %7 {offsets = [0, 0], sizes = [128, 128], strides = [1, 1]} : vector<128x768xbf16> to vector<128x128xbf16>
    %11 = vector.extract_strided_slice %7 {offsets = [0, 256], sizes = [128, 128], strides = [1, 1]} : vector<128x768xbf16> to vector<128x128xbf16>
    %12 = vector.extract_strided_slice %7 {offsets = [0, 512], sizes = [128, 128], strides = [1, 1]} : vector<128x768xbf16> to vector<128x128xbf16>
    %cst_9 = arith.constant dense<0.000000e+00> : vector<128x128xf32>
    %13 = tpu.matmul %10, %11, %cst_9 {dimension_numbers = #tpu.dot_dimension_numbers<[1], [1], [0], [0], [0, 0, 1, 0], [], []>} : vector<128x128xbf16>, vector<128x128xbf16>, vector<128x128xf32> -> vector<128x128xf32>
    %14 = vector.broadcast %9 : vector<1x128xf32> to vector<128x128xf32>
    %15 = arith.addf %13, %14 : vector<128x128xf32>
    %cst_10 = arith.constant dense<0xFF800000> : vector<128xf32>
    %16 = vector.multi_reduction <maximumf>, %15, %cst_10 [1] : vector<128x128xf32> to vector<128xf32>
    %17 = vector.shape_cast %16 : vector<128xf32> to vector<128x1xf32>
    %18 = vector.broadcast %17 : vector<128x1xf32> to vector<128x128xf32>
    %19 = arith.subf %15, %18 : vector<128x128xf32>
    %20 = math.exp %19 : vector<128x128xf32>
    %cst_11 = arith.constant dense<0.000000e+00> : vector<128xf32>
    %21 = vector.multi_reduction <add>, %20, %cst_11 [1] : vector<128x128xf32> to vector<128xf32>
    %22 = vector.shape_cast %21 : vector<128xf32> to vector<128x1xf32>
    %23 = tpu.reciprocal %22 {approx = true} : vector<128x1xf32> -> vector<128x1xf32>
    %24 = vector.broadcast %23 : vector<128x1xf32> to vector<128x128xf32>
    %25 = arith.mulf %20, %24 : vector<128x128xf32>
    %26 = arith.truncf %25 : vector<128x128xf32> to vector<128x128xbf16>
    %cst_12 = arith.constant dense<0.000000e+00> : vector<128x128xf32>
    %27 = tpu.matmul %26, %12, %cst_12 {dimension_numbers = #tpu.dot_dimension_numbers<[1], [0], [0], [1], [0, 0, 1, 1], [], []>} : vector<128x128xbf16>, vector<128x128xbf16>, vector<128x128xf32> -> vector<128x128xf32>
    %28 = arith.truncf %27 : vector<128x128xf32> to vector<128x128xbf16>
    %29 = vector.extract_strided_slice %7 {offsets = [0, 128], sizes = [128, 128], strides = [1, 1]} : vector<128x768xbf16> to vector<128x128xbf16>
    %30 = vector.extract_strided_slice %7 {offsets = [0, 384], sizes = [128, 128], strides = [1, 1]} : vector<128x768xbf16> to vector<128x128xbf16>
    %31 = vector.extract_strided_slice %7 {offsets = [0, 640], sizes = [128, 128], strides = [1, 1]} : vector<128x768xbf16> to vector<128x128xbf16>
    %cst_13 = arith.constant dense<0.000000e+00> : vector<128x128xf32>
    %32 = tpu.matmul %29, %30, %cst_13 {dimension_numbers = #tpu.dot_dimension_numbers<[1], [1], [0], [0], [0, 0, 1, 0], [], []>} : vector<128x128xbf16>, vector<128x128xbf16>, vector<128x128xf32> -> vector<128x128xf32>
    %33 = vector.broadcast %9 : vector<1x128xf32> to vector<128x128xf32>
    %34 = arith.addf %32, %33 : vector<128x128xf32>
    %cst_14 = arith.constant dense<0xFF800000> : vector<128xf32>
    %35 = vector.multi_reduction <maximumf>, %34, %cst_14 [1] : vector<128x128xf32> to vector<128xf32>
    %36 = vector.shape_cast %35 : vector<128xf32> to vector<128x1xf32>
    %37 = vector.broadcast %36 : vector<128x1xf32> to vector<128x128xf32>
    %38 = arith.subf %34, %37 : vector<128x128xf32>
    %39 = math.exp %38 : vector<128x128xf32>
    %cst_15 = arith.constant dense<0.000000e+00> : vector<128xf32>
    %40 = vector.multi_reduction <add>, %39, %cst_15 [1] : vector<128x128xf32> to vector<128xf32>
    %41 = vector.shape_cast %40 : vector<128xf32> to vector<128x1xf32>
    %42 = tpu.reciprocal %41 {approx = true} : vector<128x1xf32> -> vector<128x1xf32>
    %43 = vector.broadcast %42 : vector<128x1xf32> to vector<128x128xf32>
    %44 = arith.mulf %39, %43 : vector<128x128xf32>
    %45 = arith.truncf %44 : vector<128x128xf32> to vector<128x128xbf16>
    %cst_16 = arith.constant dense<0.000000e+00> : vector<128x128xf32>
    %46 = tpu.matmul %45, %31, %cst_16 {dimension_numbers = #tpu.dot_dimension_numbers<[1], [0], [0], [1], [0, 0, 1, 1], [], []>} : vector<128x128xbf16>, vector<128x128xbf16>, vector<128x128xf32> -> vector<128x128xf32>
    %47 = arith.truncf %46 : vector<128x128xf32> to vector<128x128xbf16>
    %48 = tpu.concatenate %28, %47 in 1 : vector<128x128xbf16>, vector<128x128xbf16> -> vector<128x256xbf16>
    %c0_17 = arith.constant 0 : index
    %c0_18 = arith.constant 0 : index
    %49 = vector.load %arg5[%c0_17, %c0_18] : memref<256x256xbf16, #tpu.memory_space<vmem>>, vector<256x256xbf16>
    %cst_19 = arith.constant dense<0.000000e+00> : vector<128x256xf32>
    %50 = tpu.matmul %48, %49, %cst_19 {dimension_numbers = #tpu.dot_dimension_numbers<[1], [0], [0], [1], [0, 0, 1, 1], [], []>} : vector<128x256xbf16>, vector<256x256xbf16>, vector<128x256xf32> -> vector<128x256xf32>
    %c0_20 = arith.constant 0 : index
    %c0_21 = arith.constant 0 : index
    %51 = vector.load %arg6[%c0_20, %c0_21] : memref<1x256xf32, #tpu.memory_space<vmem>>, vector<1x256xf32>
    %52 = vector.broadcast %51 : vector<1x256xf32> to vector<128x256xf32>
    %53 = arith.addf %50, %52 : vector<128x256xf32>
    %54 = arith.extf %1 : vector<128x256xbf16> to vector<128x256xf32>
    %55 = arith.addf %53, %54 : vector<128x256xf32>
    %c0_22 = arith.constant 0 : index
    %c0_23 = arith.constant 0 : index
    %56 = vector.load %arg7[%c0_22, %c0_23] : memref<1x256xf32, #tpu.memory_space<vmem>>, vector<1x256xf32>
    %c0_24 = arith.constant 0 : index
    %c0_25 = arith.constant 0 : index
    %57 = vector.load %arg8[%c0_24, %c0_25] : memref<1x256xf32, #tpu.memory_space<vmem>>, vector<1x256xf32>
    %cst_26 = arith.constant dense<0.000000e+00> : vector<128xf32>
    %58 = vector.multi_reduction <add>, %55, %cst_26 [1] : vector<128x256xf32> to vector<128xf32>
    %59 = vector.shape_cast %58 : vector<128xf32> to vector<128x1xf32>
    %cst_27 = arith.constant 2.560000e+02 : f32
    %60 = vector.broadcast %cst_27 : f32 to vector<128x1xf32>
    %61 = arith.divf %59, %60 : vector<128x1xf32>
    %62 = vector.broadcast %61 : vector<128x1xf32> to vector<128x256xf32>
    %63 = arith.subf %55, %62 : vector<128x256xf32>
    %64 = vector.broadcast %61 : vector<128x1xf32> to vector<128x256xf32>
    %65 = arith.subf %55, %64 : vector<128x256xf32>
    %66 = arith.mulf %63, %65 : vector<128x256xf32>
    %cst_28 = arith.constant dense<0.000000e+00> : vector<128xf32>
    %67 = vector.multi_reduction <add>, %66, %cst_28 [1] : vector<128x256xf32> to vector<128xf32>
    %68 = vector.shape_cast %67 : vector<128xf32> to vector<128x1xf32>
    %cst_29 = arith.constant 2.560000e+02 : f32
    %69 = vector.broadcast %cst_29 : f32 to vector<128x1xf32>
    %70 = arith.divf %68, %69 : vector<128x1xf32>
    %71 = vector.broadcast %61 : vector<128x1xf32> to vector<128x256xf32>
    %72 = arith.subf %55, %71 : vector<128x256xf32>
    %cst_30 = arith.constant 9.99999996E-13 : f32
    %73 = vector.broadcast %cst_30 : f32 to vector<128x1xf32>
    %74 = arith.addf %70, %73 : vector<128x1xf32>
    %75 = math.rsqrt %74 : vector<128x1xf32>
    %76 = vector.broadcast %75 : vector<128x1xf32> to vector<128x256xf32>
    %77 = arith.mulf %72, %76 : vector<128x256xf32>
    %78 = vector.broadcast %56 : vector<1x256xf32> to vector<128x256xf32>
    %79 = arith.mulf %77, %78 : vector<128x256xf32>
    %80 = vector.broadcast %57 : vector<1x256xf32> to vector<128x256xf32>
    %81 = arith.addf %79, %80 : vector<128x256xf32>
    %82 = arith.truncf %81 : vector<128x256xf32> to vector<128x256xbf16>
    %c0_31 = arith.constant 0 : index
    %c0_32 = arith.constant 0 : index
    %c0_33 = arith.constant 0 : index
    %83 = vector.load %arg9[%c0_31, %c0_32, %c0_33] : memref<1x128x256xbf16, #tpu.memory_space<vmem>>, vector<1x128x256xbf16>
    %84 = vector.shape_cast %83 : vector<1x128x256xbf16> to vector<128x256xbf16>
    %85 = vector.shape_cast %82 : vector<128x256xbf16> to vector<1x128x256xbf16>
    tpu.vector_store %arg9[%c0_31, %c0_32, %c0_33], %85 {strides = array<i32>} : memref<1x128x256xbf16, #tpu.memory_space<vmem>>, vector<1x128x256xbf16>,
    return
  }
  func.func @transform_0(%arg0: i32) -> (i32, i32, i32) {
    %c0_i32 = arith.constant 0 : i32
    %c0_i32_0 = arith.constant 0 : i32
    %c0_i32_1 = arith.constant 0 : i32
    return %arg0, %c0_i32, %c0_i32_0 : i32, i32, i32
  }
  func.func @transform_1(%arg0: i32) -> (i32, i32, i32) {
    %c0_i32 = arith.constant 0 : i32
    %c0_i32_0 = arith.constant 0 : i32
    %c0_i32_1 = arith.constant 0 : i32
    return %arg0, %c0_i32, %c0_i32_0 : i32, i32, i32
  }
  func.func @transform_2(%arg0: i32) -> (i32, i32) {
    %c0_i32 = arith.constant 0 : i32
    %c0_i32_0 = arith.constant 0 : i32
    %c0_i32_1 = arith.constant 0 : i32
    return %c0_i32, %c0_i32_0 : i32, i32
  }
  func.func @transform_3(%arg0: i32) -> (i32, i32) {
    %c0_i32 = arith.constant 0 : i32
    %c0_i32_0 = arith.constant 0 : i32
    %c0_i32_1 = arith.constant 0 : i32
    return %c0_i32, %c0_i32_0 : i32, i32
  }
  func.func @transform_4(%arg0: i32) -> (i32, i32) {
    %c0_i32 = arith.constant 0 : i32
    %c0_i32_0 = arith.constant 0 : i32
    %c0_i32_1 = arith.constant 0 : i32
    return %c0_i32, %c0_i32_0 : i32, i32
  }
  func.func @transform_5(%arg0: i32) -> (i32, i32) {
    %c0_i32 = arith.constant 0 : i32
    %c0_i32_0 = arith.constant 0 : i32
    %c0_i32_1 = arith.constant 0 : i32
    return %c0_i32, %c0_i32_0 : i32, i32
  }
  func.func @transform_6(%arg0: i32) -> (i32, i32) {
    %c0_i32 = arith.constant 0 : i32
    %c0_i32_0 = arith.constant 0 : i32
    %c0_i32_1 = arith.constant 0 : i32
    return %c0_i32, %c0_i32_0 : i32, i32
  }
  func.func @transform_7(%arg0: i32) -> (i32, i32) {
    %c0_i32 = arith.constant 0 : i32
    %c0_i32_0 = arith.constant 0 : i32
    %c0_i32_1 = arith.constant 0 : i32
    return %c0_i32, %c0_i32_0 : i32, i32
  }
  func.func @transform_8(%arg0: i32) -> (i32, i32, i32) {
    %c0_i32 = arith.constant 0 : i32
    %c0_i32_0 = arith.constant 0 : i32
    %c0_i32_1 = arith.constant 0 : i32
    return %arg0, %c0_i32, %c0_i32_0 : i32, i32, i32
  }
}

module attributes {stable_mosaic.version = 11 : i64} {
  func.func @_ffn_block_kernel(%arg0: i32, %arg1: i32, %arg2: memref<256x256xbf16, #tpu.memory_space<vmem>>, %arg3: memref<256x512xbf16, #tpu.memory_space<vmem>>, %arg4: memref<1x512xf32, #tpu.memory_space<vmem>>, %arg5: memref<512x256xbf16, #tpu.memory_space<vmem>>, %arg6: memref<1x256xf32, #tpu.memory_space<vmem>>, %arg7: memref<1x256xf32, #tpu.memory_space<vmem>>, %arg8: memref<1x256xf32, #tpu.memory_space<vmem>>, %arg9: memref<256x256xbf16, #tpu.memory_space<vmem>>, %arg10: memref<256x256xf32, #tpu.memory_space<vmem>>) attributes {dimension_semantics = [#tpu.dimension_semantics<parallel>, #tpu.dimension_semantics<arbitrary>], iteration_bounds = array<i64: 2, 2>, scalar_prefetch = 0 : i64, scratch_operands = 1 : i64, tpu.core_type = #tpu.core_type<tc>, window_params = [{transform_indices = @transform_0, window_bounds = array<i64: 256, 256>}, {transform_indices = @transform_1, window_bounds = array<i64: 256, 512>}, {transform_indices = @transform_2, window_bounds = array<i64: 1, 512>}, {transform_indices = @transform_3, window_bounds = array<i64: 512, 256>}, {pipeline_mode = #tpu.pipeline_mode<synchronous>, transform_indices = @transform_4, window_bounds = array<i64: 1, 256>}, {pipeline_mode = #tpu.pipeline_mode<synchronous>, transform_indices = @transform_5, window_bounds = array<i64: 1, 256>}, {pipeline_mode = #tpu.pipeline_mode<synchronous>, transform_indices = @transform_6, window_bounds = array<i64: 1, 256>}, {transform_indices = @transform_7, window_bounds = array<i64: 256, 256>}]} {
    %c0_i32 = arith.constant 0 : i32
    %0 = arith.cmpi eq, %arg1, %c0_i32 : i32
    %1 = arith.extui %0 : i1 to i32
    %c0_i32_0 = arith.constant 0 : i32
    %2 = arith.cmpi ne, %1, %c0_i32_0 : i32
    scf.if %2 {
      %cst_18 = arith.constant 0.000000e+00 : f32
      %31 = vector.broadcast %cst_18 : f32 to vector<256x256xf32>
      %c0_19 = arith.constant 0 : index
      %c0_20 = arith.constant 0 : index
      %32 = vector.load %arg10[%c0_19, %c0_20] : memref<256x256xf32, #tpu.memory_space<vmem>>, vector<256x256xf32>
      tpu.vector_store %arg10[%c0_19, %c0_20], %31 {strides = array<i32>} : memref<256x256xf32, #tpu.memory_space<vmem>>, vector<256x256xf32>,
    } else {
    }
    %c0 = arith.constant 0 : index
    %c0_1 = arith.constant 0 : index
    %3 = vector.load %arg2[%c0, %c0_1] : memref<256x256xbf16, #tpu.memory_space<vmem>>, vector<256x256xbf16>
    %c0_2 = arith.constant 0 : index
    %c0_3 = arith.constant 0 : index
    %4 = vector.load %arg3[%c0_2, %c0_3] : memref<256x512xbf16, #tpu.memory_space<vmem>>, vector<256x512xbf16>
    %cst = arith.constant dense<0.000000e+00> : vector<256x512xf32>
    %5 = tpu.matmul %3, %4, %cst {dimension_numbers = #tpu.dot_dimension_numbers<[1], [0], [0], [1], [0, 0, 1, 1], [], []>} : vector<256x256xbf16>, vector<256x512xbf16>, vector<256x512xf32> -> vector<256x512xf32>
    %c0_4 = arith.constant 0 : index
    %c0_5 = arith.constant 0 : index
    %6 = vector.load %arg4[%c0_4, %c0_5] : memref<1x512xf32, #tpu.memory_space<vmem>>, vector<1x512xf32>
    %7 = vector.broadcast %6 : vector<1x512xf32> to vector<256x512xf32>
    %8 = arith.addf %5, %7 : vector<256x512xf32>
    %cst_6 = arith.constant 5.000000e-01 : f32
    %9 = vector.broadcast %cst_6 : f32 to vector<256x512xf32>
    %10 = arith.mulf %9, %8 : vector<256x512xf32>
    %cst_7 = arith.constant 4.471500e-02 : f32
    %11 = vector.broadcast %cst_7 : f32 to vector<256x512xf32>
    %12 = arith.mulf %11, %8 : vector<256x512xf32>
    %13 = arith.mulf %12, %8 : vector<256x512xf32>
    %14 = arith.mulf %13, %8 : vector<256x512xf32>
    %15 = arith.addf %8, %14 : vector<256x512xf32>
    %cst_8 = arith.constant 0.797884583 : f32
    %16 = vector.broadcast %cst_8 : f32 to vector<256x512xf32>
    %17 = arith.mulf %16, %15 : vector<256x512xf32>
    %18 = math.tanh %17 : vector<256x512xf32>
    %cst_9 = arith.constant 1.000000e+00 : f32
    %19 = vector.broadcast %cst_9 : f32 to vector<256x512xf32>
    %20 = arith.addf %19, %18 : vector<256x512xf32>
    %21 = arith.mulf %10, %20 : vector<256x512xf32>
    %c0_10 = arith.constant 0 : index
    %c0_11 = arith.constant 0 : index
    %22 = vector.load %arg10[%c0_10, %c0_11] : memref<256x256xf32, #tpu.memory_space<vmem>>, vector<256x256xf32>
    %23 = arith.truncf %21 : vector<256x512xf32> to vector<256x512xbf16>
    %c0_12 = arith.constant 0 : index
    %c0_13 = arith.constant 0 : index
    %24 = vector.load %arg5[%c0_12, %c0_13] : memref<512x256xbf16, #tpu.memory_space<vmem>>, vector<512x256xbf16>
    %cst_14 = arith.constant dense<0.000000e+00> : vector<256x256xf32>
    %25 = tpu.matmul %23, %24, %cst_14 {dimension_numbers = #tpu.dot_dimension_numbers<[1], [0], [0], [1], [0, 0, 1, 1], [], []>} : vector<256x512xbf16>, vector<512x256xbf16>, vector<256x256xf32> -> vector<256x256xf32>
    %26 = arith.addf %22, %25 : vector<256x256xf32>
    %c0_15 = arith.constant 0 : index
    %c0_16 = arith.constant 0 : index
    %27 = vector.load %arg10[%c0_15, %c0_16] : memref<256x256xf32, #tpu.memory_space<vmem>>, vector<256x256xf32>
    tpu.vector_store %arg10[%c0_15, %c0_16], %26 {strides = array<i32>} : memref<256x256xf32, #tpu.memory_space<vmem>>, vector<256x256xf32>,
    %c1_i32 = arith.constant 1 : i32
    %28 = arith.cmpi eq, %arg1, %c1_i32 : i32
    %29 = arith.extui %28 : i1 to i32
    %c0_i32_17 = arith.constant 0 : i32
    %30 = arith.cmpi ne, %29, %c0_i32_17 : i32
    scf.if %30 {
      %c0_18 = arith.constant 0 : index
      %c0_19 = arith.constant 0 : index
      %31 = vector.load %arg10[%c0_18, %c0_19] : memref<256x256xf32, #tpu.memory_space<vmem>>, vector<256x256xf32>
      %c0_20 = arith.constant 0 : index
      %c0_21 = arith.constant 0 : index
      %32 = vector.load %arg6[%c0_20, %c0_21] : memref<1x256xf32, #tpu.memory_space<vmem>>, vector<1x256xf32>
      %33 = vector.broadcast %32 : vector<1x256xf32> to vector<256x256xf32>
      %34 = arith.addf %31, %33 : vector<256x256xf32>
      %35 = arith.extf %3 : vector<256x256xbf16> to vector<256x256xf32>
      %36 = arith.addf %34, %35 : vector<256x256xf32>
      %c0_22 = arith.constant 0 : index
      %c0_23 = arith.constant 0 : index
      %37 = vector.load %arg7[%c0_22, %c0_23] : memref<1x256xf32, #tpu.memory_space<vmem>>, vector<1x256xf32>
      %c0_24 = arith.constant 0 : index
      %c0_25 = arith.constant 0 : index
      %38 = vector.load %arg8[%c0_24, %c0_25] : memref<1x256xf32, #tpu.memory_space<vmem>>, vector<1x256xf32>
      %cst_26 = arith.constant dense<0.000000e+00> : vector<256xf32>
      %39 = vector.multi_reduction <add>, %36, %cst_26 [1] : vector<256x256xf32> to vector<256xf32>
      %40 = vector.shape_cast %39 : vector<256xf32> to vector<256x1xf32>
      %cst_27 = arith.constant 2.560000e+02 : f32
      %41 = vector.broadcast %cst_27 : f32 to vector<256x1xf32>
      %42 = arith.divf %40, %41 : vector<256x1xf32>
      %43 = vector.broadcast %42 : vector<256x1xf32> to vector<256x256xf32>
      %44 = arith.subf %36, %43 : vector<256x256xf32>
      %45 = vector.broadcast %42 : vector<256x1xf32> to vector<256x256xf32>
      %46 = arith.subf %36, %45 : vector<256x256xf32>
      %47 = arith.mulf %44, %46 : vector<256x256xf32>
      %cst_28 = arith.constant dense<0.000000e+00> : vector<256xf32>
      %48 = vector.multi_reduction <add>, %47, %cst_28 [1] : vector<256x256xf32> to vector<256xf32>
      %49 = vector.shape_cast %48 : vector<256xf32> to vector<256x1xf32>
      %cst_29 = arith.constant 2.560000e+02 : f32
      %50 = vector.broadcast %cst_29 : f32 to vector<256x1xf32>
      %51 = arith.divf %49, %50 : vector<256x1xf32>
      %52 = vector.broadcast %42 : vector<256x1xf32> to vector<256x256xf32>
      %53 = arith.subf %36, %52 : vector<256x256xf32>
      %cst_30 = arith.constant 9.99999996E-13 : f32
      %54 = vector.broadcast %cst_30 : f32 to vector<256x1xf32>
      %55 = arith.addf %51, %54 : vector<256x1xf32>
      %56 = math.rsqrt %55 : vector<256x1xf32>
      %57 = vector.broadcast %56 : vector<256x1xf32> to vector<256x256xf32>
      %58 = arith.mulf %53, %57 : vector<256x256xf32>
      %59 = vector.broadcast %37 : vector<1x256xf32> to vector<256x256xf32>
      %60 = arith.mulf %58, %59 : vector<256x256xf32>
      %61 = vector.broadcast %38 : vector<1x256xf32> to vector<256x256xf32>
      %62 = arith.addf %60, %61 : vector<256x256xf32>
      %63 = arith.truncf %62 : vector<256x256xf32> to vector<256x256xbf16>
      %c0_31 = arith.constant 0 : index
      %c0_32 = arith.constant 0 : index
      %64 = vector.load %arg9[%c0_31, %c0_32] : memref<256x256xbf16, #tpu.memory_space<vmem>>, vector<256x256xbf16>
      tpu.vector_store %arg9[%c0_31, %c0_32], %63 {strides = array<i32>} : memref<256x256xbf16, #tpu.memory_space<vmem>>, vector<256x256xbf16>,
    } else {
    }
    return
  }
  func.func @transform_0(%arg0: i32, %arg1: i32) -> (i32, i32) {
    %c0_i32 = arith.constant 0 : i32
    %c0_i32_0 = arith.constant 0 : i32
    return %arg0, %c0_i32 : i32, i32
  }
  func.func @transform_1(%arg0: i32, %arg1: i32) -> (i32, i32) {
    %c0_i32 = arith.constant 0 : i32
    %c0_i32_0 = arith.constant 0 : i32
    return %c0_i32, %arg1 : i32, i32
  }
  func.func @transform_2(%arg0: i32, %arg1: i32) -> (i32, i32) {
    %c0_i32 = arith.constant 0 : i32
    %c0_i32_0 = arith.constant 0 : i32
    return %c0_i32, %arg1 : i32, i32
  }
  func.func @transform_3(%arg0: i32, %arg1: i32) -> (i32, i32) {
    %c0_i32 = arith.constant 0 : i32
    %c0_i32_0 = arith.constant 0 : i32
    return %arg1, %c0_i32 : i32, i32
  }
  func.func @transform_4(%arg0: i32, %arg1: i32) -> (i32, i32) {
    %c0_i32 = arith.constant 0 : i32
    %c0_i32_0 = arith.constant 0 : i32
    %c0_i32_1 = arith.constant 0 : i32
    return %c0_i32, %c0_i32_0 : i32, i32
  }
  func.func @transform_5(%arg0: i32, %arg1: i32) -> (i32, i32) {
    %c0_i32 = arith.constant 0 : i32
    %c0_i32_0 = arith.constant 0 : i32
    %c0_i32_1 = arith.constant 0 : i32
    return %c0_i32, %c0_i32_0 : i32, i32
  }
  func.func @transform_6(%arg0: i32, %arg1: i32) -> (i32, i32) {
    %c0_i32 = arith.constant 0 : i32
    %c0_i32_0 = arith.constant 0 : i32
    %c0_i32_1 = arith.constant 0 : i32
    return %c0_i32, %c0_i32_0 : i32, i32
  }
  func.func @transform_7(%arg0: i32, %arg1: i32) -> (i32, i32) {
    %c0_i32 = arith.constant 0 : i32
    %c0_i32_0 = arith.constant 0 : i32
    return %arg0, %c0_i32 : i32, i32
  }
}

module attributes {stable_mosaic.version = 11 : i64} {
  func.func @_pool_fc_kernel(%arg0: memref<4x256xbf16, #tpu.memory_space<vmem>>, %arg1: memref<256x256xbf16, #tpu.memory_space<vmem>>, %arg2: memref<1x256xf32, #tpu.memory_space<vmem>>, %arg3: memref<256x128xbf16, #tpu.memory_space<vmem>>, %arg4: memref<1x128xf32, #tpu.memory_space<vmem>>, %arg5: memref<4x128xf32, #tpu.memory_space<vmem>>) attributes {dimension_semantics = [], scalar_prefetch = 0 : i64, scratch_operands = 0 : i64, tpu.core_type = #tpu.core_type<tc>} {
    %c0 = arith.constant 0 : index
    %c0_0 = arith.constant 0 : index
    %0 = vector.load %arg0[%c0, %c0_0] : memref<4x256xbf16, #tpu.memory_space<vmem>>, vector<4x256xbf16>
    %c0_1 = arith.constant 0 : index
    %c0_2 = arith.constant 0 : index
    %1 = vector.load %arg1[%c0_1, %c0_2] : memref<256x256xbf16, #tpu.memory_space<vmem>>, vector<256x256xbf16>
    %cst = arith.constant dense<0.000000e+00> : vector<4x256xf32>
    %2 = tpu.matmul %0, %1, %cst {dimension_numbers = #tpu.dot_dimension_numbers<[1], [0], [0], [1], [0, 0, 1, 1], [], []>} : vector<4x256xbf16>, vector<256x256xbf16>, vector<4x256xf32> -> vector<4x256xf32>
    %c0_3 = arith.constant 0 : index
    %c0_4 = arith.constant 0 : index
    %3 = vector.load %arg2[%c0_3, %c0_4] : memref<1x256xf32, #tpu.memory_space<vmem>>, vector<1x256xf32>
    %4 = vector.broadcast %3 : vector<1x256xf32> to vector<4x256xf32>
    %5 = arith.addf %2, %4 : vector<4x256xf32>
    %6 = math.tanh %5 : vector<4x256xf32>
    %7 = arith.truncf %6 : vector<4x256xf32> to vector<4x256xbf16>
    %c0_5 = arith.constant 0 : index
    %c0_6 = arith.constant 0 : index
    %8 = vector.load %arg3[%c0_5, %c0_6] : memref<256x128xbf16, #tpu.memory_space<vmem>>, vector<256x128xbf16>
    %cst_7 = arith.constant dense<0.000000e+00> : vector<4x128xf32>
    %9 = tpu.matmul %7, %8, %cst_7 {dimension_numbers = #tpu.dot_dimension_numbers<[1], [0], [0], [1], [0, 0, 1, 1], [], []>} : vector<4x256xbf16>, vector<256x128xbf16>, vector<4x128xf32> -> vector<4x128xf32>
    %c0_8 = arith.constant 0 : index
    %c0_9 = arith.constant 0 : index
    %10 = vector.load %arg4[%c0_8, %c0_9] : memref<1x128xf32, #tpu.memory_space<vmem>>, vector<1x128xf32>
    %11 = vector.broadcast %10 : vector<1x128xf32> to vector<4x128xf32>
    %12 = arith.addf %9, %11 : vector<4x128xf32>
    %c0_10 = arith.constant 0 : index
    %c0_11 = arith.constant 0 : index
    %13 = vector.load %arg5[%c0_10, %c0_11] : memref<4x128xf32, #tpu.memory_space<vmem>>, vector<4x128xf32>
    tpu.vector_store %arg5[%c0_10, %c0_11], %12 {strides = array<i32>} : memref<4x128xf32, #tpu.memory_space<vmem>>, vector<4x128xf32>,
    return
  }
}

</mosaic_0001>

<bundles_post_ra>
// kernel: albert_origin_xlarge_forward.6
= control target key start
LH: loop header
LB: loop body
LE: loop exit
PB: predicated region body
PF: predicated region fallthrough
CT: control target
= control target key end

     0   :  { %s1651_s18 = smov 0   ;;  %s2285_s0 = inlined_call_operand.vmem [shape: bf16[512,128], index: 0, kind: input, shape index: {}]   ;;  %s2286_s1 = inlined_call_operand.vmem [shape: f32[1,128], index: 1, kind: input, shape index: {}]   ;;  %s2287_s2 = inlined_call_operand.vmem [shape: f32[1,128], index: 2, kind: input, shape index: {}]   ;;  %s2288_s3 = inlined_call_operand.vmem [shape: bf16[128,256], index: 3, kind: input, shape index: {}]   ;;  %s2289_s4 = inlined_call_operand.vmem [shape: f32[1,256], index: 4, kind: input, shape index: {}]   ;;  %s2290_s5 = inlined_call_operand.vmem [shape: bf16[512,256], index: 5, kind: output, shape index: {}]  }
   0x1 LB: > { %s1325_s19 = sadd.s32 4294967295, %s1618_s18   ;;  %p1329_p0 = scmp.ge.s32.totalorder %s1618_s18, 1  ;;  %s1618_s18 = sphi %s1651_s18, %s15_s18  }
   0x2   : > { %p188_p1 = scmp.lt.s32.totalorder %s1618_s18, 3 }
   0x4   : > { %p189_p2 = pnand %p1329_p0, %p188_p1 }
   0x5   : > { %s1330_s20 = sshll.u32 (!%p189_p2), %s1325_s19, 5  ;;  %v1524_v48 = vld [vmem:[%s2288_s3 + $0x4] ss:$8 sps:$4 sm:$0xff] (!%p189_p2)   ;;  %v1526_v49 = vld [vmem:[%s2288_s3] ss:$8 sps:$4 sm:$0xff] (!%p189_p2)  }
   0x6   : > { %192 = sbr.rel (%p189_p2) target bundleno = 616 (0x268), region = 40  ;;  %p218_p3 = scmp.lt.s32.totalorder (!%p189_p2), %s1330_s20, 63  ;;  %v1527_v50 = vld [vmem:[%s2288_s3 + $0x14] ss:$8 sps:$4 sm:$0xff] (!%p189_p2)   ;;  %850 = vmatprep.subr.bf16.mxu0 (!%p189_p2), %v1524_v48  ;;  %1499 = vmatprep.subr.bf16.mxu1 (!%p189_p2), %v1524_v48 }
   0x7   : > { %851 = vmatpush1.bf16.msra.mxu0 (!%p189_p2), %v1526_v49  ;;  %1507 = vmatpush1.bf16.msra.mxu1 (!%p189_p2), %v1526_v49 }
   0x8   : > { %852 = vmatprep.subr.bf16.mxu0 (!%p189_p2), %v1527_v50  ;;  %1500 = vmatprep.subr.bf16.mxu1 (!%p189_p2), %v1527_v50 }
   0xd   : > { %s2292_s20 = smov (!%p218_p3, %s1330_s20), 63 }
   0xe   : > { %s1331_s21 = sshll.u32 %s2292_s20, 2  ;;  %s1387_s15 = sshll.u32 %s2292_s20, 3 }
   0xf   : > { %s1665_s24 = scalar_lea.vmem %s2285_s0, %s1331_s21  ;;  %s2186_s19 = scalar_lea.vmem %s2290_s5, %s1387_s15 }
  0x10   : > { %v1668_v0 = vld [vmem:[%s1665_s24] sm:$0xff]   ;;  %v1682_v6 = vld [vmem:[%s1665_s24 + $0x8] sm:$0xff]   ;;  %v1700_v12 = vld [vmem:[%s1665_s24 + $0x10] sm:$0xff]  }
  0x11   : > { %v1671_v1 = vld [vmem:[%s1665_s24 + $0x40] sm:$0xff]   ;;  %v1422_v2 = vunpack.c.l.bf16 %v1668_v0  ;;  %v1423_v4 = vunpack.c.h.bf16 %v1668_v0  ;;  %v1426_v7 = vunpack.c.l.bf16 %v1682_v6  ;;  %v1427_v8 = vunpack.c.h.bf16 %v1682_v6  ;;  %v1691_v9 = vld [vmem:[%s1665_s24 + $0x48] sm:$0xff]   ;;  %v1709_v15 = vld [vmem:[%s1665_s24 + $0x50] sm:$0xff]  }
  0x12   : > { %v1454_v3 = vunpack.c.l.bf16 %v1671_v1  ;;  %v1455_v5 = vunpack.c.h.bf16 %v1671_v1  ;;  %v1458_v10 = vunpack.c.l.bf16 %v1691_v9  ;;  %v1459_v11 = vunpack.c.h.bf16 %v1691_v9  ;;  %v1718_v18 = vld [vmem:[%s1665_s24 + $0x18] sm:$0xff]   ;;  %v1736_v24 = vld [vmem:[%s1665_s24 + $0x20] sm:$0xff]   ;;  %v1754_v30 = vld [vmem:[%s1665_s24 + $0x28] sm:$0xff]  }
  0x13   : > { %297 = vadd.xlane.f32.xlu0 %v1422_v2  ;;  %v1430_v13 = vunpack.c.l.bf16 %v1700_v12  ;;  %v1431_v14 = vunpack.c.h.bf16 %v1700_v12  ;;  %v1462_v16 = vunpack.c.l.bf16 %v1709_v15  ;;  %v1463_v17 = vunpack.c.h.bf16 %v1709_v15  ;;  %v1727_v21 = vld [vmem:[%s1665_s24 + $0x58] sm:$0xff]   ;;  %v1745_v27 = vld [vmem:[%s1665_s24 + $0x60] sm:$0xff]   ;;  %v1763_v33 = vld [vmem:[%s1665_s24 + $0x68] sm:$0xff]  }
  0x14   : > { %329 = vadd.xlane.f32.xlu1 %v1454_v3  ;;  %v1434_v19 = vunpack.c.l.bf16 %v1718_v18  ;;  %v1435_v20 = vunpack.c.h.bf16 %v1718_v18  ;;  %v1466_v22 = vunpack.c.l.bf16 %v1727_v21  ;;  %v1467_v23 = vunpack.c.h.bf16 %v1727_v21  ;;  %v1772_v36 = vld [vmem:[%s1665_s24 + $0x30] sm:$0xff]   ;;  %v1790_v42 = vld [vmem:[%s1665_s24 + $0x38] sm:$0xff]   ;;  %v1530_v12 = vld [vmem:[%s2288_s3 + $0x24] ss:$8 sps:$4 sm:$0xff]  }
  0x15   : > { %v1438_v25 = vunpack.c.l.bf16 %v1736_v24  ;;  %v1439_v26 = vunpack.c.h.bf16 %v1736_v24  ;;  %v1470_v28 = vunpack.c.l.bf16 %v1745_v27  ;;  %v1471_v29 = vunpack.c.h.bf16 %v1745_v27  ;;  %v1781_v39 = vld [vmem:[%s1665_s24 + $0x70] sm:$0xff]   ;;  %v1799_v45 = vld [vmem:[%s1665_s24 + $0x78] sm:$0xff]  }
  0x16   : > { %v1442_v31 = vunpack.c.l.bf16 %v1754_v30  ;;  %v1443_v32 = vunpack.c.h.bf16 %v1754_v30  ;;  %v1474_v34 = vunpack.c.l.bf16 %v1763_v33  ;;  %v1475_v35 = vunpack.c.h.bf16 %v1763_v33 }
  0x17   : > { %299 = vadd.xlane.f32.xlu0 %v1423_v4  ;;  %v1446_v37 = vunpack.c.l.bf16 %v1772_v36  ;;  %v1447_v38 = vunpack.c.h.bf16 %v1772_v36  ;;  %v1478_v40 = vunpack.c.l.bf16 %v1781_v39  ;;  %v1479_v41 = vunpack.c.h.bf16 %v1781_v39 }
  0x18   : > { %331 = vadd.xlane.f32.xlu1 %v1455_v5  ;;  %v1450_v43 = vunpack.c.l.bf16 %v1790_v42  ;;  %v1451_v44 = vunpack.c.h.bf16 %v1790_v42  ;;  %v1482_v46 = vunpack.c.l.bf16 %v1799_v45  ;;  %v1483_v47 = vunpack.c.h.bf16 %v1799_v45 }
  0x1b   : > { %301 = vadd.xlane.f32.xlu0 %v1426_v7 }
  0x1c   : > { %303 = vadd.xlane.f32.xlu1 %v1427_v8 }
  0x1f   : > { %333 = vadd.xlane.f32.xlu0 %v1458_v10 }
  0x20   : > { %335 = vadd.xlane.f32.xlu1 %v1459_v11 }
  0x23   : > { %305 = vadd.xlane.f32.xlu0 %v1430_v13 }
  0x24   : > { %307 = vadd.xlane.f32.xlu1 %v1431_v14 }
  0x27   : > { %337 = vadd.xlane.f32.xlu0 %v1462_v16 }
  0x28   : > { %339 = vadd.xlane.f32.xlu1 %v1463_v17 }
  0x2b   : > { %309 = vadd.xlane.f32.xlu0 %v1434_v19 }
  0x2c   : > { %311 = vadd.xlane.f32.xlu1 %v1435_v20 }
  0x2f   : > { %341 = vadd.xlane.f32.xlu0 %v1466_v22 }
  0x30   : > { %343 = vadd.xlane.f32.xlu1 %v1467_v23 }
  0x33   : > { %313 = vadd.xlane.f32.xlu0 %v1438_v25 }
  0x34   : > { %315 = vadd.xlane.f32.xlu1 %v1439_v26 }
  0x37   : > { %345 = vadd.xlane.f32.xlu0 %v1470_v28 }
  0x38   : > { %347 = vadd.xlane.f32.xlu1 %v1471_v29 }
  0x3b   : > { %317 = vadd.xlane.f32.xlu0 %v1442_v31 }
  0x3c   : > { %319 = vadd.xlane.f32.xlu1 %v1443_v32 }
  0x3f   : > { %349 = vadd.xlane.f32.xlu0 %v1474_v34 }
  0x40   : > { %351 = vadd.xlane.f32.xlu1 %v1475_v35 }
  0x43   : > { %321 = vadd.xlane.f32.xlu0 %v1446_v37 }
  0x44   : > { %323 = vadd.xlane.f32.xlu1 %v1447_v38 }
  0x47   : > { %353 = vadd.xlane.f32.xlu0 %v1478_v40 }
  0x48   : > { %355 = vadd.xlane.f32.xlu1 %v1479_v41 }
  0x4b   : > { %325 = vadd.xlane.f32.xlu0 %v1450_v43 }
  0x4c   : > { %327 = vadd.xlane.f32.xlu1 %v1451_v44 }
  0x4f   : > { %357 = vadd.xlane.f32.xlu0 %v1482_v46 }
  0x50   : > { %359 = vadd.xlane.f32.xlu1 %v1483_v47 }
  0xa0   : > { %v298_v51 = vpop.xlane.xlu0 %297 }
  0xa1   : > { %v330_v52 = vpop.xlane.xlu1 %329  ;;  %v362_v53 = vmul.f32 0.0078125, %v298_v51 }
  0xa2   : > { %v378_v54 = vmul.f32 0.0078125, %v330_v52 }
  0xa3   : > { %v1822_v55 = vsub.f32 %v1422_v2, %v362_v53 }
  0xa4   : > { %v1826_v56 = vsub.f32 %v1454_v3, %v378_v54  ;;  %v300_v57 = vpop.xlane.xlu0 %299 }
  0xa5   : > { %v332_v58 = vpop.xlane.xlu1 %331  ;;  %v363_v59 = vmul.f32 0.0078125, %v300_v57  ;;  %v426_v60 = vmul.f32 %v1822_v55, %v1822_v55 }
  0xa6   : > { %v379_v61 = vmul.f32 0.0078125, %v332_v58  ;;  %v442_v2 = vmul.f32 %v1826_v56, %v1826_v56 }
  0xa7   : > { %v1832_v62 = vsub.f32 %v1423_v4, %v363_v59  ;;  %458 = vadd.xlane.f32.xlu0 %v426_v60 }
  0xa8   : > { %v1836_v63 = vsub.f32 %v1455_v5, %v379_v61  ;;  %v302_v3 = vpop.xlane.xlu0 %301 }
  0xa9   : > { %v304_v48 = vpop.xlane.xlu1 %303  ;;  %v364_v49 = vmul.f32 0.0078125, %v302_v3  ;;  %v427_v50 = vmul.f32 %v1832_v62, %v1832_v62  ;;  %v1529_v3 = vld [vmem:[%s2288_s3 + $0x10] ss:$8 sps:$4 sm:$0xff]  }
  0xaa   : > { %v365_v51 = vmul.f32 0.0078125, %v304_v48  ;;  %v443_v4 = vmul.f32 %v1836_v63, %v1836_v63  ;;  %853 = vmatpush1.bf16.msra.mxu0 %v1529_v3  ;;  %1508 = vmatpush1.bf16.msra.mxu1 %v1529_v3 }
  0xab   : > { %v1844_v0 = vsub.f32 %v1426_v7, %v364_v49  ;;  %490 = vadd.xlane.f32.xlu0 %v442_v2  ;;  %460 = vadd.xlane.f32.xlu1 %v427_v50 }
  0xac   : > { %v1848_v1 = vsub.f32 %v1427_v8, %v365_v51  ;;  %v334_v5 = vpop.xlane.xlu0 %333  ;;  %854 = vmatprep.subr.bf16.mxu0 %v1530_v12  ;;  %1501 = vmatprep.subr.bf16.mxu1 %v1530_v12 }
  0xad   : > { %v336_v52 = vpop.xlane.xlu1 %335  ;;  %v380_v53 = vmul.f32 0.0078125, %v334_v5  ;;  %v428_v54 = vmul.f32 %v1844_v0, %v1844_v0 }
  0xae   : > { %v381_v57 = vmul.f32 0.0078125, %v336_v52  ;;  %v429_v8 = vmul.f32 %v1848_v1, %v1848_v1 }
  0xaf   : > { %v1856_v7 = vsub.f32 %v1458_v10, %v380_v53  ;;  %492 = vadd.xlane.f32.xlu1 %v443_v4  ;;  %462 = vadd.xlane.f32.xlu0 %v428_v54  ;;  %v1532_v54 = vld [vmem:[%s2288_s3 + $0x20] ss:$8 sps:$4 sm:$0xff]  }
  0xb0   : > { %v1860_v6 = vsub.f32 %v1459_v11, %v381_v57  ;;  %v306_v58 = vpop.xlane.xlu0 %305  ;;  %855 = vmatpush1.bf16.msra.mxu0 %v1532_v54  ;;  %1509 = vmatpush1.bf16.msra.mxu1 %v1532_v54 }
  0xb1   : > { %v308_v59 = vpop.xlane.xlu1 %307  ;;  %v366_v60 = vmul.f32 0.0078125, %v306_v58  ;;  %v444_v61 = vmul.f32 %v1856_v7, %v1856_v7 }
  0xb2   : > { %v367_v2 = vmul.f32 0.0078125, %v308_v59  ;;  %v445_v11 = vmul.f32 %v1860_v6, %v1860_v6  ;;  %v1533_v59 = vld [vmem:[%s2288_s3 + $0x34] ss:$8 sps:$4 sm:$0xff]  }
  0xb3   : > { %v1868_v10 = vsub.f32 %v1430_v13, %v366_v60  ;;  %464 = vadd.xlane.f32.xlu1 %v429_v8  ;;  %494 = vadd.xlane.f32.xlu0 %v444_v61 }
  0xb4   : > { %v1872_v9 = vsub.f32 %v1431_v14, %v367_v2  ;;  %v338_v48 = vpop.xlane.xlu0 %337  ;;  %856 = vmatprep.subr.bf16.mxu0 %v1533_v59  ;;  %1502 = vmatprep.subr.bf16.mxu1 %v1533_v59 }
  0xb5   : > { %v340_v49 = vpop.xlane.xlu1 %339  ;;  %v382_v50 = vmul.f32 0.0078125, %v338_v48  ;;  %v430_v13 = vmul.f32 %v1868_v10, %v1868_v10 }
  0xb6   : > { %v383_v51 = vmul.f32 0.0078125, %v340_v49  ;;  %v431_v5 = vmul.f32 %v1872_v9, %v1872_v9  ;;  %v1536_v49 = vld [vmem:[%s2288_s3 + $0x44] ss:$8 sps:$4 sm:$0xff]  }
  0xb7   : > { %v1886_v14 = vsub.f32 %v1462_v16, %v382_v50  ;;  %496 = vadd.xlane.f32.xlu1 %v445_v11  ;;  %466 = vadd.xlane.f32.xlu0 %v430_v13 }
  0xb8   : > { %v1890_v4 = vsub.f32 %v1463_v17, %v383_v51  ;;  %v310_v52 = vpop.xlane.xlu0 %309 }
  0xb9   : > { %v312_v53 = vpop.xlane.xlu1 %311  ;;  %v368_v57 = vmul.f32 0.0078125, %v310_v52  ;;  %v446_v16 = vmul.f32 %v1886_v14, %v1886_v14 }
  0xba   : > { %v369_v8 = vmul.f32 0.0078125, %v312_v53  ;;  %v447_v58 = vmul.f32 %v1890_v4, %v1890_v4  ;;  %v1539_v53 = vld [vmem:[%s2288_s3 + $0x54] ss:$8 sps:$4 sm:$0xff]  }
  0xbb   : > { %v1901_v15 = vsub.f32 %v1434_v19, %v368_v57  ;;  %468 = vadd.xlane.f32.xlu1 %v431_v5  ;;  %498 = vadd.xlane.f32.xlu0 %v446_v16  ;;  %v1535_v19 = vld [vmem:[%s2288_s3 + $0x30] ss:$8 sps:$4 sm:$0xff]  }
  0xbc   : > { %v1905_v17 = vsub.f32 %v1435_v20, %v369_v8  ;;  %v342_v60 = vpop.xlane.xlu0 %341  ;;  %857 = vmatpush1.bf16.msra.mxu0 %v1535_v19  ;;  %1510 = vmatpush1.bf16.msra.mxu1 %v1535_v19 }
  0xbd   : > { %v344_v61 = vpop.xlane.xlu1 %343  ;;  %v384_v2 = vmul.f32 0.0078125, %v342_v60  ;;  %v432_v11 = vmul.f32 %v1901_v15, %v1901_v15  ;;  %858 = vmatprep.subr.bf16.mxu0 %v1536_v49  ;;  %1503 = vmatprep.subr.bf16.mxu1 %v1536_v49  ;;  %v1542_v60 = vld [vmem:[%s2288_s3 + $0x64] ss:$8 sps:$4 sm:$0xff]   ;;  %v1545_v49 = vld [vmem:[%s2288_s3 + $0x74] ss:$8 sps:$4 sm:$0xff]  }
  0xbe   : > { %v385_v18 = vmul.f32 0.0078125, %v344_v61  ;;  %v433_v48 = vmul.f32 %v1905_v17, %v1905_v17 }
  0xbf   : > { %v1919_v20 = vsub.f32 %v1466_v22, %v384_v2  ;;  %500 = vadd.xlane.f32.xlu1 %v447_v58  ;;  %470 = vadd.xlane.f32.xlu0 %v432_v11  ;;  %v1538_v22 = vld [vmem:[%s2288_s3 + $0x40] ss:$8 sps:$4 sm:$0xff]  }
  0xc0   : > { %v1923_v3 = vsub.f32 %v1467_v23, %v385_v18  ;;  %v314_v50 = vpop.xlane.xlu0 %313  ;;  %859 = vmatpush1.bf16.msra.mxu0 %v1538_v22  ;;  %1511 = vmatpush1.bf16.msra.mxu1 %v1538_v22 }
  0xc1   : > { %v316_v13 = vpop.xlane.xlu1 %315  ;;  %v370_v51 = vmul.f32 0.0078125, %v314_v50  ;;  %v448_v12 = vmul.f32 %v1919_v20, %v1919_v20  ;;  %860 = vmatprep.subr.bf16.mxu0 %v1539_v53  ;;  %1504 = vmatprep.subr.bf16.mxu1 %v1539_v53 }
  0xc2   : > { %v371_v21 = vmul.f32 0.0078125, %v316_v13  ;;  %v449_v52 = vmul.f32 %v1923_v3, %v1923_v3 }
  0xc3   : > { %v1937_v23 = vsub.f32 %v1438_v25, %v370_v51  ;;  %472 = vadd.xlane.f32.xlu1 %v433_v48  ;;  %502 = vadd.xlane.f32.xlu0 %v448_v12  ;;  %v1541_v25 = vld [vmem:[%s2288_s3 + $0x50] ss:$8 sps:$4 sm:$0xff]  }
  0xc4   : > { %v1941_v5 = vsub.f32 %v1439_v26, %v371_v21  ;;  %v346_v54 = vpop.xlane.xlu0 %345  ;;  %861 = vmatpush1.bf16.msra.mxu0 %v1541_v25  ;;  %1512 = vmatpush1.bf16.msra.mxu1 %v1541_v25 }
  0xc5   : > { %v348_v57 = vpop.xlane.xlu1 %347  ;;  %v386_v16 = vmul.f32 0.0078125, %v346_v54  ;;  %v434_v8 = vmul.f32 %v1937_v23, %v1937_v23  ;;  %862 = vmatprep.subr.bf16.mxu0 %v1542_v60  ;;  %1505 = vmatprep.subr.bf16.mxu1 %v1542_v60  ;;  %v1620_v54 = vmov 0  }
  0xc6   : > { %v387_v24 = vmul.f32 0.0078125, %v348_v57  ;;  %v435_v59 = vmul.f32 %v1941_v5, %v1941_v5  ;;  %882 = vmatprep.mubr.bf16.mxu0 %v1620_v54  ;;  %962 = vmatprep.mubr.bf16.mxu1 %v1620_v54 }
  0xc7   : > { %v1955_v26 = vsub.f32 %v1470_v28, %v386_v16  ;;  %504 = vadd.xlane.f32.xlu1 %v449_v52  ;;  %474 = vadd.xlane.f32.xlu0 %v434_v8  ;;  %v1544_v28 = vld [vmem:[%s2288_s3 + $0x60] ss:$8 sps:$4 sm:$0xff]  }
  0xc8   : > { %v1959_v58 = vsub.f32 %v1471_v29, %v387_v24  ;;  %v318_v61 = vpop.xlane.xlu0 %317  ;;  %863 = vmatpush1.bf16.msra.mxu0 %v1544_v28  ;;  %1513 = vmatpush1.bf16.msra.mxu1 %v1544_v28 }
  0xc9   : > { %v320_v19 = vpop.xlane.xlu1 %319  ;;  %v372_v2 = vmul.f32 0.0078125, %v318_v61  ;;  %v450_v11 = vmul.f32 %v1955_v26, %v1955_v26  ;;  %864 = vmatprep.subr.bf16.mxu0 %v1545_v49  ;;  %1506 = vmatprep.subr.bf16.mxu1 %v1545_v49 }
  0xca   : > { %v373_v27 = vmul.f32 0.0078125, %v320_v19  ;;  %v451_v48 = vmul.f32 %v1959_v58, %v1959_v58 }
  0xcb   : > { %v1973_v29 = vsub.f32 %v1442_v31, %v372_v2  ;;  %476 = vadd.xlane.f32.xlu1 %v435_v59  ;;  %506 = vadd.xlane.f32.xlu0 %v450_v11  ;;  %v1547_v31 = vld [vmem:[%s2288_s3 + $0x70] ss:$8 sps:$4 sm:$0xff]  }
  0xcc   : > { %v1977_v18 = vsub.f32 %v1443_v32, %v373_v27  ;;  %v350_v50 = vpop.xlane.xlu0 %349  ;;  %865 = vmatpush1.bf16.msra.mxu0 %v1547_v31  ;;  %1514 = vmatpush1.bf16.msra.mxu1 %v1547_v31 }
  0xcd   : > { %v352_v13 = vpop.xlane.xlu1 %351  ;;  %v388_v22 = vmul.f32 0.0078125, %v350_v50  ;;  %v436_v51 = vmul.f32 %v1973_v29, %v1973_v29 }
  0xce   : > { %v389_v30 = vmul.f32 0.0078125, %v352_v13  ;;  %v437_v21 = vmul.f32 %v1977_v18, %v1977_v18 }
  0xcf   : > { %v1991_v32 = vsub.f32 %v1474_v34, %v388_v22  ;;  %508 = vadd.xlane.f32.xlu1 %v451_v48  ;;  %478 = vadd.xlane.f32.xlu0 %v436_v51 }
  0xd0   : > { %v1995_v12 = vsub.f32 %v1475_v35, %v389_v30  ;;  %v322_v52 = vpop.xlane.xlu0 %321 }
  0xd1   : > { %v324_v53 = vpop.xlane.xlu1 %323  ;;  %v374_v57 = vmul.f32 0.0078125, %v322_v52  ;;  %v452_v34 = vmul.f32 %v1991_v32, %v1991_v32 }
  0xd2   : > { %v375_v25 = vmul.f32 0.0078125, %v324_v53  ;;  %v453_v16 = vmul.f32 %v1995_v12, %v1995_v12 }
  0xd3   : > { %v2005_v33 = vsub.f32 %v1446_v37, %v374_v57  ;;  %480 = vadd.xlane.f32.xlu1 %v437_v21  ;;  %510 = vadd.xlane.f32.xlu0 %v452_v34 }
  0xd4   : > { %v2009_v35 = vsub.f32 %v1447_v38, %v375_v25  ;;  %v354_v8 = vpop.xlane.xlu0 %353 }
  0xd5   : > { %v356_v24 = vpop.xlane.xlu1 %355  ;;  %v390_v59 = vmul.f32 0.0078125, %v354_v8  ;;  %v438_v60 = vmul.f32 %v2005_v33, %v2005_v33 }
  0xd6   : > { %v391_v61 = vmul.f32 0.0078125, %v356_v24  ;;  %v439_v38 = vmul.f32 %v2009_v35, %v2009_v35 }
  0xd7   : > { %v2017_v37 = vsub.f32 %v1478_v40, %v390_v59  ;;  %512 = vadd.xlane.f32.xlu1 %v453_v16  ;;  %482 = vadd.xlane.f32.xlu0 %v438_v60 }
  0xd8   : > { %v2021_v36 = vsub.f32 %v1479_v41, %v391_v61  ;;  %v326_v19 = vpop.xlane.xlu0 %325 }
  0xd9   : > { %v328_v28 = vpop.xlane.xlu1 %327  ;;  %v376_v2 = vmul.f32 0.0078125, %v326_v19  ;;  %v454_v11 = vmul.f32 %v2017_v37, %v2017_v37 }
  0xda   : > { %v377_v27 = vmul.f32 0.0078125, %v328_v28  ;;  %v455_v41 = vmul.f32 %v2021_v36, %v2021_v36 }
  0xdb   : > { %v2029_v40 = vsub.f32 %v1450_v43, %v376_v2  ;;  %484 = vadd.xlane.f32.xlu1 %v439_v38  ;;  %514 = vadd.xlane.f32.xlu0 %v454_v11 }
  0xdc   : > { %v2033_v39 = vsub.f32 %v1451_v44, %v377_v27  ;;  %v358_v48 = vpop.xlane.xlu0 %357 }
  0xdd   : > { %v360_v49 = vpop.xlane.xlu1 %359  ;;  %v392_v50 = vmul.f32 0.0078125, %v358_v48  ;;  %v440_v13 = vmul.f32 %v2029_v40, %v2029_v40 }
  0xde   : > { %v393_v31 = vmul.f32 0.0078125, %v360_v49  ;;  %v441_v44 = vmul.f32 %v2033_v39, %v2033_v39 }
  0xdf   : > { %v2041_v43 = vsub.f32 %v1482_v46, %v392_v50  ;;  %516 = vadd.xlane.f32.xlu1 %v455_v41  ;;  %486 = vadd.xlane.f32.xlu0 %v440_v13 }
  0xe0   : > { %v2045_v42 = vsub.f32 %v1483_v47, %v393_v31  ;;  %v2057_v31 = vld [vmem:[%s2286_s1] ss:$0 sm:$0xff] }
  0xe1   : > { %v456_v22 = vmul.f32 %v2041_v43, %v2041_v43 }
  0xe2   : > { %v457_v51 = vmul.f32 %v2045_v42, %v2045_v42 }
  0xe3   : > { %488 = vadd.xlane.f32.xlu1 %v441_v44  ;;  %518 = vadd.xlane.f32.xlu0 %v456_v22 }
  0xe7   : > { %520 = vadd.xlane.f32.xlu1 %v457_v51 }
 0x134   : > { %v459_v46 = vpop.xlane.xlu0 %458 }
 0x135   : > { %v522_v30 = vmul.f32 0.0078125, %v459_v46 }
 0x137   : > { %v554_v21 = vadd.f32 1e-12, %v522_v30 }
 0x138   : > { %v461_v52 = vpop.xlane.xlu1 %460  ;;  %v491_v53 = vpop.xlane.xlu0 %490 }
 0x139   : > { %1548 = vrsqrt.f32 %v554_v21  ;;  %v523_v45 = vmul.f32 0.0078125, %v461_v52  ;;  %v538_v47 = vmul.f32 0.0078125, %v491_v53 }
 0x13b   : > { %v555_v57 = vadd.f32 1e-12, %v523_v45  ;;  %v570_v34 = vadd.f32 1e-12, %v538_v47  ;;  %v2064_v47 = vld [vmem:[%s2287_s2] ss:$0 sm:$0xff] }
 0x13c   : > { %v493_v25 = vpop.xlane.xlu1 %492  ;;  %v463_v16 = vpop.xlane.xlu0 %462 }
 0x13d   : > { %1550 = vrsqrt.f32 %v555_v57  ;;  %v539_v8 = vmul.f32 0.0078125, %v493_v25  ;;  %v524_v24 = vmul.f32 0.0078125, %v463_v16 }
 0x13e   : > { %1552 = vrsqrt.f32 %v570_v34 }
 0x13f   : > { %v571_v59 = vadd.f32 1e-12, %v539_v8  ;;  %v556_v60 = vadd.f32 1e-12, %v524_v24 }
 0x140   : > { %v465_v61 = vpop.xlane.xlu1 %464  ;;  %v495_v38 = vpop.xlane.xlu0 %494 }
 0x141   : > { %1554 = vrsqrt.f32 %v571_v59  ;;  %v525_v19 = vmul.f32 0.0078125, %v465_v61  ;;  %v540_v28 = vmul.f32 0.0078125, %v495_v38 }
 0x142   : > { %1556 = vrsqrt.f32 %v556_v60 }
 0x143   : > { %v1549_v2 = vpop.eup %1548  ;;  %v557_v11 = vadd.f32 1e-12, %v525_v19  ;;  %v572_v27 = vadd.f32 1e-12, %v540_v28 }
 0x144   : > { %v497_v41 = vpop.xlane.xlu1 %496  ;;  %v467_v48 = vpop.xlane.xlu0 %466  ;;  %v618_v49 = vmul.f32 %v1549_v2, %v1822_v55 }
 0x145   : > { %1558 = vrsqrt.f32 %v557_v11  ;;  %v541_v50 = vmul.f32 0.0078125, %v497_v41  ;;  %v526_v13 = vmul.f32 0.0078125, %v467_v48 }
 0x146   : > { %1560 = vrsqrt.f32 %v572_v27  ;;  %v656_v53 = vmul.f32 %v2057_v31, %v618_v49 }
 0x147   : > { %v1551_v44 = vpop.eup %1550  ;;  %v573_v22 = vadd.f32 1e-12, %v541_v50  ;;  %v558_v51 = vadd.f32 1e-12, %v526_v13 }
 0x148   : > { %v1553_v46 = vpop.eup %1552  ;;  %v469_v30 = vpop.xlane.xlu1 %468  ;;  %v619_v52 = vmul.f32 %v1551_v44, %v1832_v62  ;;  %v694_v60 = vadd.f32 %v2064_v47, %v656_v53 }
 0x149   : > { %v499_v21 = vpop.xlane.xlu0 %498  ;;  %1562 = vrsqrt.f32 %v573_v22  ;;  %v527_v55 = vmul.f32 0.0078125, %v469_v30  ;;  %v634_v57 = vmul.f32 %v1553_v46, %v1826_v56 }
 0x14a   : > { %v542_v45 = vmul.f32 0.0078125, %v499_v21  ;;  %1564 = vrsqrt.f32 %v558_v51  ;;  %v657_v34 = vmul.f32 %v2057_v31, %v619_v52 }
 0x14b   : > { %v1555_v25 = vpop.eup %1554  ;;  %v559_v16 = vadd.f32 1e-12, %v527_v55  ;;  %v672_v19 = vmul.f32 %v2057_v31, %v634_v57 }
 0x14c   : > { %v574_v8 = vadd.f32 1e-12, %v542_v45  ;;  %v1557_v24 = vpop.eup %1556  ;;  %v501_v62 = vpop.xlane.xlu1 %500  ;;  %v695_v61 = vadd.f32 %v2064_v47, %v657_v34  ;;  %v635_v38 = vmul.f32 %v1555_v25, %v1836_v63 }
 0x14d   : > { %v471_v59 = vpop.xlane.xlu0 %470  ;;  %1566 = vrsqrt.f32 %v559_v16  ;;  %v543_v28 = vmul.f32 0.0078125, %v501_v62  ;;  %v620_v27 = vmul.f32 %v1557_v24, %v1844_v0  ;;  %v710_v63 = vadd.f32 %v2064_v47, %v672_v19 }
 0x14e   : > { %v528_v56 = vmul.f32 0.0078125, %v471_v59  ;;  %1568 = vrsqrt.f32 %v574_v8  ;;  %v726_v2 = vpack.c.bf16 %v695_v61, %v694_v60  ;;  %v673_v11 = vmul.f32 %v2057_v31, %v635_v38 }
 0x14f   : > { %v1559_v41 = vpop.eup %1558  ;;  %v575_v48 = vadd.f32 1e-12, %v543_v28  ;;  %v658_v46 = vmul.f32 %v2057_v31, %v620_v27 }
 0x150   : > { %v560_v49 = vadd.f32 1e-12, %v528_v56  ;;  %v1561_v50 = vpop.eup %1560  ;;  %v473_v13 = vpop.xlane.xlu1 %472  ;;  %883 = vmatmul.mubr.bf16.vlgmr.msra.gmra.mrb[0].mxu0 %v726_v2  ;;  %v711_v22 = vadd.f32 %v2064_v47, %v673_v11  ;;  %v621_v51 = vmul.f32 %v1559_v41, %v1848_v1 }
 0x151   : > { %v503_v44 = vpop.xlane.xlu0 %502  ;;  %1570 = vrsqrt.f32 %v575_v48  ;;  %v529_v30 = vmul.f32 0.0078125, %v473_v13  ;;  %892 = vmatprep.mubr.bf16.mxu0 %v1620_v54  ;;  %v636_v0 = vmul.f32 %v1561_v50, %v1856_v7  ;;  %v696_v16 = vadd.f32 %v2064_v47, %v658_v46 }
 0x152   : > { %v544_v21 = vmul.f32 0.0078125, %v503_v44  ;;  %1572 = vrsqrt.f32 %v560_v49  ;;  %v734_v52 = vpack.c.bf16 %v711_v22, %v710_v63  ;;  %v659_v53 = vmul.f32 %v2057_v31, %v621_v51 }
 0x153   : > { %v1563_v55 = vpop.eup %1562  ;;  %v561_v45 = vadd.f32 1e-12, %v529_v30  ;;  %v674_v62 = vmul.f32 %v2057_v31, %v636_v0 }
 0x154   : > { %v576_v57 = vadd.f32 1e-12, %v544_v21  ;;  %v1565_v34 = vpop.eup %1564  ;;  %v505_v25 = vpop.xlane.xlu1 %504  ;;  %963 = vmatmul.mubr.bf16.vlgmr.msra.gmra.mrb[0].mxu1 %v734_v52  ;;  %v697_v8 = vadd.f32 %v2064_v47, %v659_v53  ;;  %v637_v24 = vmul.f32 %v1563_v55, %v1860_v6 }
 0x155   : > { %v475_v1 = vpop.xlane.xlu0 %474  ;;  %1574 = vrsqrt.f32 %v561_v45  ;;  %v545_v7 = vmul.f32 0.0078125, %v505_v25  ;;  %972 = vmatprep.mubr.bf16.mxu1 %v1620_v54  ;;  %v622_v38 = vmul.f32 %v1565_v34, %v1868_v10  ;;  %v712_v27 = vadd.f32 %v2064_v47, %v674_v62 }
 0x156   : > { %v530_v59 = vmul.f32 0.0078125, %v475_v1  ;;  %1576 = vrsqrt.f32 %v576_v57  ;;  %v727_v60 = vpack.c.bf16 %v697_v8, %v696_v16  ;;  %v675_v61 = vmul.f32 %v2057_v31, %v637_v24 }
 0x157   : > { %v1567_v19 = vpop.eup %1566  ;;  %v577_v28 = vadd.f32 1e-12, %v545_v7  ;;  %v660_v49 = vmul.f32 %v2057_v31, %v622_v38 }
 0x158   : > { %v562_v56 = vadd.f32 1e-12, %v530_v59  ;;  %v1569_v2 = vpop.eup %1568  ;;  %v477_v11 = vpop.xlane.xlu1 %476  ;;  %893 = vmatmul.mubr.bf16.gmra.mrb[4].mxu0 %v727_v60  ;;  %v713_v41 = vadd.f32 %v2064_v47, %v675_v61  ;;  %v623_v48 = vmul.f32 %v1567_v19, %v1872_v9 }
 0x159   : > { %v507_v6 = vpop.xlane.xlu0 %506  ;;  %1578 = vrsqrt.f32 %v577_v28  ;;  %v531_v50 = vmul.f32 0.0078125, %v477_v11  ;;  %902 = vmatprep.mubr.bf16.mxu0 %v1620_v54  ;;  %v638_v10 = vmul.f32 %v1569_v2, %v1886_v14  ;;  %v698_v0 = vadd.f32 %v2064_v47, %v660_v49 }
 0x15a   : > { %v546_v13 = vmul.f32 0.0078125, %v507_v6  ;;  %1580 = vrsqrt.f32 %v562_v56  ;;  %v735_v44 = vpack.c.bf16 %v713_v41, %v712_v27  ;;  %v661_v63 = vmul.f32 %v2057_v31, %v623_v48 }
 0x15b   : > { %v1571_v22 = vpop.eup %1570  ;;  %v563_v51 = vadd.f32 1e-12, %v531_v50  ;;  %v676_v55 = vmul.f32 %v2057_v31, %v638_v10 }
 0x15c   : > { %v578_v46 = vadd.f32 1e-12, %v546_v13  ;;  %v1573_v30 = vpop.eup %1572  ;;  %v509_v21 = vpop.xlane.xlu1 %508  ;;  %973 = vmatmul.mubr.bf16.gmra.mrb[4].mxu1 %v735_v44  ;;  %v699_v52 = vadd.f32 %v2064_v47, %v661_v63  ;;  %v639_v53 = vmul.f32 %v1571_v22, %v1890_v4 }
 0x15d   : > { %v479_v9 = vpop.xlane.xlu0 %478  ;;  %1582 = vrsqrt.f32 %v563_v51  ;;  %v547_v14 = vmul.f32 0.0078125, %v509_v21  ;;  %982 = vmatprep.mubr.bf16.mxu1 %v1620_v54  ;;  %v624_v25 = vmul.f32 %v1573_v30, %v1901_v15  ;;  %v714_v7 = vadd.f32 %v2064_v47, %v676_v55 }
 0x15e   : > { %v532_v45 = vmul.f32 0.0078125, %v479_v9  ;;  %1584 = vrsqrt.f32 %v578_v46  ;;  %v728_v57 = vpack.c.bf16 %v699_v52, %v698_v0  ;;  %v677_v34 = vmul.f32 %v2057_v31, %v639_v53 }
 0x15f   : > { %v1575_v1 = vpop.eup %1574  ;;  %v579_v16 = vadd.f32 1e-12, %v547_v14  ;;  %v662_v61 = vmul.f32 %v2057_v31, %v624_v25 }
 0x160   : > { %v564_v8 = vadd.f32 1e-12, %v532_v45  ;;  %v1577_v24 = vpop.eup %1576  ;;  %v481_v62 = vpop.xlane.xlu1 %480  ;;  %903 = vmatmul.mubr.bf16.gmra.mrb[8].mxu0 %v728_v57  ;;  %v715_v59 = vadd.f32 %v2064_v47, %v677_v34  ;;  %v625_v60 = vmul.f32 %v1575_v1, %v1905_v17 }
 0x161   : > { %v511_v4 = vpop.xlane.xlu0 %510  ;;  %1586 = vrsqrt.f32 %v579_v16  ;;  %v533_v38 = vmul.f32 0.0078125, %v481_v62  ;;  %912 = vmatprep.mubr.bf16.mxu0 %v1620_v54  ;;  %v640_v15 = vmul.f32 %v1577_v24, %v1919_v20  ;;  %v700_v48 = vadd.f32 %v2064_v47, %v662_v61 }
 0x162   : > { %v548_v19 = vmul.f32 0.0078125, %v511_v4  ;;  %1588 = vrsqrt.f32 %v564_v8  ;;  %v736_v28 = vpack.c.bf16 %v715_v59, %v714_v7  ;;  %v663_v56 = vmul.f32 %v2057_v31, %v625_v60 }
 0x163   : > { %v1579_v2 = vpop.eup %1578  ;;  %v565_v11 = vadd.f32 1e-12, %v533_v38  ;;  %v678_v13 = vmul.f32 %v2057_v31, %v640_v15 }
 0x164   : > { %v580_v6 = vadd.f32 1e-12, %v548_v19  ;;  %v1581_v27 = vpop.eup %1580  ;;  %v513_v41 = vpop.xlane.xlu1 %512  ;;  %983 = vmatmul.mubr.bf16.gmra.mrb[8].mxu1 %v736_v28  ;;  %v701_v49 = vadd.f32 %v2064_v47, %v663_v56  ;;  %v641_v50 = vmul.f32 %v1579_v2, %v1923_v3 }
 0x165   : > { %v483_v17 = vpop.xlane.xlu0 %482  ;;  %1590 = vrsqrt.f32 %v565_v11  ;;  %v549_v20 = vmul.f32 0.0078125, %v513_v41  ;;  %992 = vmatprep.mubr.bf16.mxu1 %v1620_v54  ;;  %v626_v22 = vmul.f32 %v1581_v27, %v1937_v23  ;;  %v716_v0 = vadd.f32 %v2064_v47, %v678_v13 }
 0x166   : > { %v534_v10 = vmul.f32 0.0078125, %v483_v17  ;;  %1592 = vrsqrt.f32 %v580_v6  ;;  %v729_v44 = vpack.c.bf16 %v701_v49, %v700_v48  ;;  %v679_v63 = vmul.f32 %v2057_v31, %v641_v50 }
 0x167   : > { %v1583_v51 = vpop.eup %1582  ;;  %v581_v46 = vadd.f32 1e-12, %v549_v20  ;;  %v664_v55 = vmul.f32 %v2057_v31, %v626_v22 }
 0x168   : > { %v566_v30 = vadd.f32 1e-12, %v534_v10  ;;  %v1585_v21 = vpop.eup %1584  ;;  %v485_v9 = vpop.xlane.xlu1 %484  ;;  %913 = vmatmul.mubr.bf16.gmra.mrb[12].mxu0 %v729_v44  ;;  %v717_v52 = vadd.f32 %v2064_v47, %v679_v63  ;;  %v627_v53 = vmul.f32 %v1583_v51, %v1941_v5 }
 0x169   : > { %v515_v3 = vpop.xlane.xlu0 %514  ;;  %1594 = vrsqrt.f32 %v581_v46  ;;  %v535_v14 = vmul.f32 0.0078125, %v485_v9  ;;  %922 = vmatprep.mubr.bf16.mxu0 %v1620_v54  ;;  %v642_v23 = vmul.f32 %v1585_v21, %v1955_v26  ;;  %v702_v62 = vadd.f32 %v2064_v47, %v664_v55 }
 0x16a   : > { %v550_v45 = vmul.f32 0.0078125, %v515_v3  ;;  %1596 = vrsqrt.f32 %v566_v30  ;;  %v737_v57 = vpack.c.bf16 %v717_v52, %v716_v0  ;;  %v665_v34 = vmul.f32 %v2057_v31, %v627_v53 }
 0x16b   : > { %v1587_v25 = vpop.eup %1586  ;;  %v567_v1 = vadd.f32 1e-12, %v535_v14  ;;  %v680_v59 = vmul.f32 %v2057_v31, %v642_v23 }
 0x16c   : > { %v582_v16 = vadd.f32 1e-12, %v550_v45  ;;  %v1589_v8 = vpop.eup %1588  ;;  %v517_v24 = vpop.xlane.xlu1 %516  ;;  %993 = vmatmul.mubr.bf16.gmra.mrb[12].mxu1 %v737_v57  ;;  %v703_v4 = vadd.f32 %v2064_v47, %v665_v34  ;;  %v643_v7 = vmul.f32 %v1587_v25, %v1959_v58 }
 0x16d   : > { %v487_v5 = vpop.xlane.xlu0 %486  ;;  %1598 = vrsqrt.f32 %v567_v1  ;;  %v551_v26 = vmul.f32 0.0078125, %v517_v24  ;;  %1002 = vmatprep.mubr.bf16.mxu1 %v1620_v54  ;;  %v628_v19 = vmul.f32 %v1589_v8, %v1973_v29  ;;  %v718_v6 = vadd.f32 %v2064_v47, %v680_v59 }
 0x16e   : > { %v536_v60 = vmul.f32 0.0078125, %v487_v5  ;;  %1600 = vrsqrt.f32 %v582_v16  ;;  %v730_v61 = vpack.c.bf16 %v703_v4, %v702_v62  ;;  %v681_v38 = vmul.f32 %v2057_v31, %v643_v7 }
 0x16f   : > { %v1591_v15 = vpop.eup %1590  ;;  %v583_v28 = vadd.f32 1e-12, %v551_v26  ;;  %v666_v17 = vmul.f32 %v2057_v31, %v628_v19 }
 0x170   : > { %v568_v56 = vadd.f32 1e-12, %v536_v60  ;;  %v1593_v2 = vpop.eup %1592  ;;  %v489_v11 = vpop.xlane.xlu1 %488  ;;  %923 = vmatmul.mubr.bf16.gmra.mrb[16].mxu0 %v730_v61  ;;  %v719_v27 = vadd.f32 %v2064_v47, %v681_v38  ;;  %v629_v41 = vmul.f32 %v1591_v15, %v1977_v18 }
 0x171   : > { %v519_v58 = vpop.xlane.xlu0 %518  ;;  %1602 = vrsqrt.f32 %v583_v28  ;;  %v537_v48 = vmul.f32 0.0078125, %v489_v11  ;;  %932 = vmatprep.mubr.bf16.mxu0 %v1620_v54  ;;  %v644_v29 = vmul.f32 %v1593_v2, %v1991_v32  ;;  %v704_v18 = vadd.f32 %v2064_v47, %v666_v17 }
 0x172   : > { %v552_v49 = vmul.f32 0.0078125, %v519_v58  ;;  %1604 = vrsqrt.f32 %v568_v56  ;;  %v738_v50 = vpack.c.bf16 %v719_v27, %v718_v6  ;;  %v667_v13 = vmul.f32 %v2057_v31, %v629_v41 }
 0x173   : > { %v1595_v20 = vpop.eup %1594  ;;  %v569_v10 = vadd.f32 1e-12, %v537_v48  ;;  %v682_v30 = vmul.f32 %v2057_v31, %v644_v29  ;;  %v760_v6 = vlaneseq }
 0x174   : > { %v584_v44 = vadd.f32 1e-12, %v552_v49  ;;  %v1597_v63 = vpop.eup %1596  ;;  %v521_v22 = vpop.xlane.xlu1 %520  ;;  %1003 = vmatmul.mubr.bf16.gmra.mrb[16].mxu1 %v738_v50  ;;  %v705_v51 = vadd.f32 %v2064_v47, %v667_v13  ;;  %v645_v46 = vmul.f32 %v1595_v20, %v1995_v12 }
 0x175   : > { %1606 = vrsqrt.f32 %v569_v10  ;;  %v553_v32 = vmul.f32 0.0078125, %v521_v22  ;;  %1012 = vmatprep.mubr.bf16.mxu1 %v1620_v54  ;;  %v630_v21 = vmul.f32 %v1597_v63, %v2005_v33  ;;  %v720_v55 = vadd.f32 %v2064_v47, %v682_v30 }
 0x176   : > { %1608 = vrsqrt.f32 %v584_v44  ;;  %v731_v9 = vpack.c.bf16 %v705_v51, %v704_v18  ;;  %v683_v3 = vmul.f32 %v2057_v31, %v645_v46  ;;  %v761_v27 = vshrl.u32 %v760_v6, 7 }
 0x177   : > { %v1599_v0 = vpop.eup %1598  ;;  %v585_v52 = vadd.f32 1e-12, %v553_v32  ;;  %v668_v45 = vmul.f32 %v2057_v31, %v630_v21 }
 0x178   : > { %v1601_v53 = vpop.eup %1600  ;;  %933 = vmatmul.mubr.bf16.gmra.mrb[20].mxu0 %v731_v9  ;;  %v721_v12 = vadd.f32 %v2064_v47, %v683_v3  ;;  %v631_v14 = vmul.f32 %v1599_v0, %v2009_v35  ;;  %v762_v41 = vsub.s32 0, %v761_v27  ;;  %v766_v17 = vsub.s32 1, %v761_v27 }
 0x179   : > { %1610 = vrsqrt.f32 %v585_v52  ;;  %942 = vmatprep.mubr.bf16.mxu0 %v1620_v54  ;;  %v646_v33 = vmul.f32 %v1601_v53, %v2017_v37  ;;  %v706_v1 = vadd.f32 %v2064_v47, %v668_v45 }
 0x17a   : > { %v739_v23 = vpack.c.bf16 %v721_v12, %v720_v55  ;;  %v669_v57 = vmul.f32 %v2057_v31, %v631_v14 }
 0x17b   : > { %v1603_v34 = vpop.eup %1602  ;;  %v684_v35 = vmul.f32 %v2057_v31, %v646_v33 }
 0x17c   : > { %v1605_v25 = vpop.eup %1604  ;;  %1013 = vmatmul.mubr.bf16.gmra.mrb[20].mxu1 %v739_v23  ;;  %v707_v16 = vadd.f32 %v2064_v47, %v669_v57  ;;  %v647_v8 = vmul.f32 %v1603_v34, %v2021_v36 }
 0x17d   : > { %1022 = vmatprep.mubr.bf16.mxu1 %v1620_v54  ;;  %v632_v24 = vmul.f32 %v1605_v25, %v2029_v40  ;;  %v722_v7 = vadd.f32 %v2064_v47, %v684_v35 }
 0x17e   : > { %v732_v5 = vpack.c.bf16 %v707_v16, %v706_v1  ;;  %v685_v37 = vmul.f32 %v2057_v31, %v647_v8 }
 0x17f   : > { %v1607_v62 = vpop.eup %1606  ;;  %v670_v36 = vmul.f32 %v2057_v31, %v632_v24 }
 0x180   : > { %v1609_v4 = vpop.eup %1608  ;;  %943 = vmatmul.mubr.bf16.gmra.mrb[24].mxu0 %v732_v5  ;;  %v723_v59 = vadd.f32 %v2064_v47, %v685_v37  ;;  %v633_v26 = vmul.f32 %v1607_v62, %v2033_v39 }
 0x181   : > { %952 = vmatprep.mubr.bf16.mxu0 %v1620_v54  ;;  %v648_v60 = vmul.f32 %v1609_v4, %v2041_v43  ;;  %v708_v19 = vadd.f32 %v2064_v47, %v670_v36 }
 0x182   : > { %v740_v61 = vpack.c.bf16 %v723_v59, %v722_v7  ;;  %v671_v40 = vmul.f32 %v2057_v31, %v633_v26 }
 0x183   : > { %v1611_v38 = vpop.eup %1610  ;;  %v686_v56 = vmul.f32 %v2057_v31, %v648_v60 }
 0x184   : > { %1023 = vmatmul.mubr.bf16.gmra.mrb[24].mxu1 %v740_v61  ;;  %v709_v15 = vadd.f32 %v2064_v47, %v671_v40  ;;  %v649_v28 = vmul.f32 %v1611_v38, %v2045_v42  ;;  %v758_v42 = vld [vmem:[%s2289_s4] sm:$0x3] }
 0x185   : > { %1032 = vmatprep.mubr.bf16.mxu1 %v1620_v54  ;;  %v724_v43 = vadd.f32 %v2064_v47, %v686_v56  ;;  %v2176_v48 = vrot.slane %v758_v42, %v762_v41  ;;  %v2178_v54 = vrot.slane %v758_v42, %v766_v17 }
 0x186   : > { %v733_v39 = vpack.c.bf16 %v709_v15, %v708_v19  ;;  %v687_v2 = vmul.f32 %v2057_v31, %v649_v28 }
 0x188   : > { %953 = vmatmul.mubr.bf16.gmra.mrb[28].mxu0 %v733_v39  ;;  %v725_v11 = vadd.f32 %v2064_v47, %v687_v2 }
 0x18a   : > { %v741_v58 = vpack.c.bf16 %v725_v11, %v724_v43 }
 0x18c   : > { %1033 = vmatmul.mubr.bf16.gmra.mrb[28].mxu1 %v741_v58 }
 0x223   : > { %v884_v31 = vpop.f32.mrb[0].mxu0 }
 0x224   : > { %v885_v49 = vadd.f32 %v884_v31, %v2176_v48  ;;  %v886_v29 = vpop.f32.mrb[1].mxu0 }
 0x225   : > { %v887_v47 = vadd.f32 %v886_v29, %v2178_v54  ;;  %v888_v50 = vpop.f32.mrb[2].mxu0 }
 0x226   : > { %v889_v13 = vadd.f32 %v888_v50, %v2176_v48  ;;  %v890_v20 = vpop.f32.mrb[3].mxu0 }
 0x227   : > { %v1388_v10 = vpack.c.bf16 %v887_v47, %v885_v49  ;;  %v891_v44 = vadd.f32 %v890_v20, %v2178_v54  ;;  %v964_v63 = vpop.f32.mrb[0].mxu1 }
 0x228   : > { %v965_v22 = vadd.f32 %v964_v63, %v2176_v48  ;;  %v966_v18 = vpop.f32.mrb[1].mxu1 }
 0x229   : > { %1235 = vst [vmem:[%s2186_s19] sm:$0xff] %v1388_v10  ;;  %v1389_v51 = vpack.c.bf16 %v891_v44, %v889_v13  ;;  %v967_v46 = vadd.f32 %v966_v18, %v2178_v54  ;;  %v968_v30 = vpop.f32.mrb[2].mxu1 }
 0x22a   : > { %v969_v32 = vadd.f32 %v968_v30, %v2176_v48  ;;  %v970_v21 = vpop.f32.mrb[3].mxu1 }
 0x22b   : > { %1236 = vst [vmem:[%s2186_s19 + $0x8] sm:$0xff] %v1389_v51  ;;  %v1404_v9 = vpack.c.bf16 %v967_v46, %v965_v22  ;;  %v971_v3 = vadd.f32 %v970_v21, %v2178_v54  ;;  %v894_v0 = vpop.f32.mrb[4].mxu0 }
 0x22c   : > { %v895_v52 = vadd.f32 %v894_v0, %v2176_v48  ;;  %v896_v53 = vpop.f32.mrb[5].mxu0 }
 0x22d   : > { %1251 = vst [vmem:[%s2186_s19 + $0x80] sm:$0xff] %v1404_v9  ;;  %v1405_v55 = vpack.c.bf16 %v971_v3, %v969_v32  ;;  %v897_v12 = vadd.f32 %v896_v53, %v2178_v54  ;;  %v898_v14 = vpop.f32.mrb[6].mxu0 }
 0x22e   : > { %v899_v45 = vadd.f32 %v898_v14, %v2176_v48  ;;  %v900_v33 = vpop.f32.mrb[7].mxu0 }
 0x22f   : > { %1252 = vst [vmem:[%s2186_s19 + $0x88] sm:$0xff] %v1405_v55  ;;  %v1390_v23 = vpack.c.bf16 %v897_v12, %v895_v52  ;;  %v901_v57 = vadd.f32 %v900_v33, %v2178_v54  ;;  %v974_v34 = vpop.f32.mrb[4].mxu1 }
 0x230   : > { %v975_v25 = vadd.f32 %v974_v34, %v2176_v48  ;;  %v976_v1 = vpop.f32.mrb[5].mxu1 }
 0x231   : > { %1237 = vst [vmem:[%s2186_s19 + $0x10] sm:$0xff] %v1390_v23  ;;  %v1391_v16 = vpack.c.bf16 %v901_v57, %v899_v45  ;;  %v977_v8 = vadd.f32 %v976_v1, %v2178_v54  ;;  %v978_v35 = vpop.f32.mrb[6].mxu1 }
 0x232   : > { %v979_v24 = vadd.f32 %v978_v35, %v2176_v48  ;;  %v980_v5 = vpop.f32.mrb[7].mxu1 }
 0x233   : > { %1238 = vst [vmem:[%s2186_s19 + $0x18] sm:$0xff] %v1391_v16  ;;  %v1406_v37 = vpack.c.bf16 %v977_v8, %v975_v25  ;;  %v981_v62 = vadd.f32 %v980_v5, %v2178_v54  ;;  %v904_v4 = vpop.f32.mrb[8].mxu0 }
 0x234   : > { %v905_v7 = vadd.f32 %v904_v4, %v2176_v48  ;;  %v906_v59 = vpop.f32.mrb[9].mxu0 }
 0x235   : > { %1253 = vst [vmem:[%s2186_s19 + $0x90] sm:$0xff] %v1406_v37  ;;  %v1407_v26 = vpack.c.bf16 %v981_v62, %v979_v24  ;;  %v907_v36 = vadd.f32 %v906_v59, %v2178_v54  ;;  %v908_v60 = vpop.f32.mrb[10].mxu0 }
 0x236   : > { %v909_v61 = vadd.f32 %v908_v60, %v2176_v48  ;;  %v910_v40 = vpop.f32.mrb[11].mxu0 }
 0x237   : > { %1254 = vst [vmem:[%s2186_s19 + $0x98] sm:$0xff] %v1407_v26  ;;  %v1392_v38 = vpack.c.bf16 %v907_v36, %v905_v7  ;;  %v911_v19 = vadd.f32 %v910_v40, %v2178_v54  ;;  %v984_v15 = vpop.f32.mrb[8].mxu1 }
 0x238   : > { %v985_v28 = vadd.f32 %v984_v15, %v2176_v48  ;;  %v986_v56 = vpop.f32.mrb[9].mxu1 }
 0x239   : > { %1239 = vst [vmem:[%s2186_s19 + $0x20] sm:$0xff] %v1392_v38  ;;  %v1393_v39 = vpack.c.bf16 %v911_v19, %v909_v61  ;;  %v987_v2 = vadd.f32 %v986_v56, %v2178_v54  ;;  %v988_v43 = vpop.f32.mrb[10].mxu1 }
 0x23a   : > { %v989_v11 = vadd.f32 %v988_v43, %v2176_v48  ;;  %v990_v58 = vpop.f32.mrb[11].mxu1 }
 0x23b   : > { %1240 = vst [vmem:[%s2186_s19 + $0x28] sm:$0xff] %v1393_v39  ;;  %v1408_v6 = vpack.c.bf16 %v987_v2, %v985_v28  ;;  %v991_v27 = vadd.f32 %v990_v58, %v2178_v54  ;;  %v914_v41 = vpop.f32.mrb[12].mxu0 }
 0x23c   : > { %v915_v42 = vadd.f32 %v914_v41, %v2176_v48  ;;  %v916_v17 = vpop.f32.mrb[13].mxu0 }
 0x23d   : > { %1255 = vst [vmem:[%s2186_s19 + $0xa0] sm:$0xff] %v1408_v6  ;;  %v1409_v31 = vpack.c.bf16 %v991_v27, %v989_v11  ;;  %v917_v49 = vadd.f32 %v916_v17, %v2178_v54  ;;  %v918_v29 = vpop.f32.mrb[14].mxu0 }
 0x23e   : > { %v919_v47 = vadd.f32 %v918_v29, %v2176_v48  ;;  %v920_v50 = vpop.f32.mrb[15].mxu0 }
 0x23f   : > { %1256 = vst [vmem:[%s2186_s19 + $0xa8] sm:$0xff] %v1409_v31  ;;  %v1394_v13 = vpack.c.bf16 %v917_v49, %v915_v42  ;;  %v921_v20 = vadd.f32 %v920_v50, %v2178_v54  ;;  %v994_v10 = vpop.f32.mrb[12].mxu1 }
 0x240   : > { %v995_v44 = vadd.f32 %v994_v10, %v2176_v48  ;;  %v996_v63 = vpop.f32.mrb[13].mxu1 }
 0x241   : > { %1241 = vst [vmem:[%s2186_s19 + $0x30] sm:$0xff] %v1394_v13  ;;  %v1395_v22 = vpack.c.bf16 %v921_v20, %v919_v47  ;;  %v997_v18 = vadd.f32 %v996_v63, %v2178_v54  ;;  %v998_v51 = vpop.f32.mrb[14].mxu1 }
 0x242   : > { %v999_v46 = vadd.f32 %v998_v51, %v2176_v48  ;;  %v1000_v30 = vpop.f32.mrb[15].mxu1 }
 0x243   : > { %1242 = vst [vmem:[%s2186_s19 + $0x38] sm:$0xff] %v1395_v22  ;;  %v1410_v32 = vpack.c.bf16 %v997_v18, %v995_v44  ;;  %v1001_v21 = vadd.f32 %v1000_v30, %v2178_v54  ;;  %v924_v9 = vpop.f32.mrb[16].mxu0 }
 0x244   : > { %v925_v3 = vadd.f32 %v924_v9, %v2176_v48  ;;  %v926_v0 = vpop.f32.mrb[17].mxu0 }
 0x245   : > { %1257 = vst [vmem:[%s2186_s19 + $0xb0] sm:$0xff] %v1410_v32  ;;  %v1411_v52 = vpack.c.bf16 %v1001_v21, %v999_v46  ;;  %v927_v53 = vadd.f32 %v926_v0, %v2178_v54  ;;  %v928_v55 = vpop.f32.mrb[18].mxu0 }
 0x246   : > { %v929_v12 = vadd.f32 %v928_v55, %v2176_v48  ;;  %v930_v14 = vpop.f32.mrb[19].mxu0 }
 0x247   : > { %1258 = vst [vmem:[%s2186_s19 + $0xb8] sm:$0xff] %v1411_v52  ;;  %v1396_v45 = vpack.c.bf16 %v927_v53, %v925_v3  ;;  %v931_v33 = vadd.f32 %v930_v14, %v2178_v54  ;;  %v1004_v23 = vpop.f32.mrb[16].mxu1 }
 0x248   : > { %v1005_v57 = vadd.f32 %v1004_v23, %v2176_v48  ;;  %v1006_v34 = vpop.f32.mrb[17].mxu1 }
 0x249   : > { %1243 = vst [vmem:[%s2186_s19 + $0x40] sm:$0xff] %v1396_v45  ;;  %v1397_v25 = vpack.c.bf16 %v931_v33, %v929_v12  ;;  %v1007_v1 = vadd.f32 %v1006_v34, %v2178_v54  ;;  %v1008_v16 = vpop.f32.mrb[18].mxu1 }
 0x24a   : > { %v1009_v8 = vadd.f32 %v1008_v16, %v2176_v48  ;;  %v1010_v35 = vpop.f32.mrb[19].mxu1 }
 0x24b   : > { %1244 = vst [vmem:[%s2186_s19 + $0x48] sm:$0xff] %v1397_v25  ;;  %v1412_v24 = vpack.c.bf16 %v1007_v1, %v1005_v57  ;;  %v1011_v5 = vadd.f32 %v1010_v35, %v2178_v54  ;;  %v934_v37 = vpop.f32.mrb[20].mxu0 }
 0x24c   : > { %v935_v62 = vadd.f32 %v934_v37, %v2176_v48  ;;  %v936_v4 = vpop.f32.mrb[21].mxu0 }
 0x24d   : > { %1259 = vst [vmem:[%s2186_s19 + $0xc0] sm:$0xff] %v1412_v24  ;;  %v1413_v7 = vpack.c.bf16 %v1011_v5, %v1009_v8  ;;  %v937_v59 = vadd.f32 %v936_v4, %v2178_v54  ;;  %v938_v26 = vpop.f32.mrb[22].mxu0 }
 0x24e   : > { %v939_v36 = vadd.f32 %v938_v26, %v2176_v48  ;;  %v940_v60 = vpop.f32.mrb[23].mxu0 }
 0x24f   : > { %1260 = vst [vmem:[%s2186_s19 + $0xc8] sm:$0xff] %v1413_v7  ;;  %v1398_v61 = vpack.c.bf16 %v937_v59, %v935_v62  ;;  %v941_v40 = vadd.f32 %v940_v60, %v2178_v54  ;;  %v1014_v38 = vpop.f32.mrb[20].mxu1 }
 0x250   : > { %v1015_v19 = vadd.f32 %v1014_v38, %v2176_v48  ;;  %v1016_v15 = vpop.f32.mrb[21].mxu1 }
 0x251   : > { %1245 = vst [vmem:[%s2186_s19 + $0x50] sm:$0xff] %v1398_v61  ;;  %v1399_v28 = vpack.c.bf16 %v941_v40, %v939_v36  ;;  %v1017_v56 = vadd.f32 %v1016_v15, %v2178_v54  ;;  %v1018_v39 = vpop.f32.mrb[22].mxu1 }
 0x252   : > { %v1019_v2 = vadd.f32 %v1018_v39, %v2176_v48  ;;  %v1020_v43 = vpop.f32.mrb[23].mxu1 }
 0x253   : > { %1246 = vst [vmem:[%s2186_s19 + $0x58] sm:$0xff] %v1399_v28  ;;  %v1414_v11 = vpack.c.bf16 %v1017_v56, %v1015_v19  ;;  %v1021_v58 = vadd.f32 %v1020_v43, %v2178_v54  ;;  %v944_v6 = vpop.f32.mrb[24].mxu0 }
 0x254   : > { %v945_v27 = vadd.f32 %v944_v6, %v2176_v48  ;;  %v946_v41 = vpop.f32.mrb[25].mxu0 }
 0x255   : > { %1261 = vst [vmem:[%s2186_s19 + $0xd0] sm:$0xff] %v1414_v11  ;;  %v1415_v42 = vpack.c.bf16 %v1021_v58, %v1019_v2  ;;  %v947_v17 = vadd.f32 %v946_v41, %v2178_v54  ;;  %v948_v31 = vpop.f32.mrb[26].mxu0 }
 0x256   : > { %v949_v49 = vadd.f32 %v948_v31, %v2176_v48  ;;  %v950_v29 = vpop.f32.mrb[27].mxu0 }
 0x257   : > { %1262 = vst [vmem:[%s2186_s19 + $0xd8] sm:$0xff] %v1415_v42  ;;  %v1400_v47 = vpack.c.bf16 %v947_v17, %v945_v27  ;;  %v951_v50 = vadd.f32 %v950_v29, %v2178_v54  ;;  %v1024_v13 = vpop.f32.mrb[24].mxu1 }
 0x258   : > { %v1025_v20 = vadd.f32 %v1024_v13, %v2176_v48  ;;  %v1026_v10 = vpop.f32.mrb[25].mxu1 }
 0x259   : > { %1247 = vst [vmem:[%s2186_s19 + $0x60] sm:$0xff] %v1400_v47  ;;  %v1401_v44 = vpack.c.bf16 %v951_v50, %v949_v49  ;;  %v1027_v63 = vadd.f32 %v1026_v10, %v2178_v54  ;;  %v1028_v22 = vpop.f32.mrb[26].mxu1 }
 0x25a   : > { %v1029_v18 = vadd.f32 %v1028_v22, %v2176_v48  ;;  %v1030_v51 = vpop.f32.mrb[27].mxu1 }
 0x25b   : > { %1248 = vst [vmem:[%s2186_s19 + $0x68] sm:$0xff] %v1401_v44  ;;  %v1416_v46 = vpack.c.bf16 %v1027_v63, %v1025_v20  ;;  %v1031_v30 = vadd.f32 %v1030_v51, %v2178_v54  ;;  %v954_v32 = vpop.f32.mrb[28].mxu0 }
 0x25c   : > { %v955_v21 = vadd.f32 %v954_v32, %v2176_v48  ;;  %v956_v9 = vpop.f32.mrb[29].mxu0 }
 0x25d   : > { %1263 = vst [vmem:[%s2186_s19 + $0xe0] sm:$0xff] %v1416_v46  ;;  %v1417_v3 = vpack.c.bf16 %v1031_v30, %v1029_v18  ;;  %v957_v0 = vadd.f32 %v956_v9, %v2178_v54  ;;  %v958_v52 = vpop.f32.mrb[30].mxu0 }
 0x25e   : > { %v959_v53 = vadd.f32 %v958_v52, %v2176_v48  ;;  %v960_v55 = vpop.f32.mrb[31].mxu0 }
 0x25f   : > { %1264 = vst [vmem:[%s2186_s19 + $0xe8] sm:$0xff] %v1417_v3  ;;  %v1402_v12 = vpack.c.bf16 %v957_v0, %v955_v21  ;;  %v961_v14 = vadd.f32 %v960_v55, %v2178_v54  ;;  %v1034_v45 = vpop.f32.mrb[28].mxu1 }
 0x260   : > { %v1035_v33 = vadd.f32 %v1034_v45, %v2176_v48  ;;  %v1036_v23 = vpop.f32.mrb[29].mxu1 }
 0x261   : > { %1249 = vst [vmem:[%s2186_s19 + $0x70] sm:$0xff] %v1402_v12  ;;  %v1403_v57 = vpack.c.bf16 %v961_v14, %v959_v53  ;;  %v1037_v34 = vadd.f32 %v1036_v23, %v2178_v54  ;;  %v1038_v25 = vpop.f32.mrb[30].mxu1 }
 0x262   : > { %v1039_v1 = vadd.f32 %v1038_v25, %v2176_v48  ;;  %v1040_v16 = vpop.f32.mrb[31].mxu1 }
 0x263   : > { %1250 = vst [vmem:[%s2186_s19 + $0x78] sm:$0xff] %v1403_v57  ;;  %v1418_v8 = vpack.c.bf16 %v1037_v34, %v1035_v33  ;;  %v1041_v35 = vadd.f32 %v1040_v16, %v2178_v54 }
 0x265   : > { %1265 = vst [vmem:[%s2186_s19 + $0xf0] sm:$0xff] %v1418_v8  ;;  %v1419_v24 = vpack.c.bf16 %v1041_v35, %v1039_v1 }
 0x267   : > { %1266 = vst [vmem:[%s2186_s19 + $0xf8] sm:$0xff] %v1419_v24 }
 0x268 PF: > { %s15_s18 = sadd.s32 1, %s1618_s18  }
 0x269   : > { %p12_p4 = scmp.ge.s32.totalorder %s15_s18, 4  }
 0x26b   :  { %14 = sbr.rel (!%p12_p4) target bundleno = 1 (0x1), region = 70 }

// kernel: albert_origin_xlarge_forward.11
= control target key start
LH: loop header
LB: loop body
LE: loop exit
PB: predicated region body
PF: predicated region fallthrough
CT: control target
= control target key end

     0   :  { %s834_s0 = inlined_call_operand.vmem [shape: bf16[4,256], index: 0, kind: input, shape index: {}]   ;;  %s835_s1 = inlined_call_operand.vmem [shape: bf16[256,256], index: 1, kind: input, shape index: {}]   ;;  %s836_s2 = inlined_call_operand.vmem [shape: f32[1,256], index: 2, kind: input, shape index: {}]   ;;  %s837_s3 = inlined_call_operand.vmem [shape: bf16[256,128], index: 3, kind: input, shape index: {}]   ;;  %s838_s4 = inlined_call_operand.vmem [shape: f32[1,128], index: 4, kind: input, shape index: {}]   ;;  %s839_s5 = inlined_call_operand.hbm [shape: f32[4,128], index: 5, kind: output, shape index: {}]  }
   0x1   :  { %v546_v0 = vld [vmem:[%s835_s1 + $0x4] ss:$8 sps:$4 sm:$0xff]   ;;  %v548_v1 = vld [vmem:[%s835_s1] ss:$8 sps:$4 sm:$0xff]   ;;  %v549_v2 = vld [vmem:[%s835_s1 + $0x14] ss:$8 sps:$4 sm:$0xff]  }
   0x2   :  { %238 = vmatprep.subr.bf16.mxu0 %v546_v0  ;;  %v551_v3 = vld [vmem:[%s835_s1 + $0x10] ss:$8 sps:$4 sm:$0xff]   ;;  %v552_v4 = vld [vmem:[%s835_s1 + $0x24] ss:$8 sps:$4 sm:$0xff]   ;;  %v554_v5 = vld [vmem:[%s835_s1 + $0x20] ss:$8 sps:$4 sm:$0xff]  }
   0x3   :  { %239 = vmatpush1.bf16.msra.mxu0 %v548_v1  ;;  %v555_v6 = vld [vmem:[%s835_s1 + $0x34] ss:$8 sps:$4 sm:$0xff]   ;;  %v557_v7 = vld [vmem:[%s835_s1 + $0x30] ss:$8 sps:$4 sm:$0xff]   ;;  %v558_v8 = vld [vmem:[%s835_s1 + $0x44] ss:$8 sps:$4 sm:$0xff]  }
   0x4   :  { %240 = vmatprep.subr.bf16.mxu0 %v549_v2  ;;  %v560_v9 = vld [vmem:[%s835_s1 + $0x40] ss:$8 sps:$4 sm:$0xff]   ;;  %v561_v10 = vld [vmem:[%s835_s1 + $0x54] ss:$8 sps:$4 sm:$0xff]   ;;  %v563_v11 = vld [vmem:[%s835_s1 + $0x50] ss:$8 sps:$4 sm:$0xff]  }
   0x5   :  { %v564_v12 = vld [vmem:[%s835_s1 + $0x64] ss:$8 sps:$4 sm:$0xff]   ;;  %v566_v13 = vld [vmem:[%s835_s1 + $0x60] ss:$8 sps:$4 sm:$0xff]   ;;  %v567_v15 = vld [vmem:[%s835_s1 + $0x74] ss:$8 sps:$4 sm:$0xff]  }
   0x6   :  { %v473_v14 = vld.sshfl [vmem:[%s834_s0] sm:$0x33 pattern:$0x76325410]  ;;  %v596_v19 = vld [vmem:[%s837_s3 + $0x48] sm:$0xff]   ;;  %v598_v22 = vld [vmem:[%s837_s3 + $0x50] sm:$0xff]  }
   0x7   :  { %241 = vmatpush1.bf16.msra.mxu0 %v551_v3  ;;  %v75_v16 = vcombine.high %v473_v14, %v473_v14  ;;  %v594_v17 = vld [vmem:[%s837_s3 + $0x40] sm:$0xff]   ;;  %v569_v20 = vld [vmem:[%s835_s1 + $0x70] ss:$8 sps:$4 sm:$0xff]   ;;  %v597_v21 = vld [vmem:[%s837_s3 + $0x8] sm:$0xff]  }
   0x8   :  { %242 = vmatprep.subr.bf16.mxu0 %v552_v4  ;;  %v595_v18 = vld [vmem:[%s837_s3] sm:$0xff]   ;;  %523 = vmatprep.subr.bf16.mxu1 %v594_v17  ;;  %v599_v25 = vld [vmem:[%s837_s3 + $0x10] sm:$0xff]   ;;  %v600_v27 = vld [vmem:[%s837_s3 + $0x58] sm:$0xff]  }
   0x9   :  { %270 = vmatprep.mubr.bf16.mxu0 %v75_v16  ;;  %524 = vmatpush3.bf16.msra.mxu1 %v595_v18  ;;  %v570_v23 = vld [vmem:[%s835_s1 + $0x84] ss:$8 sps:$4 sm:$0xff]   ;;  %v572_v24 = vld [vmem:[%s835_s1 + $0x80] ss:$8 sps:$4 sm:$0xff]   ;;  %v573_v26 = vld [vmem:[%s835_s1 + $0x94] ss:$8 sps:$4 sm:$0xff]  }
   0xa   :  { %525 = vmatprep.subr.bf16.mxu1 %v596_v19  ;;  %v601_v28 = vld [vmem:[%s837_s3 + $0x18] sm:$0xff]  }
   0xb   :  { %243 = vmatpush1.bf16.msra.mxu0 %v554_v5  ;;  %v575_v29 = vld [vmem:[%s835_s1 + $0x90] ss:$8 sps:$4 sm:$0xff]  }
   0xc   :  { %244 = vmatprep.subr.bf16.mxu0 %v555_v6 }
   0xd   :  { %526 = vmatpush3.bf16.msra.mxu1 %v597_v21 }
   0xe   :  { %527 = vmatprep.subr.bf16.mxu1 %v598_v22 }
   0xf   :  { %245 = vmatpush1.bf16.msra.mxu0 %v557_v7 }
  0x10   :  { %246 = vmatprep.subr.bf16.mxu0 %v558_v8 }
  0x11   :  { %528 = vmatpush3.bf16.msra.mxu1 %v599_v25 }
  0x12   :  { %529 = vmatprep.subr.bf16.mxu1 %v600_v27 }
  0x13   :  { %247 = vmatpush1.bf16.msra.mxu0 %v560_v9 }
  0x14   :  { %248 = vmatprep.subr.bf16.mxu0 %v561_v10 }
  0x17   :  { %249 = vmatpush1.bf16.msra.mxu0 %v563_v11 }
  0x18   :  { %250 = vmatprep.subr.bf16.mxu0 %v564_v12 }
  0x1b   :  { %251 = vmatpush1.bf16.msra.mxu0 %v566_v13 }
  0x1c   :  { %252 = vmatprep.subr.bf16.mxu0 %v567_v15 }
  0x1f   :  { %253 = vmatpush1.bf16.msra.mxu0 %v569_v20 }
  0x20   :  { %254 = vmatprep.subr.bf16.mxu0 %v570_v23 }
  0x23   :  { %255 = vmatpush1.bf16.msra.mxu0 %v572_v24 }
  0x24   :  { %10 = vsyncpa [#allocation3], 0  ;;  %256 = vmatprep.subr.bf16.mxu0 %v573_v26  ;;  %v576_v30 = vld [vmem:[%s835_s1 + $0xa4] ss:$8 sps:$4 sm:$0xff]   ;;  %530 = vmatpush3.bf16.msra.mxu1 %v601_v28  ;;  %v578_v31 = vld [vmem:[%s835_s1 + $0xa0] ss:$8 sps:$4 sm:$0xff]   ;;  %v57_v50 = vlaneseq }
  0x25   :  { %v579_v32 = vld [vmem:[%s835_s1 + $0xb4] ss:$8 sps:$4 sm:$0xff]   ;;  %v581_v33 = vld [vmem:[%s835_s1 + $0xb0] ss:$8 sps:$4 sm:$0xff]   ;;  %v582_v34 = vld [vmem:[%s835_s1 + $0xc4] ss:$8 sps:$4 sm:$0xff]  }
  0x26   :  { %v584_v35 = vld [vmem:[%s835_s1 + $0xc0] ss:$8 sps:$4 sm:$0xff]   ;;  %v585_v36 = vld [vmem:[%s835_s1 + $0xd4] ss:$8 sps:$4 sm:$0xff]   ;;  %v587_v37 = vld [vmem:[%s835_s1 + $0xd0] ss:$8 sps:$4 sm:$0xff]  }
  0x27   :  { %257 = vmatpush1.bf16.msra.mxu0 %v575_v29  ;;  %v588_v38 = vld [vmem:[%s835_s1 + $0xe4] ss:$8 sps:$4 sm:$0xff]   ;;  %v590_v39 = vld [vmem:[%s835_s1 + $0xe0] ss:$8 sps:$4 sm:$0xff]   ;;  %v591_v40 = vld [vmem:[%s835_s1 + $0xf4] ss:$8 sps:$4 sm:$0xff]  }
  0x28   :  { %258 = vmatprep.subr.bf16.mxu0 %v576_v30  ;;  %v593_v41 = vld [vmem:[%s835_s1 + $0xf0] ss:$8 sps:$4 sm:$0xff]   ;;  %v602_v42 = vld [vmem:[%s837_s3 + $0x60] sm:$0xff]   ;;  %v604_v44 = vld [vmem:[%s837_s3 + $0x68] sm:$0xff]   ;;  %v58_v51 = vshrl.u32 %v57_v50, 7  ;;  %s638_s14 = smov [#allocation2]  }
  0x29   :  { %v603_v43 = vld [vmem:[%s837_s3 + $0x20] sm:$0xff]   ;;  %531 = vmatprep.subr.bf16.mxu1 %v602_v42  ;;  %v605_v45 = vld [vmem:[%s837_s3 + $0x28] sm:$0xff]   ;;  %v606_v46 = vld [vmem:[%s837_s3 + $0x70] sm:$0xff]   ;;  %s465_s15 = sshll.u32 %s638_s14, 4  ;;  %s466_s15 = int_to_ptr.vmem [resolvable:$true] %s465_s15 }
  0x2a   :  { %532 = vmatpush3.bf16.msra.mxu1 %v603_v43  ;;  %v607_v47 = vld [vmem:[%s837_s3 + $0x30] sm:$0xff]   ;;  %v608_v48 = vld [vmem:[%s837_s3 + $0x78] sm:$0xff]   ;;  %v59_v52 = vsub.s32 0, %v58_v51  ;;  %v55_v53 = vld [vmem:[%s836_s2] sm:$0x3]  ;;  %v63_v54 = vsub.s32 1, %v58_v51  ;;  %p619_p1 = scmp.lt.s32.totalorder %s466_s15, %s466_s15 }
  0x2b   :  { %259 = vmatpush1.bf16.msra.mxu0 %v578_v31  ;;  %533 = vmatprep.subr.bf16.mxu1 %v604_v44  ;;  %v609_v49 = vld [vmem:[%s837_s3 + $0x38] sm:$0xff]   ;;  %v506_v5 = vld [vmem:[%s838_s4] ss:$0 sm:$0xff]  ;;  %s614_s16 = scalar_lea.vmem %s466_s15, 64 }
  0x2c   :  { %260 = vmatprep.subr.bf16.mxu0 %v579_v32  ;;  %v60_v55 = vrot.slane %v55_v53, %v59_v52  ;;  %v64_v56 = vrot.slane %v55_v53, %v63_v54  ;;  %p615_p0 = scmp.ne.s32.totalorder %s466_s15, %s614_s16  ;;  %p620_p2 = scmp.lt.s32.totalorder %s614_s16, %s614_s16 }
  0x2e   :  { %534 = vmatpush3.bf16.msra.mxu1 %v605_v45  ;;  %p621_p3 = por %p620_p2, %p619_p1 }
  0x2f   :  { %261 = vmatpush1.bf16.msra.mxu0 %v581_v33  ;;  %535 = vmatprep.subr.bf16.mxu1 %v606_v46 }
  0x30   :  { %262 = vmatprep.subr.bf16.mxu0 %v582_v34  ;;  %p622_p4 = pnand %p621_p3, %p615_p0 }
  0x32   :  { %536 = vmatpush3.bf16.msra.mxu1 %v607_v47 }
  0x33   :  { %263 = vmatpush1.bf16.msra.mxu0 %v584_v35  ;;  %537 = vmatprep.subr.bf16.mxu1 %v608_v48 }
  0x34   :  { %264 = vmatprep.subr.bf16.mxu0 %v585_v36 }
  0x36   :  { %538 = vmatpush3.bf16.msra.mxu1 %v609_v49 }
  0x37   :  { %265 = vmatpush1.bf16.msra.mxu0 %v587_v37 }
  0x38   :  { %266 = vmatprep.subr.bf16.mxu0 %v588_v38 }
  0x3b   :  { %267 = vmatpush1.bf16.msra.mxu0 %v590_v39 }
  0x3c   :  { %268 = vmatprep.subr.bf16.mxu0 %v591_v40 }
  0x3f   :  { %269 = vmatpush1.bf16.msra.mxu0 %v593_v41 }
  0x42   :  { %271 = vmatmul.mubr.bf16.vlgmr.msra.gmra.mrb[0].mxu0 %v473_v14 }
 0x115   :  { %v272_v57 = vpop.f32.mrb[0].mxu0 }
 0x116   :  { %v273_v58 = vadd.f32 %v272_v57, %v60_v55  ;;  %v274_v59 = vpop.f32.mrb[1].mxu0 }
 0x117   :  { %v275_v60 = vadd.f32 %v274_v59, %v64_v56  ;;  %v276_v61 = vpop.f32.mrb[2].mxu0 }
 0x118   :  { %610 = vtanh.f32 %v273_v58  ;;  %v277_v62 = vpop.f32.mrb[3].mxu0 }
 0x119   :  { %612 = vtanh.f32 %v275_v60 }
 0x122   :  { %v611_v63 = vpop.eup %610 }
 0x123   :  { %v613_v0 = vpop.eup %612  ;;  %v281_v2 = vpack.c.bf16 %v611_v63, %v611_v63 }
 0x124   :  { %v282_v1 = vpack.c.bf16 %v613_v0, %v613_v0 }
 0x126   :  { %450 = vmatprep.mubr.bf16.mxu1 %v282_v1 }
 0x127   :  { %451 = vmatmul.mubr.bf16.vlgmr.msra.gmra.mrb[0].mxu1 %v281_v2 }
 0x1fa   :  { %v539_v3 = vpop.f32.mrb[0].mxu1 }
 0x1fb   :  { %v540_v4 = vpop.f32.mrb[1].mxu1 }
 0x1fc   :  { %v541_v6 = vadd.f32 %v540_v4, %v539_v3  ;;  %v542_v7 = vpop.f32.mrb[2].mxu1 }
 0x1fd   :  { %v543_v8 = vpop.f32.mrb[3].mxu1 }
 0x1fe   :  { %v453_v9 = vadd.f32 %v541_v6, %v506_v5 }
 0x200   :  { %458 = vst [vmem:[#allocation2] sm:$0xf] %v453_v9 }
 0x201   :  { %625 = shalt.err (!%p622_p4)
}
 0x202   :  { %s626_s19 = scalar_lea.hbm %s839_s5, 64 }
 0x203   :  { %p627_p5 = scmp.ne.s32.totalorder %s839_s5, %s626_s19  ;;  %p630_p6 = scmp.lt.u32.totalorder %s626_s19, %s839_s5 }
 0x205   :  { %p632_p7 = pnand %p630_p6, %p627_p5 }
 0x207   :  { %635 = shalt.err (!%p632_p7)
}
 0x208   :  { %468 = dma.vmem_to_hbm [thread:$0]  %s466_s15, 64, %s839_s5, [#allocation3]  }
 0x209   :  { %636 = dma.done.wait [#allocation3], 64  }
 0x20a   :  { %637 = vsyncadd [#allocation3], 4294967232 }
 0x20b   :  { %472 = vsyncpa [#allocation3], 1 }

// kernel: albert_origin_xlarge_forward.7
= control target key start
LH: loop header
LB: loop body
LE: loop exit
PB: predicated region body
PF: predicated region fallthrough
CT: control target
= control target key end

     0   :  { %s3856_s27 = smov 0   ;;  %s5409_s0 = inlined_call_operand.vmem [shape: bf16[4,128,256], index: 0, kind: input, shape index: {}]   ;;  %s5410_s1 = inlined_call_operand.vmem [shape: f32[4,1,128], index: 1, kind: input, shape index: {}]   ;;  %s5411_s2 = inlined_call_operand.vmem [shape: bf16[256,768], index: 2, kind: input, shape index: {}]   ;;  %s5412_s3 = inlined_call_operand.vmem [shape: f32[1,768], index: 3, kind: input, shape index: {}]   ;;  %s5413_s4 = inlined_call_operand.vmem [shape: bf16[256,256], index: 4, kind: input, shape index: {}]   ;;  %s5414_s5 = inlined_call_operand.vmem [shape: f32[1,256], index: 5, kind: input, shape index: {}]   ;;  %s5415_s6 = inlined_call_operand.vmem [shape: f32[1,256], index: 6, kind: input, shape index: {}]   ;;  %s5416_s7 = inlined_call_operand.vmem [shape: f32[1,256], index: 7, kind: input, shape index: {}]   ;;  %s5417_s8 = inlined_call_operand.vmem [shape: bf16[4,128,256], index: 8, kind: output, shape index: {}]  }
   0x1 LB: > { %s3029_s28 = sadd.s32 4294967295, %s3809_s27   ;;  %p3033_p0 = scmp.ge.s32.totalorder %s3809_s27, 1  ;;  %s3809_s27 = sphi %s3856_s27, %s18_s27  }
   0x2   : > { %p270_p1 = scmp.lt.s32.totalorder %s3809_s27, 5 }
   0x4   : > { %p271_p2 = pnand %p3033_p0, %p270_p1 }
   0x6   : > { %274 = sbr.rel (%p271_p2) target bundleno = 1804 (0x70c), region = 52 }
   0xd   : > { %v3419_v0 = vld [vmem:[%s5411_s2 + $0x4] ss:$24 sps:$4 sm:$0xff]   ;;  %v3421_v1 = vld [vmem:[%s5411_s2] ss:$24 sps:$4 sm:$0xff]   ;;  %v3422_v2 = vld [vmem:[%s5411_s2 + $0x34] ss:$24 sps:$4 sm:$0xff]  }
   0xe   : > { %1025 = vmatprep.subr.bf16.mxu1 %v3419_v0  ;;  %v3424_v3 = vld [vmem:[%s5411_s2 + $0x30] ss:$24 sps:$4 sm:$0xff]   ;;  %v3425_v4 = vld [vmem:[%s5411_s2 + $0x64] ss:$24 sps:$4 sm:$0xff]   ;;  %v3427_v5 = vld [vmem:[%s5411_s2 + $0x60] ss:$24 sps:$4 sm:$0xff]  }
   0xf   : > { %1026 = vmatpush1.bf16.msra.mxu1 %v3421_v1  ;;  %p307_p3 = scmp.lt.s32.totalorder %s3029_s28, 3  ;;  %v3428_v6 = vld [vmem:[%s5411_s2 + $0x94] ss:$24 sps:$4 sm:$0xff]   ;;  %v3430_v7 = vld [vmem:[%s5411_s2 + $0x90] ss:$24 sps:$4 sm:$0xff]  }
  0x10   : > { %1027 = vmatprep.subr.bf16.mxu1 %v3422_v2  ;;  %v3431_v8 = vld [vmem:[%s5411_s2 + $0xc4] ss:$24 sps:$4 sm:$0xff]   ;;  %v3433_v9 = vld [vmem:[%s5411_s2 + $0xc0] ss:$24 sps:$4 sm:$0xff]   ;;  %v3434_v10 = vld [vmem:[%s5411_s2 + $0xf4] ss:$24 sps:$4 sm:$0xff]  }
  0x11   : > { %s5441_s28 = smov (!%p307_p3, %s3029_s28), 3  ;;  %v3436_v11 = vld [vmem:[%s5411_s2 + $0xf0] ss:$24 sps:$4 sm:$0xff]   ;;  %v3437_v12 = vld [vmem:[%s5411_s2 + $0x124] ss:$24 sps:$4 sm:$0xff]  }
  0x12   : > { %s3201_s29 = sshll.u32 %s5441_s28, 7  ;;  %v3439_v16 = vld [vmem:[%s5411_s2 + $0x120] ss:$24 sps:$4 sm:$0xff]   ;;  %v3440_v17 = vld [vmem:[%s5411_s2 + $0x154] ss:$24 sps:$4 sm:$0xff]   ;;  %s314_s25 = scalar_lea.vmem %s5410_s1, %s5441_s28 }
  0x13   : > { %1028 = vmatpush1.bf16.msra.mxu1 %v3424_v3  ;;  %s3905_s12 = scalar_lea.vmem %s5409_s0, %s3201_s29  ;;  %v3442_v18 = vld [vmem:[%s5411_s2 + $0x150] ss:$24 sps:$4 sm:$0xff]   ;;  %v3443_v19 = vld [vmem:[%s5411_s2 + $0x184] ss:$24 sps:$4 sm:$0xff]   ;;  %v3445_v20 = vld [vmem:[%s5411_s2 + $0x180] ss:$24 sps:$4 sm:$0xff]  }
  0x14   : > { %1029 = vmatprep.subr.bf16.mxu1 %v3425_v4  ;;  %v3914_v13 = vld [vmem:[%s3905_s12] sm:$0xff]  ;;  %v322_v14 = vld [vmem:[%s3905_s12 + $0x8] sm:$0xff]  ;;  %v323_v43 = vld [vmem:[%s3905_s12 + $0x10] sm:$0xff] }
  0x15   : > { %v3918_v15 = vcombine.high %v3914_v13, %v322_v14  ;;  %v3446_v21 = vld [vmem:[%s5411_s2 + $0x1b4] ss:$24 sps:$4 sm:$0xff]   ;;  %v3448_v22 = vld [vmem:[%s5411_s2 + $0x1b0] ss:$24 sps:$4 sm:$0xff]   ;;  %v3449_v23 = vld [vmem:[%s5411_s2 + $0x1e4] ss:$24 sps:$4 sm:$0xff]   ;;  %v4012_v47 = vcombine.low %v3914_v13, %v322_v14 }
  0x16   : > { %v3451_v24 = vld [vmem:[%s5411_s2 + $0x1e0] ss:$24 sps:$4 sm:$0xff]   ;;  %v3452_v25 = vld [vmem:[%s5411_s2 + $0x214] ss:$24 sps:$4 sm:$0xff]   ;;  %v3454_v26 = vld [vmem:[%s5411_s2 + $0x210] ss:$24 sps:$4 sm:$0xff]  }
  0x17   : > { %1030 = vmatpush1.bf16.msra.mxu1 %v3427_v5  ;;  %1057 = vmatprep.mubr.bf16.mxu1 %v3918_v15  ;;  %v3455_v27 = vld [vmem:[%s5411_s2 + $0x244] ss:$24 sps:$4 sm:$0xff]   ;;  %v3457_v28 = vld [vmem:[%s5411_s2 + $0x240] ss:$24 sps:$4 sm:$0xff]   ;;  %v3458_v29 = vld [vmem:[%s5411_s2 + $0x274] ss:$24 sps:$4 sm:$0xff]  }
  0x18   : > { %1031 = vmatprep.subr.bf16.mxu1 %v3428_v6  ;;  %1283 = vmatprep.mubr.bf16.mxu0 %v3918_v15  ;;  %v3531_v30 = vld [vmem:[%s5411_s2 + $0x14] ss:$24 sps:$4 sm:$0xff]   ;;  %v3533_v31 = vld [vmem:[%s5411_s2 + $0x10] ss:$24 sps:$4 sm:$0xff]   ;;  %v3534_v33 = vld [vmem:[%s5411_s2 + $0x44] ss:$24 sps:$4 sm:$0xff]  }
  0x19   : > { %v3460_v32 = vld [vmem:[%s5411_s2 + $0x270] ss:$24 sps:$4 sm:$0xff]   ;;  %v3461_v34 = vld [vmem:[%s5411_s2 + $0x2a4] ss:$24 sps:$4 sm:$0xff]   ;;  %1251 = vmatprep.subr.bf16.mxu0 %v3531_v30  ;;  %v3536_v35 = vld [vmem:[%s5411_s2 + $0x40] ss:$24 sps:$4 sm:$0xff]  }
  0x1a   : > { %1252 = vmatpush1.bf16.msra.mxu0 %v3533_v31  ;;  %v3537_v36 = vld [vmem:[%s5411_s2 + $0x74] ss:$24 sps:$4 sm:$0xff]   ;;  %v3463_v37 = vld [vmem:[%s5411_s2 + $0x2a0] ss:$24 sps:$4 sm:$0xff]   ;;  %v3539_v39 = vld [vmem:[%s5411_s2 + $0x70] ss:$24 sps:$4 sm:$0xff]  }
  0x1b   : > { %1032 = vmatpush1.bf16.msra.mxu1 %v3430_v7  ;;  %1253 = vmatprep.subr.bf16.mxu0 %v3534_v33  ;;  %v3464_v38 = vld [vmem:[%s5411_s2 + $0x2d4] ss:$24 sps:$4 sm:$0xff]   ;;  %v3540_v40 = vld [vmem:[%s5411_s2 + $0xa4] ss:$24 sps:$4 sm:$0xff]   ;;  %v3466_v41 = vld [vmem:[%s5411_s2 + $0x2d0] ss:$24 sps:$4 sm:$0xff]  }
  0x1c   : > { %1033 = vmatprep.subr.bf16.mxu1 %v3431_v8  ;;  %v3471_v42 = vld [vmem:[%s5411_s2 + $0xc] ss:$24 sps:$4 sm:$0xff]   ;;  %v324_v44 = vld [vmem:[%s3905_s12 + $0x18] sm:$0xff]  ;;  %v3469_v48 = vld [vmem:[%s5411_s2 + $0x8] ss:$24 sps:$4 sm:$0xff]  }
  0x1d   : > { %v3542_v45 = vld [vmem:[%s5411_s2 + $0xa0] ss:$24 sps:$4 sm:$0xff]   ;;  %v3543_v46 = vld [vmem:[%s5411_s2 + $0xd4] ss:$24 sps:$4 sm:$0xff]   ;;  %v4020_v50 = vcombine.high %v323_v43, %v324_v44  ;;  %v3545_v51 = vld [vmem:[%s5411_s2 + $0xd0] ss:$24 sps:$4 sm:$0xff]   ;;  %v4047_v60 = vcombine.low %v323_v43, %v324_v44 }
  0x1e   : > { %1254 = vmatpush1.bf16.msra.mxu0 %v3536_v35  ;;  %v3474_v49 = vld [vmem:[%s5411_s2 + $0x3c] ss:$24 sps:$4 sm:$0xff]   ;;  %v3472_v52 = vld [vmem:[%s5411_s2 + $0x38] ss:$24 sps:$4 sm:$0xff]   ;;  %v3479_v54 = vld [vmem:[%s5411_s2 + $0x6c] ss:$24 sps:$4 sm:$0xff]  }
  0x1f   : > { %1034 = vmatpush1.bf16.msra.mxu1 %v3433_v9  ;;  %1255 = vmatprep.subr.bf16.mxu0 %v3537_v36  ;;  %v3546_v53 = vld [vmem:[%s5411_s2 + $0x104] ss:$24 sps:$4 sm:$0xff]   ;;  %v326_v56 = vld [vmem:[%s3905_s12 + $0x28] sm:$0xff]  ;;  %v3548_v57 = vld [vmem:[%s5411_s2 + $0x100] ss:$24 sps:$4 sm:$0xff]  }
  0x20   : > { %1035 = vmatprep.subr.bf16.mxu1 %v3434_v10  ;;  %v325_v55 = vld [vmem:[%s3905_s12 + $0x20] sm:$0xff]  ;;  %v3549_v59 = vld [vmem:[%s5411_s2 + $0x134] ss:$24 sps:$4 sm:$0xff]   ;;  %v3551_v62 = vld [vmem:[%s5411_s2 + $0x130] ss:$24 sps:$4 sm:$0xff]  }
  0x21   : > { %v3477_v58 = vld [vmem:[%s5411_s2 + $0x68] ss:$24 sps:$4 sm:$0xff]   ;;  %v3482_v61 = vld [vmem:[%s5411_s2 + $0x9c] ss:$24 sps:$4 sm:$0xff]   ;;  %v4055_v63 = vcombine.high %v325_v55, %v326_v56  ;;  %v3480_v1 = vld [vmem:[%s5411_s2 + $0x98] ss:$24 sps:$4 sm:$0xff]   ;;  %v4079_v8 = vcombine.low %v325_v55, %v326_v56 }
  0x22   : > { %1256 = vmatpush1.bf16.msra.mxu0 %v3539_v39  ;;  %v3552_v0 = vld [vmem:[%s5411_s2 + $0x164] ss:$24 sps:$4 sm:$0xff]   ;;  %v327_v3 = vld [vmem:[%s3905_s12 + $0x30] sm:$0xff]  ;;  %v3554_v5 = vld [vmem:[%s5411_s2 + $0x160] ss:$24 sps:$4 sm:$0xff]  }
  0x23   : > { %1036 = vmatpush1.bf16.msra.mxu1 %v3436_v11  ;;  %1257 = vmatprep.subr.bf16.mxu0 %v3540_v40  ;;  %v3487_v2 = vld [vmem:[%s5411_s2 + $0xcc] ss:$24 sps:$4 sm:$0xff]   ;;  %v328_v4 = vld [vmem:[%s3905_s12 + $0x38] sm:$0xff]  ;;  %v3485_v7 = vld [vmem:[%s5411_s2 + $0xc8] ss:$24 sps:$4 sm:$0xff]  }
  0x24   : > { %1037 = vmatprep.subr.bf16.mxu1 %v3437_v12  ;;  %v3555_v6 = vld [vmem:[%s5411_s2 + $0x194] ss:$24 sps:$4 sm:$0xff]   ;;  %v4084_v10 = vcombine.high %v327_v3, %v328_v4  ;;  %v3557_v11 = vld [vmem:[%s5411_s2 + $0x190] ss:$24 sps:$4 sm:$0xff]   ;;  %v3558_v12 = vld [vmem:[%s5411_s2 + $0x1c4] ss:$24 sps:$4 sm:$0xff]  }
  0x25   : > { %v3490_v9 = vld [vmem:[%s5411_s2 + $0xfc] ss:$24 sps:$4 sm:$0xff]   ;;  %v3488_v13 = vld [vmem:[%s5411_s2 + $0xf8] ss:$24 sps:$4 sm:$0xff]   ;;  %v3495_v14 = vld [vmem:[%s5411_s2 + $0x12c] ss:$24 sps:$4 sm:$0xff]  }
  0x26   : > { %1258 = vmatpush1.bf16.msra.mxu0 %v3542_v45  ;;  %v3566_v30 = vld [vmem:[%s5411_s2 + $0x220] ss:$24 sps:$4 sm:$0xff]   ;;  %v3567_v31 = vld [vmem:[%s5411_s2 + $0x254] ss:$24 sps:$4 sm:$0xff]   ;;  %v3569_v36 = vld [vmem:[%s5411_s2 + $0x250] ss:$24 sps:$4 sm:$0xff]  }
  0x27   : > { %1038 = vmatpush1.bf16.msra.mxu1 %v3439_v16  ;;  %1259 = vmatprep.subr.bf16.mxu0 %v3543_v46  ;;  %v329_v16 = vld [vmem:[%s3905_s12 + $0x40] sm:$0xff]  ;;  %v3506_v35 = vld [vmem:[%s5411_s2 + $0x1bc] ss:$24 sps:$4 sm:$0xff]  }
  0x28   : > { %1039 = vmatprep.subr.bf16.mxu1 %v3440_v17  ;;  %v330_v17 = vld [vmem:[%s3905_s12 + $0x48] sm:$0xff]  ;;  %v333_v40 = vld [vmem:[%s3905_s12 + $0x60] sm:$0xff]  ;;  %v336_v55 = vld [vmem:[%s3905_s12 + $0x78] sm:$0xff] }
  0x29   : > { %v3501_v33 = vld [vmem:[%s5411_s2 + $0x188] ss:$24 sps:$4 sm:$0xff]   ;;  %v3511_v39 = vld [vmem:[%s5411_s2 + $0x1ec] ss:$24 sps:$4 sm:$0xff]  }
  0x2a   : > { %1260 = vmatpush1.bf16.msra.mxu0 %v3545_v51  ;;  %v3573_v43 = vld [vmem:[%s5411_s2 + $0x2b4] ss:$24 sps:$4 sm:$0xff]   ;;  %v3509_v45 = vld [vmem:[%s5411_s2 + $0x1e8] ss:$24 sps:$4 sm:$0xff]   ;;  %v3576_v51 = vld [vmem:[%s5411_s2 + $0x2e4] ss:$24 sps:$4 sm:$0xff]  }
  0x2b   : > { %1040 = vmatpush1.bf16.msra.mxu1 %v3442_v18  ;;  %1261 = vmatprep.subr.bf16.mxu0 %v3546_v53  ;;  %v3560_v18 = vld [vmem:[%s5411_s2 + $0x1c0] ss:$24 sps:$4 sm:$0xff]   ;;  %v3519_v53 = vld [vmem:[%s5411_s2 + $0x24c] ss:$24 sps:$4 sm:$0xff]  }
  0x2c   : > { %1041 = vmatprep.subr.bf16.mxu1 %v3443_v19  ;;  %v3561_v19 = vld [vmem:[%s5411_s2 + $0x1f4] ss:$24 sps:$4 sm:$0xff]   ;;  %v3578_v56 = vld [vmem:[%s5411_s2 + $0x2e0] ss:$24 sps:$4 sm:$0xff]  }
  0x2e   : > { %1262 = vmatpush1.bf16.msra.mxu0 %v3548_v57 }
  0x2f   : > { %1042 = vmatpush1.bf16.msra.mxu1 %v3445_v20  ;;  %1263 = vmatprep.subr.bf16.mxu0 %v3549_v59  ;;  %v4108_v20 = vcombine.low %v327_v3, %v328_v4  ;;  %v3530_v3 = vld [vmem:[%s5411_s2 + $0x2dc] ss:$24 sps:$4 sm:$0xff]   ;;  %v3528_v4 = vld [vmem:[%s5411_s2 + $0x2d8] ss:$24 sps:$4 sm:$0xff]  }
  0x30   : > { %1043 = vmatprep.subr.bf16.mxu1 %v3446_v21  ;;  %v3493_v21 = vld [vmem:[%s5411_s2 + $0x128] ss:$24 sps:$4 sm:$0xff]  }
  0x32   : > { %1264 = vmatpush1.bf16.msra.mxu0 %v3551_v62  ;;  %v3520_v62 = vld [vmem:[%s5411_s2 + $0x278] ss:$24 sps:$4 sm:$0xff]  }
  0x33   : > { %1044 = vmatpush1.bf16.msra.mxu1 %v3448_v22  ;;  %1265 = vmatprep.subr.bf16.mxu0 %v3552_v0  ;;  %v4113_v22 = vcombine.high %v329_v16, %v330_v17  ;;  %v3527_v0 = vld [vmem:[%s5411_s2 + $0x2ac] ss:$24 sps:$4 sm:$0xff]  }
  0x34   : > { %1045 = vmatprep.subr.bf16.mxu1 %v3449_v23  ;;  %v3498_v23 = vld [vmem:[%s5411_s2 + $0x15c] ss:$24 sps:$4 sm:$0xff]  }
  0x36   : > { %1266 = vmatpush1.bf16.msra.mxu0 %v3554_v5 }
  0x37   : > { %1046 = vmatpush1.bf16.msra.mxu1 %v3451_v24  ;;  %1267 = vmatprep.subr.bf16.mxu0 %v3555_v6  ;;  %v3563_v24 = vld [vmem:[%s5411_s2 + $0x1f0] ss:$24 sps:$4 sm:$0xff]  }
  0x38   : > { %1047 = vmatprep.subr.bf16.mxu1 %v3452_v25  ;;  %v3564_v25 = vld [vmem:[%s5411_s2 + $0x224] ss:$24 sps:$4 sm:$0xff]  }
  0x3a   : > { %1268 = vmatpush1.bf16.msra.mxu0 %v3557_v11 }
  0x3b   : > { %1048 = vmatpush1.bf16.msra.mxu1 %v3454_v26  ;;  %1269 = vmatprep.subr.bf16.mxu0 %v3558_v12  ;;  %v3496_v26 = vld [vmem:[%s5411_s2 + $0x158] ss:$24 sps:$4 sm:$0xff]  }
  0x3c   : > { %1049 = vmatprep.subr.bf16.mxu1 %v3455_v27  ;;  %v3503_v27 = vld [vmem:[%s5411_s2 + $0x18c] ss:$24 sps:$4 sm:$0xff]  }
  0x3e   : > { %1270 = vmatpush1.bf16.msra.mxu0 %v3560_v18 }
  0x3f   : > { %1050 = vmatpush1.bf16.msra.mxu1 %v3457_v28  ;;  %1271 = vmatprep.subr.bf16.mxu0 %v3561_v19  ;;  %v331_v28 = vld [vmem:[%s3905_s12 + $0x50] sm:$0xff] }
  0x40   : > { %1051 = vmatprep.subr.bf16.mxu1 %v3458_v29  ;;  %v332_v29 = vld [vmem:[%s3905_s12 + $0x58] sm:$0xff] }
  0x41   : > { %v4172_v44 = vcombine.low %v331_v28, %v332_v29 }
  0x42   : > { %1272 = vmatpush1.bf16.msra.mxu0 %v3563_v24 }
  0x43   : > { %1052 = vmatpush1.bf16.msra.mxu1 %v3460_v32  ;;  %1273 = vmatprep.subr.bf16.mxu0 %v3564_v25  ;;  %v4140_v32 = vcombine.low %v329_v16, %v330_v17 }
  0x44   : > { %1053 = vmatprep.subr.bf16.mxu1 %v3461_v34  ;;  %v4145_v34 = vcombine.high %v331_v28, %v332_v29 }
  0x46   : > { %1274 = vmatpush1.bf16.msra.mxu0 %v3566_v30 }
  0x47   : > { %1054 = vmatpush1.bf16.msra.mxu1 %v3463_v37  ;;  %1275 = vmatprep.subr.bf16.mxu0 %v3567_v31  ;;  %v3570_v37 = vld [vmem:[%s5411_s2 + $0x284] ss:$24 sps:$4 sm:$0xff]  }
  0x48   : > { %1055 = vmatprep.subr.bf16.mxu1 %v3464_v38  ;;  %v3504_v38 = vld [vmem:[%s5411_s2 + $0x1b8] ss:$24 sps:$4 sm:$0xff]  }
  0x4a   : > { %1276 = vmatpush1.bf16.msra.mxu0 %v3569_v36 }
  0x4b   : > { %1056 = vmatpush1.bf16.msra.mxu1 %v3466_v41  ;;  %v334_v41 = vld [vmem:[%s3905_s12 + $0x68] sm:$0xff]  ;;  %1277 = vmatprep.subr.bf16.mxu0 %v3570_v37 }
  0x4c   : > { %1138 = vmatprep.subr.bf16.mxu1 %v3471_v42  ;;  %v3572_v42 = vld [vmem:[%s5411_s2 + $0x280] ss:$24 sps:$4 sm:$0xff]   ;;  %v4177_v46 = vcombine.high %v333_v40, %v334_v41  ;;  %v3050_v57 = vcombine.low %v333_v40, %v334_v41 }
  0x4e   : > { %1058 = vmatmul.mubr.bf16.vlgmr.msra.gmra.mrb[0].mxu1 %v4012_v47  ;;  %1278 = vmatpush1.bf16.msra.mxu0 %v3572_v42 }
  0x4f   : > { %1139 = vmatpush1.bf16.msra.mxu1 %v3469_v48  ;;  %1067 = vmatprep.mubr.bf16.mxu1 %v4020_v50  ;;  %v3514_v48 = vld [vmem:[%s5411_s2 + $0x21c] ss:$24 sps:$4 sm:$0xff]  }
  0x50   : > { %1140 = vmatprep.subr.bf16.mxu1 %v3474_v49  ;;  %v3575_v49 = vld [vmem:[%s5411_s2 + $0x2b0] ss:$24 sps:$4 sm:$0xff]   ;;  %1279 = vmatprep.subr.bf16.mxu0 %v3573_v43 }
  0x52   : > { %1280 = vmatpush1.bf16.msra.mxu0 %v3575_v49 }
  0x53   : > { %1141 = vmatpush1.bf16.msra.mxu1 %v3472_v52  ;;  %v3512_v52 = vld [vmem:[%s5411_s2 + $0x218] ss:$24 sps:$4 sm:$0xff]   ;;  %1281 = vmatprep.subr.bf16.mxu0 %v3576_v51 }
  0x54   : > { %1142 = vmatprep.subr.bf16.mxu1 %v3479_v54  ;;  %v335_v54 = vld [vmem:[%s3905_s12 + $0x70] sm:$0xff] }
  0x55   : > { %v3053_v59 = vcombine.high %v335_v54, %v336_v55 }
  0x56   : > { %1068 = vmatmul.mubr.bf16.gmra.mrb[4].mxu1 %v4047_v60  ;;  %1282 = vmatpush1.bf16.msra.mxu0 %v3578_v56 }
  0x57   : > { %1143 = vmatpush1.bf16.msra.mxu1 %v3477_v58  ;;  %1077 = vmatprep.mubr.bf16.mxu1 %v4055_v63  ;;  %v3517_v58 = vld [vmem:[%s5411_s2 + $0x248] ss:$24 sps:$4 sm:$0xff]  }
  0x58   : > { %1144 = vmatprep.subr.bf16.mxu1 %v3482_v61  ;;  %v3522_v61 = vld [vmem:[%s5411_s2 + $0x27c] ss:$24 sps:$4 sm:$0xff]  }
  0x59   : > { %1284 = vmatmul.mubr.bf16.vlgmr.msra.gmra.mrb[0].mxu0 %v4012_v47 }
  0x5a   : > { %1293 = vmatprep.mubr.bf16.mxu0 %v4020_v50 }
  0x5b   : > { %1145 = vmatpush1.bf16.msra.mxu1 %v3480_v1  ;;  %v3052_v1 = vcombine.low %v335_v54, %v336_v55 }
  0x5c   : > { %1146 = vmatprep.subr.bf16.mxu1 %v3487_v2  ;;  %v3525_v2 = vld [vmem:[%s5411_s2 + $0x2a8] ss:$24 sps:$4 sm:$0xff]  }
  0x5e   : > { %1078 = vmatmul.mubr.bf16.gmra.mrb[8].mxu1 %v4079_v8 }
  0x5f   : > { %1147 = vmatpush1.bf16.msra.mxu1 %v3485_v7  ;;  %1087 = vmatprep.mubr.bf16.mxu1 %v4084_v10 }
  0x60   : > { %1148 = vmatprep.subr.bf16.mxu1 %v3490_v9 }
  0x61   : > { %1294 = vmatmul.mubr.bf16.gmra.mrb[4].mxu0 %v4047_v60 }
  0x62   : > { %1303 = vmatprep.mubr.bf16.mxu0 %v4055_v63 }
  0x63   : > { %1149 = vmatpush1.bf16.msra.mxu1 %v3488_v13 }
  0x64   : > { %1150 = vmatprep.subr.bf16.mxu1 %v3495_v14 }
  0x66   : > { %1088 = vmatmul.mubr.bf16.gmra.mrb[12].mxu1 %v4108_v20 }
  0x67   : > { %1151 = vmatpush1.bf16.msra.mxu1 %v3493_v21  ;;  %1097 = vmatprep.mubr.bf16.mxu1 %v4113_v22 }
  0x68   : > { %1152 = vmatprep.subr.bf16.mxu1 %v3498_v23 }
  0x69   : > { %1304 = vmatmul.mubr.bf16.gmra.mrb[8].mxu0 %v4079_v8 }
  0x6a   : > { %1313 = vmatprep.mubr.bf16.mxu0 %v4084_v10 }
  0x6b   : > { %1153 = vmatpush1.bf16.msra.mxu1 %v3496_v26 }
  0x6c   : > { %1154 = vmatprep.subr.bf16.mxu1 %v3503_v27 }
  0x6e   : > { %1098 = vmatmul.mubr.bf16.gmra.mrb[16].mxu1 %v4140_v32 }
  0x6f   : > { %1155 = vmatpush1.bf16.msra.mxu1 %v3501_v33  ;;  %1107 = vmatprep.mubr.bf16.mxu1 %v4145_v34 }
  0x70   : > { %1156 = vmatprep.subr.bf16.mxu1 %v3506_v35 }
  0x71   : > { %1314 = vmatmul.mubr.bf16.gmra.mrb[12].mxu0 %v4108_v20 }
  0x72   : > { %1323 = vmatprep.mubr.bf16.mxu0 %v4113_v22 }
  0x73   : > { %1157 = vmatpush1.bf16.msra.mxu1 %v3504_v38 }
  0x74   : > { %1158 = vmatprep.subr.bf16.mxu1 %v3511_v39 }
  0x76   : > { %1108 = vmatmul.mubr.bf16.gmra.mrb[20].mxu1 %v4172_v44 }
  0x77   : > { %1159 = vmatpush1.bf16.msra.mxu1 %v3509_v45  ;;  %1117 = vmatprep.mubr.bf16.mxu1 %v4177_v46 }
  0x78   : > { %1160 = vmatprep.subr.bf16.mxu1 %v3514_v48 }
  0x79   : > { %1324 = vmatmul.mubr.bf16.gmra.mrb[16].mxu0 %v4140_v32 }
  0x7a   : > { %1333 = vmatprep.mubr.bf16.mxu0 %v4145_v34 }
  0x7b   : > { %1161 = vmatpush1.bf16.msra.mxu1 %v3512_v52 }
  0x7c   : > { %1162 = vmatprep.subr.bf16.mxu1 %v3519_v53 }
  0x7e   : > { %1118 = vmatmul.mubr.bf16.gmra.mrb[24].mxu1 %v3050_v57 }
  0x7f   : > { %1163 = vmatpush1.bf16.msra.mxu1 %v3517_v58  ;;  %1127 = vmatprep.mubr.bf16.mxu1 %v3053_v59 }
  0x80   : > { %1164 = vmatprep.subr.bf16.mxu1 %v3522_v61 }
  0x81   : > { %1334 = vmatmul.mubr.bf16.gmra.mrb[20].mxu0 %v4172_v44 }
  0x82   : > { %1343 = vmatprep.mubr.bf16.mxu0 %v4177_v46 }
  0x83   : > { %1165 = vmatpush1.bf16.msra.mxu1 %v3520_v62 }
  0x84   : > { %1166 = vmatprep.subr.bf16.mxu1 %v3527_v0 }
  0x86   : > { %1128 = vmatmul.mubr.bf16.gmra.mrb[28].mxu1 %v3052_v1 }
  0x87   : > { %1167 = vmatpush1.bf16.msra.mxu1 %v3525_v2  ;;  %1170 = vmatprep.mubr.bf16.mxu1 %v3918_v15  ;;  %v435_v15 = vlaneseq }
  0x88   : > { %1168 = vmatprep.subr.bf16.mxu1 %v3530_v3 }
  0x89   : > { %1344 = vmatmul.mubr.bf16.gmra.mrb[24].mxu0 %v3050_v57 }
  0x8a   : > { %1353 = vmatprep.mubr.bf16.mxu0 %v3053_v59 }
  0x8b   : > { %1169 = vmatpush1.bf16.msra.mxu1 %v3528_v4 }
  0x8e   : > { %1171 = vmatmul.mubr.bf16.vlgmr.msra.gmra.mrb[32].mxu1 %v4012_v47  ;;  %v4247_v47 = vshrl.u32 %v435_v15, 7 }
  0x8f   : > { %1180 = vmatprep.mubr.bf16.mxu1 %v4020_v50 }
  0x90   : > { %v4250_v50 = vsub.s32 0, %v4247_v47  ;;  %v453_v15 = vsub.s32 4, %v4247_v47 }
  0x91   : > { %1354 = vmatmul.mubr.bf16.gmra.mrb[28].mxu0 %v3052_v1 }
  0x92   : > { %5422 = vst [vmem:[#allocation2_spill] sm:$0xff] %v4250_v50 }
  0x96   : > { %1181 = vmatmul.mubr.bf16.gmra.mrb[36].mxu1 %v4047_v60  ;;  %v4255_v60 = vld [vmem:[%s5412_s3] sm:$0x3f] }
  0x97   : > { %1190 = vmatprep.mubr.bf16.mxu1 %v4055_v63  ;;  %v4258_v63 = vsub.s32 1, %v4247_v47  ;;  %v4262_v5 = vrot.slane %v4255_v60, %v4250_v50 }
  0x99   : > { %5423 = vst [vmem:[#allocation3_spill] sm:$0xff] %v4258_v63  ;;  %v4266_v7 = vrot.slane %v4255_v60, %v4258_v63 }
  0x9e   : > { %1191 = vmatmul.mubr.bf16.gmra.mrb[40].mxu1 %v4079_v8 }
  0x9f   : > { %1200 = vmatprep.mubr.bf16.mxu1 %v4084_v10 }
  0xa6   : > { %1201 = vmatmul.mubr.bf16.gmra.mrb[44].mxu1 %v4108_v20 }
  0xa7   : > { %1210 = vmatprep.mubr.bf16.mxu1 %v4113_v22 }
  0xae   : > { %1211 = vmatmul.mubr.bf16.gmra.mrb[48].mxu1 %v4140_v32 }
  0xaf   : > { %1220 = vmatprep.mubr.bf16.mxu1 %v4145_v34 }
  0xb6   : > { %1221 = vmatmul.mubr.bf16.gmra.mrb[52].mxu1 %v4172_v44 }
  0xb7   : > { %1230 = vmatprep.mubr.bf16.mxu1 %v4177_v46 }
  0xbe   : > { %1231 = vmatmul.mubr.bf16.gmra.mrb[56].mxu1 %v3050_v57 }
  0xbf   : > { %1240 = vmatprep.mubr.bf16.mxu1 %v3053_v59 }
  0xc6   : > { %1241 = vmatmul.mubr.bf16.gmra.mrb[60].mxu1 %v3052_v1 }
 0x121   : > { %v1059_v6 = vpop.f32.mrb[0].mxu1 }
 0x122   : > { %v1061_v8 = vpop.f32.mrb[1].mxu1  ;;  %v1060_v10 = vadd.f32 %v1059_v6, %v4262_v5 }
 0x123   : > { %v1063_v9 = vpop.f32.mrb[2].mxu1  ;;  %v1062_v13 = vadd.f32 %v1061_v8, %v4266_v7  ;;  %v457_v8 = vsub.s32 5, %v4247_v47 }
 0x124   : > { %v1064_v11 = vadd.f32 %v1063_v9, %v4262_v5  ;;  %v1065_v12 = vpop.f32.mrb[3].mxu1 }
 0x125   : > { %v1066_v14 = vadd.f32 %v1065_v12, %v4266_v7 }
 0x126   : > { %v1364_v16 = vpack.c.bf16 %v1064_v11, %v1060_v10  ;;  %v4355_v11 = vrot.slane %v4255_v60, %v453_v15 }
 0x127   : > { %v1365_v17 = vpack.c.bf16 %v1066_v14, %v1062_v13  ;;  %v4358_v13 = vrot.slane %v4255_v60, %v457_v8 }
 0x128   : > { %3299 = vmatprep.mubr.bf16.mxu1 %v1364_v16 }
 0x129   : > { %v1069_v18 = vpop.f32.mrb[4].mxu1  ;;  %3363 = vmatprep.mubr.bf16.mxu0 %v1365_v17 }
 0x12a   : > { %v4273_v19 = vadd.f32 %v1069_v18, %v4262_v5  ;;  %v1071_v20 = vpop.f32.mrb[5].mxu1 }
 0x12b   : > { %v4276_v21 = vadd.f32 %v1071_v20, %v4266_v7  ;;  %v1073_v22 = vpop.f32.mrb[6].mxu1 }
 0x12c   : > { %v4279_v23 = vadd.f32 %v1073_v22, %v4262_v5  ;;  %v1075_v24 = vpop.f32.mrb[7].mxu1  ;;  %v1285_v20 = vpop.f32.mrb[0].mxu0 }
 0x12d   : > { %v4282_v25 = vadd.f32 %v1075_v24, %v4266_v7 }
 0x131   : > { %v1079_v28 = vpop.f32.mrb[8].mxu1 }
 0x132   : > { %v4289_v29 = vadd.f32 %v1079_v28, %v4262_v5  ;;  %v1081_v30 = vpop.f32.mrb[9].mxu1  ;;  %v1286_v28 = vadd.f32 %v1285_v20, %v4355_v11 }
 0x133   : > { %v4292_v31 = vadd.f32 %v1081_v30, %v4266_v7  ;;  %v1083_v32 = vpop.f32.mrb[10].mxu1  ;;  %v1287_v30 = vpop.f32.mrb[1].mxu0 }
 0x134   : > { %v4295_v33 = vadd.f32 %v1083_v32, %v4262_v5  ;;  %v1085_v34 = vpop.f32.mrb[11].mxu1 }
 0x135   : > { %v4298_v35 = vadd.f32 %v1085_v34, %v4266_v7  ;;  %v1288_v34 = vadd.f32 %v1287_v30, %v4358_v13  ;;  %v449_v30 = vsub.s32 3, %v4247_v47 }
 0x139   : > { %v1089_v38 = vpop.f32.mrb[12].mxu1 }
 0x13a   : > { %v4305_v39 = vadd.f32 %v1089_v38, %v4262_v5  ;;  %v1091_v40 = vpop.f32.mrb[13].mxu1  ;;  %v1289_v38 = vpop.f32.mrb[2].mxu0 }
 0x13b   : > { %v4308_v41 = vadd.f32 %v1091_v40, %v4266_v7  ;;  %v1093_v42 = vpop.f32.mrb[14].mxu1 }
 0x13c   : > { %v4311_v43 = vadd.f32 %v1093_v42, %v4262_v5  ;;  %v1095_v44 = vpop.f32.mrb[15].mxu1  ;;  %v1290_v42 = vadd.f32 %v1289_v38, %v4355_v11 }
 0x13d   : > { %v4314_v45 = vadd.f32 %v1095_v44, %v4266_v7  ;;  %v1291_v44 = vpop.f32.mrb[3].mxu0 }
 0x13e   : > { %v1295_v8 = vpop.f32.mrb[4].mxu0 }
 0x13f   : > { %v1296_v20 = vadd.f32 %v1295_v8, %v4355_v11 }
 0x141   : > { %v1099_v49 = vpop.f32.mrb[16].mxu1 }
 0x142   : > { %v4321_v51 = vadd.f32 %v1099_v49, %v4262_v5  ;;  %v1101_v52 = vpop.f32.mrb[17].mxu1 }
 0x143   : > { %v4324_v53 = vadd.f32 %v1101_v52, %v4266_v7  ;;  %v1103_v54 = vpop.f32.mrb[18].mxu1  ;;  %v1292_v52 = vadd.f32 %v1291_v44, %v4358_v13 }
 0x144   : > { %v4327_v55 = vadd.f32 %v1103_v54, %v4262_v5  ;;  %v1105_v56 = vpop.f32.mrb[19].mxu1  ;;  %v4380_v54 = vpack.c.bf16 %v1290_v42, %v1286_v28 }
 0x145   : > { %v4330_v57 = vadd.f32 %v1105_v56, %v4266_v7 }
 0x149   : > { %v1109_v61 = vpop.f32.mrb[20].mxu1 }
 0x14a   : > { %v4337_v62 = vadd.f32 %v1109_v61, %v4262_v5  ;;  %v1111_v0 = vpop.f32.mrb[21].mxu1  ;;  %v4382_v61 = vpack.c.bf16 %v1292_v52, %v1288_v34 }
 0x14b   : > { %v4340_v1 = vadd.f32 %v1111_v0, %v4266_v7  ;;  %v1113_v2 = vpop.f32.mrb[22].mxu1 }
 0x14c   : > { %v4343_v3 = vadd.f32 %v1113_v2, %v4262_v5  ;;  %v1115_v4 = vpop.f32.mrb[23].mxu1 }
 0x14d   : > { %v4347_v6 = vadd.f32 %v1115_v4, %v4266_v7 }
 0x151   : > { %v1119_v12 = vpop.f32.mrb[24].mxu1 }
 0x152   : > { %v4361_v14 = vadd.f32 %v1119_v12, %v4262_v5  ;;  %v1121_v16 = vpop.f32.mrb[25].mxu1 }
 0x153   : > { %v4364_v17 = vadd.f32 %v1121_v16, %v4266_v7  ;;  %v1123_v18 = vpop.f32.mrb[26].mxu1 }
 0x154   : > { %v4367_v22 = vadd.f32 %v1123_v18, %v4262_v5  ;;  %v1125_v24 = vpop.f32.mrb[27].mxu1  ;;  %v445_v18 = vsub.s32 2, %v4247_v47 }
 0x155   : > { %v4371_v32 = vadd.f32 %v1125_v24, %v4266_v7  ;;  %v1297_v24 = vpop.f32.mrb[5].mxu0 }
 0x156   : > { %v1298_v34 = vadd.f32 %v1297_v24, %v4358_v13  ;;  %v1299_v38 = vpop.f32.mrb[6].mxu0 }
 0x157   : > { %v1301_v44 = vpop.f32.mrb[7].mxu0 }
 0x159   : > { %v1129_v56 = vpop.f32.mrb[28].mxu1 }
 0x15a   : > { %v4385_v0 = vadd.f32 %v1129_v56, %v4262_v5  ;;  %v1131_v2 = vpop.f32.mrb[29].mxu1  ;;  %v1302_v56 = vadd.f32 %v1301_v44, %v4358_v13 }
 0x15b   : > { %v4388_v4 = vadd.f32 %v1131_v2, %v4266_v7  ;;  %v1133_v15 = vpop.f32.mrb[30].mxu1  ;;  %v4407_v2 = vrot.slane %v4255_v60, %v445_v18 }
 0x15c   : > { %v4391_v12 = vadd.f32 %v1133_v15, %v4262_v5  ;;  %v1135_v16 = vpop.f32.mrb[31].mxu1  ;;  %v1300_v5 = vadd.f32 %v1299_v38, %v4355_v11  ;;  %v4412_v15 = vrot.slane %v4255_v60, %v449_v30  ;;  %v4414_v8 = vpack.c.bf16 %v1302_v56, %v1298_v34  ;;  %v1305_v38 = vpop.f32.mrb[8].mxu0 }
 0x15d   : > { %v4396_v28 = vadd.f32 %v1135_v16, %v4266_v7  ;;  %v1306_v44 = vadd.f32 %v1305_v38, %v4355_v11  ;;  %v1307_v18 = vpop.f32.mrb[9].mxu0 }
 0x15e   : > { %v4409_v7 = vpack.c.bf16 %v1300_v5, %v1296_v20  ;;  %v1308_v60 = vadd.f32 %v1307_v18, %v4358_v13  ;;  %v1309_v30 = vpop.f32.mrb[10].mxu0 }
 0x15f   : > { %v1310_v56 = vadd.f32 %v1309_v30, %v4355_v11  ;;  %v1311_v10 = vpop.f32.mrb[11].mxu0 }
 0x160   : > { %v1315_v18 = vpop.f32.mrb[12].mxu0 }
 0x161   : > { %v1172_v47 = vpop.f32.mrb[32].mxu1 }
 0x162   : > { %v1174_v16 = vpop.f32.mrb[33].mxu1  ;;  %v1173_v42 = vadd.f32 %v1172_v47, %v4407_v2  ;;  %v1312_v47 = vadd.f32 %v1311_v10, %v4358_v13  ;;  %v1317_v10 = vpop.f32.mrb[13].mxu0 }
 0x163   : > { %v1176_v24 = vpop.f32.mrb[34].mxu1  ;;  %v1175_v20 = vadd.f32 %v1174_v16, %v4412_v15 }
 0x164   : > { %v1177_v52 = vadd.f32 %v1176_v24, %v4407_v2  ;;  %v1178_v49 = vpop.f32.mrb[35].mxu1  ;;  %v4424_v24 = vpack.c.bf16 %v1310_v56, %v1306_v44  ;;  %v4426_v38 = vpack.c.bf16 %v1312_v47, %v1308_v60  ;;  %v1319_v60 = vpop.f32.mrb[14].mxu0 }
 0x165   : > { %v1179_v5 = vadd.f32 %v1178_v49, %v4412_v15  ;;  %v1321_v47 = vpop.f32.mrb[15].mxu0 }
 0x166   : > { %v1366_v34 = vpack.c.bf16 %v1177_v52, %v1173_v42 }
 0x167   : > { %v1367_v40 = vpack.c.bf16 %v1179_v5, %v1175_v20  ;;  %v1316_v20 = vadd.f32 %v1315_v18, %v4355_v11 }
 0x168   : > { %3283 = vmatprep.subr.bf16.mxu1 %v1366_v34 }
 0x169   : > { %v1182_v9 = vpop.f32.mrb[36].mxu1  ;;  %3284 = vmatpush3.bf16.xpose.msra.mxu1 %v1366_v34  ;;  %3347 = vmatprep.subr.bf16.mxu0 %v1367_v40  ;;  %v1318_v34 = vadd.f32 %v1317_v10, %v4358_v13  ;;  %v1325_v10 = vpop.f32.mrb[16].mxu0 }
 0x16a   : > { %v1184_v16 = vpop.f32.mrb[37].mxu1  ;;  %3348 = vmatpush3.bf16.xpose.msra.mxu0 %v1367_v40  ;;  %v1183_v42 = vadd.f32 %v1182_v9, %v4407_v2  ;;  %v1320_v40 = vadd.f32 %v1319_v60, %v4355_v11  ;;  %v1322_v9 = vadd.f32 %v1321_v47, %v4358_v13 }
 0x16b   : > { %v1186_v49 = vpop.f32.mrb[38].mxu1  ;;  %v1185_v44 = vadd.f32 %v1184_v16, %v4412_v15 }
 0x16c   : > { %v1187_v52 = vadd.f32 %v1186_v49, %v4407_v2  ;;  %v1188_v30 = vpop.f32.mrb[39].mxu1  ;;  %v4436_v49 = vpack.c.bf16 %v1320_v40, %v1316_v20  ;;  %v4438_v18 = vpack.c.bf16 %v1322_v9, %v1318_v34 }
 0x16d   : > { %v1189_v5 = vadd.f32 %v1188_v30, %v4412_v15 }
 0x16e   : > { %v1372_v56 = vpack.c.bf16 %v1187_v52, %v1183_v42 }
 0x16f   : > { %v1373_v59 = vpack.c.bf16 %v1189_v5, %v1185_v44  ;;  %v1326_v44 = vadd.f32 %v1325_v10, %v4355_v11  ;;  %v1327_v5 = vpop.f32.mrb[17].mxu0 }
 0x170   : > { %3285 = vmatprep.subr.bf16.mxu1 %v1372_v56  ;;  %v1329_v34 = vpop.f32.mrb[18].mxu0 }
 0x171   : > { %v1192_v48 = vpop.f32.mrb[40].mxu1  ;;  %3286 = vmatpush3.bf16.xpose.msra.mxu1 %v1372_v56  ;;  %3349 = vmatprep.subr.bf16.mxu0 %v1373_v59  ;;  %v1328_v56 = vadd.f32 %v1327_v5, %v4358_v13  ;;  %v1331_v9 = vpop.f32.mrb[19].mxu0 }
 0x172   : > { %v1194_v16 = vpop.f32.mrb[41].mxu1  ;;  %3350 = vmatpush3.bf16.xpose.msra.mxu0 %v1373_v59  ;;  %v1193_v42 = vadd.f32 %v1192_v48, %v4407_v2  ;;  %v1330_v59 = vadd.f32 %v1329_v34, %v4355_v11  ;;  %v1332_v48 = vadd.f32 %v1331_v9, %v4358_v13  ;;  %v1335_v5 = vpop.f32.mrb[20].mxu0 }
 0x173   : > { %v1196_v30 = vpop.f32.mrb[42].mxu1  ;;  %v1195_v20 = vadd.f32 %v1194_v16, %v4412_v15 }
 0x174   : > { %v1197_v52 = vadd.f32 %v1196_v30, %v4407_v2  ;;  %v1198_v60 = vpop.f32.mrb[43].mxu1  ;;  %v4448_v30 = vpack.c.bf16 %v1330_v59, %v1326_v44  ;;  %v4450_v10 = vpack.c.bf16 %v1332_v48, %v1328_v56 }
 0x175   : > { %v1199_v40 = vadd.f32 %v1198_v60, %v4412_v15 }
 0x176   : > { %v1378_v47 = vpack.c.bf16 %v1197_v52, %v1193_v42 }
 0x177   : > { %v1379_v58 = vpack.c.bf16 %v1199_v40, %v1195_v20  ;;  %v1336_v20 = vadd.f32 %v1335_v5, %v4355_v11  ;;  %v1337_v40 = vpop.f32.mrb[21].mxu0 }
 0x178   : > { %3287 = vmatprep.subr.bf16.mxu1 %v1378_v47  ;;  %v1339_v56 = vpop.f32.mrb[22].mxu0 }
 0x179   : > { %v1202_v46 = vpop.f32.mrb[44].mxu1  ;;  %3288 = vmatpush3.bf16.xpose.msra.mxu1 %v1378_v47  ;;  %3351 = vmatprep.subr.bf16.mxu0 %v1379_v58  ;;  %v1338_v47 = vadd.f32 %v1337_v40, %v4358_v13  ;;  %v1341_v48 = vpop.f32.mrb[23].mxu0 }
 0x17a   : > { %v1204_v16 = vpop.f32.mrb[45].mxu1  ;;  %3352 = vmatpush3.bf16.xpose.msra.mxu0 %v1379_v58  ;;  %v1203_v42 = vadd.f32 %v1202_v46, %v4407_v2  ;;  %v1340_v58 = vadd.f32 %v1339_v56, %v4355_v11  ;;  %v1342_v46 = vadd.f32 %v1341_v48, %v4358_v13  ;;  %v1345_v40 = vpop.f32.mrb[24].mxu0 }
 0x17b   : > { %v1206_v60 = vpop.f32.mrb[46].mxu1  ;;  %v1205_v44 = vadd.f32 %v1204_v16, %v4412_v15 }
 0x17c   : > { %v1207_v52 = vadd.f32 %v1206_v60, %v4407_v2  ;;  %v1208_v34 = vpop.f32.mrb[47].mxu1  ;;  %v4460_v60 = vpack.c.bf16 %v1340_v58, %v1336_v20  ;;  %v4462_v5 = vpack.c.bf16 %v1342_v46, %v1338_v47 }
 0x17d   : > { %v1209_v59 = vadd.f32 %v1208_v34, %v4412_v15 }
 0x17e   : > { %v1384_v9 = vpack.c.bf16 %v1207_v52, %v1203_v42 }
 0x17f   : > { %v1385_v37 = vpack.c.bf16 %v1209_v59, %v1205_v44  ;;  %v1346_v44 = vadd.f32 %v1345_v40, %v4355_v11  ;;  %v1347_v59 = vpop.f32.mrb[25].mxu0 }
 0x180   : > { %3289 = vmatprep.subr.bf16.mxu1 %v1384_v9  ;;  %v1349_v47 = vpop.f32.mrb[26].mxu0 }
 0x181   : > { %v1212_v27 = vpop.f32.mrb[48].mxu1  ;;  %3290 = vmatpush3.bf16.xpose.msra.mxu1 %v1384_v9  ;;  %3353 = vmatprep.subr.bf16.mxu0 %v1385_v37  ;;  %v1348_v9 = vadd.f32 %v1347_v59, %v4358_v13  ;;  %v1351_v46 = vpop.f32.mrb[27].mxu0 }
 0x182   : > { %v1214_v16 = vpop.f32.mrb[49].mxu1  ;;  %3354 = vmatpush3.bf16.xpose.msra.mxu0 %v1385_v37  ;;  %v1213_v42 = vadd.f32 %v1212_v27, %v4407_v2  ;;  %v1350_v37 = vadd.f32 %v1349_v47, %v4355_v11  ;;  %v1352_v27 = vadd.f32 %v1351_v46, %v4358_v13  ;;  %v1355_v59 = vpop.f32.mrb[28].mxu0 }
 0x183   : > { %v1216_v34 = vpop.f32.mrb[50].mxu1  ;;  %v1215_v20 = vadd.f32 %v1214_v16, %v4412_v15 }
 0x184   : > { %v1217_v52 = vadd.f32 %v1216_v34, %v4407_v2  ;;  %v1218_v56 = vpop.f32.mrb[51].mxu1  ;;  %v4472_v34 = vpack.c.bf16 %v1350_v37, %v1346_v44  ;;  %v4474_v40 = vpack.c.bf16 %v1352_v27, %v1348_v9 }
 0x185   : > { %v1219_v58 = vadd.f32 %v1218_v56, %v4412_v15 }
 0x186   : > { %v1390_v48 = vpack.c.bf16 %v1217_v52, %v1213_v42 }
 0x187   : > { %v1391_v36 = vpack.c.bf16 %v1219_v58, %v1215_v20  ;;  %v1356_v20 = vadd.f32 %v1355_v59, %v4355_v11  ;;  %v1357_v58 = vpop.f32.mrb[29].mxu0 }
 0x188   : > { %3291 = vmatprep.subr.bf16.mxu1 %v1390_v48  ;;  %v1359_v9 = vpop.f32.mrb[30].mxu0 }
 0x189   : > { %v1222_v26 = vpop.f32.mrb[52].mxu1  ;;  %3292 = vmatpush3.bf16.xpose.msra.mxu1 %v1390_v48  ;;  %3355 = vmatprep.subr.bf16.mxu0 %v1391_v36  ;;  %v1358_v48 = vadd.f32 %v1357_v58, %v4358_v13  ;;  %v1361_v27 = vpop.f32.mrb[31].mxu0 }
 0x18a   : > { %v1224_v16 = vpop.f32.mrb[53].mxu1  ;;  %3356 = vmatpush3.bf16.xpose.msra.mxu0 %v1391_v36  ;;  %v1223_v42 = vadd.f32 %v1222_v26, %v4407_v2  ;;  %v1360_v36 = vadd.f32 %v1359_v9, %v4355_v11  ;;  %v1362_v26 = vadd.f32 %v1361_v27, %v4358_v13 }
 0x18b   : > { %v1226_v56 = vpop.f32.mrb[54].mxu1  ;;  %v1225_v44 = vadd.f32 %v1224_v16, %v4412_v15 }
 0x18c   : > { %v1227_v52 = vadd.f32 %v1226_v56, %v4407_v2  ;;  %v1228_v47 = vpop.f32.mrb[55].mxu1  ;;  %v1410_v56 = vpack.c.bf16 %v1360_v36, %v1356_v20  ;;  %v4484_v59 = vpack.c.bf16 %v1362_v26, %v1358_v48 }
 0x18d   : > { %v1229_v37 = vadd.f32 %v1228_v47, %v4412_v15 }
 0x18e   : > { %v1396_v46 = vpack.c.bf16 %v1227_v52, %v1223_v42 }
 0x18f   : > { %v1397_v63 = vpack.c.bf16 %v1229_v37, %v1225_v44 }
 0x190   : > { %3293 = vmatprep.subr.bf16.mxu1 %v1396_v46 }
 0x191   : > { %v1232_v50 = vpop.f32.mrb[56].mxu1  ;;  %3294 = vmatpush3.bf16.xpose.msra.mxu1 %v1396_v46  ;;  %3357 = vmatprep.subr.bf16.mxu0 %v1397_v63 }
 0x192   : > { %v1234_v16 = vpop.f32.mrb[57].mxu1  ;;  %3358 = vmatpush3.bf16.xpose.msra.mxu0 %v1397_v63  ;;  %v1233_v58 = vadd.f32 %v1232_v50, %v4407_v2 }
 0x193   : > { %v1236_v47 = vpop.f32.mrb[58].mxu1  ;;  %v1235_v11 = vadd.f32 %v1234_v16, %v4412_v15 }
 0x194   : > { %v1237_v42 = vadd.f32 %v1236_v47, %v4407_v2  ;;  %v1238_v52 = vpop.f32.mrb[59].mxu1  ;;  %v5424_v47 = vpack.c.bf16 %v4279_v23, %v4273_v19  ;;  %v5428_v19 = vpack.c.bf16 %v4311_v43, %v4305_v39  ;;  %v5430_v23 = vpack.c.bf16 %v4314_v45, %v4308_v41  ;;  %v4555_v43 = vld [vmem:[%s314_s25] ss:$0 sm:$0xff]  ;;  %s5302_s25 = scalar_lea.vmem %s5417_s8, %s3201_s29 }
 0x195   : > { %v1239_v44 = vadd.f32 %v1238_v52, %v4412_v15  ;;  %v5436_v39 = vpack.c.bf16 %v4391_v12, %v4385_v0  ;;  %v5437_v41 = vpack.c.bf16 %v4396_v28, %v4388_v4 }
 0x196   : > { %v1402_v13 = vpack.c.bf16 %v1237_v42, %v1233_v58  ;;  %v5426_v58 = vpack.c.bf16 %v4282_v25, %v4276_v21  ;;  %v5429_v21 = vpack.c.bf16 %v4327_v55, %v4321_v51  ;;  %v5431_v25 = vpack.c.bf16 %v4330_v57, %v4324_v53 }
 0x197   : > { %v1403_v37 = vpack.c.bf16 %v1239_v44, %v1235_v11 }
 0x198   : > { %3295 = vmatprep.subr.bf16.mxu1 %v1402_v13 }
 0x199   : > { %v1242_v20 = vpop.f32.mrb[60].mxu1  ;;  %3296 = vmatpush3.bf16.xpose.msra.mxu1 %v1402_v13  ;;  %3359 = vmatprep.subr.bf16.mxu0 %v1403_v37 }
 0x19a   : > { %v1244_v48 = vpop.f32.mrb[61].mxu1  ;;  %3360 = vmatpush3.bf16.xpose.msra.mxu0 %v1403_v37  ;;  %v1243_v63 = vadd.f32 %v1242_v20, %v4407_v2 }
 0x19b   : > { %v1246_v9 = vpop.f32.mrb[62].mxu1  ;;  %v1245_v36 = vadd.f32 %v1244_v48, %v4412_v15 }
 0x19c   : > { %v1247_v50 = vadd.f32 %v1246_v9, %v4407_v2  ;;  %v1248_v46 = vpop.f32.mrb[63].mxu1  ;;  %v5425_v2 = vpack.c.bf16 %v4295_v33, %v4289_v29  ;;  %v5432_v29 = vpack.c.bf16 %v4343_v3, %v4337_v62  ;;  %v5434_v33 = vpack.c.bf16 %v4347_v6, %v4340_v1 }
 0x19d   : > { %v1249_v27 = vadd.f32 %v1248_v46, %v4412_v15  ;;  %v5427_v15 = vpack.c.bf16 %v4298_v35, %v4292_v31  ;;  %v5433_v31 = vpack.c.bf16 %v4367_v22, %v4361_v14  ;;  %v5435_v35 = vpack.c.bf16 %v4371_v32, %v4364_v17 }
 0x19e   : > { %v1408_v26 = vpack.c.bf16 %v1247_v50, %v1243_v63 }
 0x19f   : > { %v1409_v16 = vpack.c.bf16 %v1249_v27, %v1245_v36 }
 0x1a0   : > { %3297 = vmatprep.subr.bf16.mxu1 %v1408_v26 }
 0x1a1   : > { %3298 = vmatpush3.bf16.xpose.msra.mxu1 %v1408_v26  ;;  %3361 = vmatprep.subr.bf16.mxu0 %v1409_v16 }
 0x1a2   : > { %3362 = vmatpush3.bf16.xpose.msra.mxu0 %v1409_v16  ;;  %3315 = vmatprep.subr.bf16.mxu1 %v4380_v54 }
 0x1a8   : > { %3300 = vmatmul.mubr.bf16.vlgmr.msra.gmra.mrb[64].mxu1 %v5424_v47 }
 0x1a9   : > { %3303 = vmatprep.mubr.bf16.mxu1 %v5425_v2  ;;  %3364 = vmatmul.mubr.bf16.vlgmr.msra.gmra.mrb[32].mxu0 %v5426_v58 }
 0x1aa   : > { %3367 = vmatprep.mubr.bf16.mxu0 %v5427_v15  ;;  %3316 = vmatpush3.bf16.msra.mxu1 %v4380_v54 }
 0x1ab   : > { %3317 = vmatprep.subr.bf16.mxu1 %v4409_v7 }
 0x1ae   : > { %3318 = vmatpush3.bf16.msra.mxu1 %v4409_v7 }
 0x1af   : > { %3319 = vmatprep.subr.bf16.mxu1 %v4424_v24 }
 0x1b0   : > { %3304 = vmatmul.mubr.bf16.gmra.mrb[68].mxu1 %v5428_v19 }
 0x1b1   : > { %3307 = vmatprep.mubr.bf16.mxu1 %v5429_v21  ;;  %3368 = vmatmul.mubr.bf16.gmra.mrb[36].mxu0 %v5430_v23 }
 0x1b2   : > { %3371 = vmatprep.mubr.bf16.mxu0 %v5431_v25  ;;  %3320 = vmatpush3.bf16.msra.mxu1 %v4424_v24 }
 0x1b3   : > { %3321 = vmatprep.subr.bf16.mxu1 %v4436_v49 }
 0x1b6   : > { %3322 = vmatpush3.bf16.msra.mxu1 %v4436_v49 }
 0x1b7   : > { %3323 = vmatprep.subr.bf16.mxu1 %v4448_v30 }
 0x1b8   : > { %3308 = vmatmul.mubr.bf16.gmra.mrb[72].mxu1 %v5432_v29 }
 0x1b9   : > { %3311 = vmatprep.mubr.bf16.mxu1 %v5433_v31  ;;  %3372 = vmatmul.mubr.bf16.gmra.mrb[40].mxu0 %v5434_v33 }
 0x1ba   : > { %3375 = vmatprep.mubr.bf16.mxu0 %v5435_v35  ;;  %3324 = vmatpush3.bf16.msra.mxu1 %v4448_v30 }
 0x1bb   : > { %3325 = vmatprep.subr.bf16.mxu1 %v4460_v60 }
 0x1be   : > { %3326 = vmatpush3.bf16.msra.mxu1 %v4460_v60 }
 0x1bf   : > { %3327 = vmatprep.subr.bf16.mxu1 %v4472_v34 }
 0x1c0   : > { %3312 = vmatmul.mubr.bf16.gmra.mrb[76].mxu1 %v5436_v39 }
 0x1c1   : > { %3376 = vmatmul.mubr.bf16.gmra.mrb[44].mxu0 %v5437_v41 }
 0x1c2   : > { %3328 = vmatpush3.bf16.msra.mxu1 %v4472_v34 }
 0x1c3   : > { %3329 = vmatprep.subr.bf16.mxu1 %v1410_v56 }
 0x1c6   : > { %3330 = vmatpush3.bf16.msra.mxu1 %v1410_v56 }
 0x1c7   : > { %3379 = vmatprep.subr.bf16.mxu1 %v4382_v61 }
 0x27b   : > { %v3301_v45 = vpop.f32.mrb[64].mxu1 }
 0x27c   : > { %v4558_v51 = vadd.f32 %v3301_v45, %v4555_v43  ;;  %v1453_v53 = vpop.f32.mrb[65].mxu1  ;;  %v3365_v55 = vpop.f32.mrb[32].mxu0 }
 0x27d   : > { %v4561_v57 = vadd.f32 %v4555_v43, %v1453_v53  ;;  %v4564_v62 = vadd.f32 %v3365_v55, %v4555_v43  ;;  %v3302_v1 = vpop.f32.mrb[66].mxu1  ;;  %v1807_v3 = vpop.f32.mrb[33].mxu0 }
 0x27e   : > { %v4567_v6 = vadd.f32 %v3302_v1, %v4555_v43  ;;  %v4570_v14 = vadd.f32 %v4555_v43, %v1807_v3  ;;  %v3366_v17 = vpop.f32.mrb[34].mxu0  ;;  %1520 = vmax.xlane.f32.xlu1 %v4558_v51  ;;  %v1456_v22 = vpop.f32.mrb[67].mxu1 }
 0x27f   : > { %v4574_v32 = vadd.f32 %v3366_v17, %v4555_v43  ;;  %v4577_v54 = vadd.f32 %v4555_v43, %v1456_v22  ;;  %v1810_v0 = vpop.f32.mrb[35].mxu0  ;;  %1516 = vmax.xlane.f32.xlu0 %v4561_v57 }
 0x280   : > { %v4581_v4 = vadd.f32 %v4555_v43, %v1810_v0 }
 0x282   : > { %1522 = vmax.xlane.f32.xlu1 %v4567_v6 }
 0x283   : > { %v3305_v12 = vpop.f32.mrb[68].mxu1  ;;  %1518 = vmax.xlane.f32.xlu0 %v4577_v54 }
 0x284   : > { %v4586_v28 = vadd.f32 %v3305_v12, %v4555_v43  ;;  %v1469_v7 = vpop.f32.mrb[69].mxu1  ;;  %v3369_v24 = vpop.f32.mrb[36].mxu0 }
 0x285   : > { %v4589_v49 = vadd.f32 %v4555_v43, %v1469_v7  ;;  %v4592_v30 = vadd.f32 %v3369_v24, %v4555_v43  ;;  %v3306_v60 = vpop.f32.mrb[70].mxu1  ;;  %v1823_v34 = vpop.f32.mrb[37].mxu0 }
 0x286   : > { %v4595_v56 = vadd.f32 %v3306_v60, %v4555_v43  ;;  %v4598_v42 = vadd.f32 %v4555_v43, %v1823_v34  ;;  %v1472_v52 = vpop.f32.mrb[71].mxu1  ;;  %v3370_v11 = vpop.f32.mrb[38].mxu0 }
 0x287   : > { %v4601_v44 = vadd.f32 %v4555_v43, %v1472_v52  ;;  %v4604_v13 = vadd.f32 %v3370_v11, %v4555_v43  ;;  %v1826_v37 = vpop.f32.mrb[39].mxu0  ;;  %1524 = vmax.xlane.f32.xlu0 %v4589_v49 }
 0x288   : > { %v4608_v20 = vadd.f32 %v4555_v43, %v1826_v37 }
 0x289   : > { %1526 = vmax.xlane.f32.xlu1 %v4601_v44 }
 0x28b   : > { %v3309_v48 = vpop.f32.mrb[72].mxu1  ;;  %1528 = vmax.xlane.f32.xlu0 %v4586_v28 }
 0x28c   : > { %v4613_v9 = vadd.f32 %v3309_v48, %v4555_v43  ;;  %v1485_v63 = vpop.f32.mrb[73].mxu1  ;;  %v3373_v50 = vpop.f32.mrb[40].mxu0 }
 0x28d   : > { %v4616_v46 = vadd.f32 %v4555_v43, %v1485_v63  ;;  %v4619_v36 = vadd.f32 %v3373_v50, %v4555_v43  ;;  %v3310_v27 = vpop.f32.mrb[74].mxu1  ;;  %v1839_v26 = vpop.f32.mrb[41].mxu0  ;;  %1530 = vmax.xlane.f32.xlu1 %v4595_v56 }
 0x28e   : > { %v4623_v16 = vadd.f32 %v3310_v27, %v4555_v43  ;;  %v4626_v47 = vadd.f32 %v4555_v43, %v1839_v26  ;;  %v1488_v2 = vpop.f32.mrb[75].mxu1  ;;  %v3374_v58 = vpop.f32.mrb[42].mxu0 }
 0x28f   : > { %v4629_v15 = vadd.f32 %v4555_v43, %v1488_v2  ;;  %v4632_v19 = vadd.f32 %v3374_v58, %v4555_v43  ;;  %v1842_v21 = vpop.f32.mrb[43].mxu0  ;;  %1532 = vmax.xlane.f32.xlu0 %v4616_v46 }
 0x290   : > { %v4636_v23 = vadd.f32 %v4555_v43, %v1842_v21 }
 0x291   : > { %1534 = vmax.xlane.f32.xlu1 %v4629_v15 }
 0x293   : > { %v3313_v25 = vpop.f32.mrb[76].mxu1  ;;  %1536 = vmax.xlane.f32.xlu0 %v4613_v9 }
 0x294   : > { %v4641_v29 = vadd.f32 %v3313_v25, %v4555_v43  ;;  %v1501_v31 = vpop.f32.mrb[77].mxu1  ;;  %v3377_v33 = vpop.f32.mrb[44].mxu0 }
 0x295   : > { %v4644_v35 = vadd.f32 %v4555_v43, %v1501_v31  ;;  %v4647_v39 = vadd.f32 %v3377_v33, %v4555_v43  ;;  %v3314_v41 = vpop.f32.mrb[78].mxu1  ;;  %v1855_v45 = vpop.f32.mrb[45].mxu0  ;;  %1538 = vmax.xlane.f32.xlu1 %v4623_v16 }
 0x296   : > { %v4651_v53 = vadd.f32 %v3314_v41, %v4555_v43  ;;  %v4654_v55 = vadd.f32 %v4555_v43, %v1855_v45  ;;  %v1504_v1 = vpop.f32.mrb[79].mxu1  ;;  %v3378_v3 = vpop.f32.mrb[46].mxu0 }
 0x297   : > { %v4657_v17 = vadd.f32 %v4555_v43, %v1504_v1  ;;  %v4660_v22 = vadd.f32 %v3378_v3, %v4555_v43  ;;  %v1858_v0 = vpop.f32.mrb[47].mxu0  ;;  %1540 = vmax.xlane.f32.xlu0 %v4644_v35 }
 0x298   : > { %v4664_v12 = vadd.f32 %v4555_v43, %v1858_v0 }
 0x299   : > { %1542 = vmax.xlane.f32.xlu1 %v4657_v17 }
 0x29b   : > { %1544 = vmax.xlane.f32.xlu0 %v4641_v29 }
 0x29d   : > { %1546 = vmax.xlane.f32.xlu1 %v4651_v53 }
 0x29f   : > { %1870 = vmax.xlane.f32.xlu0 %v4570_v14 }
 0x2a1   : > { %1872 = vmax.xlane.f32.xlu1 %v4581_v4 }
 0x2a3   : > { %1874 = vmax.xlane.f32.xlu0 %v4564_v62 }
 0x2a5   : > { %1876 = vmax.xlane.f32.xlu1 %v4574_v32 }
 0x2a7   : > { %1878 = vmax.xlane.f32.xlu0 %v4598_v42 }
 0x2a9   : > { %1880 = vmax.xlane.f32.xlu1 %v4608_v20 }
 0x2ab   : > { %1882 = vmax.xlane.f32.xlu0 %v4592_v30 }
 0x2ad   : > { %1884 = vmax.xlane.f32.xlu1 %v4604_v13 }
 0x2af   : > { %1886 = vmax.xlane.f32.xlu0 %v4626_v47 }
 0x2b1   : > { %1888 = vmax.xlane.f32.xlu1 %v4636_v23 }
 0x2b3   : > { %1890 = vmax.xlane.f32.xlu0 %v4619_v36 }
 0x2b5   : > { %1892 = vmax.xlane.f32.xlu1 %v4632_v19 }
 0x2b7   : > { %1894 = vmax.xlane.f32.xlu0 %v4654_v55 }
 0x2b9   : > { %1900 = vmax.xlane.f32.xlu1 %v4660_v22 }
 0x2bb   : > { %1898 = vmax.xlane.f32.xlu0 %v4647_v39 }
 0x2bd   : > { %1896 = vmax.xlane.f32.xlu1 %v4664_v12 }
 0x30b   : > { %v1521_v43 = vpop.xlane.xlu1 %1520 }
 0x30c   : > { %v1550_v7 = vsub.f32 %v4558_v51, %v1521_v43  ;;  %v1517_v24 = vpop.xlane.xlu0 %1516 }
 0x30d   : > { %v1548_v60 = vsub.f32 %v4561_v57, %v1517_v24 }
 0x30e   : > { %v1568_v11 = vmul.f32 1.442695, %v1550_v7 }
 0x30f   : > { %v1564_v34 = vmul.f32 1.442695, %v1548_v60  ;;  %v1523_v52 = vpop.xlane.xlu1 %1522 }
 0x310   : > { %v1551_v37 = vsub.f32 %v4567_v6, %v1523_v52  ;;  %v1519_v48 = vpop.xlane.xlu0 %1518 }
 0x311   : > { %3627 = vpow2.f32 %v1564_v34  ;;  %v1549_v63 = vsub.f32 %v4577_v54, %v1519_v48 }
 0x312   : > { %3629 = vpow2.f32 %v1568_v11  ;;  %v1570_v27 = vmul.f32 1.442695, %v1551_v37 }
 0x313   : > { %v1566_v50 = vmul.f32 1.442695, %v1549_v63 }
 0x314   : > { %v1525_v26 = vpop.xlane.xlu0 %1524 }
 0x315   : > { %3631 = vpow2.f32 %v1566_v50  ;;  %v1552_v2 = vsub.f32 %v4589_v49, %v1525_v26 }
 0x316   : > { %v1527_v51 = vpop.xlane.xlu1 %1526  ;;  %3633 = vpow2.f32 %v1570_v27 }
 0x317   : > { %v1572_v58 = vmul.f32 1.442695, %v1552_v2  ;;  %v1553_v57 = vsub.f32 %v4601_v44, %v1527_v51 }
 0x318   : > { %v1529_v21 = vpop.xlane.xlu0 %1528 }
 0x319   : > { %3635 = vpow2.f32 %v1572_v58  ;;  %v1574_v25 = vmul.f32 1.442695, %v1553_v57  ;;  %v1554_v6 = vsub.f32 %v4586_v28, %v1529_v21 }
 0x31a   : > { %v1531_v31 = vpop.xlane.xlu1 %1530 }
 0x31b   : > { %v4692_v33 = vpop.eup %3627  ;;  %v1576_v54 = vmul.f32 1.442695, %v1554_v6  ;;  %v1555_v41 = vsub.f32 %v4595_v56, %v1531_v31  ;;  %3637 = vpow2.f32 %v1574_v25 }
 0x31c   : > { %1596 = vadd.xlane.f32.xlu0 %v4692_v33  ;;  %v1533_v49 = vpop.xlane.xlu0 %1532  ;;  %v4697_v1 = vpop.eup %3629 }
 0x31d   : > { %3639 = vpow2.f32 %v1576_v54  ;;  %v1578_v45 = vmul.f32 1.442695, %v1555_v41  ;;  %v1556_v44 = vsub.f32 %v4616_v46, %v1533_v49 }
 0x31e   : > { %v1535_v3 = vpop.xlane.xlu1 %1534 }
 0x31f   : > { %v4699_v0 = vpop.eup %3631  ;;  %v1580_v28 = vmul.f32 1.442695, %v1556_v44  ;;  %v1557_v43 = vsub.f32 %v4629_v15, %v1535_v3  ;;  %3641 = vpow2.f32 %v1578_v45 }
 0x320   : > { %1600 = vadd.xlane.f32.xlu0 %v4697_v1  ;;  %1598 = vadd.xlane.f32.xlu1 %v4699_v0  ;;  %v1537_v56 = vpop.xlane.xlu0 %1536  ;;  %v4705_v60 = vpop.eup %3633 }
 0x321   : > { %3643 = vpow2.f32 %v1580_v28  ;;  %v1582_v7 = vmul.f32 1.442695, %v1557_v43  ;;  %v1558_v24 = vsub.f32 %v4613_v9, %v1537_v56 }
 0x322   : > { %v1539_v46 = vpop.xlane.xlu1 %1538 }
 0x323   : > { %v4707_v34 = vpop.eup %3635  ;;  %v1584_v52 = vmul.f32 1.442695, %v1558_v24  ;;  %v1559_v11 = vsub.f32 %v4623_v16, %v1539_v46  ;;  %3645 = vpow2.f32 %v1582_v7 }
 0x324   : > { %1602 = vadd.xlane.f32.xlu1 %v4705_v60  ;;  %1604 = vadd.xlane.f32.xlu0 %v4707_v34  ;;  %v1541_v15 = vpop.xlane.xlu0 %1540 }
 0x325   : > { %3647 = vpow2.f32 %v1584_v52  ;;  %v1586_v37 = vmul.f32 1.442695, %v1559_v11  ;;  %v1560_v48 = vsub.f32 %v4644_v35, %v1541_v15  ;;  %v4713_v63 = vpop.eup %3637 }
 0x326   : > { %v1543_v9 = vpop.xlane.xlu1 %1542 }
 0x327   : > { %v4715_v50 = vpop.eup %3639  ;;  %v1588_v27 = vmul.f32 1.442695, %v1560_v48  ;;  %v1561_v26 = vsub.f32 %v4657_v17, %v1543_v9  ;;  %3649 = vpow2.f32 %v1586_v37 }
 0x328   : > { %1606 = vadd.xlane.f32.xlu1 %v4713_v63  ;;  %1608 = vadd.xlane.f32.xlu0 %v4715_v50  ;;  %v1545_v16 = vpop.xlane.xlu0 %1544 }
 0x329   : > { %3651 = vpow2.f32 %v1588_v27  ;;  %v1590_v2 = vmul.f32 1.442695, %v1561_v26  ;;  %v1562_v51 = vsub.f32 %v4641_v29, %v1545_v16  ;;  %v4721_v58 = vpop.eup %3641 }
 0x32a   : > { %v1547_v35 = vpop.xlane.xlu1 %1546 }
 0x32b   : > { %v4723_v57 = vpop.eup %3643  ;;  %v1592_v21 = vmul.f32 1.442695, %v1562_v51  ;;  %v1563_v25 = vsub.f32 %v4651_v53, %v1547_v35  ;;  %3653 = vpow2.f32 %v1590_v2 }
 0x32c   : > { %1610 = vadd.xlane.f32.xlu1 %v4721_v58  ;;  %1612 = vadd.xlane.f32.xlu0 %v4723_v57  ;;  %v1871_v17 = vpop.xlane.xlu0 %1870 }
 0x32d   : > { %3655 = vpow2.f32 %v1592_v21  ;;  %v1594_v6 = vmul.f32 1.442695, %v1563_v25  ;;  %v1902_v31 = vsub.f32 %v4570_v14, %v1871_v17  ;;  %v4729_v54 = vpop.eup %3645 }
 0x32e   : > { %v1873_v29 = vpop.xlane.xlu1 %1872 }
 0x32f   : > { %v4731_v41 = vpop.eup %3647  ;;  %v1918_v49 = vmul.f32 1.442695, %v1902_v31  ;;  %v1903_v45 = vsub.f32 %v4581_v4, %v1873_v29  ;;  %3657 = vpow2.f32 %v1594_v6 }
 0x330   : > { %1614 = vadd.xlane.f32.xlu1 %v4729_v54  ;;  %1616 = vadd.xlane.f32.xlu0 %v4731_v41  ;;  %v1875_v53 = vpop.xlane.xlu0 %1874 }
 0x331   : > { %3659 = vpow2.f32 %v1918_v49  ;;  %v1920_v44 = vmul.f32 1.442695, %v1903_v45  ;;  %v1904_v3 = vsub.f32 %v4564_v62, %v1875_v53  ;;  %v4737_v28 = vpop.eup %3649 }
 0x332   : > { %v1877_v14 = vpop.xlane.xlu1 %1876 }
 0x333   : > { %v4739_v43 = vpop.eup %3651  ;;  %v1922_v56 = vmul.f32 1.442695, %v1904_v3  ;;  %v1905_v7 = vsub.f32 %v4574_v32, %v1877_v14  ;;  %3661 = vpow2.f32 %v1920_v44 }
 0x334   : > { %1618 = vadd.xlane.f32.xlu1 %v4737_v28  ;;  %1620 = vadd.xlane.f32.xlu0 %v4739_v43  ;;  %v1879_v4 = vpop.xlane.xlu0 %1878 }
 0x335   : > { %3663 = vpow2.f32 %v1922_v56  ;;  %v1924_v24 = vmul.f32 1.442695, %v1905_v7  ;;  %v1906_v46 = vsub.f32 %v4598_v42, %v1879_v4  ;;  %v4745_v52 = vpop.eup %3653 }
 0x336   : > { %v1881_v62 = vpop.xlane.xlu1 %1880 }
 0x337   : > { %v4747_v11 = vpop.eup %3655  ;;  %v1926_v15 = vmul.f32 1.442695, %v1906_v46  ;;  %v1907_v37 = vsub.f32 %v4608_v20, %v1881_v62  ;;  %3665 = vpow2.f32 %v1924_v24 }
 0x338   : > { %1622 = vadd.xlane.f32.xlu1 %v4745_v52  ;;  %1624 = vadd.xlane.f32.xlu0 %v4747_v11  ;;  %v1883_v32 = vpop.xlane.xlu0 %1882 }
 0x339   : > { %3667 = vpow2.f32 %v1926_v15  ;;  %v1928_v48 = vmul.f32 1.442695, %v1907_v37  ;;  %v1908_v9 = vsub.f32 %v4592_v30, %v1883_v32  ;;  %v4753_v27 = vpop.eup %3657 }
 0x33a   : > { %v1885_v42 = vpop.xlane.xlu1 %1884 }
 0x33b   : > { %v4755_v26 = vpop.eup %3659  ;;  %v1930_v16 = vmul.f32 1.442695, %v1908_v9  ;;  %v1909_v2 = vsub.f32 %v4604_v13, %v1885_v42  ;;  %3669 = vpow2.f32 %v1928_v48 }
 0x33c   : > { %1626 = vadd.xlane.f32.xlu1 %v4753_v27  ;;  %1950 = vadd.xlane.f32.xlu0 %v4755_v26  ;;  %v1887_v20 = vpop.xlane.xlu0 %1886 }
 0x33d   : > { %3671 = vpow2.f32 %v1930_v16  ;;  %v1932_v51 = vmul.f32 1.442695, %v1909_v2  ;;  %v1910_v35 = vsub.f32 %v4626_v47, %v1887_v20  ;;  %v4761_v21 = vpop.eup %3661 }
 0x33e   : > { %v1889_v30 = vpop.xlane.xlu1 %1888 }
 0x33f   : > { %v4763_v25 = vpop.eup %3663  ;;  %v1934_v17 = vmul.f32 1.442695, %v1910_v35  ;;  %v1911_v6 = vsub.f32 %v4636_v23, %v1889_v30  ;;  %3673 = vpow2.f32 %v1932_v51  ;;  %v3579_v51 = vld [vmem:[%s5413_s4] ss:$8 sps:$4 sm:$0xff]   ;;  %v3581_v35 = vld [vmem:[%s5413_s4 + $0x4] ss:$8 sps:$4 sm:$0xff]  }
 0x340   : > { %1952 = vadd.xlane.f32.xlu1 %v4761_v21  ;;  %1954 = vadd.xlane.f32.xlu0 %v4763_v25  ;;  %v1891_v13 = vpop.xlane.xlu0 %1890  ;;  %v3584_v30 = vld [vmem:[%s5413_s4 + $0x14] ss:$8 sps:$4 sm:$0xff]  }
 0x341   : > { %3675 = vpow2.f32 %v1934_v17  ;;  %v1936_v31 = vmul.f32 1.442695, %v1911_v6  ;;  %v1912_v29 = vsub.f32 %v4619_v36, %v1891_v13  ;;  %v4769_v49 = vpop.eup %3665  ;;  %2331 = vmatprep.subr.bf16.mxu0 %v3581_v35  ;;  %v3582_v17 = vld [vmem:[%s5413_s4 + $0x10] ss:$8 sps:$4 sm:$0xff]   ;;  %v3587_v6 = vld [vmem:[%s5413_s4 + $0x24] ss:$8 sps:$4 sm:$0xff]  }
 0x342   : > { %v1893_v47 = vpop.xlane.xlu1 %1892  ;;  %2332 = vmatpush1.bf16.msra.mxu0 %v3579_v51  ;;  %v3585_v13 = vld [vmem:[%s5413_s4 + $0x20] ss:$8 sps:$4 sm:$0xff]  }
 0x343   : > { %v4771_v45 = vpop.eup %3667  ;;  %v1938_v53 = vmul.f32 1.442695, %v1912_v29  ;;  %v1913_v44 = vsub.f32 %v4632_v19, %v1893_v47  ;;  %3677 = vpow2.f32 %v1936_v31  ;;  %2333 = vmatprep.subr.bf16.mxu0 %v3584_v30  ;;  %v3590_v31 = vld [vmem:[%s5413_s4 + $0x34] ss:$8 sps:$4 sm:$0xff]   ;;  %v3588_v29 = vld [vmem:[%s5413_s4 + $0x30] ss:$8 sps:$4 sm:$0xff]  }
 0x344   : > { %1956 = vadd.xlane.f32.xlu1 %v4769_v49  ;;  %1958 = vadd.xlane.f32.xlu0 %v4771_v45  ;;  %v1895_v23 = vpop.xlane.xlu0 %1894  ;;  %v3593_v47 = vld [vmem:[%s5413_s4 + $0x44] ss:$8 sps:$4 sm:$0xff]  }
 0x345   : > { %3679 = vpow2.f32 %v1938_v53  ;;  %v1940_v3 = vmul.f32 1.442695, %v1913_v44  ;;  %v1914_v14 = vsub.f32 %v4654_v55, %v1895_v23  ;;  %v4777_v56 = vpop.eup %3669  ;;  %v3591_v53 = vld [vmem:[%s5413_s4 + $0x40] ss:$8 sps:$4 sm:$0xff]   ;;  %v3596_v44 = vld [vmem:[%s5413_s4 + $0x54] ss:$8 sps:$4 sm:$0xff]  }
 0x346   : > { %v1901_v36 = vpop.xlane.xlu1 %1900  ;;  %2334 = vmatpush1.bf16.msra.mxu0 %v3582_v17  ;;  %v3594_v23 = vld [vmem:[%s5413_s4 + $0x50] ss:$8 sps:$4 sm:$0xff]  }
 0x347   : > { %v4779_v7 = vpop.eup %3671  ;;  %v1942_v4 = vmul.f32 1.442695, %v1914_v14  ;;  %3681 = vpow2.f32 %v1940_v3  ;;  %v1917_v55 = vsub.f32 %v4660_v22, %v1901_v36  ;;  %2335 = vmatprep.subr.bf16.mxu0 %v3587_v6  ;;  %v3599_v3 = vld [vmem:[%s5413_s4 + $0x64] ss:$8 sps:$4 sm:$0xff]   ;;  %v3597_v14 = vld [vmem:[%s5413_s4 + $0x60] ss:$8 sps:$4 sm:$0xff]  }
 0x348   : > { %1960 = vadd.xlane.f32.xlu1 %v4777_v56  ;;  %1962 = vadd.xlane.f32.xlu0 %v4779_v7  ;;  %v1899_v19 = vpop.xlane.xlu0 %1898 }
 0x349   : > { %3683 = vpow2.f32 %v1942_v4  ;;  %v1916_v24 = vsub.f32 %v4647_v39, %v1899_v19  ;;  %v4784_v46 = vpop.eup %3673  ;;  %v1948_v39 = vmul.f32 1.442695, %v1917_v55 }
 0x34a   : > { %v1897_v62 = vpop.xlane.xlu1 %1896  ;;  %2336 = vmatpush1.bf16.msra.mxu0 %v3585_v13 }
 0x34b   : > { %v4786_v15 = vpop.eup %3675  ;;  %v1946_v37 = vmul.f32 1.442695, %v1916_v24  ;;  %v1915_v32 = vsub.f32 %v4664_v12, %v1897_v62  ;;  %2337 = vmatprep.subr.bf16.mxu0 %v3590_v31 }
 0x34c   : > { %1964 = vadd.xlane.f32.xlu1 %v4784_v46  ;;  %1966 = vadd.xlane.f32.xlu0 %v4786_v15 }
 0x34d   : > { %3685 = vpow2.f32 %v1946_v37  ;;  %v1944_v48 = vmul.f32 1.442695, %v1915_v32  ;;  %v4792_v9 = vpop.eup %3677 }
 0x34e   : > { %2338 = vmatpush1.bf16.msra.mxu0 %v3588_v29 }
 0x34f   : > { %v4794_v42 = vpop.eup %3679  ;;  %3687 = vpow2.f32 %v1944_v48  ;;  %2339 = vmatprep.subr.bf16.mxu0 %v3593_v47 }
 0x350   : > { %1968 = vadd.xlane.f32.xlu1 %v4792_v9  ;;  %1970 = vadd.xlane.f32.xlu0 %v4794_v42  ;;  %3689 = vpow2.f32 %v1948_v39 }
 0x351   : > { %v4798_v22 = vpop.eup %3681 }
 0x352   : > { %2340 = vmatpush1.bf16.msra.mxu0 %v3591_v53 }
 0x353   : > { %v4800_v16 = vpop.eup %3683  ;;  %2341 = vmatprep.subr.bf16.mxu0 %v3596_v44 }
 0x354   : > { %1972 = vadd.xlane.f32.xlu1 %v4798_v22  ;;  %1974 = vadd.xlane.f32.xlu0 %v4800_v16 }
 0x356   : > { %2342 = vmatpush1.bf16.msra.mxu0 %v3594_v23 }
 0x357   : > { %v4804_v12 = vpop.eup %3685  ;;  %2343 = vmatprep.subr.bf16.mxu0 %v3599_v3 }
 0x358   : > { %1978 = vadd.xlane.f32.xlu0 %v4804_v12 }
 0x359   : > { %v4807_v2 = vpop.eup %3687 }
 0x35a   : > { %1976 = vadd.xlane.f32.xlu1 %v4807_v2  ;;  %v4810_v20 = vpop.eup %3689  ;;  %2344 = vmatpush1.bf16.msra.mxu0 %v3597_v14 }
 0x35e   : > { %1980 = vadd.xlane.f32.xlu1 %v4810_v20 }
 0x3a9   : > { %v1597_v36 = vpop.xlane.xlu0 %1596 }
 0x3aa   : > { %3691 = vrcp.f32 %v1597_v36 }
 0x3ad   : > { %v1599_v4 = vpop.xlane.xlu1 %1598  ;;  %v1601_v19 = vpop.xlane.xlu0 %1600 }
 0x3ae   : > { %3693 = vrcp.f32 %v1599_v4 }
 0x3af   : > { %3695 = vrcp.f32 %v1601_v19 }
 0x3b1   : > { %v1603_v24 = vpop.xlane.xlu1 %1602  ;;  %v1605_v62 = vpop.xlane.xlu0 %1604 }
 0x3b2   : > { %3697 = vrcp.f32 %v1603_v24 }
 0x3b3   : > { %3699 = vrcp.f32 %v1605_v62 }
 0x3b4   : > { %v3692_v32 = vpop.eup %3691 }
 0x3b5   : > { %v1607_v55 = vpop.xlane.xlu1 %1606  ;;  %v1609_v37 = vpop.xlane.xlu0 %1608  ;;  %v1644_v35 = vmul.f32 %v3692_v32, %v4692_v33 }
 0x3b6   : > { %3701 = vrcp.f32 %v1607_v55 }
 0x3b7   : > { %3703 = vrcp.f32 %v1609_v37 }
 0x3b8   : > { %v3694_v48 = vpop.eup %3693 }
 0x3b9   : > { %v1611_v39 = vpop.xlane.xlu1 %1610  ;;  %v1613_v51 = vpop.xlane.xlu0 %1612  ;;  %v1645_v30 = vmul.f32 %v3694_v48, %v4699_v0 }
 0x3ba   : > { %v3696_v17 = vpop.eup %3695  ;;  %3705 = vrcp.f32 %v1611_v39 }
 0x3bb   : > { %v1660_v6 = vpack.c.bf16 %v1645_v30, %v1644_v35  ;;  %3707 = vrcp.f32 %v1613_v51  ;;  %v1646_v31 = vmul.f32 %v3696_v17, %v4697_v1 }
 0x3bc   : > { %v3698_v13 = vpop.eup %3697 }
 0x3bd   : > { %v1647_v29 = vmul.f32 %v3698_v13, %v4705_v60  ;;  %v1615_v47 = vpop.xlane.xlu1 %1614  ;;  %3331 = vmatprep.mubr.bf16.mxu1 %v1660_v6  ;;  %v1617_v53 = vpop.xlane.xlu0 %1616 }
 0x3be   : > { %v3700_v44 = vpop.eup %3699  ;;  %3709 = vrcp.f32 %v1615_v47 }
 0x3bf   : > { %v1661_v23 = vpack.c.bf16 %v1647_v29, %v1646_v31  ;;  %3711 = vrcp.f32 %v1617_v53  ;;  %v1648_v14 = vmul.f32 %v3700_v44, %v4707_v34 }
 0x3c0   : > { %v3702_v3 = vpop.eup %3701 }
 0x3c1   : > { %v1619_v33 = vpop.xlane.xlu1 %1618  ;;  %3332 = vmatmul.mubr.bf16.vlgmr.msra.gmra.mrb[80].mxu1 %v1661_v23  ;;  %v1621_v0 = vpop.xlane.xlu0 %1620  ;;  %v1649_v36 = vmul.f32 %v3702_v3, %v4713_v63 }
 0x3c2   : > { %v3704_v4 = vpop.eup %3703  ;;  %3713 = vrcp.f32 %v1619_v33  ;;  %3380 = vmatpush3.bf16.msra.mxu1 %v4382_v61 }
 0x3c3   : > { %3381 = vmatprep.subr.bf16.mxu1 %v4414_v8  ;;  %v1662_v1 = vpack.c.bf16 %v1649_v36, %v1648_v14  ;;  %3715 = vrcp.f32 %v1621_v0  ;;  %v1650_v62 = vmul.f32 %v3704_v4, %v4715_v50 }
 0x3c4   : > { %v3706_v60 = vpop.eup %3705 }
 0x3c5   : > { %v1623_v19 = vpop.xlane.xlu1 %1622  ;;  %3335 = vmatprep.mubr.bf16.mxu1 %v1662_v1  ;;  %v1625_v24 = vpop.xlane.xlu0 %1624  ;;  %v1651_v55 = vmul.f32 %v3706_v60, %v4721_v58 }
 0x3c6   : > { %v3708_v37 = vpop.eup %3707  ;;  %3717 = vrcp.f32 %v1623_v19  ;;  %3382 = vmatpush3.bf16.msra.mxu1 %v4414_v8 }
 0x3c7   : > { %3383 = vmatprep.subr.bf16.mxu1 %v4426_v38  ;;  %v1663_v34 = vpack.c.bf16 %v1651_v55, %v1650_v62  ;;  %3719 = vrcp.f32 %v1625_v24  ;;  %v1652_v48 = vmul.f32 %v3708_v37, %v4723_v57 }
 0x3c8   : > { %v3710_v61 = vpop.eup %3709 }
 0x3c9   : > { %v1627_v63 = vpop.xlane.xlu1 %1626  ;;  %3336 = vmatmul.mubr.bf16.gmra.mrb[84].mxu1 %v1663_v34  ;;  %v1951_v32 = vpop.xlane.xlu0 %1950  ;;  %v1653_v39 = vmul.f32 %v3710_v61, %v4729_v54 }
 0x3ca   : > { %v3712_v51 = vpop.eup %3711  ;;  %3721 = vrcp.f32 %v1627_v63  ;;  %3384 = vmatpush3.bf16.msra.mxu1 %v4426_v38 }
 0x3cb   : > { %3385 = vmatprep.subr.bf16.mxu1 %v4438_v18  ;;  %v1664_v50 = vpack.c.bf16 %v1653_v39, %v1652_v48  ;;  %3723 = vrcp.f32 %v1951_v32  ;;  %v1654_v30 = vmul.f32 %v3712_v51, %v4731_v41 }
 0x3cc   : > { %v3714_v8 = vpop.eup %3713 }
 0x3cd   : > { %v1953_v58 = vpop.xlane.xlu1 %1952  ;;  %3339 = vmatprep.mubr.bf16.mxu1 %v1664_v50  ;;  %v1955_v35 = vpop.xlane.xlu0 %1954  ;;  %v1655_v17 = vmul.f32 %v3714_v8, %v4737_v28 }
 0x3ce   : > { %v3716_v6 = vpop.eup %3715  ;;  %3725 = vrcp.f32 %v1953_v58  ;;  %3386 = vmatpush3.bf16.msra.mxu1 %v4438_v18 }
 0x3cf   : > { %3387 = vmatprep.subr.bf16.mxu1 %v4450_v10  ;;  %v1665_v57 = vpack.c.bf16 %v1655_v17, %v1654_v30  ;;  %3727 = vrcp.f32 %v1955_v35  ;;  %v1656_v31 = vmul.f32 %v3716_v6, %v4739_v43 }
 0x3d0   : > { %v3718_v38 = vpop.eup %3717 }
 0x3d1   : > { %v1957_v54 = vpop.xlane.xlu1 %1956  ;;  %3340 = vmatmul.mubr.bf16.gmra.mrb[88].mxu1 %v1665_v57  ;;  %v1959_v13 = vpop.xlane.xlu0 %1958  ;;  %v1657_v29 = vmul.f32 %v3718_v38, %v4745_v52 }
 0x3d2   : > { %v3720_v47 = vpop.eup %3719  ;;  %3729 = vrcp.f32 %v1957_v54  ;;  %3388 = vmatpush3.bf16.msra.mxu1 %v4450_v10 }
 0x3d3   : > { %3389 = vmatprep.subr.bf16.mxu1 %v4462_v5  ;;  %v1666_v41 = vpack.c.bf16 %v1657_v29, %v1656_v31  ;;  %3731 = vrcp.f32 %v1959_v13  ;;  %v1658_v44 = vmul.f32 %v3720_v47, %v4747_v11  ;;  %v3611_v29 = vld [vmem:[%s5413_s4 + $0xa4] ss:$8 sps:$4 sm:$0xff]   ;;  %v3609_v47 = vld [vmem:[%s5413_s4 + $0xa0] ss:$8 sps:$4 sm:$0xff]  }
 0x3d4   : > { %v3722_v18 = vpop.eup %3721 }
 0x3d5   : > { %v1961_v28 = vpop.xlane.xlu1 %1960  ;;  %3343 = vmatprep.mubr.bf16.mxu1 %v1666_v41  ;;  %v1963_v53 = vpop.xlane.xlu0 %1962  ;;  %v1659_v23 = vmul.f32 %v3722_v18, %v4753_v27  ;;  %v3614_v41 = vld [vmem:[%s5413_s4 + $0xb4] ss:$8 sps:$4 sm:$0xff]   ;;  %v3612_v18 = vld [vmem:[%s5413_s4 + $0xb0] ss:$8 sps:$4 sm:$0xff]  }
 0x3d6   : > { %v3724_v3 = vpop.eup %3723  ;;  %3733 = vrcp.f32 %v1961_v28  ;;  %3390 = vmatpush3.bf16.msra.mxu1 %v4462_v5  ;;  %v3617_v28 = vld [vmem:[%s5413_s4 + $0xc4] ss:$8 sps:$4 sm:$0xff]  }
 0x3d7   : > { %3391 = vmatprep.subr.bf16.mxu1 %v4474_v40  ;;  %v1667_v43 = vpack.c.bf16 %v1659_v23, %v1658_v44  ;;  %3735 = vrcp.f32 %v1963_v53  ;;  %v1998_v0 = vmul.f32 %v3724_v3, %v4755_v26  ;;  %v3615_v53 = vld [vmem:[%s5413_s4 + $0xc0] ss:$8 sps:$4 sm:$0xff]   ;;  %v3620_v44 = vld [vmem:[%s5413_s4 + $0xd4] ss:$8 sps:$4 sm:$0xff]   ;;  %v3618_v23 = vld [vmem:[%s5413_s4 + $0xd0] ss:$8 sps:$4 sm:$0xff]  }
 0x3d8   : > { %v3726_v10 = vpop.eup %3725  ;;  %v3623_v3 = vld [vmem:[%s5413_s4 + $0xe4] ss:$8 sps:$4 sm:$0xff]  }
 0x3d9   : > { %v1965_v52 = vpop.xlane.xlu1 %1964  ;;  %3344 = vmatmul.mubr.bf16.gmra.mrb[92].mxu1 %v1667_v43  ;;  %v1967_v33 = vpop.xlane.xlu0 %1966  ;;  %v1999_v14 = vmul.f32 %v3726_v10, %v4761_v21  ;;  %v3621_v43 = vld [vmem:[%s5413_s4 + $0xe0] ss:$8 sps:$4 sm:$0xff]   ;;  %v3626_v10 = vld [vmem:[%s5413_s4 + $0xf4] ss:$8 sps:$4 sm:$0xff]  }
 0x3da   : > { %v3728_v36 = vpop.eup %3727  ;;  %3737 = vrcp.f32 %v1965_v52  ;;  %3392 = vmatpush3.bf16.msra.mxu1 %v4474_v40  ;;  %v3624_v52 = vld [vmem:[%s5413_s4 + $0xf0] ss:$8 sps:$4 sm:$0xff]  }
 0x3db   : > { %3393 = vmatprep.subr.bf16.mxu1 %v4484_v59  ;;  %v2014_v11 = vpack.c.bf16 %v1999_v14, %v1998_v0  ;;  %3739 = vrcp.f32 %v1967_v33  ;;  %v2000_v27 = vmul.f32 %v3728_v36, %v4763_v25 }
 0x3dc   : > { %v3730_v5 = vpop.eup %3729 }
 0x3dd   : > { %v2001_v4 = vmul.f32 %v3730_v5, %v4769_v49  ;;  %v1969_v1 = vpop.xlane.xlu1 %1968  ;;  %3395 = vmatprep.mubr.bf16.mxu1 %v2014_v11  ;;  %v1971_v60 = vpop.xlane.xlu0 %1970 }
 0x3de   : > { %v3732_v19 = vpop.eup %3731  ;;  %3741 = vrcp.f32 %v1969_v1  ;;  %3394 = vmatpush3.bf16.msra.mxu1 %v4484_v59 }
 0x3df   : > { %v2015_v26 = vpack.c.bf16 %v2001_v4, %v2000_v27  ;;  %3743 = vrcp.f32 %v1971_v60  ;;  %v2002_v62 = vmul.f32 %v3732_v19, %v4771_v45 }
 0x3e0   : > { %v3734_v21 = vpop.eup %3733 }
 0x3e1   : > { %v1973_v40 = vpop.xlane.xlu1 %1972  ;;  %3396 = vmatmul.mubr.bf16.vlgmr.msra.gmra.mrb[96].mxu1 %v2015_v26  ;;  %v1975_v24 = vpop.xlane.xlu0 %1974  ;;  %v2003_v55 = vmul.f32 %v3734_v21, %v4777_v56 }
 0x3e2   : > { %v3736_v25 = vpop.eup %3735  ;;  %3745 = vrcp.f32 %v1973_v40 }
 0x3e3   : > { %v2016_v49 = vpack.c.bf16 %v2003_v55, %v2002_v62  ;;  %v2004_v34 = vmul.f32 %v3736_v25, %v4779_v7  ;;  %3747 = vrcp.f32 %v1975_v24 }
 0x3e4   : > { %v3738_v37 = vpop.eup %3737 }
 0x3e5   : > { %3399 = vmatprep.mubr.bf16.mxu1 %v2016_v49  ;;  %v2005_v61 = vmul.f32 %v3738_v37, %v4784_v46  ;;  %v3740_v59 = vpop.eup %3739  ;;  %v1979_v63 = vpop.xlane.xlu0 %1978 }
 0x3e6   : > { %v2006_v45 = vmul.f32 %v3740_v59, %v4786_v15 }
 0x3e7   : > { %v1977_v32 = vpop.xlane.xlu1 %1976  ;;  %v2017_v48 = vpack.c.bf16 %v2005_v61, %v2004_v34 }
 0x3e8   : > { %v3742_v39 = vpop.eup %3741  ;;  %3749 = vrcp.f32 %v1977_v32 }
 0x3e9   : > { %3400 = vmatmul.mubr.bf16.gmra.mrb[100].mxu1 %v2017_v48  ;;  %v2007_v56 = vmul.f32 %v3742_v39, %v4792_v9  ;;  %v3744_v51 = vpop.eup %3743  ;;  %3751 = vrcp.f32 %v1979_v63 }
 0x3ea   : > { %v2008_v7 = vmul.f32 %v3744_v51, %v4794_v42  ;;  %v3602_v42 = vld [vmem:[%s5413_s4 + $0x74] ss:$8 sps:$4 sm:$0xff]  }
 0x3eb   : > { %v1981_v50 = vpop.xlane.xlu1 %1980  ;;  %v2018_v8 = vpack.c.bf16 %v2007_v56, %v2006_v45  ;;  %2345 = vmatprep.subr.bf16.mxu0 %v3602_v42 }
 0x3ec   : > { %v3746_v58 = vpop.eup %3745  ;;  %3753 = vrcp.f32 %v1981_v50 }
 0x3ed   : > { %3403 = vmatprep.mubr.bf16.mxu1 %v2018_v8  ;;  %v2009_v46 = vmul.f32 %v3746_v58, %v4798_v22  ;;  %v3748_v30 = vpop.eup %3747  ;;  %v3600_v22 = vld [vmem:[%s5413_s4 + $0x70] ss:$8 sps:$4 sm:$0xff]  }
 0x3ee   : > { %v2010_v6 = vmul.f32 %v3748_v30, %v4800_v16  ;;  %v3605_v16 = vld [vmem:[%s5413_s4 + $0x84] ss:$8 sps:$4 sm:$0xff]   ;;  %2346 = vmatpush1.bf16.msra.mxu0 %v3600_v22 }
 0x3ef   : > { %v2019_v35 = vpack.c.bf16 %v2009_v46, %v2008_v7  ;;  %2347 = vmatprep.subr.bf16.mxu0 %v3605_v16  ;;  %v2159_v16 = vld [vmem:[%s5414_s5] sm:$0x3] }
 0x3f1   : > { %3404 = vmatmul.mubr.bf16.gmra.mrb[104].mxu1 %v2019_v35 }
 0x3f2   : > { %v3750_v17 = vpop.eup %3749 }
 0x3f3   : > { %v2011_v15 = vmul.f32 %v3750_v17, %v4807_v2  ;;  %v3752_v9 = vpop.eup %3751  ;;  %v3608_v2 = vld [vmem:[%s5413_s4 + $0x94] ss:$8 sps:$4 sm:$0xff]  }
 0x3f4   : > { %v2012_v54 = vmul.f32 %v3752_v9, %v4804_v12  ;;  %v3603_v12 = vld [vmem:[%s5413_s4 + $0x80] ss:$8 sps:$4 sm:$0xff]  }
 0x3f5   : > { %v2020_v57 = vpack.c.bf16 %v2011_v15, %v2010_v6  ;;  %2348 = vmatpush1.bf16.msra.mxu0 %v3603_v12  ;;  %v5438_v12 = vld [vmem:[#allocation2_spill] sm:$0xff] }
 0x3f6   : > { %v3754_v38 = vpop.eup %3753  ;;  %2349 = vmatprep.subr.bf16.mxu0 %v3608_v2  ;;  %v4960_v2 = vrot.slane %v2159_v16, %v5438_v12 }
 0x3f7   : > { %3407 = vmatprep.mubr.bf16.mxu1 %v2020_v57  ;;  %v2013_v13 = vmul.f32 %v3754_v38, %v4810_v20  ;;  %v3606_v20 = vld [vmem:[%s5413_s4 + $0x90] ss:$8 sps:$4 sm:$0xff]  }
 0x3f9   : > { %v2021_v31 = vpack.c.bf16 %v2013_v13, %v2012_v54  ;;  %2350 = vmatpush1.bf16.msra.mxu0 %v3606_v20  ;;  %v5439_v20 = vld [vmem:[#allocation3_spill] sm:$0xff] }
 0x3fa   : > { %2351 = vmatprep.subr.bf16.mxu0 %v3611_v29  ;;  %v4963_v29 = vrot.slane %v2159_v16, %v5439_v20  ;;  %v3793_v16 = vld [vmem:[%s3905_s12 + $0x30] sm:$0xff] }
 0x3fb   : > { %3408 = vmatmul.mubr.bf16.gmra.mrb[108].mxu1 %v2021_v31 }
 0x3fd   : > { %2352 = vmatpush1.bf16.msra.mxu0 %v3609_v47  ;;  %v3787_v47 = vld [vmem:[%s3905_s12] sm:$0xff] }
 0x3fe   : > { %2353 = vmatprep.subr.bf16.mxu0 %v3614_v41  ;;  %v2444_v41 = vunpack.c.l.bf16 %v3787_v47 }
 0x401   : > { %2354 = vmatpush1.bf16.msra.mxu0 %v3612_v18 }
 0x402   : > { %2355 = vmatprep.subr.bf16.mxu0 %v3617_v28  ;;  %v2445_v28 = vunpack.c.h.bf16 %v3787_v47  ;;  %v2456_v47 = vunpack.c.l.bf16 %v3793_v16 }
 0x405   : > { %2356 = vmatpush1.bf16.msra.mxu0 %v3615_v53 }
 0x406   : > { %2357 = vmatprep.subr.bf16.mxu0 %v3620_v44 }
 0x409   : > { %2358 = vmatpush1.bf16.msra.mxu0 %v3618_v23  ;;  %v3788_v23 = vld [vmem:[%s3905_s12 + $0x8] sm:$0xff] }
 0x40a   : > { %2359 = vmatprep.subr.bf16.mxu0 %v3623_v3  ;;  %v2446_v3 = vunpack.c.l.bf16 %v3788_v23 }
 0x40d   : > { %2360 = vmatpush1.bf16.msra.mxu0 %v3621_v43 }
 0x40e   : > { %2361 = vmatprep.subr.bf16.mxu0 %v3626_v10 }
 0x411   : > { %2362 = vmatpush1.bf16.msra.mxu0 %v3624_v52  ;;  %v2447_v52 = vunpack.c.h.bf16 %v3788_v23  ;;  %v3794_v23 = vld [vmem:[%s3905_s12 + $0x38] sm:$0xff] }
 0x494   : > { %v3333_v33 = vpop.f32.mrb[80].mxu1 }
 0x495   : > { %v1702_v0 = vpop.f32.mrb[81].mxu1 }
 0x496   : > { %v3334_v14 = vpop.f32.mrb[82].mxu1 }
 0x497   : > { %v1766_v36 = vpack.c.bf16 %v3334_v14, %v3333_v33  ;;  %v1705_v11 = vpop.f32.mrb[83].mxu1 }
 0x498   : > { %v1765_v5 = vpack.c.bf16 %v1705_v11, %v1702_v0 }
 0x49c   : > { %v3337_v27 = vpop.f32.mrb[84].mxu1 }
 0x49d   : > { %v1718_v4 = vpop.f32.mrb[85].mxu1 }
 0x49e   : > { %v3338_v1 = vpop.f32.mrb[86].mxu1 }
 0x49f   : > { %v1768_v60 = vpack.c.bf16 %v3338_v1, %v3337_v27  ;;  %v1721_v19 = vpop.f32.mrb[87].mxu1  ;;  %v3789_v1 = vld [vmem:[%s3905_s12 + $0x10] sm:$0xff] }
 0x4a0   : > { %v1767_v26 = vpack.c.bf16 %v1721_v19, %v1718_v4 }
 0x4a4   : > { %v3341_v21 = vpop.f32.mrb[88].mxu1 }
 0x4a5   : > { %v1734_v40 = vpop.f32.mrb[89].mxu1 }
 0x4a6   : > { %v3342_v24 = vpop.f32.mrb[90].mxu1 }
 0x4a7   : > { %v1770_v62 = vpack.c.bf16 %v3342_v24, %v3341_v21  ;;  %v1737_v55 = vpop.f32.mrb[91].mxu1 }
 0x4a8   : > { %v1769_v25 = vpack.c.bf16 %v1737_v55, %v1734_v40 }
 0x4ac   : > { %v3345_v49 = vpop.f32.mrb[92].mxu1 }
 0x4ad   : > { %v1750_v37 = vpop.f32.mrb[93].mxu1 }
 0x4ae   : > { %v3346_v34 = vpop.f32.mrb[94].mxu1 }
 0x4af   : > { %v1772_v61 = vpack.c.bf16 %v3346_v34, %v3345_v49  ;;  %v1753_v59 = vpop.f32.mrb[95].mxu1 }
 0x4b0   : > { %v1771_v63 = vpack.c.bf16 %v1753_v59, %v1750_v37 }
 0x4b4   : > { %v3397_v32 = vpop.f32.mrb[96].mxu1 }
 0x4b5   : > { %v2056_v48 = vpop.f32.mrb[97].mxu1 }
 0x4b6   : > { %v3398_v39 = vpop.f32.mrb[98].mxu1 }
 0x4b7   : > { %v2120_v45 = vpack.c.bf16 %v3398_v39, %v3397_v32  ;;  %v2059_v56 = vpop.f32.mrb[99].mxu1 }
 0x4b8   : > { %v2119_v51 = vpack.c.bf16 %v2059_v56, %v2056_v48  ;;  %v3791_v56 = vld [vmem:[%s3905_s12 + $0x20] sm:$0xff] }
 0x4ba   : > { %2363 = vmatprep.mubr.bf16.mxu0 %v2119_v51  ;;  %v2452_v51 = vunpack.c.l.bf16 %v3791_v56 }
 0x4bb   : > { %2364 = vmatmul.mubr.bf16.vlgmr.msra.gmra.mrb[48].mxu0 %v1765_v5 }
 0x4bc   : > { %v3401_v50 = vpop.f32.mrb[100].mxu1  ;;  %2373 = vmatprep.mubr.bf16.mxu0 %v2120_v45 }
 0x4bd   : > { %v2072_v8 = vpop.f32.mrb[101].mxu1 }
 0x4be   : > { %v3402_v58 = vpop.f32.mrb[102].mxu1 }
 0x4bf   : > { %v2122_v7 = vpack.c.bf16 %v3402_v58, %v3401_v50  ;;  %v2075_v46 = vpop.f32.mrb[103].mxu1 }
 0x4c0   : > { %v2121_v35 = vpack.c.bf16 %v2075_v46, %v2072_v8  ;;  %v2453_v8 = vunpack.c.h.bf16 %v3791_v56 }
 0x4c3   : > { %2374 = vmatmul.mubr.bf16.gmra.mrb[52].mxu0 %v1766_v36 }
 0x4c4   : > { %v3405_v30 = vpop.f32.mrb[104].mxu1  ;;  %2383 = vmatprep.mubr.bf16.mxu0 %v2121_v35  ;;  %v3792_v35 = vld [vmem:[%s3905_s12 + $0x28] sm:$0xff] }
 0x4c5   : > { %v2088_v17 = vpop.f32.mrb[105].mxu1 }
 0x4c6   : > { %v3406_v6 = vpop.f32.mrb[106].mxu1 }
 0x4c7   : > { %v2124_v15 = vpack.c.bf16 %v3406_v6, %v3405_v30  ;;  %v2091_v9 = vpop.f32.mrb[107].mxu1  ;;  %v2454_v30 = vunpack.c.l.bf16 %v3792_v35 }
 0x4c8   : > { %v2123_v57 = vpack.c.bf16 %v2091_v9, %v2088_v17 }
 0x4cb   : > { %2384 = vmatmul.mubr.bf16.gmra.mrb[56].mxu0 %v1767_v26  ;;  %v2449_v26 = vunpack.c.h.bf16 %v3789_v1 }
 0x4cc   : > { %2393 = vmatprep.mubr.bf16.mxu0 %v2122_v7 }
 0x4ce   : > { %v3409_v38 = vpop.f32.mrb[108].mxu1 }
 0x4cf   : > { %v2104_v54 = vpop.f32.mrb[109].mxu1 }
 0x4d0   : > { %v3410_v13 = vpop.f32.mrb[110].mxu1 }
 0x4d1   : > { %v2126_v31 = vpack.c.bf16 %v3410_v13, %v3409_v38  ;;  %v2107_v42 = vpop.f32.mrb[111].mxu1 }
 0x4d2   : > { %v2125_v22 = vpack.c.bf16 %v2107_v42, %v2104_v54 }
 0x4d3   : > { %2394 = vmatmul.mubr.bf16.gmra.mrb[60].mxu0 %v1768_v60  ;;  %v2448_v60 = vunpack.c.l.bf16 %v3789_v1 }
 0x4d4   : > { %2403 = vmatprep.mubr.bf16.mxu0 %v2123_v57 }
 0x4db   : > { %2404 = vmatmul.mubr.bf16.gmra.mrb[64].mxu0 %v1769_v25 }
 0x4dc   : > { %2413 = vmatprep.mubr.bf16.mxu0 %v2124_v15  ;;  %v2455_v15 = vunpack.c.h.bf16 %v3792_v35 }
 0x4e3   : > { %2414 = vmatmul.mubr.bf16.gmra.mrb[68].mxu0 %v1770_v62  ;;  %v3790_v62 = vld [vmem:[%s3905_s12 + $0x18] sm:$0xff] }
 0x4e4   : > { %2423 = vmatprep.mubr.bf16.mxu0 %v2125_v22  ;;  %v2450_v55 = vunpack.c.l.bf16 %v3790_v62  ;;  %v2451_v37 = vunpack.c.h.bf16 %v3790_v62 }
 0x4eb   : > { %2424 = vmatmul.mubr.bf16.gmra.mrb[72].mxu0 %v1771_v63 }
 0x4ec   : > { %2433 = vmatprep.mubr.bf16.mxu0 %v2126_v31 }
 0x4f3   : > { %2434 = vmatmul.mubr.bf16.gmra.mrb[76].mxu0 %v1772_v61 }
 0x58e   : > { %v2365_v18 = vpop.f32.mrb[48].mxu0 }
 0x58f   : > { %v2366_v53 = vadd.f32 %v2365_v18, %v4960_v2  ;;  %v2367_v44 = vpop.f32.mrb[49].mxu0  ;;  %v2457_v18 = vunpack.c.h.bf16 %v3793_v16 }
 0x590   : > { %v2368_v43 = vadd.f32 %v2367_v44, %v4963_v29  ;;  %v2369_v10 = vpop.f32.mrb[50].mxu0 }
 0x591   : > { %v4969_v33 = vadd.f32 %v2444_v41, %v2366_v53  ;;  %v2370_v0 = vadd.f32 %v2369_v10, %v4960_v2  ;;  %v2371_v14 = vpop.f32.mrb[51].mxu0 }
 0x592   : > { %v4972_v36 = vadd.f32 %v2445_v28, %v2368_v43  ;;  %v2372_v11 = vadd.f32 %v2371_v14, %v4963_v29 }
 0x593   : > { %v4975_v5 = vadd.f32 %v2446_v3, %v2370_v0  ;;  %v2458_v3 = vunpack.c.l.bf16 %v3794_v23 }
 0x594   : > { %v4977_v27 = vadd.f32 %v2447_v52, %v2372_v11  ;;  %v2510_v4 = vadd.f32 %v4972_v36, %v4969_v33  ;;  %v2459_v52 = vunpack.c.h.bf16 %v3794_v23 }
 0x596   : > { %v2375_v19 = vpop.f32.mrb[52].mxu0  ;;  %2511 = vadd.xlane.f32.xlu0 %v2510_v4  ;;  %v2513_v21 = vadd.f32 %v4977_v27, %v4975_v5 }
 0x597   : > { %v2376_v40 = vadd.f32 %v2375_v19, %v4960_v2  ;;  %v2377_v24 = vpop.f32.mrb[53].mxu0 }
 0x598   : > { %v2378_v25 = vadd.f32 %v2377_v24, %v4963_v29  ;;  %v2379_v49 = vpop.f32.mrb[54].mxu0  ;;  %2514 = vadd.xlane.f32.xlu1 %v2513_v21  ;;  %v3795_v21 = vld [vmem:[%s3905_s12 + $0x40] sm:$0xff] }
 0x599   : > { %v4987_v34 = vadd.f32 %v2448_v60, %v2376_v40  ;;  %v2380_v61 = vadd.f32 %v2379_v49, %v4960_v2  ;;  %v2381_v59 = vpop.f32.mrb[55].mxu0  ;;  %v2460_v40 = vunpack.c.l.bf16 %v3795_v21  ;;  %v2461_v62 = vunpack.c.h.bf16 %v3795_v21 }
 0x59a   : > { %v4990_v63 = vadd.f32 %v2449_v26, %v2378_v25  ;;  %v2382_v32 = vadd.f32 %v2381_v59, %v4963_v29 }
 0x59b   : > { %v4993_v48 = vadd.f32 %v2450_v55, %v2380_v61 }
 0x59c   : > { %v4995_v39 = vadd.f32 %v2451_v37, %v2382_v32  ;;  %v2516_v45 = vadd.f32 %v4990_v63, %v4987_v34  ;;  %v3796_v37 = vld [vmem:[%s3905_s12 + $0x48] sm:$0xff] }
 0x59d   : > { %v2462_v61 = vunpack.c.l.bf16 %v3796_v37 }
 0x59e   : > { %2517 = vadd.xlane.f32.xlu0 %v2516_v45  ;;  %v2385_v50 = vpop.f32.mrb[56].mxu0  ;;  %v2519_v58 = vadd.f32 %v4995_v39, %v4993_v48  ;;  %v2463_v45 = vunpack.c.h.bf16 %v3796_v37 }
 0x59f   : > { %v2386_v7 = vadd.f32 %v2385_v50, %v4960_v2  ;;  %v2387_v46 = vpop.f32.mrb[57].mxu0 }
 0x5a0   : > { %v2388_v17 = vadd.f32 %v2387_v46, %v4963_v29  ;;  %2520 = vadd.xlane.f32.xlu1 %v2519_v58  ;;  %v2389_v6 = vpop.f32.mrb[58].mxu0 }
 0x5a1   : > { %v5005_v9 = vadd.f32 %v2452_v51, %v2386_v7  ;;  %v2390_v57 = vadd.f32 %v2389_v6, %v4960_v2  ;;  %v2391_v38 = vpop.f32.mrb[59].mxu0 }
 0x5a2   : > { %v5008_v54 = vadd.f32 %v2453_v8, %v2388_v17  ;;  %v2392_v13 = vadd.f32 %v2391_v38, %v4963_v29 }
 0x5a3   : > { %v5011_v31 = vadd.f32 %v2454_v30, %v2390_v57  ;;  %v3797_v30 = vld [vmem:[%s3905_s12 + $0x50] sm:$0xff] }
 0x5a4   : > { %v5013_v42 = vadd.f32 %v2455_v15, %v2392_v13  ;;  %v2522_v22 = vadd.f32 %v5008_v54, %v5005_v9  ;;  %v2464_v17 = vunpack.c.l.bf16 %v3797_v30  ;;  %v2465_v15 = vunpack.c.h.bf16 %v3797_v30  ;;  %v3801_v30 = vld [vmem:[%s3905_s12 + $0x70] sm:$0xff] }
 0x5a6   : > { %v2395_v41 = vpop.f32.mrb[60].mxu0  ;;  %2523 = vadd.xlane.f32.xlu0 %v2522_v22  ;;  %v2525_v28 = vadd.f32 %v5013_v42, %v5011_v31  ;;  %v3798_v22 = vld [vmem:[%s3905_s12 + $0x58] sm:$0xff] }
 0x5a7   : > { %v2396_v53 = vadd.f32 %v2395_v41, %v4960_v2  ;;  %v2397_v44 = vpop.f32.mrb[61].mxu0  ;;  %v2466_v16 = vunpack.c.l.bf16 %v3798_v22 }
 0x5a8   : > { %v2398_v43 = vadd.f32 %v2397_v44, %v4963_v29  ;;  %v2399_v10 = vpop.f32.mrb[62].mxu0  ;;  %2526 = vadd.xlane.f32.xlu1 %v2525_v28 }
 0x5a9   : > { %v5023_v0 = vadd.f32 %v2456_v47, %v2396_v53  ;;  %v2400_v14 = vadd.f32 %v2399_v10, %v4960_v2  ;;  %v2401_v11 = vpop.f32.mrb[63].mxu0 }
 0x5aa   : > { %v5026_v4 = vadd.f32 %v2457_v18, %v2398_v43  ;;  %v2402_v1 = vadd.f32 %v2401_v11, %v4963_v29  ;;  %v2467_v18 = vunpack.c.h.bf16 %v3798_v22  ;;  %v3802_v22 = vld [vmem:[%s3905_s12 + $0x78] sm:$0xff] }
 0x5ab   : > { %v5029_v60 = vadd.f32 %v2458_v3, %v2400_v14  ;;  %v3799_v14 = vld [vmem:[%s3905_s12 + $0x60] sm:$0xff] }
 0x5ac   : > { %v5031_v19 = vadd.f32 %v2459_v52, %v2402_v1  ;;  %v2528_v26 = vadd.f32 %v5026_v4, %v5023_v0  ;;  %v2468_v11 = vunpack.c.l.bf16 %v3799_v14 }
 0x5ae   : > { %2529 = vadd.xlane.f32.xlu0 %v2528_v26  ;;  %v2405_v24 = vpop.f32.mrb[64].mxu0  ;;  %v2531_v55 = vadd.f32 %v5031_v19, %v5029_v60  ;;  %v2469_v26 = vunpack.c.h.bf16 %v3799_v14 }
 0x5af   : > { %v2406_v25 = vadd.f32 %v2405_v24, %v4960_v2  ;;  %v2407_v49 = vpop.f32.mrb[65].mxu0 }
 0x5b0   : > { %v2408_v59 = vadd.f32 %v2407_v49, %v4963_v29  ;;  %2532 = vadd.xlane.f32.xlu1 %v2531_v55  ;;  %v2409_v32 = vpop.f32.mrb[66].mxu0 }
 0x5b1   : > { %v5041_v56 = vadd.f32 %v2460_v40, %v2406_v25  ;;  %v2410_v51 = vadd.f32 %v2409_v32, %v4960_v2  ;;  %v2411_v50 = vpop.f32.mrb[67].mxu0 }
 0x5b2   : > { %v5044_v8 = vadd.f32 %v2461_v62, %v2408_v59  ;;  %v2412_v58 = vadd.f32 %v2411_v50, %v4963_v29  ;;  %v3800_v62 = vld [vmem:[%s3905_s12 + $0x68] sm:$0xff] }
 0x5b3   : > { %v5047_v7 = vadd.f32 %v2462_v61, %v2410_v51  ;;  %v2470_v55 = vunpack.c.l.bf16 %v3800_v62  ;;  %v2471_v37 = vunpack.c.h.bf16 %v3800_v62 }
 0x5b4   : > { %v5049_v46 = vadd.f32 %v2463_v45, %v2412_v58  ;;  %v2534_v35 = vadd.f32 %v5044_v8, %v5041_v56 }
 0x5b6   : > { %v2415_v6 = vpop.f32.mrb[68].mxu0  ;;  %2535 = vadd.xlane.f32.xlu0 %v2534_v35  ;;  %v2537_v57 = vadd.f32 %v5049_v46, %v5047_v7 }
 0x5b7   : > { %v2416_v38 = vadd.f32 %v2415_v6, %v4960_v2  ;;  %v2417_v13 = vpop.f32.mrb[69].mxu0 }
 0x5b8   : > { %v2418_v47 = vadd.f32 %v2417_v13, %v4963_v29  ;;  %v2419_v41 = vpop.f32.mrb[70].mxu0  ;;  %2538 = vadd.xlane.f32.xlu1 %v2537_v57 }
 0x5b9   : > { %v5059_v28 = vadd.f32 %v2464_v17, %v2416_v38  ;;  %v2420_v53 = vadd.f32 %v2419_v41, %v4960_v2  ;;  %v2421_v44 = vpop.f32.mrb[71].mxu0  ;;  %v2472_v17 = vunpack.c.l.bf16 %v3801_v30 }
 0x5ba   : > { %v5062_v23 = vadd.f32 %v2465_v15, %v2418_v47  ;;  %v2422_v3 = vadd.f32 %v2421_v44, %v4963_v29  ;;  %v2473_v15 = vunpack.c.h.bf16 %v3801_v30 }
 0x5bb   : > { %v5065_v43 = vadd.f32 %v2466_v16, %v2420_v53  ;;  %v2474_v16 = vunpack.c.l.bf16 %v3802_v22 }
 0x5bc   : > { %v5067_v10 = vadd.f32 %v2467_v18, %v2422_v3  ;;  %v2540_v52 = vadd.f32 %v5062_v23, %v5059_v28  ;;  %v2475_v18 = vunpack.c.h.bf16 %v3802_v22 }
 0x5be   : > { %2541 = vadd.xlane.f32.xlu0 %v2540_v52  ;;  %v2425_v1 = vpop.f32.mrb[72].mxu0  ;;  %v2543_v21 = vadd.f32 %v5067_v10, %v5065_v43 }
 0x5bf   : > { %v2426_v40 = vadd.f32 %v2425_v1, %v4960_v2  ;;  %v2427_v24 = vpop.f32.mrb[73].mxu0 }
 0x5c0   : > { %v2428_v25 = vadd.f32 %v2427_v24, %v4963_v29  ;;  %2544 = vadd.xlane.f32.xlu1 %v2543_v21  ;;  %v2429_v49 = vpop.f32.mrb[74].mxu0 }
 0x5c1   : > { %v5077_v61 = vadd.f32 %v2468_v11, %v2426_v40  ;;  %v2430_v59 = vadd.f32 %v2429_v49, %v4960_v2  ;;  %v2431_v32 = vpop.f32.mrb[75].mxu0 }
 0x5c2   : > { %v5080_v45 = vadd.f32 %v2469_v26, %v2428_v25  ;;  %v2432_v51 = vadd.f32 %v2431_v32, %v4963_v29 }
 0x5c3   : > { %v5083_v50 = vadd.f32 %v2470_v55, %v2430_v59 }
 0x5c4   : > { %v5085_v58 = vadd.f32 %v2471_v37, %v2432_v51  ;;  %v2546_v35 = vadd.f32 %v5080_v45, %v5077_v61 }
 0x5c6   : > { %v2435_v6 = vpop.f32.mrb[76].mxu0  ;;  %2547 = vadd.xlane.f32.xlu0 %v2546_v35  ;;  %v2549_v57 = vadd.f32 %v5085_v58, %v5083_v50 }
 0x5c7   : > { %v2436_v38 = vadd.f32 %v2435_v6, %v4960_v2  ;;  %v2437_v13 = vpop.f32.mrb[77].mxu0 }
 0x5c8   : > { %v2438_v47 = vadd.f32 %v2437_v13, %v4963_v29  ;;  %v2439_v41 = vpop.f32.mrb[78].mxu0  ;;  %2550 = vadd.xlane.f32.xlu1 %v2549_v57 }
 0x5c9   : > { %v5095_v53 = vadd.f32 %v2472_v17, %v2436_v38  ;;  %v2440_v44 = vadd.f32 %v2439_v41, %v4960_v2  ;;  %v2441_v3 = vpop.f32.mrb[79].mxu0 }
 0x5ca   : > { %v5098_v52 = vadd.f32 %v2473_v15, %v2438_v47  ;;  %v2442_v14 = vadd.f32 %v2441_v3, %v4963_v29 }
 0x5cb   : > { %v5101_v11 = vadd.f32 %v2474_v16, %v2440_v44 }
 0x5cc   : > { %v5103_v1 = vadd.f32 %v2475_v18, %v2442_v14  ;;  %v2552_v26 = vadd.f32 %v5098_v52, %v5095_v53 }
 0x5ce   : > { %2553 = vadd.xlane.f32.xlu0 %v2552_v26  ;;  %v2555_v21 = vadd.f32 %v5103_v1, %v5101_v11 }
 0x5d0   : > { %2556 = vadd.xlane.f32.xlu1 %v2555_v21 }
 0x623   : > { %v2512_v40 = vpop.xlane.xlu0 %2511 }
 0x624   : > { %v2559_v24 = vmul.f32 0.00390625, %v2512_v40 }
 0x625   : > { %v2515_v2 = vpop.xlane.xlu1 %2514 }
 0x626   : > { %v5110_v62 = vsub.f32 %v4969_v33, %v2559_v24  ;;  %v5113_v29 = vsub.f32 %v4972_v36, %v2559_v24  ;;  %v2560_v55 = vmul.f32 0.00390625, %v2515_v2 }
 0x628   : > { %v5116_v25 = vsub.f32 %v4975_v5, %v2560_v55  ;;  %v5119_v49 = vsub.f32 %v4977_v27, %v2560_v55  ;;  %v2607_v37 = vmul.f32 %v5110_v62, %v5110_v62  ;;  %v2608_v59 = vmul.f32 %v5113_v29, %v5113_v29 }
 0x62a   : > { %v2639_v32 = vadd.f32 %v2608_v59, %v2607_v37  ;;  %v2609_v33 = vmul.f32 %v5116_v25, %v5116_v25  ;;  %v2610_v36 = vmul.f32 %v5119_v49, %v5119_v49 }
 0x62b   : > { %v2518_v51 = vpop.xlane.xlu0 %2517 }
 0x62c   : > { %v2561_v35 = vmul.f32 0.00390625, %v2518_v51  ;;  %2640 = vadd.xlane.f32.xlu0 %v2639_v32  ;;  %v2642_v5 = vadd.f32 %v2610_v36, %v2609_v33 }
 0x62d   : > { %v2521_v30 = vpop.xlane.xlu1 %2520 }
 0x62e   : > { %v5130_v27 = vsub.f32 %v4987_v34, %v2561_v35  ;;  %v5133_v17 = vsub.f32 %v4990_v63, %v2561_v35  ;;  %v2562_v6 = vmul.f32 0.00390625, %v2521_v30  ;;  %2643 = vadd.xlane.f32.xlu1 %v2642_v5 }
 0x630   : > { %v5136_v15 = vsub.f32 %v4993_v48, %v2562_v6  ;;  %v5139_v57 = vsub.f32 %v4995_v39, %v2562_v6  ;;  %v2611_v38 = vmul.f32 %v5130_v27, %v5130_v27  ;;  %v2612_v13 = vmul.f32 %v5133_v17, %v5133_v17 }
 0x632   : > { %v2645_v22 = vadd.f32 %v2612_v13, %v2611_v38  ;;  %v2613_v34 = vmul.f32 %v5136_v15, %v5136_v15  ;;  %v2614_v63 = vmul.f32 %v5139_v57, %v5139_v57 }
 0x633   : > { %v2524_v16 = vpop.xlane.xlu0 %2523 }
 0x634   : > { %v2563_v47 = vmul.f32 0.00390625, %v2524_v16  ;;  %2646 = vadd.xlane.f32.xlu0 %v2645_v22  ;;  %v2648_v48 = vadd.f32 %v2614_v63, %v2613_v34 }
 0x635   : > { %v2527_v41 = vpop.xlane.xlu1 %2526 }
 0x636   : > { %v5150_v39 = vsub.f32 %v5005_v9, %v2563_v47  ;;  %v5153_v18 = vsub.f32 %v5008_v54, %v2563_v47  ;;  %v2564_v44 = vmul.f32 0.00390625, %v2527_v41  ;;  %2649 = vadd.xlane.f32.xlu1 %v2648_v48 }
 0x638   : > { %v5156_v3 = vsub.f32 %v5011_v31, %v2564_v44  ;;  %v5159_v14 = vsub.f32 %v5013_v42, %v2564_v44  ;;  %v2615_v26 = vmul.f32 %v5150_v39, %v5150_v39  ;;  %v2616_v21 = vmul.f32 %v5153_v18, %v5153_v18 }
 0x63a   : > { %v2651_v40 = vadd.f32 %v2616_v21, %v2615_v26  ;;  %v2617_v9 = vmul.f32 %v5156_v3, %v5156_v3  ;;  %v2618_v54 = vmul.f32 %v5159_v14, %v5159_v14 }
 0x63b   : > { %v2530_v24 = vpop.xlane.xlu0 %2529 }
 0x63c   : > { %v2565_v2 = vmul.f32 0.00390625, %v2530_v24  ;;  %2652 = vadd.xlane.f32.xlu0 %v2651_v40  ;;  %v2654_v31 = vadd.f32 %v2618_v54, %v2617_v9 }
 0x63d   : > { %v2533_v55 = vpop.xlane.xlu1 %2532 }
 0x63e   : > { %v5170_v42 = vsub.f32 %v5023_v0, %v2565_v2  ;;  %v5173_v37 = vsub.f32 %v5026_v4, %v2565_v2  ;;  %v2566_v59 = vmul.f32 0.00390625, %v2533_v55  ;;  %2655 = vadd.xlane.f32.xlu1 %v2654_v31 }
 0x640   : > { %v5176_v32 = vsub.f32 %v5029_v60, %v2566_v59  ;;  %v5179_v33 = vsub.f32 %v5031_v19, %v2566_v59  ;;  %v2619_v36 = vmul.f32 %v5170_v42, %v5170_v42  ;;  %v2620_v51 = vmul.f32 %v5173_v37, %v5173_v37 }
 0x642   : > { %v2657_v35 = vadd.f32 %v2620_v51, %v2619_v36  ;;  %v2621_v0 = vmul.f32 %v5176_v32, %v5176_v32  ;;  %v2622_v4 = vmul.f32 %v5179_v33, %v5179_v33 }
 0x643   : > { %v2536_v5 = vpop.xlane.xlu0 %2535 }
 0x644   : > { %v2567_v30 = vmul.f32 0.00390625, %v2536_v5  ;;  %2658 = vadd.xlane.f32.xlu0 %v2657_v35  ;;  %v2660_v60 = vadd.f32 %v2622_v4, %v2621_v0 }
 0x645   : > { %v2539_v6 = vpop.xlane.xlu1 %2538 }
 0x646   : > { %v5190_v19 = vsub.f32 %v5041_v56, %v2567_v30  ;;  %v5193_v38 = vsub.f32 %v5044_v8, %v2567_v30  ;;  %v2568_v13 = vmul.f32 0.00390625, %v2539_v6  ;;  %2661 = vadd.xlane.f32.xlu1 %v2660_v60 }
 0x648   : > { %v5196_v22 = vsub.f32 %v5047_v7, %v2568_v13  ;;  %v5199_v34 = vsub.f32 %v5049_v46, %v2568_v13  ;;  %v2623_v63 = vmul.f32 %v5190_v19, %v5190_v19  ;;  %v2624_v16 = vmul.f32 %v5193_v38, %v5193_v38 }
 0x64a   : > { %v2663_v47 = vadd.f32 %v2624_v16, %v2623_v63  ;;  %v2625_v56 = vmul.f32 %v5196_v22, %v5196_v22  ;;  %v2626_v8 = vmul.f32 %v5199_v34, %v5199_v34 }
 0x64b   : > { %v2542_v48 = vpop.xlane.xlu0 %2541 }
 0x64c   : > { %v2569_v41 = vmul.f32 0.00390625, %v2542_v48  ;;  %2664 = vadd.xlane.f32.xlu0 %v2663_v47  ;;  %v2666_v7 = vadd.f32 %v2626_v8, %v2625_v56 }
 0x64d   : > { %v2545_v44 = vpop.xlane.xlu1 %2544 }
 0x64e   : > { %v5210_v46 = vsub.f32 %v5059_v28, %v2569_v41  ;;  %v5213_v26 = vsub.f32 %v5062_v23, %v2569_v41  ;;  %v2570_v21 = vmul.f32 0.00390625, %v2545_v44  ;;  %2667 = vadd.xlane.f32.xlu1 %v2666_v7 }
 0x650   : > { %v5216_v40 = vsub.f32 %v5065_v43, %v2570_v21  ;;  %v5219_v9 = vsub.f32 %v5067_v10, %v2570_v21  ;;  %v2627_v54 = vmul.f32 %v5210_v46, %v5210_v46  ;;  %v2628_v24 = vmul.f32 %v5213_v26, %v5213_v26 }
 0x652   : > { %v2669_v2 = vadd.f32 %v2628_v24, %v2627_v54  ;;  %v2629_v28 = vmul.f32 %v5216_v40, %v5216_v40  ;;  %v2630_v23 = vmul.f32 %v5219_v9, %v5219_v9 }
 0x653   : > { %v2548_v31 = vpop.xlane.xlu0 %2547 }
 0x654   : > { %v2571_v55 = vmul.f32 0.00390625, %v2548_v31  ;;  %2670 = vadd.xlane.f32.xlu0 %v2669_v2  ;;  %v2672_v43 = vadd.f32 %v2630_v23, %v2629_v28  ;;  %v2508_v31 = vld [vmem:[%s5415_s6] sm:$0x3] }
 0x655   : > { %v2551_v59 = vpop.xlane.xlu1 %2550 }
 0x656   : > { %v5230_v10 = vsub.f32 %v5077_v61, %v2571_v55  ;;  %v5233_v36 = vsub.f32 %v5080_v45, %v2571_v55  ;;  %v2572_v51 = vmul.f32 0.00390625, %v2551_v59  ;;  %2673 = vadd.xlane.f32.xlu1 %v2672_v43  ;;  %v2509_v59 = vld [vmem:[%s5416_s7] sm:$0x3] }
 0x658   : > { %v5236_v35 = vsub.f32 %v5083_v50, %v2572_v51  ;;  %v5239_v0 = vsub.f32 %v5085_v58, %v2572_v51  ;;  %v2631_v4 = vmul.f32 %v5230_v10, %v5230_v10  ;;  %v2632_v5 = vmul.f32 %v5233_v36, %v5233_v36 }
 0x65a   : > { %v2675_v30 = vadd.f32 %v2632_v5, %v2631_v4  ;;  %v2633_v61 = vmul.f32 %v5236_v35, %v5236_v35  ;;  %v2634_v45 = vmul.f32 %v5239_v0, %v5239_v0  ;;  %v5276_v4 = vrot.slane %v2508_v31, %v5438_v12 }
 0x65b   : > { %v2554_v60 = vpop.xlane.xlu0 %2553  ;;  %v5279_v5 = vrot.slane %v2508_v31, %v5439_v20 }
 0x65c   : > { %v2573_v6 = vmul.f32 0.00390625, %v2554_v60  ;;  %2676 = vadd.xlane.f32.xlu0 %v2675_v30  ;;  %v2678_v50 = vadd.f32 %v2634_v45, %v2633_v61  ;;  %v5282_v61 = vrot.slane %v2509_v59, %v5438_v12  ;;  %v5285_v45 = vrot.slane %v2509_v59, %v5439_v20 }
 0x65d   : > { %v2557_v13 = vpop.xlane.xlu1 %2556 }
 0x65e   : > { %v5250_v58 = vsub.f32 %v5095_v53, %v2573_v6  ;;  %v5253_v63 = vsub.f32 %v5098_v52, %v2573_v6  ;;  %v2574_v16 = vmul.f32 0.00390625, %v2557_v13  ;;  %2679 = vadd.xlane.f32.xlu1 %v2678_v50 }
 0x660   : > { %v5256_v47 = vsub.f32 %v5101_v11, %v2574_v16  ;;  %v5259_v56 = vsub.f32 %v5103_v1, %v2574_v16  ;;  %v2635_v8 = vmul.f32 %v5250_v58, %v5250_v58  ;;  %v2636_v48 = vmul.f32 %v5253_v63, %v5253_v63 }
 0x662   : > { %v2681_v41 = vadd.f32 %v2636_v48, %v2635_v8  ;;  %v2637_v53 = vmul.f32 %v5256_v47, %v5256_v47  ;;  %v2638_v52 = vmul.f32 %v5259_v56, %v5259_v56 }
 0x664   : > { %2682 = vadd.xlane.f32.xlu0 %v2681_v41  ;;  %v2684_v7 = vadd.f32 %v2638_v52, %v2637_v53 }
 0x666   : > { %2685 = vadd.xlane.f32.xlu1 %v2684_v7 }
 0x6b9   : > { %v2641_v11 = vpop.xlane.xlu0 %2640 }
 0x6ba   : > { %v2687_v44 = vmul.f32 0.00390625, %v2641_v11 }
 0x6bb   : > { %v2644_v1 = vpop.xlane.xlu1 %2643 }
 0x6bc   : > { %v2703_v21 = vadd.f32 1e-12, %v2687_v44  ;;  %v2688_v54 = vmul.f32 0.00390625, %v2644_v1 }
 0x6be   : > { %3755 = vrsqrt.f32 %v2703_v21  ;;  %v2704_v24 = vadd.f32 1e-12, %v2688_v54 }
 0x6c0   : > { %3757 = vrsqrt.f32 %v2704_v24 }
 0x6c1   : > { %v2647_v2 = vpop.xlane.xlu0 %2646 }
 0x6c2   : > { %v2689_v28 = vmul.f32 0.00390625, %v2647_v2 }
 0x6c3   : > { %v2650_v23 = vpop.xlane.xlu1 %2649 }
 0x6c4   : > { %v2705_v55 = vadd.f32 1e-12, %v2689_v28  ;;  %v2690_v43 = vmul.f32 0.00390625, %v2650_v23 }
 0x6c6   : > { %3759 = vrsqrt.f32 %v2705_v55  ;;  %v2706_v51 = vadd.f32 1e-12, %v2690_v43 }
 0x6c8   : > { %v3756_v30 = vpop.eup %3755  ;;  %3761 = vrsqrt.f32 %v2706_v51 }
 0x6c9   : > { %v2735_v60 = vmul.f32 %v3756_v30, %v5110_v62  ;;  %v2736_v6 = vmul.f32 %v3756_v30, %v5113_v29  ;;  %v2653_v50 = vpop.xlane.xlu0 %2652 }
 0x6ca   : > { %v3758_v13 = vpop.eup %3757  ;;  %v2691_v16 = vmul.f32 0.00390625, %v2653_v50 }
 0x6cb   : > { %v2778_v8 = vmul.f32 %v5276_v4, %v2735_v60  ;;  %v2779_v48 = vmul.f32 %v5279_v5, %v2736_v6  ;;  %v2737_v41 = vmul.f32 %v3758_v13, %v5116_v25  ;;  %v2738_v12 = vmul.f32 %v3758_v13, %v5119_v49  ;;  %v2656_v53 = vpop.xlane.xlu1 %2655 }
 0x6cc   : > { %v2707_v52 = vadd.f32 1e-12, %v2691_v16  ;;  %v2692_v20 = vmul.f32 0.00390625, %v2656_v53 }
 0x6cd   : > { %v2821_v7 = vadd.f32 %v5282_v61, %v2778_v8  ;;  %v2822_v62 = vadd.f32 %v5285_v45, %v2779_v48  ;;  %v2780_v29 = vmul.f32 %v5276_v4, %v2737_v41  ;;  %v2781_v11 = vmul.f32 %v5279_v5, %v2738_v12 }
 0x6ce   : > { %3763 = vrsqrt.f32 %v2707_v52  ;;  %v2708_v25 = vadd.f32 1e-12, %v2692_v20 }
 0x6cf   : > { %v3203_v49 = vpack.c.bf16 %v2822_v62, %v2821_v7  ;;  %v2823_v44 = vadd.f32 %v5282_v61, %v2780_v29  ;;  %v2824_v1 = vadd.f32 %v5285_v45, %v2781_v11 }
 0x6d0   : > { %v3760_v21 = vpop.eup %3759  ;;  %3765 = vrsqrt.f32 %v2708_v25 }
 0x6d1   : > { %2949 = vst [vmem:[%s5302_s25] sm:$0xff] %v3203_v49  ;;  %v3204_v54 = vpack.c.bf16 %v2824_v1, %v2823_v44  ;;  %v2739_v24 = vmul.f32 %v3760_v21, %v5130_v27  ;;  %v2740_v2 = vmul.f32 %v3760_v21, %v5133_v17  ;;  %v2659_v28 = vpop.xlane.xlu0 %2658 }
 0x6d2   : > { %v3762_v23 = vpop.eup %3761  ;;  %v2693_v31 = vmul.f32 0.00390625, %v2659_v28 }
 0x6d3   : > { %2950 = vst [vmem:[%s5302_s25 + $0x8] sm:$0xff] %v3204_v54  ;;  %v2782_v55 = vmul.f32 %v5276_v4, %v2739_v24  ;;  %v2783_v43 = vmul.f32 %v5279_v5, %v2740_v2  ;;  %v2741_v59 = vmul.f32 %v3762_v23, %v5136_v15  ;;  %v2742_v51 = vmul.f32 %v3762_v23, %v5139_v57  ;;  %v2662_v30 = vpop.xlane.xlu1 %2661 }
 0x6d4   : > { %v2709_v60 = vadd.f32 1e-12, %v2693_v31  ;;  %v2694_v6 = vmul.f32 0.00390625, %v2662_v30 }
 0x6d5   : > { %v2825_v27 = vadd.f32 %v5282_v61, %v2782_v55  ;;  %v2826_v17 = vadd.f32 %v5285_v45, %v2783_v43  ;;  %v2784_v50 = vmul.f32 %v5276_v4, %v2741_v59  ;;  %v2785_v13 = vmul.f32 %v5279_v5, %v2742_v51 }
 0x6d6   : > { %3767 = vrsqrt.f32 %v2709_v60  ;;  %v2710_v16 = vadd.f32 1e-12, %v2694_v6 }
 0x6d7   : > { %v3205_v8 = vpack.c.bf16 %v2826_v17, %v2825_v27  ;;  %v2827_v15 = vadd.f32 %v5282_v61, %v2784_v50  ;;  %v2828_v48 = vadd.f32 %v5285_v45, %v2785_v13 }
 0x6d8   : > { %v3764_v57 = vpop.eup %3763  ;;  %3769 = vrsqrt.f32 %v2710_v16 }
 0x6d9   : > { %2951 = vst [vmem:[%s5302_s25 + $0x10] sm:$0xff] %v3205_v8  ;;  %v3206_v41 = vpack.c.bf16 %v2828_v48, %v2827_v15  ;;  %v2743_v12 = vmul.f32 %v3764_v57, %v5150_v39  ;;  %v2744_v53 = vmul.f32 %v3764_v57, %v5153_v18  ;;  %v2665_v52 = vpop.xlane.xlu0 %2664 }
 0x6da   : > { %v3766_v20 = vpop.eup %3765  ;;  %v2695_v7 = vmul.f32 0.00390625, %v2665_v52 }
 0x6db   : > { %2952 = vst [vmem:[%s5302_s25 + $0x18] sm:$0xff] %v3206_v41  ;;  %v2786_v62 = vmul.f32 %v5276_v4, %v2743_v12  ;;  %v2787_v29 = vmul.f32 %v5279_v5, %v2744_v53  ;;  %v2745_v11 = vmul.f32 %v3766_v20, %v5156_v3  ;;  %v2746_v25 = vmul.f32 %v3766_v20, %v5159_v14  ;;  %v2668_v49 = vpop.xlane.xlu1 %2667 }
 0x6dc   : > { %v2711_v44 = vadd.f32 1e-12, %v2695_v7  ;;  %v2696_v1 = vmul.f32 0.00390625, %v2668_v49 }
 0x6dd   : > { %v2829_v39 = vadd.f32 %v5282_v61, %v2786_v62  ;;  %v2830_v18 = vadd.f32 %v5285_v45, %v2787_v29  ;;  %v2788_v21 = vmul.f32 %v5276_v4, %v2745_v11  ;;  %v2789_v54 = vmul.f32 %v5279_v5, %v2746_v25 }
 0x6de   : > { %3771 = vrsqrt.f32 %v2711_v44  ;;  %v2712_v24 = vadd.f32 1e-12, %v2696_v1 }
 0x6df   : > { %v3207_v2 = vpack.c.bf16 %v2830_v18, %v2829_v39  ;;  %v2831_v3 = vadd.f32 %v5282_v61, %v2788_v21  ;;  %v2832_v28 = vadd.f32 %v5285_v45, %v2789_v54 }
 0x6e0   : > { %v3768_v14 = vpop.eup %3767  ;;  %3773 = vrsqrt.f32 %v2712_v24 }
 0x6e1   : > { %2953 = vst [vmem:[%s5302_s25 + $0x20] sm:$0xff] %v3207_v2  ;;  %v3208_v23 = vpack.c.bf16 %v2832_v28, %v2831_v3  ;;  %v2747_v31 = vmul.f32 %v3768_v14, %v5170_v42  ;;  %v2748_v55 = vmul.f32 %v3768_v14, %v5173_v37  ;;  %v2671_v43 = vpop.xlane.xlu0 %2670 }
 0x6e2   : > { %v3770_v59 = vpop.eup %3769  ;;  %v2697_v51 = vmul.f32 0.00390625, %v2671_v43 }
 0x6e3   : > { %2954 = vst [vmem:[%s5302_s25 + $0x28] sm:$0xff] %v3208_v23  ;;  %v2790_v30 = vmul.f32 %v5276_v4, %v2747_v31  ;;  %v2791_v60 = vmul.f32 %v5279_v5, %v2748_v55  ;;  %v2749_v6 = vmul.f32 %v3770_v59, %v5176_v32  ;;  %v2750_v27 = vmul.f32 %v3770_v59, %v5179_v33  ;;  %v2674_v17 = vpop.xlane.xlu1 %2673 }
 0x6e4   : > { %v2713_v50 = vadd.f32 1e-12, %v2697_v51  ;;  %v2698_v13 = vmul.f32 0.00390625, %v2674_v17 }
 0x6e5   : > { %v2833_v42 = vadd.f32 %v5282_v61, %v2790_v30  ;;  %v2834_v37 = vadd.f32 %v5285_v45, %v2791_v60  ;;  %v2792_v16 = vmul.f32 %v5276_v4, %v2749_v6  ;;  %v2793_v8 = vmul.f32 %v5279_v5, %v2750_v27 }
 0x6e6   : > { %3775 = vrsqrt.f32 %v2713_v50  ;;  %v2714_v15 = vadd.f32 1e-12, %v2698_v13 }
 0x6e7   : > { %v3209_v48 = vpack.c.bf16 %v2834_v37, %v2833_v42  ;;  %v2835_v32 = vadd.f32 %v5282_v61, %v2792_v16  ;;  %v2836_v57 = vadd.f32 %v5285_v45, %v2793_v8 }
 0x6e8   : > { %v3772_v33 = vpop.eup %3771  ;;  %3777 = vrsqrt.f32 %v2714_v15 }
 0x6e9   : > { %2955 = vst [vmem:[%s5302_s25 + $0x30] sm:$0xff] %v3209_v48  ;;  %v3210_v41 = vpack.c.bf16 %v2836_v57, %v2835_v32  ;;  %v2751_v12 = vmul.f32 %v3772_v33, %v5190_v19  ;;  %v2752_v53 = vmul.f32 %v3772_v33, %v5193_v38  ;;  %v2677_v52 = vpop.xlane.xlu0 %2676 }
 0x6ea   : > { %v3774_v20 = vpop.eup %3773  ;;  %v2699_v7 = vmul.f32 0.00390625, %v2677_v52 }
 0x6eb   : > { %2956 = vst [vmem:[%s5302_s25 + $0x38] sm:$0xff] %v3210_v41  ;;  %v2794_v62 = vmul.f32 %v5276_v4, %v2751_v12  ;;  %v2795_v29 = vmul.f32 %v5279_v5, %v2752_v53  ;;  %v2753_v11 = vmul.f32 %v3774_v20, %v5196_v22  ;;  %v2754_v25 = vmul.f32 %v3774_v20, %v5199_v34  ;;  %v2680_v49 = vpop.xlane.xlu1 %2679 }
 0x6ec   : > { %v2715_v44 = vadd.f32 1e-12, %v2699_v7  ;;  %v2700_v1 = vmul.f32 0.00390625, %v2680_v49 }
 0x6ed   : > { %v2837_v19 = vadd.f32 %v5282_v61, %v2794_v62  ;;  %v2838_v38 = vadd.f32 %v5285_v45, %v2795_v29  ;;  %v2796_v39 = vmul.f32 %v5276_v4, %v2753_v11  ;;  %v2797_v18 = vmul.f32 %v5279_v5, %v2754_v25 }
 0x6ee   : > { %3779 = vrsqrt.f32 %v2715_v44  ;;  %v2716_v21 = vadd.f32 1e-12, %v2700_v1 }
 0x6ef   : > { %v3211_v54 = vpack.c.bf16 %v2838_v38, %v2837_v19  ;;  %v2839_v22 = vadd.f32 %v5282_v61, %v2796_v39  ;;  %v2840_v24 = vadd.f32 %v5285_v45, %v2797_v18 }
 0x6f0   : > { %v3776_v34 = vpop.eup %3775  ;;  %3781 = vrsqrt.f32 %v2716_v21 }
 0x6f1   : > { %2957 = vst [vmem:[%s5302_s25 + $0x40] sm:$0xff] %v3211_v54  ;;  %v3212_v2 = vpack.c.bf16 %v2840_v24, %v2839_v22  ;;  %v2755_v3 = vmul.f32 %v3776_v34, %v5210_v46  ;;  %v2756_v28 = vmul.f32 %v3776_v34, %v5213_v26  ;;  %v2683_v14 = vpop.xlane.xlu0 %2682 }
 0x6f2   : > { %v3778_v23 = vpop.eup %3777  ;;  %v2701_v31 = vmul.f32 0.00390625, %v2683_v14 }
 0x6f3   : > { %2958 = vst [vmem:[%s5302_s25 + $0x48] sm:$0xff] %v3212_v2  ;;  %v2798_v55 = vmul.f32 %v5276_v4, %v2755_v3  ;;  %v2799_v43 = vmul.f32 %v5279_v5, %v2756_v28  ;;  %v2757_v59 = vmul.f32 %v3778_v23, %v5216_v40  ;;  %v2758_v51 = vmul.f32 %v3778_v23, %v5219_v9  ;;  %v2686_v30 = vpop.xlane.xlu1 %2685 }
 0x6f4   : > { %v2717_v60 = vadd.f32 1e-12, %v2701_v31  ;;  %v2702_v6 = vmul.f32 0.00390625, %v2686_v30 }
 0x6f5   : > { %v2841_v46 = vadd.f32 %v5282_v61, %v2798_v55  ;;  %v2842_v26 = vadd.f32 %v5285_v45, %v2799_v43  ;;  %v2800_v27 = vmul.f32 %v5276_v4, %v2757_v59  ;;  %v2801_v17 = vmul.f32 %v5279_v5, %v2758_v51 }
 0x6f6   : > { %3783 = vrsqrt.f32 %v2717_v60  ;;  %v2718_v50 = vadd.f32 1e-12, %v2702_v6 }
 0x6f7   : > { %v3213_v13 = vpack.c.bf16 %v2842_v26, %v2841_v46  ;;  %v2843_v40 = vadd.f32 %v5282_v61, %v2800_v27  ;;  %v2844_v42 = vadd.f32 %v5285_v45, %v2801_v17 }
 0x6f8   : > { %v3780_v9 = vpop.eup %3779  ;;  %3785 = vrsqrt.f32 %v2718_v50 }
 0x6f9   : > { %2959 = vst [vmem:[%s5302_s25 + $0x50] sm:$0xff] %v3213_v13  ;;  %v3214_v37 = vpack.c.bf16 %v2844_v42, %v2843_v40  ;;  %v2759_v16 = vmul.f32 %v3780_v9, %v5230_v10  ;;  %v2760_v8 = vmul.f32 %v3780_v9, %v5233_v36 }
 0x6fa   : > { %v3782_v15 = vpop.eup %3781 }
 0x6fb   : > { %2960 = vst [vmem:[%s5302_s25 + $0x58] sm:$0xff] %v3214_v37  ;;  %v2802_v48 = vmul.f32 %v5276_v4, %v2759_v16  ;;  %v2803_v32 = vmul.f32 %v5279_v5, %v2760_v8  ;;  %v2761_v57 = vmul.f32 %v3782_v15, %v5236_v35  ;;  %v2762_v33 = vmul.f32 %v3782_v15, %v5239_v0 }
 0x6fd   : > { %v2845_v41 = vadd.f32 %v5282_v61, %v2802_v48  ;;  %v2846_v12 = vadd.f32 %v5285_v45, %v2803_v32  ;;  %v2804_v10 = vmul.f32 %v5276_v4, %v2761_v57  ;;  %v2805_v53 = vmul.f32 %v5279_v5, %v2762_v33 }
 0x6ff   : > { %v3215_v36 = vpack.c.bf16 %v2846_v12, %v2845_v41  ;;  %v2847_v52 = vadd.f32 %v5282_v61, %v2804_v10  ;;  %v2848_v20 = vadd.f32 %v5285_v45, %v2805_v53 }
 0x700   : > { %v3784_v7 = vpop.eup %3783 }
 0x701   : > { %2961 = vst [vmem:[%s5302_s25 + $0x60] sm:$0xff] %v3215_v36  ;;  %v3216_v62 = vpack.c.bf16 %v2848_v20, %v2847_v52  ;;  %v2763_v35 = vmul.f32 %v3784_v7, %v5250_v58  ;;  %v2764_v0 = vmul.f32 %v3784_v7, %v5253_v63 }
 0x702   : > { %v3786_v29 = vpop.eup %3785 }
 0x703   : > { %2962 = vst [vmem:[%s5302_s25 + $0x68] sm:$0xff] %v3216_v62  ;;  %v2806_v11 = vmul.f32 %v5276_v4, %v2763_v35  ;;  %v2807_v25 = vmul.f32 %v5279_v5, %v2764_v0  ;;  %v2765_v49 = vmul.f32 %v3786_v29, %v5256_v47  ;;  %v2766_v44 = vmul.f32 %v3786_v29, %v5259_v56 }
 0x705   : > { %v2849_v1 = vadd.f32 %v5282_v61, %v2806_v11  ;;  %v2850_v19 = vadd.f32 %v5285_v45, %v2807_v25  ;;  %v2808_v38 = vmul.f32 %v5276_v4, %v2765_v49  ;;  %v2809_v58 = vmul.f32 %v5279_v5, %v2766_v44 }
 0x707   : > { %v3217_v63 = vpack.c.bf16 %v2850_v19, %v2849_v1  ;;  %v2851_v39 = vadd.f32 %v5282_v61, %v2808_v38  ;;  %v2852_v18 = vadd.f32 %v5285_v45, %v2809_v58 }
 0x709   : > { %2963 = vst [vmem:[%s5302_s25 + $0x70] sm:$0xff] %v3217_v63  ;;  %v3218_v21 = vpack.c.bf16 %v2852_v18, %v2851_v39 }
 0x70b   : > { %2964 = vst [vmem:[%s5302_s25 + $0x78] sm:$0xff] %v3218_v21 }
 0x70c PF: > { %s18_s27 = sadd.s32 1, %s3809_s27  }
 0x70d   : > { %p15_p4 = scmp.ge.s32.totalorder %s18_s27, 6  }
 0x70f   :  { %17 = sbr.rel (!%p15_p4) target bundleno = 1 (0x1), region = 85 }

// kernel: albert_origin_xlarge_forward.8
= control target key start
LH: loop header
LB: loop body
LE: loop exit
PB: predicated region body
PF: predicated region fallthrough
CT: control target
= control target key end

     0   :  { %s9350_s0 = inlined_call_operand.vmem [shape: bf16[512,256], index: 0, kind: input, shape index: {}]   ;;  %s9351_s1 = inlined_call_operand.vmem [shape: bf16[256,1024], index: 1, kind: input, shape index: {}]   ;;  %s9352_s2 = inlined_call_operand.vmem [shape: f32[1,1024], index: 2, kind: input, shape index: {}]   ;;  %s9353_s3 = inlined_call_operand.vmem [shape: bf16[1024,256], index: 3, kind: input, shape index: {}]   ;;  %s9354_s4 = inlined_call_operand.vmem [shape: f32[1,256], index: 4, kind: input, shape index: {}]   ;;  %s9355_s5 = inlined_call_operand.vmem [shape: f32[1,256], index: 5, kind: input, shape index: {}]   ;;  %s9356_s6 = inlined_call_operand.vmem [shape: f32[1,256], index: 6, kind: input, shape index: {}]   ;;  %s9357_s7 = inlined_call_operand.vmem [shape: bf16[512,256], index: 7, kind: output, shape index: {}]  }
   0x1   :  { %9470 = sst [smem:[#allocation78_spill]] %s9351_s1 }
   0x2   :  { %s6024_s24 = smov 0   ;;  %s6026_s25 = smov 0  }
   0x3   :  { %s6028_s26 = smov 0   ;;  %s6030_s27 = smov 0  }
   0x4   :  { %s6032_s28 = smov 0   ;;  %s6034_s29 = smov 0  }
   0x5   :  { %s6036_s30 = smov 0  }
   0x6 LB: > { %s26_s8 = sadd.s32 1, %s5973_s28  ;;  %s29_s9 = sadd.s32 1, %s5977_s29  ;;  %s5981_s30 = sphi %s6036_s30, %s17_s30   ;;  %s5977_s29 = sphi %s6034_s29, %s9698_s29   ;;  %s5973_s28 = sphi %s6032_s28, %s9697_s28   ;;  %s5969_s27 = sphi %s6030_s27, %s9696_s27   ;;  %s5965_s26 = sphi %s6028_s26, %s9695_s26   ;;  %s5961_s25 = sphi %s6026_s25, %s9694_s25   ;;  %s5957_s24 = sphi %s6024_s24, %s9693_s24  }
   0x7   : > { %p27_p0 = scmp.ge.s32.totalorder %s26_s8, 2  ;;  %s62_s10 = sadd.s32 1, %s5961_s25 }
   0x8   : > { %p69_p1 = scmp.ne.s32.totalorder %s5961_s25, %s5957_s24  ;;  %p70_p2 = scmp.eq.s32.totalorder %s5981_s30, 0 }
   0x9   : > { %s9700_s8 = smov (%p27_p0, %s26_s8), 0  ;;  %s9702_s9 = smov (!%p27_p0, %s29_s9), %s5977_s29 }
   0xa   : > { %s59_s11 = ssub.s32 %s5973_s28, %s9700_s8  ;;  %p71_p3 = por %p70_p2, %p69_p1 }
   0xb   : > { %p31_p4 = scmp.ge.s32.totalorder %s9702_s9, 2  ;;  %p60_p5 = scmp.eq.s32.totalorder %s59_s11, 0 }
   0xc   : > { %p5013_p6 = scmp.ge.s32.totalorder %s5981_s30, 4 }
   0xd   : > { %s9704_s9 = smov (%p31_p4, %s9702_s9), 0 }
   0xe   : > { %9471 = sst [smem:[#allocation4_spill]] %s9704_s9  ;;  %245 = sbr.rel (%p5013_p6) target bundleno = 63 (0x3f), region = 28 }
   0xf   : > { %s6073_s12 = scalar_select %p60_p5, %s5961_s25, %s62_s10  }
  0x15   : > { %258 = sbr.rel (!%p71_p3) target bundleno = 63 (0x3f), region = 36  ;;  %s260_s13 = sand.u32 (%p71_p3), 1, %s5961_s25  }
  0x16   : > { %s5225_s14 = sshll.u32 (%p71_p3), %s5973_s28, 4  ;;  %s5014_s15 = sshll.u32 (%p71_p3), %s260_s13, 9 }
  0x17   : > { %s9472_s1 = sld [smem:[#allocation78_spill]] (%p71_p3)  ;;  %s6086_s19 = scalar_lea.vmem (%p71_p3), [#allocation3], %s5014_s15 }
  0x1d   : > { %s6081_s18 = scalar_lea.vmem %s9472_s1, %s5225_s14 }
  0x1e   : > { %v278_v0 = vld [vmem:[%s6081_s18] sm:$0xff]  ;;  %v280_v1 = vld [vmem:[%s6081_s18 + $0x8] sm:$0xff] }
  0x1f   : > { %v282_v2 = vld [vmem:[%s6081_s18 + $0x20] sm:$0xff]  ;;  %279 = vst [vmem:[%s6086_s19] sm:$0xff] %v278_v0  ;;  %281 = vst [vmem:[%s6086_s19 + $0x8] sm:$0xff] %v280_v1  ;;  %v284_v3 = vld [vmem:[%s6081_s18 + $0x28] sm:$0xff] }
  0x20   : > { %283 = vst [vmem:[%s6086_s19 + $0x10] sm:$0xff] %v282_v2  ;;  %v286_v4 = vld [vmem:[%s6081_s18 + $0x40] sm:$0xff]  ;;  %v288_v5 = vld [vmem:[%s6081_s18 + $0x48] sm:$0xff]  ;;  %285 = vst [vmem:[%s6086_s19 + $0x18] sm:$0xff] %v284_v3 }
  0x21   : > { %287 = vst [vmem:[%s6086_s19 + $0x20] sm:$0xff] %v286_v4  ;;  %289 = vst [vmem:[%s6086_s19 + $0x28] sm:$0xff] %v288_v5  ;;  %v290_v6 = vld [vmem:[%s6081_s18 + $0x60] sm:$0xff]  ;;  %v292_v7 = vld [vmem:[%s6081_s18 + $0x68] sm:$0xff] }
  0x22   : > { %v294_v8 = vld [vmem:[%s6081_s18 + $0x80] sm:$0xff]  ;;  %291 = vst [vmem:[%s6086_s19 + $0x30] sm:$0xff] %v290_v6  ;;  %293 = vst [vmem:[%s6086_s19 + $0x38] sm:$0xff] %v292_v7  ;;  %v296_v9 = vld [vmem:[%s6081_s18 + $0x88] sm:$0xff] }
  0x23   : > { %295 = vst [vmem:[%s6086_s19 + $0x40] sm:$0xff] %v294_v8  ;;  %v298_v10 = vld [vmem:[%s6081_s18 + $0xa0] sm:$0xff]  ;;  %v300_v11 = vld [vmem:[%s6081_s18 + $0xa8] sm:$0xff]  ;;  %297 = vst [vmem:[%s6086_s19 + $0x48] sm:$0xff] %v296_v9 }
  0x24   : > { %299 = vst [vmem:[%s6086_s19 + $0x50] sm:$0xff] %v298_v10  ;;  %301 = vst [vmem:[%s6086_s19 + $0x58] sm:$0xff] %v300_v11  ;;  %v302_v12 = vld [vmem:[%s6081_s18 + $0xc0] sm:$0xff]  ;;  %v304_v13 = vld [vmem:[%s6081_s18 + $0xc8] sm:$0xff] }
  0x25   : > { %v306_v14 = vld [vmem:[%s6081_s18 + $0xe0] sm:$0xff]  ;;  %303 = vst [vmem:[%s6086_s19 + $0x60] sm:$0xff] %v302_v12  ;;  %305 = vst [vmem:[%s6086_s19 + $0x68] sm:$0xff] %v304_v13  ;;  %v308_v15 = vld [vmem:[%s6081_s18 + $0xe8] sm:$0xff] }
  0x26   : > { %307 = vst [vmem:[%s6086_s19 + $0x70] sm:$0xff] %v306_v14  ;;  %v310_v16 = vld [vmem:[%s6081_s18 + $0x100] sm:$0xff]  ;;  %v312_v17 = vld [vmem:[%s6081_s18 + $0x108] sm:$0xff]  ;;  %309 = vst [vmem:[%s6086_s19 + $0x78] sm:$0xff] %v308_v15 }
  0x27   : > { %311 = vst [vmem:[%s6086_s19 + $0x80] sm:$0xff] %v310_v16  ;;  %313 = vst [vmem:[%s6086_s19 + $0x88] sm:$0xff] %v312_v17  ;;  %v314_v18 = vld [vmem:[%s6081_s18 + $0x120] sm:$0xff]  ;;  %v316_v19 = vld [vmem:[%s6081_s18 + $0x128] sm:$0xff] }
  0x28   : > { %v318_v20 = vld [vmem:[%s6081_s18 + $0x140] sm:$0xff]  ;;  %315 = vst [vmem:[%s6086_s19 + $0x90] sm:$0xff] %v314_v18  ;;  %317 = vst [vmem:[%s6086_s19 + $0x98] sm:$0xff] %v316_v19  ;;  %v320_v21 = vld [vmem:[%s6081_s18 + $0x148] sm:$0xff] }
  0x29   : > { %319 = vst [vmem:[%s6086_s19 + $0xa0] sm:$0xff] %v318_v20  ;;  %v322_v22 = vld [vmem:[%s6081_s18 + $0x160] sm:$0xff]  ;;  %v324_v23 = vld [vmem:[%s6081_s18 + $0x168] sm:$0xff]  ;;  %321 = vst [vmem:[%s6086_s19 + $0xa8] sm:$0xff] %v320_v21 }
  0x2a   : > { %323 = vst [vmem:[%s6086_s19 + $0xb0] sm:$0xff] %v322_v22  ;;  %325 = vst [vmem:[%s6086_s19 + $0xb8] sm:$0xff] %v324_v23  ;;  %v326_v24 = vld [vmem:[%s6081_s18 + $0x180] sm:$0xff]  ;;  %v328_v25 = vld [vmem:[%s6081_s18 + $0x188] sm:$0xff] }
  0x2b   : > { %v330_v26 = vld [vmem:[%s6081_s18 + $0x1a0] sm:$0xff]  ;;  %327 = vst [vmem:[%s6086_s19 + $0xc0] sm:$0xff] %v326_v24  ;;  %329 = vst [vmem:[%s6086_s19 + $0xc8] sm:$0xff] %v328_v25  ;;  %v332_v27 = vld [vmem:[%s6081_s18 + $0x1a8] sm:$0xff] }
  0x2c   : > { %331 = vst [vmem:[%s6086_s19 + $0xd0] sm:$0xff] %v330_v26  ;;  %v334_v28 = vld [vmem:[%s6081_s18 + $0x1c0] sm:$0xff]  ;;  %v336_v29 = vld [vmem:[%s6081_s18 + $0x1c8] sm:$0xff]  ;;  %333 = vst [vmem:[%s6086_s19 + $0xd8] sm:$0xff] %v332_v27 }
  0x2d   : > { %335 = vst [vmem:[%s6086_s19 + $0xe0] sm:$0xff] %v334_v28  ;;  %337 = vst [vmem:[%s6086_s19 + $0xe8] sm:$0xff] %v336_v29  ;;  %v338_v30 = vld [vmem:[%s6081_s18 + $0x1e0] sm:$0xff]  ;;  %v340_v31 = vld [vmem:[%s6081_s18 + $0x1e8] sm:$0xff] }
  0x2e   : > { %v342_v32 = vld [vmem:[%s6081_s18 + $0x200] sm:$0xff]  ;;  %339 = vst [vmem:[%s6086_s19 + $0xf0] sm:$0xff] %v338_v30  ;;  %341 = vst [vmem:[%s6086_s19 + $0xf8] sm:$0xff] %v340_v31  ;;  %v344_v33 = vld [vmem:[%s6081_s18 + $0x208] sm:$0xff] }
  0x2f   : > { %343 = vst [vmem:[%s6086_s19 + $0x100] sm:$0xff] %v342_v32  ;;  %v346_v34 = vld [vmem:[%s6081_s18 + $0x220] sm:$0xff]  ;;  %v348_v35 = vld [vmem:[%s6081_s18 + $0x228] sm:$0xff]  ;;  %345 = vst [vmem:[%s6086_s19 + $0x108] sm:$0xff] %v344_v33 }
  0x30   : > { %347 = vst [vmem:[%s6086_s19 + $0x110] sm:$0xff] %v346_v34  ;;  %349 = vst [vmem:[%s6086_s19 + $0x118] sm:$0xff] %v348_v35  ;;  %v350_v36 = vld [vmem:[%s6081_s18 + $0x240] sm:$0xff]  ;;  %v352_v37 = vld [vmem:[%s6081_s18 + $0x248] sm:$0xff] }
  0x31   : > { %v354_v38 = vld [vmem:[%s6081_s18 + $0x260] sm:$0xff]  ;;  %351 = vst [vmem:[%s6086_s19 + $0x120] sm:$0xff] %v350_v36  ;;  %353 = vst [vmem:[%s6086_s19 + $0x128] sm:$0xff] %v352_v37  ;;  %v356_v39 = vld [vmem:[%s6081_s18 + $0x268] sm:$0xff] }
  0x32   : > { %355 = vst [vmem:[%s6086_s19 + $0x130] sm:$0xff] %v354_v38  ;;  %v358_v40 = vld [vmem:[%s6081_s18 + $0x280] sm:$0xff]  ;;  %v360_v41 = vld [vmem:[%s6081_s18 + $0x288] sm:$0xff]  ;;  %357 = vst [vmem:[%s6086_s19 + $0x138] sm:$0xff] %v356_v39 }
  0x33   : > { %359 = vst [vmem:[%s6086_s19 + $0x140] sm:$0xff] %v358_v40  ;;  %361 = vst [vmem:[%s6086_s19 + $0x148] sm:$0xff] %v360_v41  ;;  %v362_v42 = vld [vmem:[%s6081_s18 + $0x2a0] sm:$0xff]  ;;  %v364_v43 = vld [vmem:[%s6081_s18 + $0x2a8] sm:$0xff] }
  0x34   : > { %v366_v44 = vld [vmem:[%s6081_s18 + $0x2c0] sm:$0xff]  ;;  %363 = vst [vmem:[%s6086_s19 + $0x150] sm:$0xff] %v362_v42  ;;  %365 = vst [vmem:[%s6086_s19 + $0x158] sm:$0xff] %v364_v43  ;;  %v368_v45 = vld [vmem:[%s6081_s18 + $0x2c8] sm:$0xff] }
  0x35   : > { %367 = vst [vmem:[%s6086_s19 + $0x160] sm:$0xff] %v366_v44  ;;  %v370_v46 = vld [vmem:[%s6081_s18 + $0x2e0] sm:$0xff]  ;;  %v372_v47 = vld [vmem:[%s6081_s18 + $0x2e8] sm:$0xff]  ;;  %369 = vst [vmem:[%s6086_s19 + $0x168] sm:$0xff] %v368_v45 }
  0x36   : > { %371 = vst [vmem:[%s6086_s19 + $0x170] sm:$0xff] %v370_v46  ;;  %373 = vst [vmem:[%s6086_s19 + $0x178] sm:$0xff] %v372_v47  ;;  %v374_v48 = vld [vmem:[%s6081_s18 + $0x300] sm:$0xff]  ;;  %v376_v49 = vld [vmem:[%s6081_s18 + $0x308] sm:$0xff] }
  0x37   : > { %v378_v50 = vld [vmem:[%s6081_s18 + $0x320] sm:$0xff]  ;;  %375 = vst [vmem:[%s6086_s19 + $0x180] sm:$0xff] %v374_v48  ;;  %377 = vst [vmem:[%s6086_s19 + $0x188] sm:$0xff] %v376_v49  ;;  %v380_v51 = vld [vmem:[%s6081_s18 + $0x328] sm:$0xff] }
  0x38   : > { %379 = vst [vmem:[%s6086_s19 + $0x190] sm:$0xff] %v378_v50  ;;  %v382_v52 = vld [vmem:[%s6081_s18 + $0x340] sm:$0xff]  ;;  %v384_v53 = vld [vmem:[%s6081_s18 + $0x348] sm:$0xff]  ;;  %381 = vst [vmem:[%s6086_s19 + $0x198] sm:$0xff] %v380_v51 }
  0x39   : > { %383 = vst [vmem:[%s6086_s19 + $0x1a0] sm:$0xff] %v382_v52  ;;  %385 = vst [vmem:[%s6086_s19 + $0x1a8] sm:$0xff] %v384_v53  ;;  %v386_v54 = vld [vmem:[%s6081_s18 + $0x360] sm:$0xff]  ;;  %v388_v55 = vld [vmem:[%s6081_s18 + $0x368] sm:$0xff] }
  0x3a   : > { %v390_v56 = vld [vmem:[%s6081_s18 + $0x380] sm:$0xff]  ;;  %387 = vst [vmem:[%s6086_s19 + $0x1b0] sm:$0xff] %v386_v54  ;;  %389 = vst [vmem:[%s6086_s19 + $0x1b8] sm:$0xff] %v388_v55  ;;  %v392_v57 = vld [vmem:[%s6081_s18 + $0x388] sm:$0xff] }
  0x3b   : > { %391 = vst [vmem:[%s6086_s19 + $0x1c0] sm:$0xff] %v390_v56  ;;  %v394_v58 = vld [vmem:[%s6081_s18 + $0x3a0] sm:$0xff]  ;;  %v396_v59 = vld [vmem:[%s6081_s18 + $0x3a8] sm:$0xff]  ;;  %393 = vst [vmem:[%s6086_s19 + $0x1c8] sm:$0xff] %v392_v57 }
  0x3c   : > { %395 = vst [vmem:[%s6086_s19 + $0x1d0] sm:$0xff] %v394_v58  ;;  %397 = vst [vmem:[%s6086_s19 + $0x1d8] sm:$0xff] %v396_v59  ;;  %v398_v60 = vld [vmem:[%s6081_s18 + $0x3c0] sm:$0xff]  ;;  %v400_v61 = vld [vmem:[%s6081_s18 + $0x3c8] sm:$0xff] }
  0x3d   : > { %v402_v62 = vld [vmem:[%s6081_s18 + $0x3e0] sm:$0xff]  ;;  %399 = vst [vmem:[%s6086_s19 + $0x1e0] sm:$0xff] %v398_v60  ;;  %401 = vst [vmem:[%s6086_s19 + $0x1e8] sm:$0xff] %v400_v61  ;;  %v404_v63 = vld [vmem:[%s6081_s18 + $0x3e8] sm:$0xff] }
  0x3e   : > { %403 = vst [vmem:[%s6086_s19 + $0x1f0] sm:$0xff] %v402_v62  ;;  %405 = vst [vmem:[%s6086_s19 + $0x1f8] sm:$0xff] %v404_v63 }
  0x3f PF: > { %p5017_p7 = scmp.ge.s32.totalorder %s5981_s30, 1  ;;  %p428_p8 = scmp.lt.s32.totalorder %s5981_s30, 5 }
  0x41   : > { %p429_p9 = pnand %p5017_p7, %p428_p8 }
  0x43   : > { %432 = sbr.rel (%p429_p9) target bundleno = 1381 (0x565), region = 67 }
  0x4a   : > { %s435_s20 = sand.u32 1, %s5957_s24   ;;  %s5019_s21 = sshll.u32 %s5969_s27, 5 }
  0x4b   : > { %s5018_s22 = sshll.u32 %s435_s20, 9  ;;  %p484_p10 = scmp.lt.s32.totalorder %s5019_s21, 63 }
  0x4c   : > { %s5022_s23 = sshll.u32 %s5965_s26, 2  ;;  %s5023_s10 = sshll.u32 %s5965_s26, 6 }
  0x4d   : > { %s9706_s21 = smov (!%p484_p10, %s5019_s21), 63  ;;  %p492_p11 = scmp.lt.s32.totalorder %s5022_s23, 7 }
  0x4e   : > { %s5226_s11 = sshll.u32 %s9706_s21, 3  ;;  %p497_p12 = scmp.lt.s32.totalorder %s5023_s10, 127 }
  0x4f   : > { %s6222_s15 = scalar_lea.vmem %s9350_s0, %s5226_s11  ;;  %s6227_s18 = scalar_lea.vmem %s9357_s7, %s5226_s11 }
  0x50   : > { %s9708_s23 = smov (!%p492_p11, %s5022_s23), 7  ;;  %s9710_s10 = smov (!%p497_p12, %s5023_s10), 127 }
  0x51   : > { %s6232_s19 = scalar_lea.vmem %s9352_s2, %s9708_s23  ;;  %s5227_s20 = sshll.u32 %s9710_s10, 3 }
  0x52   : > { %s6237_s9 = scalar_lea.vmem %s9353_s3, %s5227_s20  ;;  %s6239_s13 = scalar_lea.vmem [#allocation3], %s5018_s22 }
  0x53   : > { %p5029_p13 = scmp.ne.s32.totalorder %s5965_s26, 0 }
  0x54   : > { %v5983_v0 = vmov (!%p5029_p13), 0.0  }
  0x55   : > { %513 = sbr.rel (%p5029_p13) target bundleno = 117 (0x75), region = 75  ;;  %514 = vst [vmem:[#allocation2] sm:$0xff] (!%p5029_p13), %v5983_v0  ;;  %515 = vst [vmem:[#allocation2 + $0x8] sm:$0xff] (!%p5029_p13), %v5983_v0 }
  0x56   : > { %516 = vst [vmem:[#allocation2 + $0x10] sm:$0xff] (!%p5029_p13), %v5983_v0  ;;  %517 = vst [vmem:[#allocation2 + $0x18] sm:$0xff] (!%p5029_p13), %v5983_v0 }
  0x57   : > { %518 = vst [vmem:[#allocation2 + $0x20] sm:$0xff] (!%p5029_p13), %v5983_v0  ;;  %519 = vst [vmem:[#allocation2 + $0x28] sm:$0xff] (!%p5029_p13), %v5983_v0 }
  0x58   : > { %520 = vst [vmem:[#allocation2 + $0x30] sm:$0xff] (!%p5029_p13), %v5983_v0  ;;  %521 = vst [vmem:[#allocation2 + $0x38] sm:$0xff] (!%p5029_p13), %v5983_v0 }
  0x59   : > { %522 = vst [vmem:[#allocation2 + $0x40] sm:$0xff] (!%p5029_p13), %v5983_v0  ;;  %523 = vst [vmem:[#allocation2 + $0x48] sm:$0xff] (!%p5029_p13), %v5983_v0 }
  0x5a   : > { %524 = vst [vmem:[#allocation2 + $0x50] sm:$0xff] (!%p5029_p13), %v5983_v0  ;;  %525 = vst [vmem:[#allocation2 + $0x58] sm:$0xff] (!%p5029_p13), %v5983_v0 }
  0x5b   : > { %526 = vst [vmem:[#allocation2 + $0x60] sm:$0xff] (!%p5029_p13), %v5983_v0  ;;  %527 = vst [vmem:[#allocation2 + $0x68] sm:$0xff] (!%p5029_p13), %v5983_v0 }
  0x5c   : > { %528 = vst [vmem:[#allocation2 + $0x70] sm:$0xff] %v5983_v0  ;;  %529 = vst [vmem:[#allocation2 + $0x78] sm:$0xff] %v5983_v0 }
  0x5d   : > { %530 = vst [vmem:[#allocation2 + $0x80] sm:$0xff] %v5983_v0  ;;  %531 = vst [vmem:[#allocation2 + $0x88] sm:$0xff] %v5983_v0 }
  0x5e   : > { %532 = vst [vmem:[#allocation2 + $0x90] sm:$0xff] %v5983_v0  ;;  %533 = vst [vmem:[#allocation2 + $0x98] sm:$0xff] %v5983_v0 }
  0x5f   : > { %534 = vst [vmem:[#allocation2 + $0xa0] sm:$0xff] %v5983_v0  ;;  %535 = vst [vmem:[#allocation2 + $0xa8] sm:$0xff] %v5983_v0 }
  0x60   : > { %536 = vst [vmem:[#allocation2 + $0xb0] sm:$0xff] %v5983_v0  ;;  %537 = vst [vmem:[#allocation2 + $0xb8] sm:$0xff] %v5983_v0 }
  0x61   : > { %538 = vst [vmem:[#allocation2 + $0xc0] sm:$0xff] %v5983_v0  ;;  %539 = vst [vmem:[#allocation2 + $0xc8] sm:$0xff] %v5983_v0 }
  0x62   : > { %540 = vst [vmem:[#allocation2 + $0xd0] sm:$0xff] %v5983_v0  ;;  %541 = vst [vmem:[#allocation2 + $0xd8] sm:$0xff] %v5983_v0 }
  0x63   : > { %542 = vst [vmem:[#allocation2 + $0xe0] sm:$0xff] %v5983_v0  ;;  %543 = vst [vmem:[#allocation2 + $0xe8] sm:$0xff] %v5983_v0 }
  0x64   : > { %544 = vst [vmem:[#allocation2 + $0xf0] sm:$0xff] %v5983_v0  ;;  %545 = vst [vmem:[#allocation2 + $0xf8] sm:$0xff] %v5983_v0 }
  0x65   : > { %546 = vst [vmem:[#allocation2 + $0x100] sm:$0xff] %v5983_v0  ;;  %547 = vst [vmem:[#allocation2 + $0x108] sm:$0xff] %v5983_v0 }
  0x66   : > { %548 = vst [vmem:[#allocation2 + $0x110] sm:$0xff] %v5983_v0  ;;  %549 = vst [vmem:[#allocation2 + $0x118] sm:$0xff] %v5983_v0 }
  0x67   : > { %550 = vst [vmem:[#allocation2 + $0x120] sm:$0xff] %v5983_v0  ;;  %551 = vst [vmem:[#allocation2 + $0x128] sm:$0xff] %v5983_v0 }
  0x68   : > { %552 = vst [vmem:[#allocation2 + $0x130] sm:$0xff] %v5983_v0  ;;  %553 = vst [vmem:[#allocation2 + $0x138] sm:$0xff] %v5983_v0 }
  0x69   : > { %554 = vst [vmem:[#allocation2 + $0x140] sm:$0xff] %v5983_v0  ;;  %555 = vst [vmem:[#allocation2 + $0x148] sm:$0xff] %v5983_v0 }
  0x6a   : > { %556 = vst [vmem:[#allocation2 + $0x150] sm:$0xff] %v5983_v0  ;;  %557 = vst [vmem:[#allocation2 + $0x158] sm:$0xff] %v5983_v0 }
  0x6b   : > { %558 = vst [vmem:[#allocation2 + $0x160] sm:$0xff] %v5983_v0  ;;  %559 = vst [vmem:[#allocation2 + $0x168] sm:$0xff] %v5983_v0 }
  0x6c   : > { %560 = vst [vmem:[#allocation2 + $0x170] sm:$0xff] %v5983_v0  ;;  %561 = vst [vmem:[#allocation2 + $0x178] sm:$0xff] %v5983_v0 }
  0x6d   : > { %562 = vst [vmem:[#allocation2 + $0x180] sm:$0xff] %v5983_v0  ;;  %563 = vst [vmem:[#allocation2 + $0x188] sm:$0xff] %v5983_v0 }
  0x6e   : > { %564 = vst [vmem:[#allocation2 + $0x190] sm:$0xff] %v5983_v0  ;;  %565 = vst [vmem:[#allocation2 + $0x198] sm:$0xff] %v5983_v0 }
  0x6f   : > { %566 = vst [vmem:[#allocation2 + $0x1a0] sm:$0xff] %v5983_v0  ;;  %567 = vst [vmem:[#allocation2 + $0x1a8] sm:$0xff] %v5983_v0 }
  0x70   : > { %568 = vst [vmem:[#allocation2 + $0x1b0] sm:$0xff] %v5983_v0  ;;  %569 = vst [vmem:[#allocation2 + $0x1b8] sm:$0xff] %v5983_v0 }
  0x71   : > { %570 = vst [vmem:[#allocation2 + $0x1c0] sm:$0xff] %v5983_v0  ;;  %571 = vst [vmem:[#allocation2 + $0x1c8] sm:$0xff] %v5983_v0 }
  0x72   : > { %572 = vst [vmem:[#allocation2 + $0x1d0] sm:$0xff] %v5983_v0  ;;  %573 = vst [vmem:[#allocation2 + $0x1d8] sm:$0xff] %v5983_v0 }
  0x73   : > { %574 = vst [vmem:[#allocation2 + $0x1e0] sm:$0xff] %v5983_v0  ;;  %575 = vst [vmem:[#allocation2 + $0x1e8] sm:$0xff] %v5983_v0 }
  0x74   : > { %576 = vst [vmem:[#allocation2 + $0x1f0] sm:$0xff] %v5983_v0  ;;  %577 = vst [vmem:[#allocation2 + $0x1f8] sm:$0xff] %v5983_v0 }
  0x75 PF: > { %v5382_v1 = vld [vmem:[%s6239_s13 + $0x4] ss:$16 sps:$4 sm:$0xff]   ;;  %v5384_v2 = vld [vmem:[%s6239_s13] ss:$16 sps:$4 sm:$0xff]   ;;  %v6323_v15 = vld [vmem:[%s6222_s15 + $0x8] sm:$0xff]  ;;  %p5190_p0 = scmp.ne.s32.totalorder %s5965_s26, 1 }
  0x76   : > { %1176 = vmatprep.subr.bf16.mxu1 %v5382_v1  ;;  %v5385_v3 = vld [vmem:[%s6239_s13 + $0x24] ss:$16 sps:$4 sm:$0xff]   ;;  %v5387_v4 = vld [vmem:[%s6239_s13 + $0x20] ss:$16 sps:$4 sm:$0xff]   ;;  %9474 = vst [vmem:[#allocation6_spill] sm:$0xff] %v6323_v15  ;;  %v6354_v38 = vld [vmem:[%s6222_s15 + $0x18] sm:$0xff] }
  0x77   : > { %1177 = vmatpush1.bf16.msra.mxu1 %v5384_v2  ;;  %v5388_v5 = vld [vmem:[%s6239_s13 + $0x44] ss:$16 sps:$4 sm:$0xff]   ;;  %v5390_v6 = vld [vmem:[%s6239_s13 + $0x40] ss:$16 sps:$4 sm:$0xff]   ;;  %v5434_v36 = vld [vmem:[%s6239_s13 + $0xc] ss:$16 sps:$4 sm:$0xff]  }
  0x78   : > { %1178 = vmatprep.subr.bf16.mxu1 %v5385_v3  ;;  %v5391_v7 = vld [vmem:[%s6239_s13 + $0x64] ss:$16 sps:$4 sm:$0xff]   ;;  %v5393_v8 = vld [vmem:[%s6239_s13 + $0x60] ss:$16 sps:$4 sm:$0xff]   ;;  %9476 = vst [vmem:[#allocation8_spill] sm:$0xff] %v6354_v38  ;;  %v6372_v45 = vld [vmem:[%s6222_s15 + $0x28] sm:$0xff] }
  0x79   : > { %v5394_v9 = vld [vmem:[%s6239_s13 + $0x84] ss:$16 sps:$4 sm:$0xff]   ;;  %v5396_v10 = vld [vmem:[%s6239_s13 + $0x80] ss:$16 sps:$4 sm:$0xff]   ;;  %v5432_v39 = vld [vmem:[%s6239_s13 + $0x8] ss:$16 sps:$4 sm:$0xff]  }
  0x7a   : > { %v5397_v11 = vld [vmem:[%s6239_s13 + $0xa4] ss:$16 sps:$4 sm:$0xff]   ;;  %v5399_v12 = vld [vmem:[%s6239_s13 + $0xa0] ss:$16 sps:$4 sm:$0xff]   ;;  %v5439_v41 = vld [vmem:[%s6239_s13 + $0x2c] ss:$16 sps:$4 sm:$0xff]  }
  0x7b   : > { %1179 = vmatpush1.bf16.msra.mxu1 %v5387_v4  ;;  %v5400_v13 = vld [vmem:[%s6239_s13 + $0xc4] ss:$16 sps:$4 sm:$0xff]   ;;  %v5402_v17 = vld [vmem:[%s6239_s13 + $0xc0] ss:$16 sps:$4 sm:$0xff]   ;;  %v5437_v43 = vld [vmem:[%s6239_s13 + $0x28] ss:$16 sps:$4 sm:$0xff]  }
  0x7c   : > { %1180 = vmatprep.subr.bf16.mxu1 %v5388_v5  ;;  %v6320_v14 = vld [vmem:[%s6222_s15] sm:$0xff]  ;;  %v6351_v37 = vld [vmem:[%s6222_s15 + $0x10] sm:$0xff]  ;;  %9478 = vst [vmem:[#allocation10_spill] sm:$0xff] %v6372_v45  ;;  %v5444_v46 = vld [vmem:[%s6239_s13 + $0x4c] ss:$16 sps:$4 sm:$0xff]  }
  0x7d   : > { %9473 = vst [vmem:[#allocation5_spill] sm:$0xff] %v6320_v14  ;;  %v6327_v16 = vcombine.high %v6320_v14, %v6323_v15  ;;  %v5403_v18 = vld [vmem:[%s6239_s13 + $0xe4] ss:$16 sps:$4 sm:$0xff]   ;;  %v5405_v19 = vld [vmem:[%s6239_s13 + $0xe0] ss:$16 sps:$4 sm:$0xff]   ;;  %9475 = vst [vmem:[#allocation7_spill] sm:$0xff] %v6351_v37  ;;  %v6359_v40 = vcombine.low %v6320_v14, %v6323_v15  ;;  %v6364_v42 = vcombine.high %v6351_v37, %v6354_v38 }
  0x7e   : > { %v5406_v20 = vld [vmem:[%s6239_s13 + $0x104] ss:$16 sps:$4 sm:$0xff]   ;;  %v5408_v21 = vld [vmem:[%s6239_s13 + $0x100] ss:$16 sps:$4 sm:$0xff]   ;;  %v5442_v47 = vld [vmem:[%s6239_s13 + $0x48] ss:$16 sps:$4 sm:$0xff]   ;;  %v6379_v48 = vcombine.low %v6351_v37, %v6354_v38 }
  0x7f   : > { %1181 = vmatpush1.bf16.msra.mxu1 %v5390_v6  ;;  %1208 = vmatprep.mubr.bf16.mxu1 %v6327_v16  ;;  %v5409_v22 = vld [vmem:[%s6239_s13 + $0x124] ss:$16 sps:$4 sm:$0xff]   ;;  %v5411_v23 = vld [vmem:[%s6239_s13 + $0x120] ss:$16 sps:$4 sm:$0xff]   ;;  %v5449_v49 = vld [vmem:[%s6239_s13 + $0x6c] ss:$16 sps:$4 sm:$0xff]  }
  0x80   : > { %1182 = vmatprep.subr.bf16.mxu1 %v5391_v7  ;;  %v5412_v24 = vld [vmem:[%s6239_s13 + $0x144] ss:$16 sps:$4 sm:$0xff]   ;;  %v5414_v25 = vld [vmem:[%s6239_s13 + $0x140] ss:$16 sps:$4 sm:$0xff]   ;;  %v5447_v51 = vld [vmem:[%s6239_s13 + $0x68] ss:$16 sps:$4 sm:$0xff]  }
  0x81   : > { %v5415_v26 = vld [vmem:[%s6239_s13 + $0x164] ss:$16 sps:$4 sm:$0xff]   ;;  %v5417_v27 = vld [vmem:[%s6239_s13 + $0x160] ss:$16 sps:$4 sm:$0xff]   ;;  %v6393_v53 = vld [vmem:[%s6222_s15 + $0x38] sm:$0xff] }
  0x82   : > { %v5418_v28 = vld [vmem:[%s6239_s13 + $0x184] ss:$16 sps:$4 sm:$0xff]   ;;  %v5420_v29 = vld [vmem:[%s6239_s13 + $0x180] ss:$16 sps:$4 sm:$0xff]   ;;  %9480 = vst [vmem:[#allocation12_spill] sm:$0xff] %v6393_v53  ;;  %v6413_v61 = vld [vmem:[%s6222_s15 + $0x48] sm:$0xff] }
  0x83   : > { %1183 = vmatpush1.bf16.msra.mxu1 %v5393_v8  ;;  %v5421_v30 = vld [vmem:[%s6239_s13 + $0x1a4] ss:$16 sps:$4 sm:$0xff]   ;;  %v5423_v31 = vld [vmem:[%s6239_s13 + $0x1a0] ss:$16 sps:$4 sm:$0xff]   ;;  %v5454_v54 = vld [vmem:[%s6239_s13 + $0x8c] ss:$16 sps:$4 sm:$0xff]  }
  0x84   : > { %1184 = vmatprep.subr.bf16.mxu1 %v5394_v9  ;;  %v5424_v32 = vld [vmem:[%s6239_s13 + $0x1c4] ss:$16 sps:$4 sm:$0xff]   ;;  %v5426_v33 = vld [vmem:[%s6239_s13 + $0x1c0] ss:$16 sps:$4 sm:$0xff]   ;;  %v5452_v57 = vld [vmem:[%s6239_s13 + $0x88] ss:$16 sps:$4 sm:$0xff]  }
  0x85   : > { %v5427_v34 = vld [vmem:[%s6239_s13 + $0x1e4] ss:$16 sps:$4 sm:$0xff]   ;;  %v5429_v35 = vld [vmem:[%s6239_s13 + $0x1e0] ss:$16 sps:$4 sm:$0xff]   ;;  %v5459_v58 = vld [vmem:[%s6239_s13 + $0xac] ss:$16 sps:$4 sm:$0xff]  }
  0x86   : > { %v6369_v44 = vld [vmem:[%s6222_s15 + $0x20] sm:$0xff]  ;;  %v6390_v52 = vld [vmem:[%s6222_s15 + $0x30] sm:$0xff]  ;;  %v5457_v59 = vld [vmem:[%s6239_s13 + $0xa8] ss:$16 sps:$4 sm:$0xff]   ;;  %9482 = vst [vmem:[#allocation14_spill] sm:$0xff] %v6413_v61 }
  0x87   : > { %1185 = vmatpush1.bf16.msra.mxu1 %v5396_v10  ;;  %9477 = vst [vmem:[#allocation9_spill] sm:$0xff] %v6369_v44  ;;  %v6384_v50 = vcombine.high %v6369_v44, %v6372_v45  ;;  %9479 = vst [vmem:[#allocation11_spill] sm:$0xff] %v6390_v52  ;;  %v6398_v55 = vcombine.low %v6369_v44, %v6372_v45  ;;  %v6402_v56 = vcombine.high %v6390_v52, %v6393_v53  ;;  %v6410_v60 = vld [vmem:[%s6222_s15 + $0x40] sm:$0xff]  ;;  %v5464_v62 = vld [vmem:[%s6239_s13 + $0xcc] ss:$16 sps:$4 sm:$0xff]  }
  0x88   : > { %1186 = vmatprep.subr.bf16.mxu1 %v5397_v11  ;;  %9481 = vst [vmem:[#allocation13_spill] sm:$0xff] %v6410_v60  ;;  %v6418_v63 = vcombine.low %v6390_v52, %v6393_v53  ;;  %v6422_v0 = vcombine.high %v6410_v60, %v6413_v61  ;;  %v5462_v1 = vld [vmem:[%s6239_s13 + $0xc8] ss:$16 sps:$4 sm:$0xff]   ;;  %v5469_v2 = vld [vmem:[%s6239_s13 + $0xec] ss:$16 sps:$4 sm:$0xff]   ;;  %v6430_v4 = vld [vmem:[%s6222_s15 + $0x50] sm:$0xff]  ;;  %v6438_v7 = vcombine.low %v6410_v60, %v6413_v61 }
  0x89   : > { %v5467_v3 = vld [vmem:[%s6239_s13 + $0xe8] ss:$16 sps:$4 sm:$0xff]   ;;  %9483 = vst [vmem:[#allocation15_spill] sm:$0xff] %v6430_v4  ;;  %v5474_v6 = vld [vmem:[%s6239_s13 + $0x10c] ss:$16 sps:$4 sm:$0xff]  }
  0x8a   : > { %v6433_v5 = vld [vmem:[%s6222_s15 + $0x58] sm:$0xff] }
  0x8b   : > { %1187 = vmatpush1.bf16.msra.mxu1 %v5399_v12  ;;  %9484 = vst [vmem:[#allocation16_spill] sm:$0xff] %v6433_v5  ;;  %v6442_v8 = vcombine.high %v6430_v4, %v6433_v5  ;;  %v5472_v9 = vld [vmem:[%s6239_s13 + $0x108] ss:$16 sps:$4 sm:$0xff]   ;;  %v5479_v10 = vld [vmem:[%s6239_s13 + $0x12c] ss:$16 sps:$4 sm:$0xff]   ;;  %v6450_v12 = vld [vmem:[%s6222_s15 + $0x60] sm:$0xff] }
  0x8c   : > { %1188 = vmatprep.subr.bf16.mxu1 %v5400_v13  ;;  %v5477_v11 = vld [vmem:[%s6239_s13 + $0x128] ss:$16 sps:$4 sm:$0xff]   ;;  %9485 = vst [vmem:[#allocation17_spill] sm:$0xff] %v6450_v12 }
  0x8d   : > { %v6453_v13 = vld [vmem:[%s6222_s15 + $0x68] sm:$0xff]  ;;  %v5603_v38 = vld [vmem:[%s6237_s9 + $0x1f0] ss:$8 sps:$4 sm:$0xff]  }
  0x8e   : > { %9486 = vst [vmem:[#allocation18_spill] sm:$0xff] %v6453_v13 }
  0x8f   : > { %1189 = vmatpush1.bf16.msra.mxu1 %v5402_v17  ;;  %v5484_v17 = vld [vmem:[%s6239_s13 + $0x14c] ss:$16 sps:$4 sm:$0xff]  }
  0x90   : > { %1190 = vmatprep.subr.bf16.mxu1 %v5403_v18  ;;  %v6458_v18 = vcombine.low %v6430_v4, %v6433_v5 }
  0x93   : > { %1191 = vmatpush1.bf16.msra.mxu1 %v5405_v19  ;;  %v6462_v19 = vcombine.high %v6450_v12, %v6453_v13 }
  0x94   : > { %1192 = vmatprep.subr.bf16.mxu1 %v5406_v20  ;;  %v5482_v20 = vld [vmem:[%s6239_s13 + $0x148] ss:$16 sps:$4 sm:$0xff]  }
  0x97   : > { %1193 = vmatpush1.bf16.msra.mxu1 %v5408_v21  ;;  %v5489_v21 = vld [vmem:[%s6239_s13 + $0x16c] ss:$16 sps:$4 sm:$0xff]  }
  0x98   : > { %1194 = vmatprep.subr.bf16.mxu1 %v5409_v22  ;;  %v5487_v22 = vld [vmem:[%s6239_s13 + $0x168] ss:$16 sps:$4 sm:$0xff]  }
  0x9b   : > { %1195 = vmatpush1.bf16.msra.mxu1 %v5411_v23  ;;  %v6470_v23 = vld [vmem:[%s6222_s15 + $0x70] sm:$0xff] }
  0x9c   : > { %1196 = vmatprep.subr.bf16.mxu1 %v5412_v24  ;;  %9487 = vst [vmem:[#allocation19_spill] sm:$0xff] %v6470_v23  ;;  %v6473_v24 = vld [vmem:[%s6222_s15 + $0x78] sm:$0xff] }
  0x9d   : > { %9488 = vst [vmem:[#allocation20_spill] sm:$0xff] %v6473_v24 }
  0x9f   : > { %1197 = vmatpush1.bf16.msra.mxu1 %v5414_v25  ;;  %v5494_v25 = vld [vmem:[%s6239_s13 + $0x18c] ss:$16 sps:$4 sm:$0xff]  }
  0xa0   : > { %1198 = vmatprep.subr.bf16.mxu1 %v5415_v26  ;;  %v6478_v26 = vcombine.low %v6450_v12, %v6453_v13  ;;  %v5587_v12 = vld [vmem:[%s6237_s9 + $0x194] ss:$8 sps:$4 sm:$0xff]  }
  0xa3   : > { %1199 = vmatpush1.bf16.msra.mxu1 %v5417_v27  ;;  %v6482_v27 = vcombine.high %v6470_v23, %v6473_v24 }
  0xa4   : > { %1200 = vmatprep.subr.bf16.mxu1 %v5418_v28  ;;  %v5492_v28 = vld [vmem:[%s6239_s13 + $0x188] ss:$16 sps:$4 sm:$0xff]  }
  0xa7   : > { %1201 = vmatpush1.bf16.msra.mxu1 %v5420_v29  ;;  %v5499_v29 = vld [vmem:[%s6239_s13 + $0x1ac] ss:$16 sps:$4 sm:$0xff]  }
  0xa8   : > { %1202 = vmatprep.subr.bf16.mxu1 %v5421_v30  ;;  %v5510_v30 = vld [vmem:[%s6237_s9 + $0x4] ss:$8 sps:$4 sm:$0xff]  }
  0xa9   : > { %3226 = vmatprep.subr.bf16.mxu0 %v5510_v30 }
  0xab   : > { %1203 = vmatpush1.bf16.msra.mxu1 %v5423_v31  ;;  %v5512_v31 = vld [vmem:[%s6237_s9] ss:$8 sps:$4 sm:$0xff]  }
  0xac   : > { %1204 = vmatprep.subr.bf16.mxu1 %v5424_v32  ;;  %v5497_v32 = vld [vmem:[%s6239_s13 + $0x1a8] ss:$16 sps:$4 sm:$0xff]   ;;  %3227 = vmatpush1.bf16.msra.mxu0 %v5512_v31 }
  0xaf   : > { %1205 = vmatpush1.bf16.msra.mxu1 %v5426_v33  ;;  %v6492_v33 = vld [vmem:[%s6222_s15 + $0x80] sm:$0xff] }
  0xb0   : > { %1206 = vmatprep.subr.bf16.mxu1 %v5427_v34  ;;  %9489 = vst [vmem:[#allocation21_spill] sm:$0xff] %v6492_v33  ;;  %v6495_v34 = vld [vmem:[%s6222_s15 + $0x88] sm:$0xff] }
  0xb1   : > { %9490 = vst [vmem:[#allocation22_spill] sm:$0xff] %v6495_v34 }
  0xb3   : > { %1207 = vmatpush1.bf16.msra.mxu1 %v5429_v35  ;;  %v5504_v35 = vld [vmem:[%s6239_s13 + $0x1cc] ss:$16 sps:$4 sm:$0xff]  }
  0xb4   : > { %1369 = vmatprep.subr.bf16.mxu1 %v5434_v36  ;;  %v6500_v36 = vcombine.low %v6470_v23, %v6473_v24  ;;  %v5569_v24 = vld [vmem:[%s6237_s9 + $0x134] ss:$8 sps:$4 sm:$0xff]  }
  0xb6   : > { %1209 = vmatmul.mubr.bf16.vlgmr.msra.gmra.mrb[0].mxu1 %v6359_v40 }
  0xb7   : > { %1370 = vmatpush1.bf16.msra.mxu1 %v5432_v39  ;;  %1218 = vmatprep.mubr.bf16.mxu1 %v6364_v42  ;;  %v6504_v39 = vcombine.high %v6492_v33, %v6495_v34 }
  0xb8   : > { %1371 = vmatprep.subr.bf16.mxu1 %v5439_v41  ;;  %v5502_v41 = vld [vmem:[%s6239_s13 + $0x1c8] ss:$16 sps:$4 sm:$0xff]  }
  0xbb   : > { %1372 = vmatpush1.bf16.msra.mxu1 %v5437_v43  ;;  %v5509_v43 = vld [vmem:[%s6239_s13 + $0x1ec] ss:$16 sps:$4 sm:$0xff]  }
  0xbc   : > { %1373 = vmatprep.subr.bf16.mxu1 %v5444_v46  ;;  %v5513_v46 = vld [vmem:[%s6237_s9 + $0x14] ss:$8 sps:$4 sm:$0xff]  }
  0xbd   : > { %3228 = vmatprep.subr.bf16.mxu0 %v5513_v46  ;;  %v5534_v46 = vld [vmem:[%s6237_s9 + $0x84] ss:$8 sps:$4 sm:$0xff]  }
  0xbe   : > { %1219 = vmatmul.mubr.bf16.gmra.mrb[4].mxu1 %v6379_v48 }
  0xbf   : > { %1228 = vmatprep.mubr.bf16.mxu1 %v6384_v50  ;;  %1374 = vmatpush1.bf16.msra.mxu1 %v5442_v47  ;;  %v5515_v47 = vld [vmem:[%s6237_s9 + $0x10] ss:$8 sps:$4 sm:$0xff]  }
  0xc0   : > { %1375 = vmatprep.subr.bf16.mxu1 %v5449_v49  ;;  %v5516_v49 = vld [vmem:[%s6237_s9 + $0x24] ss:$8 sps:$4 sm:$0xff]   ;;  %3229 = vmatpush1.bf16.msra.mxu0 %v5515_v47 }
  0xc1   : > { %3230 = vmatprep.subr.bf16.mxu0 %v5516_v49  ;;  %v5536_v49 = vld [vmem:[%s6237_s9 + $0x80] ss:$8 sps:$4 sm:$0xff]  }
  0xc3   : > { %1376 = vmatpush1.bf16.msra.mxu1 %v5447_v51  ;;  %v5507_v51 = vld [vmem:[%s6239_s13 + $0x1e8] ss:$16 sps:$4 sm:$0xff]  }
  0xc4   : > { %1377 = vmatprep.subr.bf16.mxu1 %v5454_v54  ;;  %v6515_v54 = vld [vmem:[%s6222_s15 + $0x90] sm:$0xff] }
  0xc5   : > { %9491 = vst [vmem:[#allocation23_spill] sm:$0xff] %v6515_v54 }
  0xc6   : > { %1229 = vmatmul.mubr.bf16.gmra.mrb[8].mxu1 %v6398_v55 }
  0xc7   : > { %1238 = vmatprep.mubr.bf16.mxu1 %v6402_v56  ;;  %1378 = vmatpush1.bf16.msra.mxu1 %v5452_v57  ;;  %v6518_v57 = vld [vmem:[%s6222_s15 + $0x98] sm:$0xff] }
  0xc8   : > { %1379 = vmatprep.subr.bf16.mxu1 %v5459_v58  ;;  %9492 = vst [vmem:[#allocation24_spill] sm:$0xff] %v6518_v57  ;;  %v5518_v58 = vld [vmem:[%s6237_s9 + $0x20] ss:$8 sps:$4 sm:$0xff]  }
  0xc9   : > { %3231 = vmatpush1.bf16.msra.mxu0 %v5518_v58  ;;  %v5537_v58 = vld [vmem:[%s6237_s9 + $0x94] ss:$8 sps:$4 sm:$0xff]  }
  0xcb   : > { %1380 = vmatpush1.bf16.msra.mxu1 %v5457_v59  ;;  %v6523_v59 = vcombine.low %v6492_v33, %v6495_v34 }
  0xcc   : > { %1381 = vmatprep.subr.bf16.mxu1 %v5464_v62  ;;  %v6527_v62 = vcombine.high %v6515_v54, %v6518_v57 }
  0xce   : > { %1239 = vmatmul.mubr.bf16.gmra.mrb[12].mxu1 %v6418_v63 }
  0xcf   : > { %1248 = vmatprep.mubr.bf16.mxu1 %v6422_v0  ;;  %1382 = vmatpush1.bf16.msra.mxu1 %v5462_v1  ;;  %v5519_v1 = vld [vmem:[%s6237_s9 + $0x34] ss:$8 sps:$4 sm:$0xff]  }
  0xd0   : > { %1383 = vmatprep.subr.bf16.mxu1 %v5469_v2  ;;  %v5521_v2 = vld [vmem:[%s6237_s9 + $0x30] ss:$8 sps:$4 sm:$0xff]   ;;  %3232 = vmatprep.subr.bf16.mxu0 %v5519_v1 }
  0xd1   : > { %3233 = vmatpush1.bf16.msra.mxu0 %v5521_v2  ;;  %v5539_v1 = vld [vmem:[%s6237_s9 + $0x90] ss:$8 sps:$4 sm:$0xff]  }
  0xd2   : > { %v6594_v2 = vld [vmem:[%s6222_s15 + $0xd0] sm:$0xff] }
  0xd3   : > { %1384 = vmatpush1.bf16.msra.mxu1 %v5467_v3  ;;  %v5522_v3 = vld [vmem:[%s6237_s9 + $0x44] ss:$8 sps:$4 sm:$0xff]   ;;  %9499 = vst [vmem:[#allocation31_spill] sm:$0xff] %v6594_v2 }
  0xd4   : > { %1385 = vmatprep.subr.bf16.mxu1 %v5474_v6  ;;  %v6535_v6 = vld [vmem:[%s6222_s15 + $0xa0] sm:$0xff]  ;;  %3234 = vmatprep.subr.bf16.mxu0 %v5522_v3  ;;  %v6597_v3 = vld [vmem:[%s6222_s15 + $0xd8] sm:$0xff] }
  0xd5   : > { %9493 = vst [vmem:[#allocation25_spill] sm:$0xff] %v6535_v6  ;;  %9500 = vst [vmem:[#allocation32_spill] sm:$0xff] %v6597_v3 }
  0xd6   : > { %1249 = vmatmul.mubr.bf16.gmra.mrb[16].mxu1 %v6438_v7 }
  0xd7   : > { %1258 = vmatprep.mubr.bf16.mxu1 %v6442_v8  ;;  %1386 = vmatpush1.bf16.msra.mxu1 %v5472_v9  ;;  %v6538_v9 = vld [vmem:[%s6222_s15 + $0xa8] sm:$0xff] }
  0xd8   : > { %1387 = vmatprep.subr.bf16.mxu1 %v5479_v10  ;;  %9494 = vst [vmem:[#allocation26_spill] sm:$0xff] %v6538_v9  ;;  %v5524_v10 = vld [vmem:[%s6237_s9 + $0x40] ss:$8 sps:$4 sm:$0xff]   ;;  %v6563_v30 = vcombine.low %v6535_v6, %v6538_v9 }
  0xd9   : > { %3235 = vmatpush1.bf16.msra.mxu0 %v5524_v10  ;;  %v5540_v10 = vld [vmem:[%s6237_s9 + $0xa4] ss:$8 sps:$4 sm:$0xff]  }
  0xdb   : > { %1388 = vmatpush1.bf16.msra.mxu1 %v5477_v11  ;;  %v6543_v11 = vcombine.low %v6515_v54, %v6518_v57 }
  0xdc   : > { %1389 = vmatprep.subr.bf16.mxu1 %v5484_v17  ;;  %v6547_v17 = vcombine.high %v6535_v6, %v6538_v9  ;;  %v5558_v9 = vld [vmem:[%s6237_s9 + $0x100] ss:$8 sps:$4 sm:$0xff]   ;;  %v5561_v6 = vld [vmem:[%s6237_s9 + $0x110] ss:$8 sps:$4 sm:$0xff]  }
  0xde   : > { %1259 = vmatmul.mubr.bf16.gmra.mrb[20].mxu1 %v6458_v18 }
  0xdf   : > { %1268 = vmatprep.mubr.bf16.mxu1 %v6462_v19  ;;  %1390 = vmatpush1.bf16.msra.mxu1 %v5482_v20  ;;  %v5525_v20 = vld [vmem:[%s6237_s9 + $0x54] ss:$8 sps:$4 sm:$0xff]  }
  0xe0   : > { %1391 = vmatprep.subr.bf16.mxu1 %v5489_v21  ;;  %v5527_v21 = vld [vmem:[%s6237_s9 + $0x50] ss:$8 sps:$4 sm:$0xff]   ;;  %3236 = vmatprep.subr.bf16.mxu0 %v5525_v20 }
  0xe1   : > { %3237 = vmatpush1.bf16.msra.mxu0 %v5527_v21  ;;  %v5542_v21 = vld [vmem:[%s6237_s9 + $0xa0] ss:$8 sps:$4 sm:$0xff]  }
  0xe3   : > { %1392 = vmatpush1.bf16.msra.mxu1 %v5487_v22  ;;  %v5528_v22 = vld [vmem:[%s6237_s9 + $0x64] ss:$8 sps:$4 sm:$0xff]  }
  0xe4   : > { %1393 = vmatprep.subr.bf16.mxu1 %v5494_v25  ;;  %v6555_v25 = vld [vmem:[%s6222_s15 + $0xb0] sm:$0xff]  ;;  %3238 = vmatprep.subr.bf16.mxu0 %v5528_v22  ;;  %v6607_v22 = vcombine.high %v6594_v2, %v6597_v3 }
  0xe5   : > { %9495 = vst [vmem:[#allocation27_spill] sm:$0xff] %v6555_v25 }
  0xe6   : > { %1269 = vmatmul.mubr.bf16.gmra.mrb[24].mxu1 %v6478_v26 }
  0xe7   : > { %1278 = vmatprep.mubr.bf16.mxu1 %v6482_v27  ;;  %1394 = vmatpush1.bf16.msra.mxu1 %v5492_v28  ;;  %v6558_v28 = vld [vmem:[%s6222_s15 + $0xb8] sm:$0xff] }
  0xe8   : > { %1395 = vmatprep.subr.bf16.mxu1 %v5499_v29  ;;  %9496 = vst [vmem:[#allocation28_spill] sm:$0xff] %v6558_v28  ;;  %v5530_v29 = vld [vmem:[%s6237_s9 + $0x60] ss:$8 sps:$4 sm:$0xff]   ;;  %v6567_v31 = vcombine.high %v6555_v25, %v6558_v28  ;;  %v6582_v47 = vcombine.low %v6555_v25, %v6558_v28 }
  0xe9   : > { %3239 = vmatpush1.bf16.msra.mxu0 %v5530_v29  ;;  %v5543_v29 = vld [vmem:[%s6237_s9 + $0xb4] ss:$8 sps:$4 sm:$0xff]  }
  0xeb   : > { %1396 = vmatpush1.bf16.msra.mxu1 %v5497_v32  ;;  %v5531_v32 = vld [vmem:[%s6237_s9 + $0x74] ss:$8 sps:$4 sm:$0xff]  }
  0xec   : > { %1397 = vmatprep.subr.bf16.mxu1 %v5504_v35  ;;  %v5533_v35 = vld [vmem:[%s6237_s9 + $0x70] ss:$8 sps:$4 sm:$0xff]   ;;  %3240 = vmatprep.subr.bf16.mxu0 %v5531_v32 }
  0xed   : > { %3241 = vmatpush1.bf16.msra.mxu0 %v5533_v35  ;;  %v5545_v32 = vld [vmem:[%s6237_s9 + $0xb0] ss:$8 sps:$4 sm:$0xff]   ;;  %v6614_v35 = vld [vmem:[%s6222_s15 + $0xe0] sm:$0xff] }
  0xee   : > { %1279 = vmatmul.mubr.bf16.gmra.mrb[28].mxu1 %v6500_v36  ;;  %3242 = vmatprep.subr.bf16.mxu0 %v5534_v46  ;;  %9501 = vst [vmem:[#allocation33_spill] sm:$0xff] %v6614_v35  ;;  %v6617_v46 = vld [vmem:[%s6222_s15 + $0xe8] sm:$0xff] }
  0xef   : > { %1288 = vmatprep.mubr.bf16.mxu1 %v6504_v39  ;;  %1398 = vmatpush1.bf16.msra.mxu1 %v5502_v41  ;;  %v6574_v41 = vld [vmem:[%s6222_s15 + $0xc0] sm:$0xff]  ;;  %9502 = vst [vmem:[#allocation34_spill] sm:$0xff] %v6617_v46 }
  0xf0   : > { %1399 = vmatprep.subr.bf16.mxu1 %v5509_v43  ;;  %9497 = vst [vmem:[#allocation29_spill] sm:$0xff] %v6574_v41  ;;  %v6577_v43 = vld [vmem:[%s6222_s15 + $0xc8] sm:$0xff] }
  0xf1   : > { %9498 = vst [vmem:[#allocation30_spill] sm:$0xff] %v6577_v43  ;;  %3243 = vmatpush1.bf16.msra.mxu0 %v5536_v49  ;;  %v6602_v20 = vcombine.low %v6574_v41, %v6577_v43  ;;  %v5546_v49 = vld [vmem:[%s6237_s9 + $0xc4] ss:$8 sps:$4 sm:$0xff]  }
  0xf2   : > { %3244 = vmatprep.subr.bf16.mxu0 %v5537_v58  ;;  %v6622_v58 = vcombine.low %v6594_v2, %v6597_v3  ;;  %v6637_v3 = vld [vmem:[%s6222_s15 + $0xf8] sm:$0xff]  ;;  %v5552_v2 = vld [vmem:[%s6237_s9 + $0xe4] ss:$8 sps:$4 sm:$0xff]  }
  0xf3   : > { %1400 = vmatpush1.bf16.msra.mxu1 %v5507_v51  ;;  %v6587_v51 = vcombine.high %v6574_v41, %v6577_v43  ;;  %9504 = vst [vmem:[#allocation36_spill] sm:$0xff] %v6637_v3  ;;  %v5555_v41 = vld [vmem:[%s6237_s9 + $0xf4] ss:$8 sps:$4 sm:$0xff]  }
  0xf5   : > { %3245 = vmatpush1.bf16.msra.mxu0 %v5539_v1  ;;  %v5548_v1 = vld [vmem:[%s6237_s9 + $0xc0] ss:$8 sps:$4 sm:$0xff]  }
  0xf6   : > { %1289 = vmatmul.mubr.bf16.gmra.mrb[32].mxu1 %v6523_v59  ;;  %3246 = vmatprep.subr.bf16.mxu0 %v5540_v10  ;;  %v6627_v10 = vcombine.high %v6614_v35, %v6617_v46 }
  0xf7   : > { %1298 = vmatprep.mubr.bf16.mxu1 %v6527_v62 }
  0xf9   : > { %3247 = vmatpush1.bf16.msra.mxu0 %v5542_v21  ;;  %v5549_v21 = vld [vmem:[%s6237_s9 + $0xd4] ss:$8 sps:$4 sm:$0xff]  }
  0xfa   : > { %3248 = vmatprep.subr.bf16.mxu0 %v5543_v29  ;;  %v5551_v29 = vld [vmem:[%s6237_s9 + $0xd0] ss:$8 sps:$4 sm:$0xff]  }
  0xfd   : > { %3249 = vmatpush1.bf16.msra.mxu0 %v5545_v32  ;;  %v6634_v32 = vld [vmem:[%s6222_s15 + $0xf0] sm:$0xff] }
  0xfe   : > { %1299 = vmatmul.mubr.bf16.gmra.mrb[36].mxu1 %v6543_v11  ;;  %3250 = vmatprep.subr.bf16.mxu0 %v5546_v49  ;;  %9503 = vst [vmem:[#allocation35_spill] sm:$0xff] %v6634_v32  ;;  %v6642_v49 = vcombine.low %v6614_v35, %v6617_v46  ;;  %v6647_v43 = vcombine.high %v6634_v32, %v6637_v3  ;;  %v5560_v46 = vld [vmem:[%s6237_s9 + $0x104] ss:$8 sps:$4 sm:$0xff]  }
  0xff   : > { %1308 = vmatprep.mubr.bf16.mxu1 %v6547_v17 }
 0x101   : > { %3251 = vmatpush1.bf16.msra.mxu0 %v5548_v1  ;;  %v5554_v1 = vld [vmem:[%s6237_s9 + $0xe0] ss:$8 sps:$4 sm:$0xff]  }
 0x102   : > { %3252 = vmatprep.subr.bf16.mxu0 %v5549_v21  ;;  %v5557_v21 = vld [vmem:[%s6237_s9 + $0xf0] ss:$8 sps:$4 sm:$0xff]  }
 0x105   : > { %3253 = vmatpush1.bf16.msra.mxu0 %v5551_v29  ;;  %v6655_v29 = vcombine.low %v6634_v32, %v6637_v3 }
 0x106   : > { %1309 = vmatmul.mubr.bf16.gmra.mrb[40].mxu1 %v6563_v30  ;;  %3254 = vmatprep.subr.bf16.mxu0 %v5552_v2 }
 0x107   : > { %1318 = vmatprep.mubr.bf16.mxu1 %v6567_v31 }
 0x109   : > { %3255 = vmatpush1.bf16.msra.mxu0 %v5554_v1 }
 0x10a   : > { %3256 = vmatprep.subr.bf16.mxu0 %v5555_v41 }
 0x10d   : > { %3257 = vmatpush1.bf16.msra.mxu0 %v5557_v21 }
 0x10e   : > { %1319 = vmatmul.mubr.bf16.gmra.mrb[44].mxu1 %v6582_v47  ;;  %3419 = vmatprep.subr.bf16.mxu0 %v5560_v46 }
 0x10f   : > { %1328 = vmatprep.mubr.bf16.mxu1 %v6587_v51 }
 0x116   : > { %1329 = vmatmul.mubr.bf16.gmra.mrb[48].mxu1 %v6602_v20 }
 0x117   : > { %1338 = vmatprep.mubr.bf16.mxu1 %v6607_v22 }
 0x11e   : > { %1339 = vmatmul.mubr.bf16.gmra.mrb[52].mxu1 %v6622_v58 }
 0x11f   : > { %1348 = vmatprep.mubr.bf16.mxu1 %v6627_v10 }
 0x126   : > { %1349 = vmatmul.mubr.bf16.gmra.mrb[56].mxu1 %v6642_v49 }
 0x127   : > { %1358 = vmatprep.mubr.bf16.mxu1 %v6647_v43 }
 0x12e   : > { %1359 = vmatmul.mubr.bf16.gmra.mrb[60].mxu1 %v6655_v29 }
 0x12f   : > { %1401 = vmatprep.mubr.bf16.mxu1 %v6327_v16  ;;  %v676_v16 = vlaneseq }
 0x136   : > { %1402 = vmatmul.mubr.bf16.vlgmr.msra.gmra.mrb[64].mxu1 %v6359_v40  ;;  %v6679_v40 = vshrl.u32 %v676_v16, 7 }
 0x137   : > { %1411 = vmatprep.mubr.bf16.mxu1 %v6364_v42 }
 0x138   : > { %v6683_v42 = vsub.s32 0, %v6679_v40 }
 0x13a   : > { %9505 = vst [vmem:[#allocation37_spill] sm:$0xff] %v6683_v42 }
 0x13e   : > { %1412 = vmatmul.mubr.bf16.gmra.mrb[68].mxu1 %v6379_v48  ;;  %v674_v48 = vld [vmem:[%s6232_s19] sm:$0xf] }
 0x13f   : > { %1421 = vmatprep.mubr.bf16.mxu1 %v6384_v50  ;;  %v6687_v50 = vsub.s32 1, %v6679_v40 }
 0x141   : > { %9506 = vst [vmem:[#allocation38_spill] sm:$0xff] %v6687_v50 }
 0x146   : > { %1422 = vmatmul.mubr.bf16.gmra.mrb[72].mxu1 %v6398_v55  ;;  %v6691_v55 = vrot.slane %v674_v48, %v6683_v42 }
 0x147   : > { %1431 = vmatprep.mubr.bf16.mxu1 %v6402_v56  ;;  %v6694_v56 = vrot.slane %v674_v48, %v6687_v50 }
 0x14e   : > { %1432 = vmatmul.mubr.bf16.gmra.mrb[76].mxu1 %v6418_v63 }
 0x14f   : > { %1441 = vmatprep.mubr.bf16.mxu1 %v6422_v0 }
 0x156   : > { %1442 = vmatmul.mubr.bf16.gmra.mrb[80].mxu1 %v6438_v7 }
 0x157   : > { %1451 = vmatprep.mubr.bf16.mxu1 %v6442_v8 }
 0x15e   : > { %1452 = vmatmul.mubr.bf16.gmra.mrb[84].mxu1 %v6458_v18 }
 0x15f   : > { %1461 = vmatprep.mubr.bf16.mxu1 %v6462_v19 }
 0x166   : > { %1462 = vmatmul.mubr.bf16.gmra.mrb[88].mxu1 %v6478_v26 }
 0x167   : > { %1471 = vmatprep.mubr.bf16.mxu1 %v6482_v27 }
 0x16e   : > { %1472 = vmatmul.mubr.bf16.gmra.mrb[92].mxu1 %v6500_v36 }
 0x16f   : > { %1481 = vmatprep.mubr.bf16.mxu1 %v6504_v39 }
 0x176   : > { %1482 = vmatmul.mubr.bf16.gmra.mrb[96].mxu1 %v6523_v59 }
 0x177   : > { %1491 = vmatprep.mubr.bf16.mxu1 %v6527_v62 }
 0x17e   : > { %1492 = vmatmul.mubr.bf16.gmra.mrb[100].mxu1 %v6543_v11 }
 0x17f   : > { %1501 = vmatprep.mubr.bf16.mxu1 %v6547_v17 }
 0x186   : > { %1502 = vmatmul.mubr.bf16.gmra.mrb[104].mxu1 %v6563_v30 }
 0x187   : > { %1511 = vmatprep.mubr.bf16.mxu1 %v6567_v31 }
 0x189   : > { %v1210_v63 = vpop.f32.mrb[0].mxu1 }
 0x18a   : > { %v6698_v0 = vadd.f32 %v1210_v63, %v6691_v55  ;;  %v1212_v7 = vpop.f32.mrb[1].mxu1 }
 0x18b   : > { %v1213_v8 = vadd.f32 %v1212_v7, %v6694_v56  ;;  %v1214_v18 = vpop.f32.mrb[2].mxu1 }
 0x18c   : > { %v1690_v19 = vmul.f32 0.044715, %v6698_v0  ;;  %v6703_v26 = vadd.f32 %v1214_v18, %v6691_v55  ;;  %v1216_v27 = vpop.f32.mrb[3].mxu1 }
 0x18d   : > { %v1691_v36 = vmul.f32 0.044715, %v1213_v8  ;;  %v6706_v39 = vadd.f32 %v1216_v27, %v6694_v56 }
 0x18e   : > { %v1818_v59 = vmul.f32 %v1690_v19, %v6698_v0  ;;  %v1694_v62 = vmul.f32 0.044715, %v6703_v26  ;;  %1512 = vmatmul.mubr.bf16.gmra.mrb[108].mxu1 %v6582_v47 }
 0x18f   : > { %v1695_v11 = vmul.f32 0.044715, %v6706_v39  ;;  %1521 = vmatprep.mubr.bf16.mxu1 %v6587_v51  ;;  %v1819_v17 = vmul.f32 %v1691_v36, %v1213_v8 }
 0x190   : > { %v1946_v30 = vmul.f32 %v1818_v59, %v6698_v0  ;;  %v1822_v31 = vmul.f32 %v1694_v62, %v6703_v26 }
 0x191   : > { %v1220_v41 = vpop.f32.mrb[4].mxu1  ;;  %v1823_v2 = vmul.f32 %v1695_v11, %v6706_v39  ;;  %v1947_v46 = vmul.f32 %v1819_v17, %v1213_v8 }
 0x192   : > { %v1950_v1 = vmul.f32 %v1822_v31, %v6703_v26  ;;  %v6718_v21 = vadd.f32 %v1220_v41, %v6691_v55  ;;  %v1222_v16 = vpop.f32.mrb[5].mxu1  ;;  %v2074_v47 = vadd.f32 %v1946_v30, %v6698_v0 }
 0x193   : > { %v1223_v48 = vadd.f32 %v1222_v16, %v6694_v56  ;;  %v1224_v51 = vpop.f32.mrb[6].mxu1  ;;  %v1951_v63 = vmul.f32 %v1823_v2, %v6706_v39  ;;  %v2075_v7 = vadd.f32 %v1947_v46, %v1213_v8 }
 0x194   : > { %v1698_v18 = vmul.f32 0.044715, %v6718_v21  ;;  %v6725_v19 = vadd.f32 %v1224_v51, %v6691_v55  ;;  %v1226_v27 = vpop.f32.mrb[7].mxu1  ;;  %v2078_v36 = vadd.f32 %v1950_v1, %v6703_v26  ;;  %v2202_v59 = vmul.f32 0.7978846, %v2074_v47 }
 0x195   : > { %v1699_v62 = vmul.f32 0.044715, %v1223_v48  ;;  %v1227_v11 = vadd.f32 %v1226_v27, %v6694_v56  ;;  %v2079_v17 = vadd.f32 %v1951_v63, %v6706_v39  ;;  %v2203_v30 = vmul.f32 0.7978846, %v2075_v7 }
 0x196   : > { %v1826_v31 = vmul.f32 %v1698_v18, %v6718_v21  ;;  %v1702_v41 = vmul.f32 0.044715, %v6725_v19  ;;  %1522 = vmatmul.mubr.bf16.gmra.mrb[112].mxu1 %v6602_v20  ;;  %v2206_v2 = vmul.f32 0.7978846, %v2078_v36  ;;  %5606 = vtanh.f32 %v2202_v59 }
 0x197   : > { %v1827_v46 = vmul.f32 %v1699_v62, %v1223_v48  ;;  %v1703_v16 = vmul.f32 0.044715, %v1227_v11  ;;  %1531 = vmatprep.mubr.bf16.mxu1 %v6607_v22  ;;  %v2207_v1 = vmul.f32 0.7978846, %v2079_v17  ;;  %5608 = vtanh.f32 %v2203_v30 }
 0x198   : > { %v1954_v47 = vmul.f32 %v1826_v31, %v6718_v21  ;;  %v1830_v51 = vmul.f32 %v1702_v41, %v6725_v19  ;;  %5610 = vtanh.f32 %v2206_v2  ;;  %v1563_v2 = vmul.f32 0.5, %v1213_v8 }
 0x199   : > { %v1955_v63 = vmul.f32 %v1827_v46, %v1223_v48  ;;  %v1831_v7 = vmul.f32 %v1703_v16, %v1227_v11  ;;  %v1230_v18 = vpop.f32.mrb[8].mxu1  ;;  %5612 = vtanh.f32 %v2207_v1  ;;  %v1562_v46 = vmul.f32 0.5, %v6698_v0 }
 0x19a   : > { %v1958_v27 = vmul.f32 %v1830_v51, %v6725_v19  ;;  %v6738_v20 = vadd.f32 %v1230_v18, %v6691_v55  ;;  %v1232_v36 = vpop.f32.mrb[9].mxu1  ;;  %v2082_v30 = vadd.f32 %v1954_v47, %v6718_v21  ;;  %v6765_v35 = vmul.f32 0.5, %v1227_v11 }
 0x19b   : > { %v1959_v59 = vmul.f32 %v1831_v7, %v1227_v11  ;;  %v6741_v22 = vadd.f32 %v1232_v36, %v6694_v56  ;;  %v1234_v62 = vpop.f32.mrb[10].mxu1  ;;  %v2083_v17 = vadd.f32 %v1955_v63, %v1223_v48 }
 0x19c   : > { %v6745_v31 = vadd.f32 %v1234_v62, %v6691_v55  ;;  %v1236_v41 = vpop.f32.mrb[11].mxu1  ;;  %v2086_v16 = vadd.f32 %v1958_v27, %v6725_v19  ;;  %v1706_v63 = vmul.f32 0.044715, %v6738_v20  ;;  %v2210_v47 = vmul.f32 0.7978846, %v2082_v30 }
 0x19d   : > { %v1707_v1 = vmul.f32 0.044715, %v6741_v22  ;;  %v6751_v51 = vadd.f32 %v1236_v41, %v6694_v56  ;;  %v2087_v7 = vadd.f32 %v1959_v59, %v1227_v11  ;;  %v2211_v18 = vmul.f32 0.7978846, %v2083_v17 }
 0x19e   : > { %1532 = vmatmul.mubr.bf16.gmra.mrb[116].mxu1 %v6622_v58  ;;  %v2214_v36 = vmul.f32 0.7978846, %v2086_v16  ;;  %v1567_v41 = vmul.f32 0.5, %v6706_v39  ;;  %v1566_v59 = vmul.f32 0.5, %v6703_v26  ;;  %v6760_v17 = vmul.f32 0.5, %v1223_v48 }
 0x19f   : > { %v1835_v62 = vmul.f32 %v1707_v1, %v6741_v22  ;;  %v1711_v8 = vmul.f32 0.044715, %v6751_v51  ;;  %1541 = vmatprep.mubr.bf16.mxu1 %v6627_v10  ;;  %v2215_v0 = vmul.f32 0.7978846, %v2087_v7  ;;  %5614 = vtanh.f32 %v2211_v18 }
 0x1a0   : > { %v5607_v27 = vpop.eup %5606  ;;  %5616 = vtanh.f32 %v2210_v47  ;;  %v1710_v58 = vmul.f32 0.044715, %v6745_v31  ;;  %v1834_v39 = vmul.f32 %v1706_v63, %v6738_v20  ;;  %v1574_v11 = vmul.f32 0.5, %v6725_v19 }
 0x1a1   : > { %v5609_v3 = vpop.eup %5608  ;;  %v1839_v30 = vmul.f32 %v1711_v8, %v6751_v51  ;;  %v1240_v16 = vpop.f32.mrb[12].mxu1  ;;  %v2458_v1 = vadd.f32 1.0, %v5607_v27  ;;  %5618 = vtanh.f32 %v2215_v0  ;;  %v1963_v10 = vmul.f32 %v1835_v62, %v6741_v22 }
 0x1a2   : > { %v5611_v32 = vpop.eup %5610  ;;  %v1242_v7 = vpop.f32.mrb[13].mxu1  ;;  %v2459_v18 = vadd.f32 1.0, %v5609_v3  ;;  %5620 = vtanh.f32 %v2214_v36  ;;  %v6770_v47 = vadd.f32 %v1240_v16, %v6691_v55  ;;  %v1570_v3 = vmul.f32 0.5, %v6718_v21 }
 0x1a3   : > { %v5613_v26 = vpop.eup %5612  ;;  %v1967_v48 = vmul.f32 %v1839_v30, %v6751_v51  ;;  %v1244_v8 = vpop.f32.mrb[14].mxu1  ;;  %v2462_v28 = vadd.f32 1.0, %v5611_v32  ;;  %v6773_v0 = vadd.f32 %v1242_v7, %v6694_v56  ;;  %v1838_v36 = vmul.f32 %v1710_v58, %v6745_v31 }
 0x1a4   : > { %v1246_v27 = vpop.f32.mrb[15].mxu1  ;;  %v2463_v62 = vadd.f32 1.0, %v5613_v26  ;;  %v2586_v30 = vmul.f32 %v2458_v1, %v1562_v46  ;;  %v2587_v32 = vmul.f32 %v2459_v18, %v1563_v2  ;;  %v2091_v7 = vadd.f32 %v1963_v10, %v6741_v22 }
 0x1a5   : > { %v6779_v63 = vadd.f32 %v1246_v27, %v6694_v56  ;;  %v2590_v16 = vmul.f32 %v2462_v28, %v1566_v59  ;;  %v6784_v26 = vmul.f32 0.5, %v6738_v20  ;;  %v1962_v21 = vmul.f32 %v1834_v39, %v6738_v20  ;;  %v5563_v39 = vld [vmem:[%s6237_s9 + $0x114] ss:$8 sps:$4 sm:$0xff]  }
 0x1a6   : > { %1542 = vmatmul.mubr.bf16.gmra.mrb[120].mxu1 %v6642_v49  ;;  %v2591_v25 = vmul.f32 %v2463_v62, %v1567_v41  ;;  %v1714_v19 = vmul.f32 0.044715, %v6770_v47  ;;  %v2095_v28 = vadd.f32 %v1967_v48, %v6751_v51  ;;  %v1715_v49 = vmul.f32 0.044715, %v6773_v0 }
 0x1a7   : > { %v2778_v58 = vpack.c.bf16 %v2590_v16, %v2586_v30  ;;  %1551 = vmatprep.mubr.bf16.mxu1 %v6647_v43  ;;  %v1719_v2 = vmul.f32 0.044715, %v6779_v63  ;;  %v2219_v41 = vmul.f32 0.7978846, %v2091_v7  ;;  %v1966_v1 = vmul.f32 %v1838_v36, %v6745_v31 }
 0x1a8   : > { %v2779_v46 = vpack.c.bf16 %v2591_v25, %v2587_v32  ;;  %v6795_v10 = vadd.f32 %v1244_v8, %v6691_v55  ;;  %v6799_v27 = vmul.f32 0.5, %v6741_v22  ;;  %v2223_v43 = vmul.f32 0.7978846, %v2095_v28 }
 0x1a9   : > { %v5615_v59 = vpop.eup %5614  ;;  %v1250_v18 = vpop.f32.mrb[16].mxu1  ;;  %v6805_v16 = vmul.f32 0.5, %v6751_v51  ;;  %5622 = vtanh.f32 %v2219_v41  ;;  %v1842_v36 = vmul.f32 %v1714_v19, %v6770_v47  ;;  %v5566_v19 = vld [vmem:[%s6237_s9 + $0x124] ss:$8 sps:$4 sm:$0xff]  }
 0x1aa   : > { %v5617_v62 = vpop.eup %5616  ;;  %v6802_v48 = vadd.f32 %v1250_v18, %v6691_v55  ;;  %v1252_v30 = vpop.f32.mrb[17].mxu1  ;;  %3258 = vmatprep.mubr.bf16.mxu0 %v2779_v46  ;;  %v2467_v25 = vadd.f32 1.0, %v5615_v59  ;;  %5624 = vtanh.f32 %v2223_v43  ;;  %v1843_v46 = vmul.f32 %v1715_v49, %v6773_v0 }
 0x1ab   : > { %v5619_v8 = vpop.eup %5618  ;;  %v6809_v22 = vadd.f32 %v1252_v30, %v6694_v56  ;;  %v1254_v32 = vpop.f32.mrb[18].mxu1  ;;  %3259 = vmatmul.mubr.bf16.vlgmr.msra.gmra.mrb[0].mxu0 %v2778_v58  ;;  %v2466_v7 = vadd.f32 1.0, %v5617_v62  ;;  %v1847_v59 = vmul.f32 %v1719_v2, %v6779_v63  ;;  %v1718_v30 = vmul.f32 0.044715, %v6795_v10 }
 0x1ac   : > { %v5621_v28 = vpop.eup %5620  ;;  %v6814_v51 = vadd.f32 %v1254_v32, %v6691_v55  ;;  %v1256_v41 = vpop.f32.mrb[19].mxu1  ;;  %3420 = vmatpush1.bf16.msra.mxu0 %v5558_v9  ;;  %v2471_v18 = vadd.f32 1.0, %v5619_v8  ;;  %v1722_v57 = vmul.f32 0.044715, %v6802_v48  ;;  %v2595_v9 = vmul.f32 %v2467_v25, %v6760_v17 }
 0x1ad   : > { %v6821_v58 = vadd.f32 %v1256_v41, %v6694_v56  ;;  %v2470_v43 = vadd.f32 1.0, %v5621_v28  ;;  %3421 = vmatprep.subr.bf16.mxu0 %v5563_v39  ;;  %v1723_v49 = vmul.f32 0.044715, %v6809_v22  ;;  %v2090_v62 = vadd.f32 %v1962_v21, %v6738_v20 }
 0x1ae   : > { %1552 = vmatmul.mubr.bf16.gmra.mrb[124].mxu1 %v6655_v29  ;;  %v2599_v2 = vmul.f32 %v2471_v18, %v6765_v35  ;;  %v1726_v8 = vmul.f32 0.044715, %v6814_v51  ;;  %v2594_v32 = vmul.f32 %v2466_v7, %v1570_v3  ;;  %v2094_v41 = vadd.f32 %v1966_v1, %v6745_v31  ;;  %v5564_v29 = vld [vmem:[%s6237_s9 + $0x120] ss:$8 sps:$4 sm:$0xff]  }
 0x1af   : > { %v2598_v54 = vmul.f32 %v2470_v43, %v1574_v11  ;;  %v1971_v28 = vmul.f32 %v1843_v46, %v6773_v0  ;;  %v1975_v39 = vmul.f32 %v1847_v59, %v6779_v63  ;;  %v2218_v33 = vmul.f32 0.7978846, %v2090_v62 }
 0x1b0   : > { %v2783_v34 = vpack.c.bf16 %v2599_v2, %v2595_v9  ;;  %3422 = vmatpush1.bf16.msra.mxu0 %v5561_v6  ;;  %v1846_v17 = vmul.f32 %v1718_v30, %v6795_v10  ;;  %v1727_v35 = vmul.f32 0.044715, %v6821_v58  ;;  %v2222_v25 = vmul.f32 0.7978846, %v2094_v41  ;;  %v5567_v30 = vld [vmem:[%s6237_s9 + $0x130] ss:$8 sps:$4 sm:$0xff]  }
 0x1b1   : > { %v1260_v20 = vpop.f32.mrb[20].mxu1  ;;  %v2782_v21 = vpack.c.bf16 %v2598_v54, %v2594_v32  ;;  %3423 = vmatprep.subr.bf16.mxu0 %v5566_v19  ;;  %v1970_v3 = vmul.f32 %v1842_v36, %v6770_v47  ;;  %v1850_v11 = vmul.f32 %v1722_v57, %v6802_v48  ;;  %5626 = vtanh.f32 %v2218_v33 }
 0x1b2   : > { %v6839_v1 = vadd.f32 %v1260_v20, %v6691_v55  ;;  %v1262_v7 = vpop.f32.mrb[21].mxu1  ;;  %3268 = vmatprep.mubr.bf16.mxu0 %v2783_v34  ;;  %v1851_v6 = vmul.f32 %v1723_v49, %v6809_v22  ;;  %v1854_v46 = vmul.f32 %v1726_v8, %v6814_v51  ;;  %5628 = vtanh.f32 %v2222_v25  ;;  %v5572_v8 = vld [vmem:[%s6237_s9 + $0x144] ss:$8 sps:$4 sm:$0xff]   ;;  %v5570_v25 = vld [vmem:[%s6237_s9 + $0x140] ss:$8 sps:$4 sm:$0xff]  }
 0x1b3   : > { %v6844_v59 = vadd.f32 %v1262_v7, %v6694_v56  ;;  %v1264_v54 = vpop.f32.mrb[22].mxu1  ;;  %3269 = vmatmul.mubr.bf16.gmra.mrb[4].mxu0 %v2782_v21  ;;  %v5623_v36 = vpop.eup %5622  ;;  %v6850_v19 = vmul.f32 0.5, %v6745_v31  ;;  %v2099_v33 = vadd.f32 %v1971_v28, %v6773_v0  ;;  %v2103_v34 = vadd.f32 %v1975_v39, %v6779_v63 }
 0x1b4   : > { %v6847_v57 = vadd.f32 %v1264_v54, %v6691_v55  ;;  %v1266_v18 = vpop.f32.mrb[23].mxu1  ;;  %3424 = vmatpush1.bf16.msra.mxu0 %v5564_v29  ;;  %v5625_v43 = vpop.eup %5624  ;;  %v1974_v49 = vmul.f32 %v1846_v17, %v6795_v10  ;;  %v1855_v9 = vmul.f32 %v1727_v35, %v6821_v58  ;;  %v2475_v62 = vadd.f32 1.0, %v5623_v36  ;;  %v5575_v54 = vld [vmem:[%s6237_s9 + $0x154] ss:$8 sps:$4 sm:$0xff]  }
 0x1b5   : > { %v6858_v2 = vadd.f32 %v1266_v18, %v6694_v56  ;;  %3425 = vmatprep.subr.bf16.mxu0 %v5569_v24  ;;  %v6862_v31 = vmul.f32 %v1850_v11, %v6802_v48  ;;  %v1730_v32 = vmul.f32 0.044715, %v6839_v1  ;;  %v2479_v41 = vadd.f32 1.0, %v5625_v43 }
 0x1b6   : > { %v2227_v28 = vmul.f32 0.7978846, %v2099_v33  ;;  %v1979_v39 = vmul.f32 %v1851_v6, %v6809_v22  ;;  %v6867_v29 = vmul.f32 %v1854_v46, %v6814_v51  ;;  %v1731_v17 = vmul.f32 0.044715, %v6844_v59 }
 0x1b7   : > { %v2231_v35 = vmul.f32 0.7978846, %v2103_v34  ;;  %v1734_v20 = vmul.f32 0.044715, %v6847_v57  ;;  %v2603_v24 = vmul.f32 %v2475_v62, %v6799_v27  ;;  %v2607_v21 = vmul.f32 %v2479_v41, %v6805_v16 }
 0x1b8   : > { %5630 = vtanh.f32 %v2227_v28  ;;  %3426 = vmatpush1.bf16.msra.mxu0 %v5567_v30  ;;  %v1983_v11 = vmul.f32 %v1855_v9, %v6821_v58  ;;  %v1735_v7 = vmul.f32 0.044715, %v6858_v2  ;;  %v6877_v46 = vmul.f32 0.5, %v6773_v0 }
 0x1b9   : > { %v1270_v6 = vpop.f32.mrb[24].mxu1  ;;  %5632 = vtanh.f32 %v2231_v35  ;;  %3427 = vmatprep.subr.bf16.mxu0 %v5572_v8  ;;  %v1858_v36 = vmul.f32 %v1730_v32, %v6839_v1  ;;  %v2787_v18 = vpack.c.bf16 %v2607_v21, %v2603_v24  ;;  %v2098_v33 = vadd.f32 %v1970_v3, %v6770_v47 }
 0x1ba   : > { %v6882_v27 = vadd.f32 %v1270_v6, %v6691_v55  ;;  %v1272_v16 = vpop.f32.mrb[25].mxu1  ;;  %v1859_v34 = vmul.f32 %v1731_v17, %v6844_v59  ;;  %v6890_v43 = vmul.f32 0.5, %v6779_v63  ;;  %v2102_v9 = vadd.f32 %v1974_v49, %v6795_v10  ;;  %v5573_v17 = vld [vmem:[%s6237_s9 + $0x150] ss:$8 sps:$4 sm:$0xff]  }
 0x1bb   : > { %v6887_v30 = vadd.f32 %v1272_v16, %v6694_v56  ;;  %v1274_v0 = vpop.f32.mrb[26].mxu1  ;;  %v5627_v62 = vpop.eup %5626  ;;  %v1862_v8 = vmul.f32 %v1734_v20, %v6847_v57  ;;  %3278 = vmatprep.mubr.bf16.mxu0 %v2787_v18  ;;  %v6898_v41 = vmul.f32 0.5, %v6770_v47  ;;  %v2226_v28 = vmul.f32 0.7978846, %v2098_v33  ;;  %v5578_v20 = vld [vmem:[%s6237_s9 + $0x164] ss:$8 sps:$4 sm:$0xff]  }
 0x1bc   : > { %v6895_v32 = vadd.f32 %v1274_v0, %v6691_v55  ;;  %v1276_v3 = vpop.f32.mrb[27].mxu1  ;;  %3428 = vmatpush1.bf16.msra.mxu0 %v5570_v25  ;;  %v5629_v35 = vpop.eup %5628  ;;  %v1863_v63 = vmul.f32 %v1735_v7, %v6858_v2  ;;  %v2474_v24 = vadd.f32 1.0, %v5627_v62  ;;  %v2230_v21 = vmul.f32 0.7978846, %v2102_v9 }
 0x1bd   : > { %v6903_v49 = vadd.f32 %v1276_v3, %v6694_v56  ;;  %3429 = vmatprep.subr.bf16.mxu0 %v5575_v54  ;;  %v6907_v6 = vmul.f32 %v1858_v36, %v6839_v1  ;;  %v1738_v16 = vmul.f32 0.044715, %v6882_v27  ;;  %v2478_v47 = vadd.f32 1.0, %v5629_v35 }
 0x1be   : > { %5634 = vtanh.f32 %v2226_v28  ;;  %v6911_v25 = vmul.f32 %v1859_v34, %v6844_v59  ;;  %v1739_v7 = vmul.f32 0.044715, %v6887_v30  ;;  %v1742_v18 = vmul.f32 0.044715, %v6895_v32  ;;  %v5576_v28 = vld [vmem:[%s6237_s9 + $0x160] ss:$8 sps:$4 sm:$0xff]  }
 0x1bf   : > { %5636 = vtanh.f32 %v2230_v21  ;;  %v2602_v33 = vmul.f32 %v2474_v24, %v6784_v26  ;;  %v2606_v54 = vmul.f32 %v2478_v47, %v6850_v19  ;;  %v1743_v36 = vmul.f32 0.044715, %v6903_v49  ;;  %v5581_v21 = vld [vmem:[%s6237_s9 + $0x174] ss:$8 sps:$4 sm:$0xff]  }
 0x1c0   : > { %v2107_v0 = vadd.f32 %v1979_v39, %v6809_v22  ;;  %3430 = vmatpush1.bf16.msra.mxu0 %v5573_v17  ;;  %v6920_v9 = vmul.f32 %v1862_v8, %v6847_v57  ;;  %v6923_v34 = vmul.f32 %v1863_v63, %v6858_v2  ;;  %v6926_v3 = vmul.f32 0.5, %v6795_v10 }
 0x1c1   : > { %v1280_v62 = vpop.f32.mrb[28].mxu1  ;;  %v2111_v26 = vadd.f32 %v1983_v11, %v6821_v58  ;;  %3431 = vmatprep.subr.bf16.mxu0 %v5578_v20  ;;  %v1866_v35 = vmul.f32 %v1738_v16, %v6882_v27  ;;  %v2786_v24 = vpack.c.bf16 %v2606_v54, %v2602_v33  ;;  %v1867_v47 = vmul.f32 %v1739_v7, %v6887_v30 }
 0x1c2   : > { %v5631_v19 = vpop.eup %5630  ;;  %v6932_v39 = vadd.f32 %v1280_v62, %v6691_v55  ;;  %v1282_v8 = vpop.f32.mrb[29].mxu1  ;;  %v2235_v17 = vmul.f32 0.7978846, %v2107_v0  ;;  %v1870_v13 = vmul.f32 %v1742_v18, %v6895_v32  ;;  %v1871_v16 = vmul.f32 %v1743_v36, %v6903_v49 }
 0x1c3   : > { %v5633_v63 = vpop.eup %5632  ;;  %v6937_v10 = vadd.f32 %v1282_v8, %v6694_v56  ;;  %v2483_v11 = vadd.f32 1.0, %v5631_v19  ;;  %v1284_v23 = vpop.f32.mrb[30].mxu1  ;;  %v2239_v20 = vmul.f32 0.7978846, %v2111_v26  ;;  %3279 = vmatmul.mubr.bf16.gmra.mrb[8].mxu0 %v2786_v24  ;;  %v6945_v7 = vmul.f32 0.5, %v6809_v22 }
 0x1c4   : > { %v2487_v33 = vadd.f32 1.0, %v5633_v63  ;;  %v1286_v54 = vpop.f32.mrb[31].mxu1  ;;  %5638 = vtanh.f32 %v2235_v17  ;;  %v6942_v0 = vadd.f32 %v1284_v23, %v6691_v55  ;;  %v6948_v62 = vmul.f32 0.5, %v6821_v58  ;;  %3432 = vmatpush1.bf16.msra.mxu0 %v5576_v28  ;;  %v5579_v26 = vld [vmem:[%s6237_s9 + $0x170] ss:$8 sps:$4 sm:$0xff]  }
 0x1c5   : > { %5640 = vtanh.f32 %v2239_v20  ;;  %v6952_v18 = vmul.f32 %v1866_v35, %v6882_v27  ;;  %v1746_v36 = vmul.f32 0.044715, %v6932_v39  ;;  %v2611_v19 = vmul.f32 %v2483_v11, %v6877_v46  ;;  %3433 = vmatprep.subr.bf16.mxu0 %v5581_v21  ;;  %v5584_v24 = vld [vmem:[%s6237_s9 + $0x184] ss:$8 sps:$4 sm:$0xff]   ;;  %v5582_v63 = vld [vmem:[%s6237_s9 + $0x180] ss:$8 sps:$4 sm:$0xff]  }
 0x1c6   : > { %v2615_v23 = vmul.f32 %v2487_v33, %v6890_v43  ;;  %v6959_v22 = vmul.f32 %v1867_v47, %v6887_v30  ;;  %v1747_v58 = vmul.f32 0.044715, %v6937_v10  ;;  %v2106_v28 = vadd.f32 %v6862_v31, %v6802_v48 }
 0x1c7   : > { %v2110_v35 = vadd.f32 %v6867_v29, %v6814_v51  ;;  %v6967_v17 = vmul.f32 %v1870_v13, %v6895_v32  ;;  %v6970_v46 = vmul.f32 %v1871_v16, %v6903_v49  ;;  %v6973_v21 = vmul.f32 0.5, %v6802_v48 }
 0x1c8   : > { %v5635_v8 = vpop.eup %5634  ;;  %v2791_v43 = vpack.c.bf16 %v2615_v23, %v2611_v19  ;;  %v1750_v11 = vmul.f32 0.044715, %v6942_v0  ;;  %v6978_v20 = vadd.f32 %v1286_v54, %v6694_v56  ;;  %v2234_v33 = vmul.f32 0.7978846, %v2106_v28  ;;  %3434 = vmatpush1.bf16.msra.mxu0 %v5579_v26 }
 0x1c9   : > { %v5637_v47 = vpop.eup %5636  ;;  %v2482_v31 = vadd.f32 1.0, %v5635_v8  ;;  %v1290_v29 = vpop.f32.mrb[32].mxu1  ;;  %v1874_v13 = vmul.f32 %v1746_v36, %v6932_v39  ;;  %v2238_v23 = vmul.f32 0.7978846, %v2110_v35  ;;  %3435 = vmatprep.subr.bf16.mxu0 %v5584_v24  ;;  %v1875_v8 = vmul.f32 %v1747_v58, %v6937_v10 }
 0x1ca   : > { %3288 = vmatprep.mubr.bf16.mxu0 %v2791_v43  ;;  %v2486_v16 = vadd.f32 1.0, %v5637_v47  ;;  %v6982_v19 = vadd.f32 %v1290_v29, %v6691_v55  ;;  %v1292_v48 = vpop.f32.mrb[33].mxu1  ;;  %v6990_v26 = vmul.f32 0.5, %v6814_v51  ;;  %5642 = vtanh.f32 %v2234_v33 }
 0x1cb   : > { %v6987_v54 = vadd.f32 %v1292_v48, %v6694_v56  ;;  %v1294_v5 = vpop.f32.mrb[34].mxu1  ;;  %v2610_v36 = vmul.f32 %v2482_v31, %v6898_v41  ;;  %5644 = vtanh.f32 %v2238_v23  ;;  %v1878_v58 = vmul.f32 %v1750_v11, %v6942_v0  ;;  %v5585_v41 = vld [vmem:[%s6237_s9 + $0x190] ss:$8 sps:$4 sm:$0xff]   ;;  %v5590_v11 = vld [vmem:[%s6237_s9 + $0x1a4] ss:$8 sps:$4 sm:$0xff]  }
 0x1cc   : > { %v2614_v28 = vmul.f32 %v2486_v16, %v6926_v3  ;;  %v6995_v35 = vadd.f32 %v1294_v5, %v6691_v55  ;;  %v1296_v24 = vpop.f32.mrb[35].mxu1  ;;  %v1751_v43 = vmul.f32 0.044715, %v6978_v20  ;;  %v2115_v51 = vadd.f32 %v6911_v25, %v6844_v59  ;;  %3436 = vmatpush1.bf16.msra.mxu0 %v5582_v63 }
 0x1cd   : > { %v7000_v47 = vadd.f32 %v1296_v24, %v6694_v56  ;;  %v1754_v29 = vmul.f32 0.044715, %v6982_v19  ;;  %v1755_v5 = vmul.f32 0.044715, %v6987_v54  ;;  %v2119_v33 = vadd.f32 %v6923_v34, %v6858_v2  ;;  %3437 = vmatprep.subr.bf16.mxu0 %v5587_v12 }
 0x1ce   : > { %v5639_v31 = vpop.eup %5638  ;;  %v2790_v3 = vpack.c.bf16 %v2614_v28, %v2610_v36  ;;  %v7011_v48 = vmul.f32 %v1874_v13, %v6932_v39  ;;  %v1758_v25 = vmul.f32 0.044715, %v6995_v35  ;;  %v2243_v63 = vmul.f32 0.7978846, %v2115_v51  ;;  %v5588_v51 = vld [vmem:[%s6237_s9 + $0x1a0] ss:$8 sps:$4 sm:$0xff]  }
 0x1cf   : > { %v5641_v16 = vpop.eup %5640  ;;  %v2491_v23 = vadd.f32 1.0, %v5639_v31  ;;  %v1759_v28 = vmul.f32 0.044715, %v7000_v47  ;;  %v7016_v24 = vmul.f32 0.5, %v6844_v59  ;;  %v2247_v34 = vmul.f32 0.7978846, %v2119_v33 }
 0x1d0   : > { %3289 = vmatmul.mubr.bf16.gmra.mrb[12].mxu0 %v2790_v3  ;;  %v2495_v36 = vadd.f32 1.0, %v5641_v16  ;;  %v7019_v12 = vmul.f32 %v1875_v8, %v6937_v10  ;;  %v7022_v4 = vmul.f32 %v1878_v58, %v6942_v0  ;;  %v1879_v13 = vmul.f32 %v1751_v43, %v6978_v20  ;;  %v5593_v8 = vld [vmem:[%s6237_s9 + $0x1b4] ss:$8 sps:$4 sm:$0xff]  }
 0x1d1   : > { %v1300_v31 = vpop.f32.mrb[36].mxu1  ;;  %5646 = vtanh.f32 %v2243_v63  ;;  %3438 = vmatpush1.bf16.msra.mxu0 %v5585_v41  ;;  %v2619_v3 = vmul.f32 %v2491_v23, %v6945_v7  ;;  %v1882_v58 = vmul.f32 %v1754_v29, %v6982_v19  ;;  %v1883_v43 = vmul.f32 %v1755_v5, %v6987_v54 }
 0x1d2   : > { %v2623_v16 = vmul.f32 %v2495_v36, %v6948_v62  ;;  %v7029_v59 = vadd.f32 %v1300_v31, %v6691_v55  ;;  %v1302_v33 = vpop.f32.mrb[37].mxu1  ;;  %5648 = vtanh.f32 %v2247_v34  ;;  %3439 = vmatprep.subr.bf16.mxu0 %v5590_v11  ;;  %v1886_v41 = vmul.f32 %v1758_v25, %v6995_v35 }
 0x1d3   : > { %v7036_v63 = vadd.f32 %v1302_v33, %v6694_v56  ;;  %v1304_v7 = vpop.f32.mrb[38].mxu1  ;;  %v1887_v23 = vmul.f32 %v1759_v28, %v7000_v47  ;;  %v2114_v11 = vadd.f32 %v6907_v6, %v6839_v1  ;;  %v7045_v5 = vmul.f32 %v1879_v13, %v6978_v20  ;;  %v5591_v28 = vld [vmem:[%s6237_s9 + $0x1b0] ss:$8 sps:$4 sm:$0xff]  }
 0x1d4   : > { %v2795_v62 = vpack.c.bf16 %v2623_v16, %v2619_v3  ;;  %v7040_v36 = vadd.f32 %v1304_v7, %v6691_v55  ;;  %v1306_v29 = vpop.f32.mrb[39].mxu1  ;;  %v5643_v34 = vpop.eup %5642  ;;  %v1762_v25 = vmul.f32 0.044715, %v7029_v59  ;;  %v2118_v31 = vadd.f32 %v6920_v9, %v6847_v57  ;;  %v5596_v16 = vld [vmem:[%s6237_s9 + $0x1c4] ss:$8 sps:$4 sm:$0xff]  }
 0x1d5   : > { %v7051_v3 = vadd.f32 %v1306_v29, %v6694_v56  ;;  %3440 = vmatpush1.bf16.msra.mxu0 %v5588_v51  ;;  %v5645_v33 = vpop.eup %5644  ;;  %v2490_v7 = vadd.f32 1.0, %v5643_v34  ;;  %v1763_v6 = vmul.f32 0.044715, %v7036_v63  ;;  %v1607_v61 = vmul.f32 0.5, %v6858_v2 }
 0x1d6   : > { %3298 = vmatprep.mubr.bf16.mxu0 %v2795_v62  ;;  %v2242_v13 = vmul.f32 0.7978846, %v2114_v11  ;;  %3441 = vmatprep.subr.bf16.mxu0 %v5593_v8  ;;  %v7058_v60 = vmul.f32 %v1882_v58, %v6982_v19  ;;  %v7061_v9 = vmul.f32 %v1883_v43, %v6987_v54  ;;  %v2494_v29 = vadd.f32 1.0, %v5645_v33 }
 0x1d7   : > { %v2246_v53 = vmul.f32 0.7978846, %v2118_v31  ;;  %v7064_v51 = vmul.f32 %v1886_v41, %v6995_v35  ;;  %v7067_v62 = vmul.f32 %v1887_v23, %v7000_v47  ;;  %v1766_v34 = vmul.f32 0.044715, %v7040_v36 }
 0x1d8   : > { %5650 = vtanh.f32 %v2242_v13  ;;  %v2618_v2 = vmul.f32 %v2490_v7, %v6973_v21  ;;  %v2622_v8 = vmul.f32 %v2494_v29, %v6990_v26  ;;  %v1767_v58 = vmul.f32 0.044715, %v7051_v3  ;;  %v5594_v21 = vld [vmem:[%s6237_s9 + $0x1c0] ss:$8 sps:$4 sm:$0xff]   ;;  %v5599_v13 = vld [vmem:[%s6237_s9 + $0x1d4] ss:$8 sps:$4 sm:$0xff]  }
 0x1d9   : > { %5652 = vtanh.f32 %v2246_v53  ;;  %v1310_v43 = vpop.f32.mrb[40].mxu1  ;;  %3442 = vmatpush1.bf16.msra.mxu0 %v5591_v28  ;;  %v1890_v11 = vmul.f32 %v1762_v25, %v7029_v59  ;;  %v1891_v41 = vmul.f32 %v1763_v6, %v7036_v63  ;;  %v2123_v33 = vadd.f32 %v6959_v22, %v6887_v30 }
 0x1da   : > { %v7076_v23 = vadd.f32 %v1310_v43, %v6691_v55  ;;  %v1312_v31 = vpop.f32.mrb[41].mxu1  ;;  %3443 = vmatprep.subr.bf16.mxu0 %v5596_v16  ;;  %v2794_v53 = vpack.c.bf16 %v2622_v8, %v2618_v2  ;;  %v7082_v7 = vmul.f32 0.5, %v6839_v1  ;;  %v7085_v28 = vmul.f32 0.5, %v6847_v57 }
 0x1db   : > { %v5647_v26 = vpop.eup %5646  ;;  %v2127_v25 = vadd.f32 %v6970_v46, %v6903_v49  ;;  %v1314_v6 = vpop.f32.mrb[42].mxu1  ;;  %v1894_v22 = vmul.f32 %v1766_v34, %v7040_v36  ;;  %v7092_v16 = vadd.f32 %v1312_v31, %v6694_v56  ;;  %v2251_v2 = vmul.f32 0.7978846, %v2123_v33  ;;  %v5597_v31 = vld [vmem:[%s6237_s9 + $0x1d0] ss:$8 sps:$4 sm:$0xff]  }
 0x1dc   : > { %v5649_v29 = vpop.eup %5648  ;;  %v2499_v43 = vadd.f32 1.0, %v5647_v26  ;;  %v1316_v8 = vpop.f32.mrb[43].mxu1  ;;  %3299 = vmatmul.mubr.bf16.gmra.mrb[16].mxu0 %v2794_v53  ;;  %v1895_v57 = vmul.f32 %v1767_v58, %v7051_v3  ;;  %v7096_v52 = vmul.f32 0.5, %v6887_v30  ;;  %v7099_v45 = vmul.f32 %v1890_v11, %v7029_v59  ;;  %v5602_v58 = vld [vmem:[%s6237_s9 + $0x1e4] ss:$8 sps:$4 sm:$0xff]  }
 0x1dd   : > { %v2503_v1 = vadd.f32 1.0, %v5649_v29  ;;  %v2255_v46 = vmul.f32 0.7978846, %v2127_v25  ;;  %v7102_v26 = vmul.f32 %v1891_v41, %v7036_v63  ;;  %v1770_v34 = vmul.f32 0.044715, %v7076_v23  ;;  %3444 = vmatpush1.bf16.msra.mxu0 %v5594_v21 }
 0x1de   : > { %5654 = vtanh.f32 %v2251_v2  ;;  %v2627_v33 = vmul.f32 %v2499_v43, %v7016_v24  ;;  %v7108_v30 = vadd.f32 %v1314_v6, %v6691_v55  ;;  %3445 = vmatprep.subr.bf16.mxu0 %v5599_v13  ;;  %v7112_v11 = vmul.f32 %v1894_v22, %v7040_v36  ;;  %v5600_v43 = vld [vmem:[%s6237_s9 + $0x1e0] ss:$8 sps:$4 sm:$0xff]  }
 0x1df   : > { %v2631_v53 = vmul.f32 %v2503_v1, %v1607_v61  ;;  %5656 = vtanh.f32 %v2255_v46  ;;  %v1771_v41 = vmul.f32 0.044715, %v7092_v16  ;;  %v2122_v25 = vadd.f32 %v6952_v18, %v6882_v27 }
 0x1e0   : > { %v2126_v21 = vadd.f32 %v6967_v17, %v6895_v32  ;;  %v7120_v61 = vmul.f32 %v1895_v57, %v7051_v3  ;;  %v7123_v24 = vmul.f32 0.5, %v6903_v49  ;;  %v7126_v6 = vadd.f32 %v1316_v8, %v6694_v56 }
 0x1e1   : > { %v2799_v29 = vpack.c.bf16 %v2631_v53, %v2627_v33  ;;  %v1320_v13 = vpop.f32.mrb[44].mxu1  ;;  %v7130_v2 = vmul.f32 0.5, %v6882_v27  ;;  %v2250_v18 = vmul.f32 0.7978846, %v2122_v25  ;;  %3446 = vmatpush1.bf16.msra.mxu0 %v5597_v31  ;;  %v1898_v8 = vmul.f32 %v1770_v34, %v7076_v23  ;;  %v5605_v27 = vld [vmem:[%s6237_s9 + $0x1f4] ss:$8 sps:$4 sm:$0xff]  }
 0x1e2   : > { %v5651_v22 = vpop.eup %5650  ;;  %v2254_v1 = vmul.f32 0.7978846, %v2126_v21  ;;  %v7133_v17 = vadd.f32 %v1320_v13, %v6691_v55  ;;  %v1322_v57 = vpop.f32.mrb[45].mxu1  ;;  %v1774_v33 = vmul.f32 0.044715, %v7108_v30  ;;  %3447 = vmatprep.subr.bf16.mxu0 %v5602_v58  ;;  %v1899_v21 = vmul.f32 %v1771_v41, %v7092_v16 }
 0x1e3   : > { %v5653_v46 = vpop.eup %5652  ;;  %3308 = vmatprep.mubr.bf16.mxu0 %v2799_v29  ;;  %v2498_v49 = vadd.f32 1.0, %v5651_v22  ;;  %v7138_v53 = vadd.f32 %v1322_v57, %v6694_v56  ;;  %v1324_v44 = vpop.f32.mrb[46].mxu1  ;;  %5658 = vtanh.f32 %v2250_v18  ;;  %v2131_v31 = vadd.f32 %v7019_v12, %v6937_v10 }
 0x1e4   : > { %v2502_v25 = vadd.f32 1.0, %v5653_v46  ;;  %v1326_v29 = vpop.f32.mrb[47].mxu1  ;;  %v7145_v13 = vmul.f32 0.5, %v6895_v32  ;;  %5660 = vtanh.f32 %v2254_v1  ;;  %v1775_v34 = vmul.f32 0.044715, %v7126_v6 }
 0x1e5   : > { %v1778_v22 = vmul.f32 0.044715, %v7133_v17  ;;  %v2626_v58 = vmul.f32 %v2498_v49, %v7082_v7  ;;  %v2135_v41 = vadd.f32 %v7045_v5, %v6978_v20  ;;  %v2259_v18 = vmul.f32 0.7978846, %v2131_v31  ;;  %3448 = vmatpush1.bf16.msra.mxu0 %v5600_v43 }
 0x1e6   : > { %v2630_v57 = vmul.f32 %v2502_v25, %v7085_v28  ;;  %v7154_v12 = vmul.f32 %v1898_v8, %v7076_v23  ;;  %v1902_v32 = vmul.f32 %v1774_v33, %v7108_v30  ;;  %v1779_v1 = vmul.f32 0.044715, %v7138_v53  ;;  %3449 = vmatprep.subr.bf16.mxu0 %v5605_v27 }
 0x1e7   : > { %v7159_v46 = vadd.f32 %v1324_v44, %v6691_v55  ;;  %v7163_v28 = vmul.f32 %v1899_v21, %v7092_v16  ;;  %v2263_v5 = vmul.f32 0.7978846, %v2135_v41  ;;  %5662 = vtanh.f32 %v2259_v18 }
 0x1e8   : > { %v5655_v7 = vpop.eup %5654  ;;  %v2798_v49 = vpack.c.bf16 %v2630_v57, %v2626_v58  ;;  %v1903_v8 = vmul.f32 %v1775_v34, %v7126_v6  ;;  %v1906_v33 = vmul.f32 %v1778_v22, %v7133_v17  ;;  %v7168_v31 = vmul.f32 0.5, %v6937_v10 }
 0x1e9   : > { %v5657_v43 = vpop.eup %5656  ;;  %v2507_v25 = vadd.f32 1.0, %v5655_v7  ;;  %v1330_v44 = vpop.f32.mrb[48].mxu1  ;;  %5664 = vtanh.f32 %v2263_v5  ;;  %v2130_v27 = vadd.f32 %v7011_v48, %v6932_v39  ;;  %v2134_v21 = vadd.f32 %v7022_v4, %v6942_v0  ;;  %3450 = vmatpush1.bf16.msra.mxu0 %v5603_v38 }
 0x1ea   : > { %3309 = vmatmul.mubr.bf16.gmra.mrb[20].mxu0 %v2798_v49  ;;  %v2511_v15 = vadd.f32 1.0, %v5657_v43  ;;  %v1332_v58 = vpop.f32.mrb[49].mxu1  ;;  %v7175_v57 = vmul.f32 %v1902_v32, %v7108_v30  ;;  %v1907_v34 = vmul.f32 %v1779_v1, %v7138_v53  ;;  %v1782_v22 = vmul.f32 0.044715, %v7159_v46 }
 0x1eb   : > { %v7180_v10 = vadd.f32 %v1326_v29, %v6694_v56  ;;  %v1334_v41 = vpop.f32.mrb[50].mxu1  ;;  %v2635_v18 = vmul.f32 %v2507_v25, %v7096_v52  ;;  %v2258_v7 = vmul.f32 0.7978846, %v2130_v27  ;;  %v2262_v49 = vmul.f32 0.7978846, %v2134_v21 }
 0x1ec   : > { %v2639_v48 = vmul.f32 %v2511_v15, %v7123_v24  ;;  %v1336_v4 = vpop.f32.mrb[51].mxu1  ;;  %v7185_v5 = vmul.f32 %v1903_v8, %v7126_v6  ;;  %v1623_v32 = vmul.f32 0.5, %v6978_v20  ;;  %v7189_v1 = vadd.f32 %v1330_v44, %v6691_v55 }
 0x1ed   : > { %v7192_v29 = vadd.f32 %v1332_v58, %v6694_v56  ;;  %v5659_v43 = vpop.eup %5658  ;;  %v7195_v52 = vmul.f32 %v1906_v33, %v7133_v17  ;;  %v7198_v15 = vmul.f32 0.5, %v6932_v39  ;;  %5666 = vtanh.f32 %v2258_v7 }
 0x1ee   : > { %v2803_v38 = vpack.c.bf16 %v2639_v48, %v2635_v18  ;;  %v5661_v24 = vpop.eup %5660  ;;  %v2506_v25 = vadd.f32 1.0, %v5659_v43  ;;  %v1910_v8 = vmul.f32 %v1782_v22, %v7159_v46  ;;  %5668 = vtanh.f32 %v2262_v49 }
 0x1ef   : > { %v1783_v20 = vmul.f32 0.044715, %v7180_v10  ;;  %v2510_v44 = vadd.f32 1.0, %v5661_v24  ;;  %v7203_v27 = vmul.f32 %v1907_v34, %v7138_v53  ;;  %v2139_v33 = vadd.f32 %v7061_v9, %v6987_v54 }
 0x1f0   : > { %3318 = vmatprep.mubr.bf16.mxu0 %v2803_v38  ;;  %v2143_v39 = vadd.f32 %v7067_v62, %v7000_v47  ;;  %v1622_v21 = vmul.f32 0.5, %v6942_v0  ;;  %v1786_v58 = vmul.f32 0.044715, %v7189_v1  ;;  %v1787_v22 = vmul.f32 0.044715, %v7192_v29 }
 0x1f1   : > { %v7213_v18 = vadd.f32 %v1334_v41, %v6691_v55  ;;  %v1340_v48 = vpop.f32.mrb[52].mxu1  ;;  %v5663_v7 = vpop.eup %5662  ;;  %v2634_v34 = vmul.f32 %v2506_v25, %v7130_v2  ;;  %v2638_v49 = vmul.f32 %v2510_v44, %v7145_v13  ;;  %v2267_v43 = vmul.f32 0.7978846, %v2139_v33 }
 0x1f2   : > { %v2271_v9 = vmul.f32 0.7978846, %v2143_v39  ;;  %v1342_v38 = vpop.f32.mrb[53].mxu1  ;;  %v2515_v24 = vadd.f32 1.0, %v5663_v7  ;;  %v7218_v62 = vmul.f32 %v1910_v8, %v7159_v46  ;;  %v1911_v0 = vmul.f32 %v1783_v20, %v7180_v10 }
 0x1f3   : > { %v1790_v50 = vmul.f32 0.044715, %v7213_v18  ;;  %v1344_v42 = vpop.f32.mrb[54].mxu1  ;;  %v5665_v41 = vpop.eup %5664  ;;  %v2802_v37 = vpack.c.bf16 %v2638_v49, %v2634_v34  ;;  %5670 = vtanh.f32 %v2267_v43  ;;  %v2138_v2 = vadd.f32 %v7058_v60, %v6982_v19 }
 0x1f4   : > { %v2142_v13 = vadd.f32 %v7064_v51, %v6995_v35  ;;  %v1346_v25 = vpop.f32.mrb[55].mxu1  ;;  %v2519_v44 = vadd.f32 1.0, %v5665_v41  ;;  %v1914_v33 = vmul.f32 %v1786_v58, %v7189_v1  ;;  %v7228_v8 = vmul.f32 0.5, %v6987_v54 }
 0x1f5   : > { %5672 = vtanh.f32 %v2271_v9  ;;  %3319 = vmatmul.mubr.bf16.gmra.mrb[24].mxu0 %v2802_v37  ;;  %v1915_v20 = vmul.f32 %v1787_v22, %v7192_v29  ;;  %v2266_v39 = vmul.f32 0.7978846, %v2138_v2  ;;  %v7232_v34 = vadd.f32 %v1336_v4, %v6694_v56 }
 0x1f6   : > { %v2270_v7 = vmul.f32 0.7978846, %v2142_v13  ;;  %v2643_v60 = vmul.f32 %v2515_v24, %v7168_v31  ;;  %v2647_v49 = vmul.f32 %v2519_v44, %v1623_v32  ;;  %v7236_v51 = vmul.f32 %v1911_v0, %v7180_v10 }
 0x1f7   : > { %v1631_v58 = vmul.f32 0.5, %v7000_v47  ;;  %v5667_v43 = vpop.eup %5666  ;;  %v1918_v54 = vmul.f32 %v1790_v50, %v7213_v18  ;;  %5674 = vtanh.f32 %v2266_v39  ;;  %v7241_v37 = vadd.f32 %v1340_v48, %v6691_v55 }
 0x1f8   : > { %v7244_v22 = vadd.f32 %v1342_v38, %v6694_v56  ;;  %v5669_v4 = vpop.eup %5668  ;;  %v2807_v9 = vpack.c.bf16 %v2647_v49, %v2643_v60  ;;  %v2514_v41 = vadd.f32 1.0, %v5667_v43  ;;  %5676 = vtanh.f32 %v2270_v7 }
 0x1f9   : > { %v1791_v31 = vmul.f32 0.044715, %v7232_v34  ;;  %v1350_v32 = vpop.f32.mrb[56].mxu1  ;;  %v2518_v24 = vadd.f32 1.0, %v5669_v4  ;;  %v7248_v47 = vmul.f32 %v1914_v33, %v7189_v1  ;;  %v7251_v50 = vmul.f32 %v1915_v20, %v7192_v29 }
 0x1fa   : > { %v2147_v48 = vadd.f32 %v7102_v26, %v7036_v63  ;;  %v1352_v0 = vpop.f32.mrb[57].mxu1  ;;  %3328 = vmatprep.mubr.bf16.mxu0 %v2807_v9  ;;  %v1626_v38 = vmul.f32 0.5, %v6982_v19  ;;  %v1630_v2 = vmul.f32 0.5, %v6995_v35  ;;  %v2151_v13 = vadd.f32 %v7120_v61, %v7051_v3 }
 0x1fb   : > { %v7260_v44 = vadd.f32 %v1344_v42, %v6691_v55  ;;  %v1354_v33 = vpop.f32.mrb[58].mxu1  ;;  %v2642_v39 = vmul.f32 %v2514_v41, %v7198_v15  ;;  %v2646_v20 = vmul.f32 %v2518_v24, %v1622_v21  ;;  %v1794_v7 = vmul.f32 0.044715, %v7241_v37 }
 0x1fc   : > { %v2275_v60 = vmul.f32 0.7978846, %v2147_v48  ;;  %v7264_v26 = vpop.f32.mrb[59].mxu1  ;;  %v7267_v49 = vmul.f32 %v1918_v54, %v7213_v18  ;;  %v1919_v19 = vmul.f32 %v1791_v31, %v7232_v34  ;;  %v1795_v35 = vmul.f32 0.044715, %v7244_v22 }
 0x1fd   : > { %9507 = vst [vmem:[#allocation39_spill] sm:$0xff] %v7260_v44  ;;  %v2279_v61 = vmul.f32 0.7978846, %v2151_v13  ;;  %v5671_v43 = vpop.eup %5670  ;;  %v2806_v42 = vpack.c.bf16 %v2646_v20, %v2642_v39  ;;  %v1798_v4 = vmul.f32 0.044715, %v7260_v44  ;;  %v2146_v15 = vadd.f32 %v7099_v45, %v7029_v59 }
 0x1fe   : > { %5678 = vtanh.f32 %v2275_v60  ;;  %v2523_v9 = vadd.f32 1.0, %v5671_v43  ;;  %v7275_v41 = vmul.f32 0.5, %v7036_v63  ;;  %v2150_v54 = vadd.f32 %v7112_v11, %v7040_v36 }
 0x1ff   : > { %v5673_v21 = vpop.eup %5672  ;;  %5680 = vtanh.f32 %v2279_v61  ;;  %3329 = vmatmul.mubr.bf16.gmra.mrb[28].mxu0 %v2806_v42  ;;  %v1922_v24 = vmul.f32 %v1794_v7, %v7241_v37  ;;  %v2274_v48 = vmul.f32 0.7978846, %v2146_v15  ;;  %v7281_v13 = vadd.f32 %v1346_v25, %v6694_v56 }
 0x200   : > { %v2527_v31 = vadd.f32 1.0, %v5673_v21  ;;  %v7284_v39 = vmul.f32 %v1919_v19, %v7232_v34  ;;  %v1923_v45 = vmul.f32 %v1795_v35, %v7244_v22  ;;  %v1639_v63 = vmul.f32 0.5, %v7051_v3 }
 0x201   : > { %v2278_v20 = vmul.f32 0.7978846, %v2150_v54  ;;  %v1360_v60 = vpop.f32.mrb[60].mxu1  ;;  %v5675_v61 = vpop.eup %5674  ;;  %v2651_v11 = vmul.f32 %v2523_v9, %v7228_v8  ;;  %v1926_v42 = vmul.f32 %v1798_v4, %v7260_v44  ;;  %5682 = vtanh.f32 %v2274_v48 }
 0x202   : > { %v2655_v43 = vmul.f32 %v2527_v31, %v1631_v58  ;;  %v1362_v7 = vpop.f32.mrb[61].mxu1  ;;  %v5677_v15 = vpop.eup %5676  ;;  %v2522_v25 = vadd.f32 1.0, %v5675_v61  ;;  %v7291_v19 = vadd.f32 %v1350_v32, %v6691_v55  ;;  %v7294_v35 = vadd.f32 %v1352_v0, %v6694_v56 }
 0x203   : > { %5684 = vtanh.f32 %v2278_v20  ;;  %v7296_v3 = vpop.f32.mrb[62].mxu1  ;;  %v2526_v54 = vadd.f32 1.0, %v5677_v15  ;;  %v7299_v8 = vmul.f32 %v1922_v24, %v7241_v37  ;;  %v1799_v58 = vmul.f32 0.044715, %v7281_v13 }
 0x204   : > { %v2811_v21 = vpack.c.bf16 %v2655_v43, %v2651_v11  ;;  %v7302_v4 = vpop.f32.mrb[63].mxu1  ;;  %v7305_v9 = vmul.f32 %v1923_v45, %v7244_v22  ;;  %v1634_v32 = vmul.f32 0.5, %v7029_v59  ;;  %v1638_v31 = vmul.f32 0.5, %v7040_v36 }
 0x205   : > { %v2155_v0 = vadd.f32 %v7163_v28, %v7092_v16  ;;  %v2650_v48 = vmul.f32 %v2522_v25, %v1626_v38  ;;  %v2654_v20 = vmul.f32 %v2526_v54, %v1630_v2  ;;  %v7312_v24 = vmul.f32 %v1926_v42, %v7260_v44 }
 0x206   : > { %3338 = vmatprep.mubr.bf16.mxu0 %v2811_v21  ;;  %v2159_v61 = vadd.f32 %v7185_v5, %v7126_v6  ;;  %v1802_v11 = vmul.f32 0.044715, %v7291_v19  ;;  %v1803_v45 = vmul.f32 0.044715, %v7294_v35  ;;  %v7319_v59 = vadd.f32 %v1354_v33, %v6691_v55 }
 0x207   : > { %9508 = vst [vmem:[#allocation40_spill] sm:$0xff] %v7312_v24  ;;  %v2283_v43 = vmul.f32 0.7978846, %v2155_v0  ;;  %v2810_v15 = vpack.c.bf16 %v2654_v20, %v2650_v48  ;;  %v1927_v28 = vmul.f32 %v1799_v58, %v7281_v13  ;;  %v2154_v2 = vadd.f32 %v7154_v12, %v7076_v23 }
 0x208   : > { %v5679_v36 = vpop.eup %5678  ;;  %v2287_v38 = vmul.f32 0.7978846, %v2159_v61  ;;  %v1806_v5 = vmul.f32 0.044715, %v7319_v59  ;;  %v2158_v21 = vadd.f32 %v7175_v57, %v7108_v30  ;;  %v7331_v58 = vadd.f32 %v7264_v26, %v6694_v56 }
 0x209   : > { %v5681_v42 = vpop.eup %5680  ;;  %v2531_v25 = vadd.f32 1.0, %v5679_v36  ;;  %5686 = vtanh.f32 %v2283_v43  ;;  %v7327_v54 = vpop.f32.mrb[64].mxu1  ;;  %3339 = vmatmul.mubr.bf16.gmra.mrb[32].mxu0 %v2810_v15  ;;  %v2282_v0 = vmul.f32 0.7978846, %v2154_v2  ;;  %v1930_v12 = vmul.f32 %v1802_v11, %v7291_v19 }
 0x20a   : > { %v2535_v33 = vadd.f32 1.0, %v5681_v42  ;;  %5688 = vtanh.f32 %v2287_v38  ;;  %v7333_v48 = vpop.f32.mrb[65].mxu1  ;;  %v1931_v20 = vmul.f32 %v1803_v45, %v7294_v35  ;;  %v2286_v61 = vmul.f32 0.7978846, %v2158_v21 }
 0x20b   : > { %v7338_v43 = vadd.f32 %v1360_v60, %v6691_v55  ;;  %v7340_v57 = vpop.f32.mrb[66].mxu1  ;;  %v5683_v36 = vpop.eup %5682  ;;  %v2659_v15 = vmul.f32 %v2531_v25, %v7275_v41  ;;  %v1643_v2 = vmul.f32 0.5, %v7092_v16  ;;  %5690 = vtanh.f32 %v2282_v0 }
 0x20c   : > { %v2663_v38 = vmul.f32 %v2535_v33, %v1639_v63  ;;  %v7344_v26 = vpop.f32.mrb[67].mxu1  ;;  %v2530_v14 = vadd.f32 1.0, %v5683_v36  ;;  %v1934_v11 = vmul.f32 %v1806_v5, %v7319_v59  ;;  %5692 = vtanh.f32 %v2286_v61 }
 0x20d   : > { %v5685_v42 = vpop.eup %5684  ;;  %v1807_v45 = vmul.f32 0.044715, %v7331_v58  ;;  %v1810_v24 = vmul.f32 0.044715, %v7338_v43  ;;  %v7350_v44 = vadd.f32 %v1362_v7, %v6694_v56  ;;  %v7353_v41 = vmul.f32 %v1927_v28, %v7281_v13 }
 0x20e   : > { %v2815_v60 = vpack.c.bf16 %v2663_v38, %v2659_v15  ;;  %v2534_v21 = vadd.f32 1.0, %v5685_v42  ;;  %v7356_v16 = vmul.f32 %v1930_v12, %v7291_v19  ;;  %v7359_v63 = vmul.f32 %v1931_v20, %v7294_v35 }
 0x20f   : > { %v1647_v25 = vmul.f32 0.5, %v7126_v6  ;;  %v2658_v5 = vmul.f32 %v2530_v14, %v1634_v32  ;;  %v1642_v0 = vmul.f32 0.5, %v7076_v23  ;;  %v2163_v7 = vadd.f32 %v7203_v27, %v7138_v53 }
 0x210   : > { %3348 = vmatprep.mubr.bf16.mxu0 %v2815_v60  ;;  %v2662_v33 = vmul.f32 %v2534_v21, %v1638_v31  ;;  %v7366_v61 = vmul.f32 %v1934_v11, %v7319_v59  ;;  %v1646_v28 = vmul.f32 0.5, %v7108_v30  ;;  %v1935_v12 = vmul.f32 %v1807_v45, %v7331_v58 }
 0x211   : > { %v2167_v20 = vadd.f32 %v7236_v51, %v7180_v10  ;;  %v7372_v36 = vpop.f32.mrb[68].mxu1  ;;  %v1938_v14 = vmul.f32 %v1810_v24, %v7338_v43  ;;  %v1811_v23 = vmul.f32 0.044715, %v7350_v44  ;;  %v2291_v32 = vmul.f32 0.7978846, %v2163_v7 }
 0x212   : > { %v2814_v6 = vpack.c.bf16 %v2662_v33, %v2658_v5  ;;  %v7376_v31 = vpop.f32.mrb[69].mxu1  ;;  %v7379_v15 = vmul.f32 0.5, %v7138_v53  ;;  %v2162_v38 = vadd.f32 %v7195_v52, %v7133_v17  ;;  %v2166_v51 = vadd.f32 %v7218_v62, %v7159_v46 }
 0x213   : > { %v5687_v27 = vpop.eup %5686  ;;  %v2295_v30 = vmul.f32 0.7978846, %v2167_v20  ;;  %v7385_v42 = vpop.f32.mrb[70].mxu1  ;;  %v7388_v45 = vmul.f32 0.5, %v7180_v10  ;;  %5694 = vtanh.f32 %v2291_v32  ;;  %v686_v53 = vsub.s32 2, %v6679_v40 }
 0x214   : > { %v5689_v24 = vpop.eup %5688  ;;  %3349 = vmatmul.mubr.bf16.gmra.mrb[36].mxu0 %v2814_v6  ;;  %v2539_v11 = vadd.f32 1.0, %v5687_v27  ;;  %v7391_v60 = vpop.f32.mrb[71].mxu1  ;;  %v7395_v52 = vadd.f32 %v7296_v3, %v6691_v55  ;;  %v2290_v62 = vmul.f32 0.7978846, %v2162_v38  ;;  %v7398_v33 = vmul.f32 %v1935_v12, %v7331_v58  ;;  %v5862_v20 = vld [vmem:[%s6232_s19] sm:$0xf] }
 0x215   : > { %v2543_v21 = vadd.f32 1.0, %v5689_v24  ;;  %5696 = vtanh.f32 %v2295_v30  ;;  %v5691_v5 = vpop.eup %5690  ;;  %v2294_v7 = vmul.f32 0.7978846, %v2166_v51  ;;  %v7402_v10 = vadd.f32 %v7302_v4, %v6694_v56 }
 0x216   : > { %v7405_v6 = vrot.slane %v5862_v20, %v686_v53  ;;  %v5693_v32 = vpop.eup %5692  ;;  %v2667_v27 = vmul.f32 %v2539_v11, %v1643_v2  ;;  %v2538_v24 = vadd.f32 1.0, %v5691_v5  ;;  %5698 = vtanh.f32 %v2290_v62 }
 0x217   : > { %v2671_v30 = vmul.f32 %v2543_v21, %v1647_v25  ;;  %v2542_v55 = vadd.f32 1.0, %v5693_v32  ;;  %v1939_v3 = vmul.f32 %v1811_v23, %v7350_v44  ;;  %5700 = vtanh.f32 %v2294_v7 }
 0x218   : > { %v7410_v12 = vadd.f32 %v7327_v54, %v7405_v6  ;;  %v7413_v56 = vmul.f32 %v1938_v14, %v7338_v43  ;;  %v1814_v4 = vmul.f32 0.044715, %v7395_v52  ;;  %v690_v51 = vsub.s32 3, %v6679_v40 }
 0x219   : > { %v2819_v38 = vpack.c.bf16 %v2671_v30, %v2667_v27  ;;  %v7417_v2 = vpop.f32.mrb[72].mxu1  ;;  %v2666_v25 = vmul.f32 %v2538_v24, %v1642_v0  ;;  %v2670_v11 = vmul.f32 %v2542_v55, %v1646_v28  ;;  %v1650_v53 = vmul.f32 0.5, %v7133_v17 }
 0x21a   : > { %v1692_v23 = vmul.f32 0.044715, %v7410_v12  ;;  %v7421_v21 = vpop.f32.mrb[73].mxu1  ;;  %v1815_v54 = vmul.f32 0.044715, %v7402_v10  ;;  %v7424_v62 = vrot.slane %v5862_v20, %v690_v51  ;;  %v2171_v14 = vadd.f32 %v7251_v50, %v7192_v29 }
 0x21b   : > { %3358 = vmatprep.mubr.bf16.mxu0 %v2819_v38  ;;  %v2175_v40 = vadd.f32 %v7284_v39, %v7232_v34  ;;  %v7430_v5 = vpop.f32.mrb[74].mxu1  ;;  %v2818_v0 = vpack.c.bf16 %v2670_v11, %v2666_v25  ;;  %v7433_v17 = vmul.f32 %v1939_v3, %v7350_v44  ;;  %v7438_v7 = vadd.f32 %v7340_v57, %v7405_v6 }
 0x21c   : > { %v1820_v28 = vmul.f32 %v1692_v23, %v7410_v12  ;;  %v7440_v20 = vpop.f32.mrb[75].mxu1  ;;  %v1942_v32 = vmul.f32 %v1814_v4, %v7395_v52  ;;  %v7445_v50 = vadd.f32 %v7333_v48, %v7424_v62  ;;  %v2299_v39 = vmul.f32 0.7978846, %v2171_v14 }
 0x21d   : > { %v2303_v27 = vmul.f32 0.7978846, %v2175_v40  ;;  %v5695_v30 = vpop.eup %5694  ;;  %3359 = vmatmul.mubr.bf16.gmra.mrb[40].mxu0 %v2818_v0  ;;  %v1654_v24 = vmul.f32 0.5, %v7159_v46  ;;  %v1696_v3 = vmul.f32 0.044715, %v7438_v7  ;;  %v2170_v57 = vadd.f32 %v7248_v47, %v7189_v1 }
 0x21e   : > { %v1948_v55 = vmul.f32 %v1820_v28, %v7410_v12  ;;  %v2547_v51 = vadd.f32 1.0, %v5695_v30  ;;  %v1943_v4 = vmul.f32 %v1815_v54, %v7402_v10  ;;  %5702 = vtanh.f32 %v2299_v39 }
 0x21f   : > { %v5697_v38 = vpop.eup %5696  ;;  %v2174_v48 = vadd.f32 %v7267_v49, %v7213_v18  ;;  %v1693_v11 = vmul.f32 0.044715, %v7445_v50  ;;  %5704 = vtanh.f32 %v2303_v27  ;;  %v1824_v46 = vmul.f32 %v1696_v3, %v7438_v7 }
 0x220   : > { %v2551_v25 = vadd.f32 1.0, %v5697_v38  ;;  %v5699_v23 = vpop.eup %5698  ;;  %v7458_v14 = vmul.f32 %v1942_v32, %v7395_v52  ;;  %v2076_v47 = vadd.f32 %v1948_v55, %v7410_v12  ;;  %v2298_v40 = vmul.f32 0.7978846, %v2170_v57 }
 0x221   : > { %v2302_v0 = vmul.f32 0.7978846, %v2174_v48  ;;  %v7461_v28 = vpop.f32.mrb[76].mxu1  ;;  %v5701_v54 = vpop.eup %5700  ;;  %v2675_v39 = vmul.f32 %v2547_v51, %v7379_v15  ;;  %v2546_v30 = vadd.f32 1.0, %v5699_v23  ;;  %v1952_v27 = vmul.f32 %v1824_v46, %v7438_v7 }
 0x222   : > { %9509 = vst [vmem:[#allocation41_spill] sm:$0xff] %v7458_v14  ;;  %v2679_v49 = vmul.f32 %v2551_v25, %v7388_v45  ;;  %v7466_v38 = vpop.f32.mrb[77].mxu1  ;;  %v2550_v3 = vadd.f32 1.0, %v5701_v54  ;;  %v1659_v32 = vmul.f32 0.5, %v7192_v29  ;;  %5706 = vtanh.f32 %v2298_v40 }
 0x223   : > { %v7471_v55 = vadd.f32 %v7344_v26, %v7424_v62  ;;  %v7473_v57 = vpop.f32.mrb[78].mxu1  ;;  %v2674_v14 = vmul.f32 %v2546_v30, %v1650_v53  ;;  %v7476_v15 = vmul.f32 %v1943_v4, %v7402_v10  ;;  %v1821_v45 = vmul.f32 %v1693_v11, %v7445_v50 }
 0x224   : > { %v2823_v48 = vpack.c.bf16 %v2679_v49, %v2675_v39  ;;  %v7479_v51 = vpop.f32.mrb[79].mxu1  ;;  %v2678_v25 = vmul.f32 %v2550_v3, %v1654_v24  ;;  %v2080_v46 = vadd.f32 %v1952_v27, %v7438_v7  ;;  %5708 = vtanh.f32 %v2302_v0 }
 0x225   : > { %v7484_v29 = vadd.f32 %v7372_v36, %v7405_v6  ;;  %v7487_v26 = vmul.f32 0.5, %v7410_v12  ;;  %v2204_v53 = vmul.f32 0.7978846, %v2076_v47  ;;  %v1663_v4 = vmul.f32 0.5, %v7232_v34 }
 0x226   : > { %3368 = vmatprep.mubr.bf16.mxu0 %v2823_v48  ;;  %v7492_v11 = vadd.f32 %v7376_v31, %v7424_v62  ;;  %v2822_v23 = vpack.c.bf16 %v2678_v25, %v2674_v14  ;;  %v1658_v24 = vmul.f32 0.5, %v7189_v1  ;;  %v1697_v40 = vmul.f32 0.044715, %v7471_v55 }
 0x227   : > { %v2179_v36 = vadd.f32 %v7305_v9, %v7244_v22  ;;  %v1662_v0 = vmul.f32 0.5, %v7213_v18  ;;  %v1700_v12 = vmul.f32 0.044715, %v7484_v29  ;;  %v2183_v47 = vadd.f32 %v7353_v41, %v7281_v13 }
 0x228   : > { %v7504_v34 = vadd.f32 %v7385_v42, %v7405_v6  ;;  %v5703_v31 = vpop.eup %5702  ;;  %3369 = vmatmul.mubr.bf16.gmra.mrb[44].mxu0 %v2822_v23  ;;  %v7507_v1 = vmul.f32 %v1821_v45, %v7445_v50  ;;  %v7510_v14 = vmul.f32 0.5, %v7438_v7  ;;  %v2208_v9 = vmul.f32 0.7978846, %v2080_v46 }
 0x229   : > { %v2307_v54 = vmul.f32 0.7978846, %v2179_v36  ;;  %v7512_v18 = vpop.f32.mrb[80].mxu1  ;;  %v5705_v39 = vpop.eup %5704  ;;  %5710 = vtanh.f32 %v2204_v53  ;;  %v2555_v49 = vadd.f32 1.0, %v5703_v31  ;;  %v1701_v41 = vmul.f32 0.044715, %v7492_v11 }
 0x22a   : > { %v2311_v30 = vmul.f32 0.7978846, %v2183_v47  ;;  %v7515_v42 = vpop.f32.mrb[81].mxu1  ;;  %v2559_v27 = vadd.f32 1.0, %v5705_v39  ;;  %v1825_v3 = vmul.f32 %v1697_v40, %v7471_v55  ;;  %v7519_v48 = vmul.f32 0.5, %v7244_v22  ;;  %v9511_v40 = vld [vmem:[#allocation39_spill] sm:$0xff] }
 0x22b   : > { %5712 = vtanh.f32 %v2307_v54  ;;  %v7521_v7 = vpop.f32.mrb[82].mxu1  ;;  %v2683_v45 = vmul.f32 %v2555_v49, %v1659_v32  ;;  %v1828_v25 = vmul.f32 %v1700_v12, %v7484_v29  ;;  %v1704_v46 = vmul.f32 0.044715, %v7504_v34  ;;  %v9512_v31 = vld [vmem:[#allocation40_spill] sm:$0xff] }
 0x22c   : > { %5714 = vtanh.f32 %v2311_v30  ;;  %v7525_v53 = vpop.f32.mrb[83].mxu1  ;;  %v5707_v23 = vpop.eup %5706  ;;  %v2687_v36 = vmul.f32 %v2559_v27, %v1663_v4  ;;  %v2178_v47 = vadd.f32 %v7299_v8, %v7241_v37  ;;  %v2182_v22 = vadd.f32 %v9512_v31, %v9511_v40 }
 0x22d   : > { %9510 = vst [vmem:[#allocation42_spill] sm:$0xff] %v7525_v53  ;;  %v7533_v54 = vadd.f32 %v7391_v60, %v7424_v62  ;;  %5716 = vtanh.f32 %v2208_v9  ;;  %v2554_v32 = vadd.f32 1.0, %v5707_v23  ;;  %v1829_v12 = vmul.f32 %v1701_v41, %v7492_v11 }
 0x22e   : > { %v1671_v39 = vmul.f32 0.5, %v7281_v13  ;;  %v5709_v49 = vpop.eup %5708  ;;  %v2827_v30 = vpack.c.bf16 %v2687_v36, %v2683_v45  ;;  %v2306_v53 = vmul.f32 0.7978846, %v2178_v47  ;;  %v2310_v4 = vmul.f32 0.7978846, %v2182_v22 }
 0x22f   : > { %v7539_v8 = vadd.f32 %v7417_v2, %v7405_v6  ;;  %v2558_v27 = vadd.f32 1.0, %v5709_v49  ;;  %v7542_v31 = vmul.f32 %v1825_v3, %v7471_v55  ;;  %v1832_v60 = vmul.f32 %v1704_v46, %v7504_v34 }
 0x230   : > { %v7547_v9 = vadd.f32 %v7421_v21, %v7424_v62  ;;  %3378 = vmatprep.mubr.bf16.mxu0 %v2827_v30  ;;  %v7550_v13 = vmul.f32 %v1828_v25, %v7484_v29  ;;  %v7553_v41 = vmul.f32 0.5, %v7241_v37  ;;  %5718 = vtanh.f32 %v2306_v53 }
 0x231   : > { %9513 = vst [vmem:[#allocation39_spill] sm:$0xff] %v7539_v8  ;;  %v1705_v2 = vmul.f32 0.044715, %v7533_v54  ;;  %v7556_v45 = vpop.f32.mrb[84].mxu1  ;;  %v2682_v3 = vmul.f32 %v2554_v32, %v1658_v24  ;;  %v2686_v23 = vmul.f32 %v2558_v27, %v1662_v0  ;;  %v7559_v46 = vmul.f32 0.5, %v9511_v40 }
 0x232   : > { %5720 = vtanh.f32 %v2310_v4  ;;  %v7561_v21 = vpop.f32.mrb[85].mxu1  ;;  %v7564_v36 = vmul.f32 %v1829_v12, %v7492_v11  ;;  %v1708_v25 = vmul.f32 0.044715, %v7539_v8  ;;  %v2187_v37 = vadd.f32 %v7359_v63, %v7294_v35 }
 0x233   : > { %v2191_v53 = vadd.f32 %v7398_v33, %v7331_v58  ;;  %v7571_v47 = vpop.f32.mrb[86].mxu1  ;;  %v7573_v24 = vpop.eup %5710  ;;  %v2826_v0 = vpack.c.bf16 %v2686_v23, %v2682_v3  ;;  %v7576_v40 = vmul.f32 %v1832_v60, %v7504_v34  ;;  %v1709_v22 = vmul.f32 0.044715, %v7547_v9 }
 0x234   : > { %v7581_v32 = vadd.f32 %v7430_v5, %v7405_v6  ;;  %v7583_v12 = vpop.f32.mrb[87].mxu1  ;;  %v1833_v49 = vmul.f32 %v1705_v2, %v7533_v54  ;;  %v2315_v33 = vmul.f32 0.7978846, %v2187_v37  ;;  %v2186_v4 = vadd.f32 %v7356_v16, %v7291_v19 }
 0x235   : > { %9514 = vst [vmem:[#allocation40_spill] sm:$0xff] %v7583_v12  ;;  %v5713_v63 = vpop.eup %5712  ;;  %v2319_v30 = vmul.f32 0.7978846, %v2191_v53  ;;  %3379 = vmatmul.mubr.bf16.gmra.mrb[48].mxu0 %v2826_v0  ;;  %v7589_v3 = vmul.f32 0.5, %v7294_v35  ;;  %v2190_v5 = vadd.f32 %v7366_v61, %v7319_v59  ;;  %v7595_v23 = vadd.f32 %v7440_v20, %v7424_v62 }
 0x236   : > { %v5715_v27 = vpop.eup %5714  ;;  %v2563_v60 = vadd.f32 1.0, %v5713_v63  ;;  %v1836_v2 = vmul.f32 %v1708_v25, %v7539_v8  ;;  %5722 = vtanh.f32 %v2315_v33  ;;  %v2314_v37 = vmul.f32 0.7978846, %v2186_v4 }
 0x237   : > { %v2567_v12 = vadd.f32 1.0, %v5715_v27  ;;  %v7598_v53 = vpop.eup %5716  ;;  %v7601_v16 = vmul.f32 0.5, %v7331_v58  ;;  %5724 = vtanh.f32 %v2319_v30  ;;  %v1712_v35 = vmul.f32 0.044715, %v7581_v32 }
 0x238   : > { %v2318_v0 = vmul.f32 0.7978846, %v2190_v5  ;;  %v2691_v61 = vmul.f32 %v2563_v60, %v7519_v48  ;;  %5726 = vtanh.f32 %v2314_v37  ;;  %v1713_v20 = vmul.f32 0.044715, %v7595_v23 }
 0x239   : > { %v2695_v63 = vmul.f32 %v2567_v12, %v1671_v39  ;;  %v7606_v27 = vpop.f32.mrb[88].mxu1  ;;  %v1837_v25 = vmul.f32 %v1709_v22, %v7547_v9  ;;  %v7611_v33 = vadd.f32 %v7461_v28, %v7405_v6  ;;  %v7615_v58 = vadd.f32 %v7466_v38, %v7424_v62 }
 0x23a   : > { %5728 = vtanh.f32 %v2318_v0  ;;  %v7617_v30 = vpop.f32.mrb[89].mxu1  ;;  %v5719_v48 = vpop.eup %5718  ;;  %v7620_v12 = vmul.f32 %v1833_v49, %v7533_v54  ;;  %v7623_v4 = vmul.f32 %v1836_v2, %v7539_v8  ;;  %v2195_v22 = vadd.f32 %v7433_v17, %v7350_v44 }
 0x23b   : > { %v2831_v39 = vpack.c.bf16 %v2695_v63, %v2691_v61  ;;  %v7627_v60 = vpop.f32.mrb[90].mxu1  ;;  %v2562_v5 = vadd.f32 1.0, %v5719_v48  ;;  %v1840_v38 = vmul.f32 %v1712_v35, %v7581_v32  ;;  %v1674_v37 = vmul.f32 0.5, %v7291_v19 }
 0x23c   : > { %9515 = vst [vmem:[#allocation43_spill] sm:$0xff] %v7623_v4  ;;  %v5721_v28 = vpop.eup %5720  ;;  %v2199_v0 = vadd.f32 %v7476_v15, %v7402_v10  ;;  %v7633_v61 = vpop.f32.mrb[91].mxu1  ;;  %v1678_v2 = vmul.f32 0.5, %v7319_v59  ;;  %v1841_v63 = vmul.f32 %v1713_v20, %v7595_v23  ;;  %v2323_v17 = vmul.f32 0.7978846, %v2195_v22 }
 0x23d   : > { %9516 = vst [vmem:[#allocation44_spill] sm:$0xff] %v7633_v61  ;;  %3388 = vmatprep.mubr.bf16.mxu0 %v2831_v39  ;;  %v2566_v49 = vadd.f32 1.0, %v5721_v28  ;;  %v7638_v4 = vmul.f32 %v1837_v25, %v7547_v9  ;;  %v1716_v48 = vmul.f32 0.044715, %v7611_v33  ;;  %v1717_v35 = vmul.f32 0.044715, %v7615_v58 }
 0x23e   : > { %v2327_v19 = vmul.f32 0.7978846, %v2199_v0  ;;  %v2690_v8 = vmul.f32 %v2562_v5, %v7553_v41  ;;  %5730 = vtanh.f32 %v2323_v17  ;;  %v7646_v39 = vadd.f32 %v7473_v57, %v7405_v6  ;;  %v9517_v57 = vld [vmem:[#allocation41_spill] sm:$0xff] }
 0x23f   : > { %v2694_v15 = vmul.f32 %v2566_v49, %v7559_v46  ;;  %v7649_v59 = vmul.f32 %v1840_v38, %v7581_v32  ;;  %v7652_v20 = vmul.f32 0.5, %v7350_v44  ;;  %v2194_v25 = vadd.f32 %v7413_v56, %v7338_v43 }
 0x240   : > { %5732 = vtanh.f32 %v2327_v19  ;;  %v5723_v22 = vpop.eup %5722  ;;  %v7657_v41 = vmul.f32 %v1841_v63, %v7595_v23  ;;  %v7660_v46 = vmul.f32 0.5, %v7402_v10  ;;  %v2198_v5 = vadd.f32 %v9517_v57, %v7395_v52 }
 0x241   : > { %v2830_v28 = vpack.c.bf16 %v2694_v15, %v2690_v8  ;;  %v7664_v38 = vpop.f32.mrb[92].mxu1  ;;  %v5725_v0 = vpop.eup %5724  ;;  %v2571_v44 = vadd.f32 1.0, %v5723_v22  ;;  %v1844_v49 = vmul.f32 %v1716_v48, %v7611_v33  ;;  %v1845_v17 = vmul.f32 %v1717_v35, %v7615_v58 }
 0x242   : > { %9518 = vst [vmem:[#allocation41_spill] sm:$0xff] %v7664_v38  ;;  %v2322_v56 = vmul.f32 0.7978846, %v2194_v25  ;;  %v7668_v19 = vpop.f32.mrb[93].mxu1  ;;  %v5727_v8 = vpop.eup %5726  ;;  %v2575_v63 = vadd.f32 1.0, %v5725_v0  ;;  %v7673_v57 = vadd.f32 %v7479_v51, %v7424_v62  ;;  %v7679_v48 = vadd.f32 %v7512_v18, %v7405_v6 }
 0x243   : > { %9519 = vst [vmem:[#allocation45_spill] sm:$0xff] %v7668_v19  ;;  %3389 = vmatmul.mubr.bf16.gmra.mrb[52].mxu0 %v2830_v28  ;;  %v1720_v10 = vmul.f32 0.044715, %v7646_v39  ;;  %v2326_v15 = vmul.f32 0.7978846, %v2198_v5  ;;  %v7675_v38 = vpop.f32.mrb[94].mxu1  ;;  %v7683_v35 = vadd.f32 %v7515_v42, %v7424_v62  ;;  %v2699_v28 = vmul.f32 %v2571_v44, %v7589_v3 }
 0x244   : > { %9520 = vst [vmem:[#allocation46_spill] sm:$0xff] %v7675_v38  ;;  %v5729_v22 = vpop.eup %5728  ;;  %v2570_v61 = vadd.f32 1.0, %v5727_v8  ;;  %5734 = vtanh.f32 %v2322_v56  ;;  %v7685_v25 = vpop.f32.mrb[95].mxu1  ;;  %v2703_v51 = vmul.f32 %v2575_v63, %v7601_v16  ;;  %v7690_v0 = vmul.f32 %v1844_v49, %v7611_v33 }
 0x245   : > { %9521 = vst [vmem:[#allocation47_spill] sm:$0xff] %v7685_v25  ;;  %v2574_v5 = vadd.f32 1.0, %v5729_v22  ;;  %5736 = vtanh.f32 %v2326_v15  ;;  %v7693_v56 = vmul.f32 %v1845_v17, %v7615_v58  ;;  %v1682_v18 = vmul.f32 0.5, %v7338_v43 }
 0x246   : > { %v1686_v8 = vmul.f32 0.5, %v7395_v52  ;;  %v2835_v42 = vpack.c.bf16 %v2703_v51, %v2699_v28  ;;  %v2698_v38 = vmul.f32 %v2570_v61, %v1674_v37  ;;  %v1721_v25 = vmul.f32 0.044715, %v7673_v57 }
 0x247   : > { %v2702_v19 = vmul.f32 %v2574_v5, %v1678_v2  ;;  %v1848_v3 = vmul.f32 %v1720_v10, %v7646_v39  ;;  %v1724_v16 = vmul.f32 0.044715, %v7679_v48  ;;  %v2077_v44 = vadd.f32 %v7507_v1, %v7445_v50 }
 0x248   : > { %v2081_v49 = vadd.f32 %v7542_v31, %v7471_v55  ;;  %v5731_v17 = vpop.eup %5730  ;;  %3398 = vmatprep.mubr.bf16.mxu0 %v2835_v42  ;;  %v1725_v52 = vmul.f32 0.044715, %v7683_v35  ;;  %v2460_v37 = vadd.f32 1.0, %v7573_v24  ;;  %v2464_v61 = vadd.f32 1.0, %v7598_v53 }
 0x249   : > { %v2834_v43 = vpack.c.bf16 %v2702_v19, %v2698_v38  ;;  %v7707_v2 = vpop.f32.mrb[96].mxu1  ;;  %v2579_v10 = vadd.f32 1.0, %v5731_v17  ;;  %v2205_v15 = vmul.f32 0.7978846, %v2077_v44  ;;  %v7711_v1 = vadd.f32 %v7521_v7, %v7405_v6  ;;  %v9522_v7 = vld [vmem:[#allocation42_spill] sm:$0xff] }
 0x24a   : > { %v5733_v63 = vpop.eup %5732  ;;  %v2209_v22 = vmul.f32 0.7978846, %v2081_v49  ;;  %v7713_v31 = vpop.f32.mrb[97].mxu1  ;;  %v1849_v19 = vmul.f32 %v1721_v25, %v7673_v57  ;;  %v7717_v24 = vmul.f32 %v2460_v37, %v7487_v26  ;;  %v7720_v53 = vmul.f32 %v2464_v61, %v7510_v14 }
 0x24b   : > { %3399 = vmatmul.mubr.bf16.gmra.mrb[56].mxu0 %v2834_v43  ;;  %v2583_v38 = vadd.f32 1.0, %v5733_v63  ;;  %v7722_v28 = vpop.f32.mrb[98].mxu1  ;;  %v1852_v51 = vmul.f32 %v1724_v16, %v7679_v48  ;;  %5738 = vtanh.f32 %v2205_v15  ;;  %v7727_v5 = vadd.f32 %v9522_v7, %v7424_v62 }
 0x24c   : > { %v7731_v42 = vadd.f32 %v7556_v45, %v7405_v6  ;;  %v7733_v25 = vpop.f32.mrb[99].mxu1  ;;  %v2707_v26 = vmul.f32 %v2579_v10, %v7652_v20  ;;  %5740 = vtanh.f32 %v2209_v22  ;;  %v7740_v49 = vmul.f32 %v1848_v3, %v7646_v39 }
 0x24d   : > { %v2711_v14 = vmul.f32 %v2583_v38, %v7660_v46  ;;  %v1853_v17 = vmul.f32 %v1725_v52, %v7683_v35  ;;  %v1565_v43 = vmul.f32 0.5, %v7445_v50  ;;  %v1728_v45 = vmul.f32 0.044715, %v7711_v1 }
 0x24e   : > { %v5735_v16 = vpop.eup %5734  ;;  %v7746_v20 = vmul.f32 %v1849_v19, %v7673_v57  ;;  %v7750_v46 = vadd.f32 %v7561_v21, %v7424_v62  ;;  %v1569_v3 = vmul.f32 0.5, %v7471_v55  ;;  %v1729_v15 = vmul.f32 0.044715, %v7727_v5 }
 0x24f   : > { %v5737_v37 = vpop.eup %5736  ;;  %v2839_v61 = vpack.c.bf16 %v2711_v14, %v2707_v26  ;;  %v2578_v63 = vadd.f32 1.0, %v5735_v16  ;;  %v1732_v52 = vmul.f32 0.044715, %v7731_v42  ;;  %v7756_v50 = vmul.f32 %v1852_v51, %v7679_v48 }
 0x250   : > { %v2582_v10 = vadd.f32 1.0, %v5737_v37  ;;  %v2085_v22 = vadd.f32 %v7564_v36, %v7492_v11  ;;  %v2089_v38 = vadd.f32 %v7620_v12, %v7533_v54  ;;  %v7764_v21 = vadd.f32 %v7571_v47, %v7405_v6 }
 0x251   : > { %3408 = vmatprep.mubr.bf16.mxu0 %v2839_v61  ;;  %v7766_v19 = vpop.f32.mrb[100].mxu1  ;;  %v2706_v55 = vmul.f32 %v2578_v63, %v1682_v18  ;;  %v7769_v26 = vmul.f32 %v1853_v17, %v7683_v35  ;;  %v1856_v51 = vmul.f32 %v1728_v45, %v7711_v1  ;;  %v1733_v36 = vmul.f32 0.044715, %v7750_v46 }
 0x252   : > { %v2710_v7 = vmul.f32 %v2582_v10, %v1686_v8  ;;  %v7772_v14 = vpop.f32.mrb[101].mxu1  ;;  %v2213_v16 = vmul.f32 0.7978846, %v2085_v22  ;;  %v2217_v37 = vmul.f32 0.7978846, %v2089_v38  ;;  %v2084_v12 = vadd.f32 %v7550_v13, %v7484_v29 }
 0x253   : > { %v1857_v61 = vmul.f32 %v1729_v15, %v7727_v5  ;;  %v1860_v18 = vmul.f32 %v1732_v52, %v7731_v42  ;;  %v7780_v8 = vmul.f32 0.5, %v7492_v11  ;;  %v7782_v17 = vpop.f32.mrb[102].mxu1  ;;  %v1736_v45 = vmul.f32 0.044715, %v7764_v21  ;;  %v9524_v11 = vld [vmem:[#allocation40_spill] sm:$0xff] }
 0x254   : > { %v2838_v47 = vpack.c.bf16 %v2710_v7, %v2706_v55  ;;  %5742 = vtanh.f32 %v2213_v16  ;;  %v2088_v63 = vadd.f32 %v7576_v40, %v7504_v34  ;;  %v2212_v10 = vmul.f32 0.7978846, %v2084_v12  ;;  %v7787_v22 = vpop.f32.mrb[103].mxu1 }
 0x255   : > { %9523 = vst [vmem:[#allocation42_spill] sm:$0xff] %v7787_v22  ;;  %v5739_v13 = vpop.eup %5738  ;;  %v7790_v15 = vmul.f32 %v1856_v51, %v7711_v1  ;;  %5744 = vtanh.f32 %v2217_v37  ;;  %v7794_v52 = vadd.f32 %v9524_v11, %v7424_v62  ;;  %v7798_v38 = vadd.f32 %v7606_v27, %v7405_v6 }
 0x256   : > { %3409 = vmatmul.mubr.bf16.gmra.mrb[60].mxu0 %v2838_v47  ;;  %v5741_v55 = vpop.eup %5740  ;;  %v2461_v7 = vadd.f32 1.0, %v5739_v13  ;;  %v1861_v40 = vmul.f32 %v1733_v36, %v7750_v46  ;;  %v2216_v16 = vmul.f32 0.7978846, %v2088_v63  ;;  %5746 = vtanh.f32 %v2212_v10 }
 0x257   : > { %v2465_v12 = vadd.f32 1.0, %v5741_v55  ;;  %v7802_v47 = vmul.f32 %v1857_v61, %v7727_v5  ;;  %v1577_v51 = vmul.f32 0.5, %v7533_v54  ;;  %v7807_v37 = vadd.f32 %v7617_v30, %v7424_v62 }
 0x258   : > { %v7810_v11 = vmul.f32 %v1860_v18, %v7731_v42  ;;  %v1864_v27 = vmul.f32 %v1736_v45, %v7764_v21  ;;  %5748 = vtanh.f32 %v2216_v16  ;;  %v1737_v36 = vmul.f32 0.044715, %v7794_v52 }
 0x259   : > { %v7814_v63 = vpop.f32.mrb[104].mxu1  ;;  %v2589_v10 = vmul.f32 %v2461_v7, %v1565_v43  ;;  %v2593_v13 = vmul.f32 %v2465_v12, %v1569_v3  ;;  %v1740_v61 = vmul.f32 0.044715, %v7798_v38  ;;  %v2093_v54 = vadd.f32 %v7638_v4, %v7547_v9 }
 0x25a   : > { %9525 = vst [vmem:[#allocation40_spill] sm:$0xff] %v7814_v63  ;;  %v7819_v55 = vpop.f32.mrb[105].mxu1  ;;  %v7822_v30 = vmul.f32 %v1861_v40, %v7750_v46  ;;  %v1572_v18 = vmul.f32 0.5, %v7484_v29  ;;  %v2097_v45 = vadd.f32 %v7657_v41, %v7595_v23  ;;  %v7829_v16 = vadd.f32 %v7627_v60, %v7405_v6 }
 0x25b   : > { %9526 = vst [vmem:[#allocation48_spill] sm:$0xff] %v7819_v55  ;;  %v7831_v43 = vpop.f32.mrb[106].mxu1  ;;  %v2781_v3 = vpack.c.bf16 %v2593_v13, %v2589_v10  ;;  %v1576_v7 = vmul.f32 0.5, %v7504_v34  ;;  %v1741_v4 = vmul.f32 0.044715, %v7807_v37  ;;  %v7838_v40 = vmul.f32 %v1864_v27, %v7764_v21  ;;  %v9530_v10 = vld [vmem:[#allocation39_spill] sm:$0xff] }
 0x25c   : > { %9527 = vst [vmem:[#allocation49_spill] sm:$0xff] %v7831_v43  ;;  %v2221_v12 = vmul.f32 0.7978846, %v2093_v54  ;;  %v7835_v44 = vpop.f32.mrb[107].mxu1  ;;  %v1865_v29 = vmul.f32 %v1737_v36, %v7794_v52  ;;  %v7842_v41 = vmul.f32 0.5, %v7547_v9  ;;  %v1868_v43 = vmul.f32 %v1740_v61, %v7798_v38  ;;  %v9531_v34 = vld [vmem:[#allocation43_spill] sm:$0xff] }
 0x25d   : > { %9528 = vst [vmem:[#allocation50_spill] sm:$0xff] %v7835_v44  ;;  %9529 = vst [vmem:[#allocation51_spill] sm:$0xff] %v7838_v40  ;;  %v2225_v60 = vmul.f32 0.7978846, %v2097_v45  ;;  %3451 = vmatprep.mubr.bf16.mxu0 %v2781_v3  ;;  %v2092_v13 = vadd.f32 %v9531_v34, %v9530_v10  ;;  %v2096_v54 = vadd.f32 %v7649_v59, %v7581_v32  ;;  %v7853_v36 = vmul.f32 0.5, %v7595_v23  ;;  %v9533_v61 = vld [vmem:[#allocation44_spill] sm:$0xff] }
 0x25e   : > { %5750 = vtanh.f32 %v2221_v12  ;;  %v5743_v44 = vpop.eup %5742  ;;  %v9532_v27 = vpack.c.bf16 %v7720_v53, %v7717_v24  ;;  %v1744_v9 = vmul.f32 0.044715, %v7829_v16  ;;  %v7858_v45 = vadd.f32 %v9533_v61, %v7424_v62  ;;  %v9534_v53 = vld [vmem:[#allocation41_spill] sm:$0xff] }
 0x25f   : > { %5752 = vtanh.f32 %v2225_v60  ;;  %v5745_v3 = vpop.eup %5744  ;;  %v2469_v12 = vadd.f32 1.0, %v5743_v44  ;;  %v1869_v34 = vmul.f32 %v1741_v4, %v7807_v37  ;;  %v2220_v59 = vmul.f32 0.7978846, %v2092_v13  ;;  %v9537_v4 = vld [vmem:[#allocation45_spill] sm:$0xff] }
 0x260   : > { %3452 = vmatmul.mubr.bf16.vlgmr.msra.gmra.mrb[0].mxu0 %v9532_v27  ;;  %v2224_v55 = vmul.f32 0.7978846, %v2096_v54  ;;  %v5747_v63 = vpop.eup %5746  ;;  %v2473_v22 = vadd.f32 1.0, %v5745_v3  ;;  %v7862_v24 = vmul.f32 %v1865_v29, %v7794_v52  ;;  %v7865_v23 = vmul.f32 0.5, %v9530_v10 }
 0x261   : > { %v7869_v60 = vadd.f32 %v9534_v53, %v7405_v6  ;;  %v7871_v27 = vpop.f32.mrb[108].mxu1  ;;  %v2468_v61 = vadd.f32 1.0, %v5747_v63  ;;  %v7874_v44 = vmul.f32 %v1868_v43, %v7798_v38  ;;  %5754 = vtanh.f32 %v2220_v59 }
 0x262   : > { %9535 = vst [vmem:[#allocation39_spill] sm:$0xff] %v7871_v27  ;;  %v7878_v13 = vadd.f32 %v9537_v4, %v7424_v62  ;;  %v7880_v29 = vpop.f32.mrb[109].mxu1  ;;  %v5749_v54 = vpop.eup %5748  ;;  %v2597_v10 = vmul.f32 %v2469_v12, %v7780_v8  ;;  %v2601_v3 = vmul.f32 %v2473_v22, %v1577_v51  ;;  %5756 = vtanh.f32 %v2224_v55 }
 0x263   : > { %9536 = vst [vmem:[#allocation43_spill] sm:$0xff] %v7874_v44  ;;  %9538 = vst [vmem:[#allocation44_spill] sm:$0xff] %v7880_v29  ;;  %v1745_v53 = vmul.f32 0.044715, %v7858_v45  ;;  %v7884_v40 = vpop.f32.mrb[110].mxu1  ;;  %v2472_v63 = vadd.f32 1.0, %v5749_v54  ;;  %v7887_v43 = vmul.f32 %v1869_v34, %v7807_v37  ;;  %v1872_v59 = vmul.f32 %v1744_v9, %v7829_v16 }
 0x264   : > { %v1584_v4 = vmul.f32 0.5, %v7581_v32  ;;  %v7891_v27 = vpop.f32.mrb[111].mxu1  ;;  %v2785_v29 = vpack.c.bf16 %v2601_v3, %v2597_v10  ;;  %v1748_v44 = vmul.f32 0.044715, %v7869_v60  ;;  %v7895_v8 = vmul.f32 0.5, %v7615_v58  ;;  %v9540_v9 = vld [vmem:[#allocation46_spill] sm:$0xff] }
 0x265   : > { %9539 = vst [vmem:[#allocation41_spill] sm:$0xff] %v7891_v27  ;;  %v2101_v22 = vadd.f32 %v7693_v56, %v7615_v58  ;;  %v2596_v51 = vmul.f32 %v2468_v61, %v1572_v18  ;;  %v2600_v55 = vmul.f32 %v2472_v63, %v1576_v7  ;;  %v2105_v12 = vadd.f32 %v7746_v20, %v7673_v57 }
 0x266   : > { %v7903_v34 = vadd.f32 %v9540_v9, %v7405_v6  ;;  %3461 = vmatprep.mubr.bf16.mxu0 %v2785_v29  ;;  %v1873_v32 = vmul.f32 %v1745_v53, %v7858_v45  ;;  %v1749_v54 = vmul.f32 0.044715, %v7878_v13  ;;  %v2100_v3 = vadd.f32 %v7690_v0, %v7611_v33  ;;  %v9541_v53 = vld [vmem:[#allocation47_spill] sm:$0xff] }
 0x267   : > { %v2229_v10 = vmul.f32 0.7978846, %v2101_v22  ;;  %v2784_v58 = vpack.c.bf16 %v2600_v55, %v2596_v51  ;;  %v2233_v56 = vmul.f32 0.7978846, %v2105_v12  ;;  %v2104_v20 = vadd.f32 %v7740_v49, %v7646_v39 }
 0x268   : > { %v5751_v27 = vpop.eup %5750  ;;  %v1752_v18 = vmul.f32 0.044715, %v7903_v34  ;;  %v2228_v29 = vmul.f32 0.7978846, %v2100_v3  ;;  %v7914_v63 = vadd.f32 %v9541_v53, %v7424_v62  ;;  %v1876_v51 = vmul.f32 %v1748_v44, %v7869_v60 }
 0x269   : > { %v5753_v7 = vpop.eup %5752  ;;  %v2477_v61 = vadd.f32 1.0, %v5751_v27  ;;  %5758 = vtanh.f32 %v2229_v10  ;;  %v7916_v22 = vpop.f32.mrb[112].mxu1  ;;  %3462 = vmatmul.mubr.bf16.gmra.mrb[4].mxu0 %v2784_v58  ;;  %v2232_v55 = vmul.f32 0.7978846, %v2104_v20  ;;  %v7922_v49 = vmul.f32 %v1872_v59, %v7829_v16 }
 0x26a   : > { %v2481_v0 = vadd.f32 1.0, %v5753_v7  ;;  %5760 = vtanh.f32 %v2233_v56  ;;  %v7919_v12 = vpop.f32.mrb[113].mxu1  ;;  %v1877_v27 = vmul.f32 %v1749_v54, %v7878_v13  ;;  %v1593_v9 = vmul.f32 0.5, %v7673_v57 }
 0x26b   : > { %5762 = vtanh.f32 %v2228_v29  ;;  %v7926_v10 = vpop.f32.mrb[114].mxu1  ;;  %v5755_v3 = vpop.eup %5754  ;;  %v2605_v58 = vmul.f32 %v2477_v61, %v7842_v41  ;;  %v7931_v44 = vmul.f32 %v1873_v32, %v7858_v45  ;;  %v1880_v54 = vmul.f32 %v1752_v18, %v7903_v34 }
 0x26c   : > { %v2609_v7 = vmul.f32 %v2481_v0, %v7853_v36  ;;  %5764 = vtanh.f32 %v2232_v55  ;;  %v7933_v56 = vpop.f32.mrb[115].mxu1  ;;  %v5757_v59 = vpop.eup %5756  ;;  %v2476_v20 = vadd.f32 1.0, %v5755_v3  ;;  %v1753_v57 = vmul.f32 0.044715, %v7914_v63 }
 0x26d   : > { %v7939_v29 = vadd.f32 %v7707_v2, %v7405_v6  ;;  %v2480_v41 = vadd.f32 1.0, %v5757_v59  ;;  %v7942_v36 = vmul.f32 %v1876_v51, %v7869_v60  ;;  %v7946_v32 = vadd.f32 %v7713_v31, %v7424_v62 }
 0x26e   : > { %v2789_v53 = vpack.c.bf16 %v2609_v7, %v2605_v58  ;;  %v7949_v61 = vmul.f32 %v1877_v27, %v7878_v13  ;;  %v1588_v18 = vmul.f32 0.5, %v7611_v33  ;;  %v1592_v0 = vmul.f32 0.5, %v7646_v39 }
 0x26f   : > { %v2109_v2 = vadd.f32 %v7769_v26, %v7683_v35  ;;  %v2604_v55 = vmul.f32 %v2476_v20, %v7865_v23  ;;  %v2608_v3 = vmul.f32 %v2480_v41, %v1584_v4  ;;  %v2113_v51 = vadd.f32 %v7802_v47, %v7727_v5 }
 0x270   : > { %3471 = vmatprep.mubr.bf16.mxu0 %v2789_v53  ;;  %v7960_v31 = vadd.f32 %v7722_v28, %v7405_v6  ;;  %v7963_v27 = vmul.f32 %v1880_v54, %v7903_v34  ;;  %v1881_v33 = vmul.f32 %v1753_v57, %v7914_v63  ;;  %v1756_v39 = vmul.f32 0.044715, %v7939_v29 }
 0x271   : > { %v2237_v58 = vmul.f32 0.7978846, %v2109_v2  ;;  %v7967_v26 = vpop.f32.mrb[116].mxu1  ;;  %v2788_v7 = vpack.c.bf16 %v2608_v3, %v2604_v55  ;;  %v1757_v23 = vmul.f32 0.044715, %v7946_v32  ;;  %v7971_v4 = vmul.f32 0.5, %v7683_v35 }
 0x272   : > { %9542 = vst [vmem:[#allocation45_spill] sm:$0xff] %v7967_v26  ;;  %v2241_v47 = vmul.f32 0.7978846, %v2113_v51  ;;  %v7973_v59 = vpop.f32.mrb[117].mxu1  ;;  %v7976_v20 = vmul.f32 0.5, %v7727_v5  ;;  %v2108_v54 = vadd.f32 %v7756_v50, %v7679_v48  ;;  %v2112_v57 = vadd.f32 %v7790_v15, %v7711_v1 }
 0x273   : > { %9543 = vst [vmem:[#allocation46_spill] sm:$0xff] %v7973_v59  ;;  %v5759_v28 = vpop.eup %5758  ;;  %5766 = vtanh.f32 %v2237_v58  ;;  %v7982_v53 = vpop.f32.mrb[118].mxu1  ;;  %3472 = vmatmul.mubr.bf16.gmra.mrb[8].mxu0 %v2788_v7  ;;  %v1760_v2 = vmul.f32 0.044715, %v7960_v31  ;;  %v7987_v55 = vadd.f32 %v7733_v25, %v7424_v62  ;;  %v7993_v15 = vadd.f32 %v7766_v19, %v7405_v6 }
 0x274   : > { %9544 = vst [vmem:[#allocation47_spill] sm:$0xff] %v7982_v53  ;;  %v5761_v41 = vpop.eup %5760  ;;  %v2485_v35 = vadd.f32 1.0, %v5759_v28  ;;  %5768 = vtanh.f32 %v2241_v47  ;;  %v7989_v5 = vpop.f32.mrb[119].mxu1  ;;  %v2236_v50 = vmul.f32 0.7978846, %v2108_v54  ;;  %v7996_v47 = vmul.f32 %v1881_v33, %v7914_v63 }
 0x275   : > { %9545 = vst [vmem:[#allocation52_spill] sm:$0xff] %v7989_v5  ;;  %v5763_v3 = vpop.eup %5762  ;;  %v2489_v51 = vadd.f32 1.0, %v5761_v41  ;;  %v2240_v58 = vmul.f32 0.7978846, %v2112_v57  ;;  %v1884_v28 = vmul.f32 %v1756_v39, %v7939_v29  ;;  %v1885_v25 = vmul.f32 %v1757_v23, %v7946_v32 }
 0x276   : > { %v5765_v53 = vpop.eup %5764  ;;  %v2484_v7 = vadd.f32 1.0, %v5763_v3  ;;  %v2613_v59 = vmul.f32 %v2485_v35, %v7895_v8  ;;  %5770 = vtanh.f32 %v2236_v50  ;;  %v1888_v54 = vmul.f32 %v1760_v2, %v7960_v31 }
 0x277   : > { %v2617_v5 = vmul.f32 %v2489_v51, %v1593_v9  ;;  %v2488_v26 = vadd.f32 1.0, %v5765_v53  ;;  %5772 = vtanh.f32 %v2240_v58  ;;  %v1761_v19 = vmul.f32 0.044715, %v7987_v55 }
 0x278   : > { %v8005_v57 = vadd.f32 %v7772_v14, %v7424_v62  ;;  %v2612_v41 = vmul.f32 %v2484_v7, %v1588_v18  ;;  %v1764_v39 = vmul.f32 0.044715, %v7993_v15  ;;  %v8011_v8 = vmul.f32 %v1884_v28, %v7939_v29  ;;  %v9550_v7 = vld [vmem:[#allocation51_spill] sm:$0xff] }
 0x279   : > { %v2793_v33 = vpack.c.bf16 %v2617_v5, %v2613_v59  ;;  %v2616_v3 = vmul.f32 %v2488_v26, %v1592_v0  ;;  %v8008_v23 = vpop.f32.mrb[120].mxu1  ;;  %v1596_v9 = vmul.f32 0.5, %v7679_v48  ;;  %v1600_v53 = vmul.f32 0.5, %v7711_v1 }
 0x27a   : > { %9546 = vst [vmem:[#allocation53_spill] sm:$0xff] %v8008_v23  ;;  %v2117_v35 = vadd.f32 %v7822_v30, %v7750_v46  ;;  %v8017_v2 = vpop.f32.mrb[121].mxu1  ;;  %v8020_v18 = vmul.f32 %v1885_v25, %v7946_v32  ;;  %v2121_v0 = vadd.f32 %v7862_v24, %v7794_v52  ;;  %v8026_v26 = vadd.f32 %v7782_v17, %v7405_v6 }
 0x27b   : > { %9547 = vst [vmem:[#allocation54_spill] sm:$0xff] %v8017_v2  ;;  %3481 = vmatprep.mubr.bf16.mxu0 %v2793_v33  ;;  %v2792_v14 = vpack.c.bf16 %v2616_v3, %v2612_v41  ;;  %v8028_v48 = vpop.f32.mrb[122].mxu1  ;;  %v8031_v1 = vmul.f32 %v1888_v54, %v7960_v31  ;;  %v1889_v30 = vmul.f32 %v1761_v19, %v7987_v55  ;;  %v1765_v59 = vmul.f32 0.044715, %v8005_v57  ;;  %v9551_v33 = vld [vmem:[#allocation42_spill] sm:$0xff] }
 0x27c   : > { %9548 = vst [vmem:[#allocation55_spill] sm:$0xff] %v8028_v48  ;;  %v2245_v5 = vmul.f32 0.7978846, %v2117_v35  ;;  %v8035_v51 = vpop.f32.mrb[123].mxu1  ;;  %v1892_v24 = vmul.f32 %v1764_v39, %v7993_v15  ;;  %v2249_v58 = vmul.f32 0.7978846, %v2121_v0  ;;  %v2116_v17 = vadd.f32 %v7810_v11, %v7731_v42 }
 0x27d   : > { %9549 = vst [vmem:[#allocation56_spill] sm:$0xff] %v8035_v51  ;;  %v5767_v50 = vpop.eup %5766  ;;  %3482 = vmatmul.mubr.bf16.gmra.mrb[12].mxu0 %v2792_v14  ;;  %v2120_v28 = vadd.f32 %v9550_v7, %v7764_v21  ;;  %v1768_v19 = vmul.f32 0.044715, %v8026_v26  ;;  %v8045_v41 = vadd.f32 %v9551_v33, %v7424_v62  ;;  %v8048_v35 = vmul.f32 0.5, %v7750_v46 }
 0x27e   : > { %v5769_v25 = vpop.eup %5768  ;;  %v2493_v54 = vadd.f32 1.0, %v5767_v50  ;;  %5774 = vtanh.f32 %v2245_v5  ;;  %v2244_v39 = vmul.f32 0.7978846, %v2116_v17  ;;  %v8051_v11 = vmul.f32 %v1889_v30, %v7987_v55  ;;  %v9552_v5 = vld [vmem:[#allocation40_spill] sm:$0xff] }
 0x27f   : > { %v2497_v3 = vadd.f32 1.0, %v5769_v25  ;;  %5776 = vtanh.f32 %v2249_v58  ;;  %v1893_v14 = vmul.f32 %v1765_v59, %v8005_v57  ;;  %v2248_v0 = vmul.f32 0.7978846, %v2120_v28 }
 0x280   : > { %v8056_v50 = vadd.f32 %v9552_v5, %v7405_v6  ;;  %v5771_v7 = vpop.eup %5770  ;;  %v2621_v33 = vmul.f32 %v2493_v54, %v7971_v4  ;;  %v1609_v46 = vmul.f32 0.5, %v7794_v52  ;;  %5778 = vtanh.f32 %v2244_v39 }
 0x281   : > { %v2625_v25 = vmul.f32 %v2497_v3, %v7976_v20  ;;  %v8061_v58 = vpop.f32.mrb[124].mxu1  ;;  %v5773_v17 = vpop.eup %5772  ;;  %v2492_v30 = vadd.f32 1.0, %v5771_v7  ;;  %v1896_v51 = vmul.f32 %v1768_v19, %v8026_v26  ;;  %5780 = vtanh.f32 %v2248_v0  ;;  %v9555_v20 = vld [vmem:[#allocation48_spill] sm:$0xff] }
 0x282   : > { %9553 = vst [vmem:[#allocation51_spill] sm:$0xff] %v8061_v58  ;;  %v1769_v59 = vmul.f32 0.044715, %v8045_v41  ;;  %v8065_v28 = vpop.f32.mrb[125].mxu1  ;;  %v2496_v48 = vadd.f32 1.0, %v5773_v17  ;;  %v8068_v4 = vmul.f32 %v1892_v24, %v7993_v15  ;;  %v8072_v52 = vadd.f32 %v9555_v20, %v7424_v62 }
 0x283   : > { %9554 = vst [vmem:[#allocation42_spill] sm:$0xff] %v8065_v28  ;;  %v2797_v5 = vpack.c.bf16 %v2625_v25, %v2621_v33  ;;  %v8074_v54 = vpop.f32.mrb[126].mxu1  ;;  %v8077_v3 = vmul.f32 %v1893_v14, %v8005_v57  ;;  %v1604_v19 = vmul.f32 0.5, %v7731_v42  ;;  %v1608_v39 = vmul.f32 0.5, %v7764_v21  ;;  %v9558_v21 = vld [vmem:[#allocation49_spill] sm:$0xff] }
 0x284   : > { %9556 = vst [vmem:[#allocation40_spill] sm:$0xff] %v8074_v54  ;;  %v1772_v0 = vmul.f32 0.044715, %v8056_v50  ;;  %v8082_v7 = vpop.f32.mrb[127].mxu1  ;;  %v2620_v24 = vmul.f32 %v2492_v30, %v1596_v9  ;;  %v2624_v33 = vmul.f32 %v2496_v48, %v1600_v53  ;;  %v2125_v25 = vadd.f32 %v7887_v43, %v7807_v37 }
 0x285   : > { %9557 = vst [vmem:[#allocation48_spill] sm:$0xff] %v8082_v7  ;;  %3491 = vmatprep.mubr.bf16.mxu0 %v2797_v5  ;;  %v2129_v17 = vadd.f32 %v7931_v44, %v7858_v45  ;;  %v8089_v14 = vmul.f32 %v1896_v51, %v8026_v26  ;;  %v1897_v42 = vmul.f32 %v1769_v59, %v8045_v41  ;;  %v9559_v7 = vld [vmem:[#allocation43_spill] sm:$0xff]  ;;  %v1773_v53 = vmul.f32 0.044715, %v8072_v52 }
 0x286   : > { %v8094_v20 = vadd.f32 %v9558_v21, %v7405_v6  ;;  %v2124_v5 = vadd.f32 %v9559_v7, %v7798_v38  ;;  %v2796_v9 = vpack.c.bf16 %v2624_v33, %v2620_v24  ;;  %v2253_v48 = vmul.f32 0.7978846, %v2125_v25  ;;  %v9560_v7 = vld [vmem:[#allocation50_spill] sm:$0xff]  ;;  %v9561_v33 = vld [vmem:[#allocation39_spill] sm:$0xff] }
 0x287   : > { %v2257_v43 = vmul.f32 0.7978846, %v2129_v17  ;;  %v1900_v44 = vmul.f32 %v1772_v0, %v8056_v50  ;;  %v2128_v59 = vadd.f32 %v7922_v49, %v7829_v16  ;;  %v8105_v24 = vadd.f32 %v9560_v7, %v7424_v62 }
 0x288   : > { %v5775_v30 = vpop.eup %5774  ;;  %v1776_v51 = vmul.f32 0.044715, %v8094_v20  ;;  %v2252_v54 = vmul.f32 0.7978846, %v2124_v5  ;;  %3492 = vmatmul.mubr.bf16.gmra.mrb[16].mxu0 %v2796_v9  ;;  %5782 = vtanh.f32 %v2253_v48  ;;  %v8109_v25 = vadd.f32 %v9561_v33, %v7405_v6 }
 0x289   : > { %v5777_v28 = vpop.eup %5776  ;;  %v2501_v21 = vadd.f32 1.0, %v5775_v30  ;;  %v1613_v0 = vmul.f32 0.5, %v7807_v37  ;;  %5784 = vtanh.f32 %v2257_v43  ;;  %v2256_v58 = vmul.f32 0.7978846, %v2128_v59 }
 0x28a   : > { %v2505_v17 = vadd.f32 1.0, %v5777_v28  ;;  %v5779_v2 = vpop.eup %5778  ;;  %v8113_v49 = vmul.f32 %v1897_v42, %v8045_v41  ;;  %v1901_v5 = vmul.f32 %v1773_v53, %v8072_v52  ;;  %v1904_v9 = vmul.f32 %v1776_v51, %v8094_v20 }
 0x28b   : > { %5786 = vtanh.f32 %v2252_v54  ;;  %v5781_v48 = vpop.eup %5780  ;;  %v2629_v30 = vmul.f32 %v2501_v21, %v8048_v35  ;;  %v2500_v33 = vadd.f32 1.0, %v5779_v2  ;;  %v8119_v37 = vmul.f32 %v1900_v44, %v8056_v50  ;;  %v9562_v54 = vld [vmem:[#allocation44_spill] sm:$0xff] }
 0x28c   : > { %v2633_v7 = vmul.f32 %v2505_v17, %v1609_v46  ;;  %5788 = vtanh.f32 %v2256_v58  ;;  %v2504_v28 = vadd.f32 1.0, %v5781_v48  ;;  %v1777_v43 = vmul.f32 0.044715, %v8105_v24 }
 0x28d   : > { %v1780_v42 = vmul.f32 0.044715, %v8109_v25  ;;  %v1617_v53 = vmul.f32 0.5, %v7858_v45  ;;  %v1612_v51 = vmul.f32 0.5, %v7798_v38  ;;  %v8127_v23 = vadd.f32 %v9562_v54, %v7424_v62 }
 0x28e   : > { %v2801_v59 = vpack.c.bf16 %v2633_v7, %v2629_v30  ;;  %v2628_v35 = vmul.f32 %v2500_v33, %v1604_v19  ;;  %v2632_v2 = vmul.f32 %v2504_v28, %v1608_v39  ;;  %v8130_v46 = vmul.f32 %v1901_v5, %v8072_v52  ;;  %v9563_v33 = vld [vmem:[#allocation41_spill] sm:$0xff] }
 0x28f   : > { %v1616_v58 = vmul.f32 0.5, %v7829_v16  ;;  %v8134_v44 = vmul.f32 %v1904_v9, %v8094_v20  ;;  %v2133_v45 = vadd.f32 %v7949_v61, %v7878_v13  ;;  %v2137_v38 = vadd.f32 %v7996_v47, %v7914_v63 }
 0x290   : > { %3501 = vmatprep.mubr.bf16.mxu0 %v2801_v59  ;;  %v8142_v21 = vadd.f32 %v7884_v40, %v7405_v6  ;;  %v2800_v19 = vpack.c.bf16 %v2632_v2, %v2628_v35  ;;  %v1905_v39 = vmul.f32 %v1777_v43, %v8105_v24  ;;  %v1908_v17 = vmul.f32 %v1780_v42, %v8109_v25 }
 0x291   : > { %v2132_v16 = vadd.f32 %v7942_v36, %v7869_v60  ;;  %v1781_v5 = vmul.f32 0.044715, %v8127_v23  ;;  %v2261_v9 = vmul.f32 0.7978846, %v2133_v45  ;;  %v2265_v48 = vmul.f32 0.7978846, %v2137_v38 }
 0x292   : > { %v2136_v61 = vadd.f32 %v7963_v27, %v7903_v34  ;;  %v5783_v47 = vpop.eup %5782  ;;  %3502 = vmatmul.mubr.bf16.gmra.mrb[20].mxu0 %v2800_v19  ;;  %v8152_v40 = vmul.f32 0.5, %v7878_v13  ;;  %v1784_v30 = vmul.f32 0.044715, %v8142_v21  ;;  %v8157_v28 = vadd.f32 %v9563_v33, %v7424_v62 }
 0x293   : > { %v2260_v7 = vmul.f32 0.7978846, %v2132_v16  ;;  %v5785_v36 = vpop.eup %5784  ;;  %v2509_v43 = vadd.f32 1.0, %v5783_v47  ;;  %5790 = vtanh.f32 %v2261_v9  ;;  %v8161_v59 = vadd.f32 %v7916_v22, %v7405_v6 }
 0x294   : > { %v2264_v42 = vmul.f32 0.7978846, %v2136_v61  ;;  %v2513_v54 = vadd.f32 1.0, %v5785_v36  ;;  %v1625_v13 = vmul.f32 0.5, %v7914_v63  ;;  %5792 = vtanh.f32 %v2265_v48 }
 0x295   : > { %v5787_v27 = vpop.eup %5786  ;;  %v1785_v35 = vmul.f32 0.044715, %v8157_v28  ;;  %v1909_v38 = vmul.f32 %v1781_v5, %v8127_v23  ;;  %5794 = vtanh.f32 %v2260_v7  ;;  %v8168_v19 = vadd.f32 %v7919_v12, %v7424_v62 }
 0x296   : > { %v5789_v2 = vpop.eup %5788  ;;  %v2508_v45 = vadd.f32 1.0, %v5787_v27  ;;  %v2637_v16 = vmul.f32 %v2509_v43, %v1613_v0  ;;  %v2641_v9 = vmul.f32 %v2513_v54, %v1617_v53  ;;  %5796 = vtanh.f32 %v2264_v42 }
 0x297   : > { %v2512_v22 = vadd.f32 1.0, %v5789_v2  ;;  %v8171_v61 = vmul.f32 %v1905_v39, %v8105_v24  ;;  %v8174_v63 = vmul.f32 %v1908_v17, %v8109_v25  ;;  %v1912_v48 = vmul.f32 %v1784_v30, %v8142_v21 }
 0x298   : > { %v1788_v47 = vmul.f32 0.044715, %v8161_v59  ;;  %v2805_v5 = vpack.c.bf16 %v2641_v9, %v2637_v16  ;;  %v2636_v7 = vmul.f32 %v2508_v45, %v1612_v51  ;;  %v1913_v12 = vmul.f32 %v1785_v35, %v8157_v28 }
 0x299   : > { %v2640_v33 = vmul.f32 %v2512_v22, %v1616_v58  ;;  %v8180_v0 = vmul.f32 %v1909_v38, %v8127_v23  ;;  %v1620_v53 = vmul.f32 0.5, %v7869_v60  ;;  %v2141_v39 = vadd.f32 %v8020_v18, %v7946_v32 }
 0x29a   : > { %v2145_v17 = vadd.f32 %v8051_v11, %v7987_v55  ;;  %3511 = vmatprep.mubr.bf16.mxu0 %v2805_v5  ;;  %v1624_v36 = vmul.f32 0.5, %v7903_v34  ;;  %v1789_v51 = vmul.f32 0.044715, %v8168_v19  ;;  %v8191_v58 = vadd.f32 %v7926_v10, %v7405_v6 }
 0x29b   : > { %v2804_v30 = vpack.c.bf16 %v2640_v33, %v2636_v7  ;;  %v1916_v43 = vmul.f32 %v1788_v47, %v8161_v59  ;;  %v2269_v42 = vmul.f32 0.7978846, %v2141_v39  ;;  %v2140_v18 = vadd.f32 %v8011_v8, %v7939_v29  ;;  %v9564_v7 = vld [vmem:[#allocation45_spill] sm:$0xff] }
 0x29c   : > { %v2273_v60 = vmul.f32 0.7978846, %v2145_v17  ;;  %v8197_v11 = vmul.f32 %v1912_v48, %v8142_v21  ;;  %v8200_v27 = vmul.f32 %v1913_v12, %v8157_v28  ;;  %v8203_v34 = vmul.f32 0.5, %v7946_v32 }
 0x29d   : > { %3512 = vmatmul.mubr.bf16.gmra.mrb[24].mxu0 %v2804_v30  ;;  %v2144_v10 = vadd.f32 %v8031_v1, %v7960_v31  ;;  %v5791_v54 = vpop.eup %5790  ;;  %v8208_v35 = vmul.f32 0.5, %v7987_v55  ;;  %5798 = vtanh.f32 %v2269_v42  ;;  %v1792_v8 = vmul.f32 0.044715, %v8191_v58 }
 0x29e   : > { %v2268_v2 = vmul.f32 0.7978846, %v2140_v18  ;;  %v5793_v45 = vpop.eup %5792  ;;  %v2517_v38 = vadd.f32 1.0, %v5791_v54  ;;  %v1917_v16 = vmul.f32 %v1789_v51, %v8168_v19  ;;  %5800 = vtanh.f32 %v2273_v60 }
 0x29f   : > { %v2272_v9 = vmul.f32 0.7978846, %v2144_v10  ;;  %v5795_v22 = vpop.eup %5794  ;;  %v2521_v32 = vadd.f32 1.0, %v5793_v45  ;;  %v8213_v48 = vmul.f32 %v1916_v43, %v8161_v59  ;;  %v8217_v55 = vadd.f32 %v7933_v56, %v7424_v62  ;;  %v9565_v43 = vld [vmem:[#allocation46_spill] sm:$0xff] }
 0x2a0   : > { %5802 = vtanh.f32 %v2268_v2  ;;  %v5797_v1 = vpop.eup %5796  ;;  %v2516_v47 = vadd.f32 1.0, %v5795_v22  ;;  %v1628_v5 = vmul.f32 0.5, %v7939_v29  ;;  %v8222_v33 = vadd.f32 %v9564_v7, %v7405_v6 }
 0x2a1   : > { %5804 = vtanh.f32 %v2272_v9  ;;  %v2645_v12 = vmul.f32 %v2517_v38, %v8152_v40  ;;  %v2649_v39 = vmul.f32 %v2521_v32, %v1625_v13  ;;  %v2520_v17 = vadd.f32 1.0, %v5797_v1 }
 0x2a2   : > { %v1920_v30 = vmul.f32 %v1792_v8, %v8191_v58  ;;  %v8227_v51 = vmul.f32 %v1917_v16, %v8168_v19  ;;  %v1632_v56 = vmul.f32 0.5, %v7960_v31  ;;  %v8232_v42 = vadd.f32 %v9565_v43, %v7424_v62  ;;  %v9566_v31 = vld [vmem:[#allocation47_spill] sm:$0xff] }
 0x2a3   : > { %v2149_v29 = vadd.f32 %v8077_v3, %v8005_v57  ;;  %v2809_v60 = vpack.c.bf16 %v2649_v39, %v2645_v12  ;;  %v2644_v18 = vmul.f32 %v2516_v47, %v1620_v53  ;;  %v2648_v10 = vmul.f32 %v2520_v17, %v1624_v36  ;;  %v9568_v39 = vld [vmem:[#allocation53_spill] sm:$0xff] }
 0x2a4   : > { %v1793_v40 = vmul.f32 0.044715, %v8217_v55  ;;  %v1796_v13 = vmul.f32 0.044715, %v8222_v33  ;;  %v2153_v54 = vadd.f32 %v8113_v49, %v8045_v41  ;;  %v8242_v2 = vadd.f32 %v9566_v31, %v7405_v6 }
 0x2a5   : > { %v2277_v8 = vmul.f32 0.7978846, %v2149_v29  ;;  %3521 = vmatprep.mubr.bf16.mxu0 %v2809_v60  ;;  %v2808_v45 = vpack.c.bf16 %v2648_v10, %v2644_v18  ;;  %v8245_v38 = vmul.f32 %v1920_v30, %v8191_v58  ;;  %v8248_v3 = vmul.f32 0.5, %v8005_v57  ;;  %v9567_v57 = vld [vmem:[#allocation52_spill] sm:$0xff] }
 0x2a6   : > { %v2148_v53 = vadd.f32 %v8068_v4, %v7993_v15  ;;  %v1797_v36 = vmul.f32 0.044715, %v8232_v42  ;;  %v2281_v16 = vmul.f32 0.7978846, %v2153_v54  ;;  %v1800_v49 = vmul.f32 0.044715, %v8242_v2 }
 0x2a7   : > { %5806 = vtanh.f32 %v2277_v8  ;;  %v5799_v9 = vpop.eup %5798  ;;  %3522 = vmatmul.mubr.bf16.gmra.mrb[28].mxu0 %v2808_v45  ;;  %v1921_v22 = vmul.f32 %v1793_v40, %v8217_v55  ;;  %v2152_v32 = vadd.f32 %v8089_v14, %v8026_v26  ;;  %v8259_v47 = vadd.f32 %v9567_v57, %v7424_v62 }
 0x2a8   : > { %v2276_v1 = vmul.f32 0.7978846, %v2148_v53  ;;  %v5801_v7 = vpop.eup %5800  ;;  %v2525_v4 = vadd.f32 1.0, %v5799_v9  ;;  %v1924_v12 = vmul.f32 %v1796_v13, %v8222_v33  ;;  %5808 = vtanh.f32 %v2281_v16 }
 0x2a9   : > { %v8264_v17 = vadd.f32 %v9568_v39, %v7405_v6  ;;  %v2529_v43 = vadd.f32 1.0, %v5801_v7  ;;  %v1641_v29 = vmul.f32 0.5, %v8045_v41  ;;  %v2280_v60 = vmul.f32 0.7978846, %v2152_v32  ;;  %v9569_v32 = vld [vmem:[#allocation54_spill] sm:$0xff]  ;;  %v9570_v7 = vld [vmem:[#allocation55_spill] sm:$0xff] }
 0x2aa   : > { %v5803_v30 = vpop.eup %5802  ;;  %5810 = vtanh.f32 %v2276_v1  ;;  %v1925_v10 = vmul.f32 %v1797_v36, %v8232_v42  ;;  %v1928_v40 = vmul.f32 %v1800_v49, %v8242_v2  ;;  %v1801_v54 = vmul.f32 0.044715, %v8259_v47 }
 0x2ab   : > { %v5805_v14 = vpop.eup %5804  ;;  %v2524_v18 = vadd.f32 1.0, %v5803_v30  ;;  %v2653_v13 = vmul.f32 %v2525_v4, %v8203_v34  ;;  %v2657_v8 = vmul.f32 %v2529_v43, %v8208_v35  ;;  %5812 = vtanh.f32 %v2280_v60 }
 0x2ac   : > { %v2528_v31 = vadd.f32 1.0, %v5805_v14  ;;  %v8273_v45 = vmul.f32 %v1921_v22, %v8217_v55  ;;  %v8276_v41 = vmul.f32 %v1924_v12, %v8222_v33  ;;  %v1636_v53 = vmul.f32 0.5, %v7993_v15  ;;  %v9571_v14 = vld [vmem:[#allocation56_spill] sm:$0xff] }
 0x2ad   : > { %v1804_v36 = vmul.f32 0.044715, %v8264_v17  ;;  %v2813_v16 = vpack.c.bf16 %v2657_v8, %v2653_v13  ;;  %v2652_v49 = vmul.f32 %v2524_v18, %v1628_v5  ;;  %v8282_v34 = vadd.f32 %v9569_v32, %v7424_v62  ;;  %v9572_v13 = vld [vmem:[#allocation51_spill] sm:$0xff] }
 0x2ae   : > { %v2656_v9 = vmul.f32 %v2528_v31, %v1632_v56  ;;  %v8285_v35 = vmul.f32 %v1925_v10, %v8232_v42  ;;  %v1640_v22 = vmul.f32 0.5, %v8026_v26  ;;  %v2157_v1 = vadd.f32 %v8130_v46, %v8072_v52 }
 0x2af   : > { %v2161_v15 = vadd.f32 %v8171_v61, %v8105_v24  ;;  %3531 = vmatprep.mubr.bf16.mxu0 %v2813_v16  ;;  %v8293_v5 = vmul.f32 %v1928_v40, %v8242_v2  ;;  %v1929_v56 = vmul.f32 %v1801_v54, %v8259_v47  ;;  %v8298_v4 = vadd.f32 %v9570_v7, %v7405_v6 }
 0x2b0   : > { %v2812_v57 = vpack.c.bf16 %v2656_v9, %v2652_v49  ;;  %v1932_v26 = vmul.f32 %v1804_v36, %v8264_v17  ;;  %v2285_v39 = vmul.f32 0.7978846, %v2157_v1  ;;  %v2156_v46 = vadd.f32 %v8119_v37, %v8056_v50 }
 0x2b1   : > { %v5807_v12 = vpop.eup %5806  ;;  %v2289_v30 = vmul.f32 0.7978846, %v2161_v15  ;;  %v1805_v43 = vmul.f32 0.044715, %v8282_v34  ;;  %v2160_v60 = vadd.f32 %v8134_v44, %v8094_v20  ;;  %v8308_v18 = vadd.f32 %v9571_v14, %v7424_v62  ;;  %v9573_v44 = vld [vmem:[#allocation42_spill] sm:$0xff] }
 0x2b2   : > { %3532 = vmatmul.mubr.bf16.gmra.mrb[32].mxu0 %v2812_v57  ;;  %v2533_v61 = vadd.f32 1.0, %v5807_v12  ;;  %v5809_v10 = vpop.eup %5808  ;;  %5814 = vtanh.f32 %v2285_v39  ;;  %v1808_v40 = vmul.f32 0.044715, %v8298_v4  ;;  %v2284_v54 = vmul.f32 0.7978846, %v2156_v46 }
 0x2b3   : > { %v8313_v8 = vadd.f32 %v9572_v13, %v7405_v6  ;;  %v2537_v31 = vadd.f32 1.0, %v5809_v10  ;;  %v1645_v36 = vmul.f32 0.5, %v8072_v52  ;;  %5816 = vtanh.f32 %v2289_v30 }
 0x2b4   : > { %v5811_v37 = vpop.eup %5810  ;;  %v8318_v16 = vadd.f32 %v9573_v44, %v7424_v62  ;;  %v2288_v9 = vmul.f32 0.7978846, %v2160_v60  ;;  %5818 = vtanh.f32 %v2284_v54  ;;  %v1809_v32 = vmul.f32 0.044715, %v8308_v18 }
 0x2b5   : > { %v2532_v49 = vadd.f32 1.0, %v5811_v37  ;;  %v5813_v1 = vpop.eup %5812  ;;  %v2661_v15 = vmul.f32 %v2533_v61, %v8248_v3  ;;  %v2665_v57 = vmul.f32 %v2537_v31, %v1641_v29  ;;  %v8323_v7 = vmul.f32 %v1929_v56, %v8259_v47 }
 0x2b6   : > { %v1933_v12 = vmul.f32 %v1805_v43, %v8282_v34  ;;  %v2536_v52 = vadd.f32 1.0, %v5813_v1  ;;  %v1936_v39 = vmul.f32 %v1808_v40, %v8298_v4  ;;  %5820 = vtanh.f32 %v2288_v9 }
 0x2b7   : > { %v1812_v30 = vmul.f32 0.044715, %v8313_v8  ;;  %v2817_v46 = vpack.c.bf16 %v2665_v57, %v2661_v15  ;;  %v8329_v60 = vmul.f32 %v1932_v26, %v8264_v17  ;;  %v1649_v14 = vmul.f32 0.5, %v8105_v24 }
 0x2b8   : > { %v1813_v3 = vmul.f32 0.044715, %v8318_v16  ;;  %v2660_v29 = vmul.f32 %v2532_v49, %v1636_v53  ;;  %v2664_v61 = vmul.f32 %v2536_v52, %v1640_v22  ;;  %v1937_v56 = vmul.f32 %v1809_v32, %v8308_v18 }
 0x2b9   : > { %v2165_v43 = vadd.f32 %v8180_v0, %v8127_v23  ;;  %3541 = vmatprep.mubr.bf16.mxu0 %v2817_v46  ;;  %v8337_v10 = vmul.f32 %v1933_v12, %v8282_v34  ;;  %v1644_v40 = vmul.f32 0.5, %v8056_v50  ;;  %v1648_v26 = vmul.f32 0.5, %v8094_v20  ;;  %v9574_v0 = vld [vmem:[#allocation40_spill] sm:$0xff] }
 0x2ba   : > { %v2169_v24 = vadd.f32 %v8200_v27, %v8157_v28  ;;  %v2816_v54 = vpack.c.bf16 %v2664_v61, %v2660_v29  ;;  %v8344_v53 = vmul.f32 %v1936_v39, %v8298_v4  ;;  %v1940_v22 = vmul.f32 %v1812_v30, %v8313_v8 }
 0x2bb   : > { %v2293_v13 = vmul.f32 0.7978846, %v2165_v43  ;;  %v8349_v31 = vadd.f32 %v9574_v0, %v7405_v6  ;;  %v2164_v50 = vadd.f32 %v8174_v63, %v8109_v25  ;;  %v2168_v20 = vadd.f32 %v8197_v11, %v8142_v21 }
 0x2bc   : > { %v2297_v37 = vmul.f32 0.7978846, %v2169_v24  ;;  %v5815_v44 = vpop.eup %5814  ;;  %3542 = vmatmul.mubr.bf16.gmra.mrb[36].mxu0 %v2816_v54  ;;  %v8356_v27 = vmul.f32 %v1937_v56, %v8308_v18  ;;  %v1941_v49 = vmul.f32 %v1813_v3, %v8318_v16  ;;  %v1653_v9 = vmul.f32 0.5, %v8127_v23  ;;  %v9575_v23 = vld [vmem:[#allocation48_spill] sm:$0xff] }
 0x2bd   : > { %5822 = vtanh.f32 %v2293_v13  ;;  %v5817_v32 = vpop.eup %5816  ;;  %v2541_v1 = vadd.f32 1.0, %v5815_v44  ;;  %v1657_v6 = vmul.f32 0.5, %v8157_v28  ;;  %v2292_v15 = vmul.f32 0.7978846, %v2164_v50 }
 0x2be   : > { %5824 = vtanh.f32 %v2297_v37  ;;  %v5819_v63 = vpop.eup %5818  ;;  %v2545_v57 = vadd.f32 1.0, %v5817_v32  ;;  %v8362_v11 = vmul.f32 %v1940_v22, %v8313_v8  ;;  %v2296_v12 = vmul.f32 0.7978846, %v2168_v20 }
 0x2bf   : > { %v2173_v52 = vadd.f32 %v8227_v51, %v8168_v19  ;;  %v2540_v39 = vadd.f32 1.0, %v5819_v63  ;;  %v1816_v30 = vmul.f32 0.044715, %v8349_v31  ;;  %5826 = vtanh.f32 %v2292_v15 }
 0x2c0   : > { %v8369_v46 = vadd.f32 %v9575_v23, %v7424_v62  ;;  %v5821_v28 = vpop.eup %5820  ;;  %v2669_v3 = vmul.f32 %v2541_v1, %v1645_v36  ;;  %v2673_v29 = vmul.f32 %v2545_v57, %v1649_v14  ;;  %5828 = vtanh.f32 %v2296_v12 }
 0x2c1   : > { %v2177_v61 = vadd.f32 %v8273_v45, %v8217_v55  ;;  %v2544_v56 = vadd.f32 1.0, %v5821_v28  ;;  %v8374_v43 = vmul.f32 %v1941_v49, %v8318_v16  ;;  %v1652_v51 = vmul.f32 0.5, %v8109_v25 }
 0x2c2   : > { %v2301_v24 = vmul.f32 0.7978846, %v2173_v52  ;;  %v2821_v54 = vpack.c.bf16 %v2673_v29, %v2669_v3  ;;  %v2668_v22 = vmul.f32 %v2540_v39, %v1644_v40  ;;  %v1656_v13 = vmul.f32 0.5, %v8142_v21 }
 0x2c3   : > { %v2305_v62 = vmul.f32 0.7978846, %v2177_v61  ;;  %v2672_v37 = vmul.f32 %v2544_v56, %v1648_v26  ;;  %v2172_v36 = vadd.f32 %v8213_v48, %v8161_v59  ;;  %v2176_v45 = vadd.f32 %v8245_v38, %v8191_v58 }
 0x2c4   : > { %5830 = vtanh.f32 %v2301_v24  ;;  %3551 = vmatprep.mubr.bf16.mxu0 %v2821_v54  ;;  %v1944_v14 = vmul.f32 %v1816_v30, %v8349_v31  ;;  %v1817_v0 = vmul.f32 0.044715, %v8369_v46  ;;  %v2181_v25 = vadd.f32 %v8285_v35, %v8232_v42 }
 0x2c5   : > { %5832 = vtanh.f32 %v2305_v62  ;;  %v2820_v40 = vpack.c.bf16 %v2672_v37, %v2668_v22  ;;  %v2300_v21 = vmul.f32 0.7978846, %v2172_v36  ;;  %v2304_v50 = vmul.f32 0.7978846, %v2176_v45 }
 0x2c6   : > { %v2185_v26 = vadd.f32 %v8323_v7, %v8259_v47  ;;  %v1661_v48 = vmul.f32 0.5, %v8168_v19  ;;  %v1665_v38 = vmul.f32 0.5, %v8217_v55  ;;  %v2309_v44 = vmul.f32 0.7978846, %v2181_v25 }
 0x2c7   : > { %v5823_v20 = vpop.eup %5822  ;;  %v2180_v49 = vadd.f32 %v8276_v41, %v8222_v33  ;;  %3552 = vmatmul.mubr.bf16.gmra.mrb[40].mxu0 %v2820_v40  ;;  %5834 = vtanh.f32 %v2300_v21  ;;  %v2184_v15 = vadd.f32 %v8293_v5, %v8242_v2  ;;  %v1945_v7 = vmul.f32 %v1817_v0, %v8369_v46 }
 0x2c8   : > { %v5825_v32 = vpop.eup %5824  ;;  %v2549_v1 = vadd.f32 1.0, %v5823_v20  ;;  %v2313_v35 = vmul.f32 0.7978846, %v2185_v26  ;;  %5836 = vtanh.f32 %v2304_v50  ;;  %v2072_v55 = vmul.f32 %v1944_v14, %v8349_v31 }
 0x2c9   : > { %v2553_v63 = vadd.f32 1.0, %v5825_v32  ;;  %v2308_v57 = vmul.f32 0.7978846, %v2180_v49  ;;  %v5827_v19 = vpop.eup %5826  ;;  %5838 = vtanh.f32 %v2309_v44  ;;  %v2312_v52 = vmul.f32 0.7978846, %v2184_v15 }
 0x2ca   : > { %v2677_v12 = vmul.f32 %v2549_v1, %v1653_v9  ;;  %v5829_v41 = vpop.eup %5828  ;;  %v2548_v30 = vadd.f32 1.0, %v5827_v19  ;;  %5840 = vtanh.f32 %v2313_v35  ;;  %v2189_v23 = vadd.f32 %v8337_v10, %v8282_v34 }
 0x2cb   : > { %v2681_v39 = vmul.f32 %v2553_v63, %v1657_v6  ;;  %v2552_v28 = vadd.f32 1.0, %v5829_v41  ;;  %v1660_v5 = vmul.f32 0.5, %v8161_v59  ;;  %5842 = vtanh.f32 %v2308_v57 }
 0x2cc   : > { %v2193_v3 = vadd.f32 %v8356_v27, %v8308_v18  ;;  %v2073_v9 = vmul.f32 %v1945_v7, %v8369_v46  ;;  %5844 = vtanh.f32 %v2312_v52  ;;  %v2317_v61 = vmul.f32 0.7978846, %v2189_v23 }
 0x2cd   : > { %v2825_v29 = vpack.c.bf16 %v2681_v39, %v2677_v12  ;;  %v2676_v24 = vmul.f32 %v2548_v30, %v1652_v51  ;;  %v2680_v6 = vmul.f32 %v2552_v28, %v1656_v13  ;;  %v2188_v22 = vadd.f32 %v8329_v60, %v8264_v17 }
 0x2ce   : > { %v5831_v56 = vpop.eup %5830  ;;  %v2321_v54 = vmul.f32 0.7978846, %v2193_v3  ;;  %v1664_v59 = vmul.f32 0.5, %v8191_v58  ;;  %5846 = vtanh.f32 %v2317_v61  ;;  %v2192_v27 = vadd.f32 %v8344_v53, %v8298_v4 }
 0x2cf   : > { %v5833_v10 = vpop.eup %5832  ;;  %3561 = vmatprep.mubr.bf16.mxu0 %v2825_v29  ;;  %v2557_v62 = vadd.f32 1.0, %v5831_v56  ;;  %v2824_v37 = vpack.c.bf16 %v2680_v6, %v2676_v24  ;;  %v2316_v45 = vmul.f32 0.7978846, %v2188_v22  ;;  %v1669_v51 = vmul.f32 0.5, %v8232_v42 }
 0x2d0   : > { %v2561_v36 = vadd.f32 1.0, %v5833_v10  ;;  %5848 = vtanh.f32 %v2321_v54  ;;  %v1673_v13 = vmul.f32 0.5, %v8259_v47  ;;  %v2320_v14 = vmul.f32 0.7978846, %v2192_v27 }
 0x2d1   : > { %v2197_v60 = vadd.f32 %v8374_v43, %v8318_v16  ;;  %v5835_v0 = vpop.eup %5834  ;;  %3562 = vmatmul.mubr.bf16.gmra.mrb[44].mxu0 %v2824_v37  ;;  %v2685_v25 = vmul.f32 %v2557_v62, %v1661_v48  ;;  %5850 = vtanh.f32 %v2316_v45  ;;  %v2201_v40 = vadd.f32 %v2073_v9, %v8369_v46 }
 0x2d2   : > { %v2689_v58 = vmul.f32 %v2561_v36, %v1665_v38  ;;  %v5837_v53 = vpop.eup %5836  ;;  %v2556_v21 = vadd.f32 1.0, %v5835_v0  ;;  %v1668_v50 = vmul.f32 0.5, %v8222_v33  ;;  %5852 = vtanh.f32 %v2320_v14 }
 0x2d3   : > { %v2325_v26 = vmul.f32 0.7978846, %v2197_v60  ;;  %v5839_v42 = vpop.eup %5838  ;;  %v2560_v47 = vadd.f32 1.0, %v5837_v53  ;;  %v2329_v44 = vmul.f32 0.7978846, %v2201_v40  ;;  %v2196_v43 = vadd.f32 %v8362_v11, %v8313_v8 }
 0x2d4   : > { %v2829_v20 = vpack.c.bf16 %v2689_v58, %v2685_v25  ;;  %v5841_v49 = vpop.eup %5840  ;;  %v2684_v32 = vmul.f32 %v2556_v21, %v1660_v5  ;;  %v2565_v48 = vadd.f32 1.0, %v5839_v42  ;;  %v2200_v38 = vadd.f32 %v2072_v55, %v8349_v31  ;;  %v2715_v42 = vld [vmem:[#allocation2 + $0x8] sm:$0xff] }
 0x2d5   : > { %5854 = vtanh.f32 %v2325_v26  ;;  %v5843_v1 = vpop.eup %5842  ;;  %v2688_v35 = vmul.f32 %v2560_v47, %v1664_v59  ;;  %v2569_v15 = vadd.f32 1.0, %v5841_v49  ;;  %v2324_v33 = vmul.f32 0.7978846, %v2196_v43  ;;  %v2716_v47 = vld [vmem:[#allocation2 + $0x10] sm:$0xff]  ;;  %v2717_v49 = vld [vmem:[#allocation2 + $0x18] sm:$0xff] }
 0x2d6   : > { %3571 = vmatprep.mubr.bf16.mxu0 %v2829_v20  ;;  %5856 = vtanh.f32 %v2329_v44  ;;  %v5845_v63 = vpop.eup %5844  ;;  %v2693_v7 = vmul.f32 %v2565_v48, %v1669_v51  ;;  %v1672_v57 = vmul.f32 0.5, %v8242_v2  ;;  %v2564_v19 = vadd.f32 1.0, %v5843_v1  ;;  %v2718_v1 = vld [vmem:[#allocation2 + $0x20] sm:$0xff] }
 0x2d7   : > { %v2328_v12 = vmul.f32 0.7978846, %v2200_v38  ;;  %v2828_v52 = vpack.c.bf16 %v2688_v35, %v2684_v32  ;;  %v2697_v11 = vmul.f32 %v2569_v15, %v1673_v13  ;;  %v2568_v41 = vadd.f32 1.0, %v5845_v63  ;;  %v2719_v35 = vld [vmem:[#allocation2 + $0x28] sm:$0xff] }
 0x2d8   : > { %5858 = vtanh.f32 %v2324_v33  ;;  %v5847_v39 = vpop.eup %5846  ;;  %v2692_v23 = vmul.f32 %v2564_v19, %v1668_v50  ;;  %v1677_v3 = vmul.f32 0.5, %v8282_v34  ;;  %v1681_v29 = vmul.f32 0.5, %v8308_v18  ;;  %v2720_v33 = vld [vmem:[#allocation2 + $0x30] sm:$0xff] }
 0x2d9   : > { %5860 = vtanh.f32 %v2328_v12  ;;  %3572 = vmatmul.mubr.bf16.gmra.mrb[48].mxu0 %v2828_v52  ;;  %v2833_v55 = vpack.c.bf16 %v2697_v11, %v2693_v7  ;;  %v2696_v28 = vmul.f32 %v2568_v41, %v1672_v57  ;;  %v2573_v5 = vadd.f32 1.0, %v5847_v39  ;;  %v2721_v57 = vld [vmem:[#allocation2 + $0x38] sm:$0xff]  ;;  %v2722_v39 = vld [vmem:[#allocation2 + $0x40] sm:$0xff] }
 0x2da   : > { %v5849_v30 = vpop.eup %5848  ;;  %v1676_v22 = vmul.f32 0.5, %v8264_v17  ;;  %v1680_v10 = vmul.f32 0.5, %v8298_v4  ;;  %v1685_v18 = vmul.f32 0.5, %v8318_v16  ;;  %v1689_v51 = vmul.f32 0.5, %v8369_v46  ;;  %v2714_v46 = vld [vmem:[#allocation2] sm:$0xff] }
 0x2db   : > { %v2577_v9 = vadd.f32 1.0, %v5849_v30  ;;  %v5851_v2 = vpop.eup %5850  ;;  %3581 = vmatprep.mubr.bf16.mxu0 %v2833_v55  ;;  %v2832_v61 = vpack.c.bf16 %v2696_v28, %v2692_v23  ;;  %v2701_v24 = vmul.f32 %v2573_v5, %v1677_v3  ;;  %v1684_v58 = vmul.f32 0.5, %v8313_v8  ;;  %v2723_v30 = vld [vmem:[#allocation2 + $0x48] sm:$0xff]  ;;  %v2724_v23 = vld [vmem:[#allocation2 + $0x50] sm:$0xff]  ;;  %v2725_v3 = vld [vmem:[#allocation2 + $0x58] sm:$0xff] }
 0x2dc   : > { %v5853_v56 = vpop.eup %5852  ;;  %v2572_v54 = vadd.f32 1.0, %v5851_v2  ;;  %v1688_v40 = vmul.f32 0.5, %v8349_v31 }
 0x2dd   : > { %v2705_v6 = vmul.f32 %v2577_v9, %v1681_v29  ;;  %v2576_v62 = vadd.f32 1.0, %v5853_v56 }
 0x2de   : > { %v2700_v36 = vmul.f32 %v2572_v54, %v1676_v22  ;;  %v2728_v22 = vld [vmem:[#allocation2 + $0x70] sm:$0xff] }
 0x2df   : > { %v5855_v59 = vpop.eup %5854  ;;  %v2837_v27 = vpack.c.bf16 %v2705_v6, %v2701_v24  ;;  %v2704_v34 = vmul.f32 %v2576_v62, %v1680_v10  ;;  %v2726_v24 = vld [vmem:[#allocation2 + $0x60] sm:$0xff]  ;;  %v2727_v6 = vld [vmem:[#allocation2 + $0x68] sm:$0xff] }
 0x2e0   : > { %v5857_v37 = vpop.eup %5856  ;;  %v2581_v45 = vadd.f32 1.0, %v5855_v59  ;;  %v2729_v59 = vld [vmem:[#allocation2 + $0x78] sm:$0xff] }
 0x2e1   : > { %v2585_v13 = vadd.f32 1.0, %v5857_v37  ;;  %3582 = vmatmul.mubr.bf16.gmra.mrb[52].mxu0 %v2832_v61  ;;  %v2836_v60 = vpack.c.bf16 %v2704_v34, %v2700_v36 }
 0x2e2   : > { %v5859_v14 = vpop.eup %5858  ;;  %3591 = vmatprep.mubr.bf16.mxu0 %v2837_v27  ;;  %v2709_v17 = vmul.f32 %v2581_v45, %v1685_v18  ;;  %v2730_v18 = vld [vmem:[#allocation2 + $0x80] sm:$0xff] }
 0x2e3   : > { %v5861_v0 = vpop.eup %5860  ;;  %v2713_v25 = vmul.f32 %v2585_v13, %v1689_v51  ;;  %v2580_v4 = vadd.f32 1.0, %v5859_v14  ;;  %v2731_v51 = vld [vmem:[#allocation2 + $0x88] sm:$0xff]  ;;  %v2732_v14 = vld [vmem:[#allocation2 + $0x90] sm:$0xff] }
 0x2e4   : > { %v2584_v53 = vadd.f32 1.0, %v5861_v0 }
 0x2e5   : > { %v2841_v21 = vpack.c.bf16 %v2713_v25, %v2709_v17  ;;  %v2708_v50 = vmul.f32 %v2580_v4, %v1684_v58  ;;  %v2733_v17 = vld [vmem:[#allocation2 + $0x98] sm:$0xff] }
 0x2e6   : > { %v2712_v26 = vmul.f32 %v2584_v53, %v1688_v40 }
 0x2e8   : > { %v2840_v16 = vpack.c.bf16 %v2712_v26, %v2708_v50  ;;  %v2735_v50 = vld [vmem:[#allocation2 + $0xa8] sm:$0xff] }
 0x2e9   : > { %3592 = vmatmul.mubr.bf16.gmra.mrb[56].mxu0 %v2836_v60 }
 0x2ea   : > { %3601 = vmatprep.mubr.bf16.mxu0 %v2841_v21  ;;  %v2734_v21 = vld [vmem:[#allocation2 + $0xa0] sm:$0xff] }
 0x2f1   : > { %3602 = vmatmul.mubr.bf16.gmra.mrb[60].mxu0 %v2840_v16  ;;  %v2736_v16 = vld [vmem:[#allocation2 + $0xb0] sm:$0xff] }
 0x333   : > { %v3453_v20 = vpop.f32.mrb[0].mxu0 }
 0x334   : > { %v3612_v44 = vadd.f32 %v3453_v20, %v2714_v46  ;;  %v3455_v43 = vpop.f32.mrb[1].mxu0  ;;  %v2737_v20 = vld [vmem:[#allocation2 + $0xb8] sm:$0xff] }
 0x335   : > { %v3613_v32 = vadd.f32 %v3455_v43, %v2715_v42  ;;  %v3457_v48 = vpop.f32.mrb[2].mxu0 }
 0x336   : > { %3676 = vst [vmem:[#allocation2] sm:$0xff] %v3612_v44  ;;  %v3614_v8 = vadd.f32 %v3457_v48, %v2716_v47  ;;  %v3459_v31 = vpop.f32.mrb[3].mxu0  ;;  %v2738_v48 = vld [vmem:[#allocation2 + $0xc0] sm:$0xff] }
 0x337   : > { %3677 = vst [vmem:[#allocation2 + $0x8] sm:$0xff] %v3613_v32  ;;  %v3615_v38 = vadd.f32 %v3459_v31, %v2717_v49 }
 0x338   : > { %3678 = vst [vmem:[#allocation2 + $0x10] sm:$0xff] %v3614_v8  ;;  %v2739_v8 = vld [vmem:[#allocation2 + $0xc8] sm:$0xff] }
 0x339   : > { %3679 = vst [vmem:[#allocation2 + $0x18] sm:$0xff] %v3615_v38  ;;  %v2740_v38 = vld [vmem:[#allocation2 + $0xd0] sm:$0xff] }
 0x33c   : > { %v3463_v15 = vpop.f32.mrb[4].mxu0 }
 0x33d   : > { %v3616_v63 = vadd.f32 %v3463_v15, %v2718_v1  ;;  %v3465_v7 = vpop.f32.mrb[5].mxu0  ;;  %v2741_v15 = vld [vmem:[#allocation2 + $0xd8] sm:$0xff] }
 0x33e   : > { %v3617_v19 = vadd.f32 %v3465_v7, %v2719_v35  ;;  %v3467_v12 = vpop.f32.mrb[6].mxu0 }
 0x33f   : > { %3680 = vst [vmem:[#allocation2 + $0x20] sm:$0xff] %v3616_v63  ;;  %v3618_v52 = vadd.f32 %v3467_v12, %v2720_v33  ;;  %v3469_v11 = vpop.f32.mrb[7].mxu0  ;;  %v2742_v12 = vld [vmem:[#allocation2 + $0xe0] sm:$0xff] }
 0x340   : > { %3681 = vst [vmem:[#allocation2 + $0x28] sm:$0xff] %v3617_v19  ;;  %v3619_v41 = vadd.f32 %v3469_v11, %v2721_v57 }
 0x341   : > { %3682 = vst [vmem:[#allocation2 + $0x30] sm:$0xff] %v3618_v52  ;;  %v2743_v52 = vld [vmem:[#allocation2 + $0xe8] sm:$0xff] }
 0x342   : > { %3683 = vst [vmem:[#allocation2 + $0x38] sm:$0xff] %v3619_v41  ;;  %v2744_v41 = vld [vmem:[#allocation2 + $0xf0] sm:$0xff] }
 0x346   : > { %v3473_v55 = vpop.f32.mrb[8].mxu0 }
 0x347   : > { %v3620_v28 = vadd.f32 %v3473_v55, %v2722_v39  ;;  %v3475_v5 = vpop.f32.mrb[9].mxu0  ;;  %v2745_v55 = vld [vmem:[#allocation2 + $0xf8] sm:$0xff] }
 0x348   : > { %v3621_v29 = vadd.f32 %v3475_v5, %v2723_v30  ;;  %v3477_v9 = vpop.f32.mrb[10].mxu0 }
 0x349   : > { %3684 = vst [vmem:[#allocation2 + $0x40] sm:$0xff] %v3620_v28  ;;  %v3622_v2 = vadd.f32 %v3477_v9, %v2724_v23  ;;  %v3479_v61 = vpop.f32.mrb[11].mxu0  ;;  %v2746_v9 = vld [vmem:[#allocation2 + $0x100] sm:$0xff] }
 0x34a   : > { %3685 = vst [vmem:[#allocation2 + $0x48] sm:$0xff] %v3621_v29  ;;  %v3623_v56 = vadd.f32 %v3479_v61, %v2725_v3 }
 0x34b   : > { %3686 = vst [vmem:[#allocation2 + $0x50] sm:$0xff] %v3622_v2  ;;  %v2747_v2 = vld [vmem:[#allocation2 + $0x108] sm:$0xff] }
 0x34c   : > { %3687 = vst [vmem:[#allocation2 + $0x58] sm:$0xff] %v3623_v56  ;;  %v2748_v56 = vld [vmem:[#allocation2 + $0x110] sm:$0xff] }
 0x350   : > { %v3483_v54 = vpop.f32.mrb[12].mxu0 }
 0x351   : > { %v3624_v10 = vadd.f32 %v3483_v54, %v2726_v24  ;;  %v3485_v62 = vpop.f32.mrb[13].mxu0  ;;  %v2749_v54 = vld [vmem:[#allocation2 + $0x118] sm:$0xff] }
 0x352   : > { %v3625_v27 = vadd.f32 %v3485_v62, %v2727_v6  ;;  %v3487_v37 = vpop.f32.mrb[14].mxu0 }
 0x353   : > { %3688 = vst [vmem:[#allocation2 + $0x60] sm:$0xff] %v3624_v10  ;;  %v3626_v36 = vadd.f32 %v3487_v37, %v2728_v22  ;;  %v3489_v34 = vpop.f32.mrb[15].mxu0  ;;  %v2750_v37 = vld [vmem:[#allocation2 + $0x120] sm:$0xff] }
 0x354   : > { %3689 = vst [vmem:[#allocation2 + $0x68] sm:$0xff] %v3625_v27  ;;  %v3627_v45 = vadd.f32 %v3489_v34, %v2729_v59 }
 0x355   : > { %3690 = vst [vmem:[#allocation2 + $0x70] sm:$0xff] %v3626_v36  ;;  %v2751_v36 = vld [vmem:[#allocation2 + $0x128] sm:$0xff] }
 0x356   : > { %3691 = vst [vmem:[#allocation2 + $0x78] sm:$0xff] %v3627_v45  ;;  %v2752_v45 = vld [vmem:[#allocation2 + $0x130] sm:$0xff] }
 0x35b   : > { %v3493_v13 = vpop.f32.mrb[16].mxu0 }
 0x35c   : > { %v3628_v60 = vadd.f32 %v3493_v13, %v2730_v18  ;;  %v3495_v0 = vpop.f32.mrb[17].mxu0  ;;  %v2753_v13 = vld [vmem:[#allocation2 + $0x138] sm:$0xff] }
 0x35d   : > { %v3629_v25 = vadd.f32 %v3495_v0, %v2731_v51  ;;  %v3497_v4 = vpop.f32.mrb[18].mxu0 }
 0x35e   : > { %3692 = vst [vmem:[#allocation2 + $0x80] sm:$0xff] %v3628_v60  ;;  %v3630_v58 = vadd.f32 %v3497_v4, %v2732_v14  ;;  %v3499_v40 = vpop.f32.mrb[19].mxu0  ;;  %v2754_v4 = vld [vmem:[#allocation2 + $0x140] sm:$0xff] }
 0x35f   : > { %3693 = vst [vmem:[#allocation2 + $0x88] sm:$0xff] %v3629_v25  ;;  %v3631_v53 = vadd.f32 %v3499_v40, %v2733_v17 }
 0x360   : > { %3694 = vst [vmem:[#allocation2 + $0x90] sm:$0xff] %v3630_v58  ;;  %v2755_v58 = vld [vmem:[#allocation2 + $0x148] sm:$0xff] }
 0x361   : > { %3695 = vst [vmem:[#allocation2 + $0x98] sm:$0xff] %v3631_v53  ;;  %v2756_v53 = vld [vmem:[#allocation2 + $0x150] sm:$0xff] }
 0x365   : > { %v3503_v26 = vpop.f32.mrb[20].mxu0 }
 0x366   : > { %v3632_v46 = vadd.f32 %v3503_v26, %v2734_v21  ;;  %v3505_v42 = vpop.f32.mrb[21].mxu0  ;;  %v2757_v26 = vld [vmem:[#allocation2 + $0x158] sm:$0xff] }
 0x367   : > { %v3633_v47 = vadd.f32 %v3505_v42, %v2735_v50  ;;  %v3507_v44 = vpop.f32.mrb[22].mxu0 }
 0x368   : > { %3696 = vst [vmem:[#allocation2 + $0xa0] sm:$0xff] %v3632_v46  ;;  %v3634_v43 = vadd.f32 %v3507_v44, %v2736_v16  ;;  %v3509_v49 = vpop.f32.mrb[23].mxu0  ;;  %v2758_v44 = vld [vmem:[#allocation2 + $0x160] sm:$0xff] }
 0x369   : > { %3697 = vst [vmem:[#allocation2 + $0xa8] sm:$0xff] %v3633_v47  ;;  %v3635_v32 = vadd.f32 %v3509_v49, %v2737_v20 }
 0x36a   : > { %3698 = vst [vmem:[#allocation2 + $0xb0] sm:$0xff] %v3634_v43  ;;  %v2759_v43 = vld [vmem:[#allocation2 + $0x168] sm:$0xff] }
 0x36b   : > { %3699 = vst [vmem:[#allocation2 + $0xb8] sm:$0xff] %v3635_v32  ;;  %v2760_v32 = vld [vmem:[#allocation2 + $0x170] sm:$0xff] }
 0x370   : > { %v3513_v31 = vpop.f32.mrb[24].mxu0 }
 0x371   : > { %v3636_v1 = vadd.f32 %v3513_v31, %v2738_v48  ;;  %v3515_v35 = vpop.f32.mrb[25].mxu0  ;;  %v2761_v31 = vld [vmem:[#allocation2 + $0x178] sm:$0xff] }
 0x372   : > { %v3637_v33 = vadd.f32 %v3515_v35, %v2739_v8  ;;  %v3517_v63 = vpop.f32.mrb[26].mxu0 }
 0x373   : > { %3700 = vst [vmem:[#allocation2 + $0xc0] sm:$0xff] %v3636_v1  ;;  %v3638_v7 = vadd.f32 %v3517_v63, %v2740_v38  ;;  %v3519_v57 = vpop.f32.mrb[27].mxu0  ;;  %v2762_v63 = vld [vmem:[#allocation2 + $0x180] sm:$0xff] }
 0x374   : > { %3701 = vst [vmem:[#allocation2 + $0xc8] sm:$0xff] %v3637_v33  ;;  %v3639_v19 = vadd.f32 %v3519_v57, %v2741_v15 }
 0x375   : > { %3702 = vst [vmem:[#allocation2 + $0xd0] sm:$0xff] %v3638_v7  ;;  %v2763_v7 = vld [vmem:[#allocation2 + $0x188] sm:$0xff] }
 0x376   : > { %3703 = vst [vmem:[#allocation2 + $0xd8] sm:$0xff] %v3639_v19  ;;  %v2764_v19 = vld [vmem:[#allocation2 + $0x190] sm:$0xff] }
 0x37a   : > { %v3523_v11 = vpop.f32.mrb[28].mxu0 }
 0x37b   : > { %v3640_v39 = vadd.f32 %v3523_v11, %v2742_v12  ;;  %v3525_v30 = vpop.f32.mrb[29].mxu0  ;;  %v2765_v11 = vld [vmem:[#allocation2 + $0x198] sm:$0xff] }
 0x37c   : > { %v3641_v23 = vadd.f32 %v3525_v30, %v2743_v52  ;;  %v3527_v28 = vpop.f32.mrb[30].mxu0 }
 0x37d   : > { %3704 = vst [vmem:[#allocation2 + $0xe0] sm:$0xff] %v3640_v39  ;;  %v3642_v5 = vadd.f32 %v3527_v28, %v2744_v41  ;;  %v3529_v3 = vpop.f32.mrb[31].mxu0  ;;  %v2766_v28 = vld [vmem:[#allocation2 + $0x1a0] sm:$0xff] }
 0x37e   : > { %3705 = vst [vmem:[#allocation2 + $0xe8] sm:$0xff] %v3641_v23  ;;  %v3643_v29 = vadd.f32 %v3529_v3, %v2745_v55 }
 0x37f   : > { %3706 = vst [vmem:[#allocation2 + $0xf0] sm:$0xff] %v3642_v5  ;;  %v2767_v5 = vld [vmem:[#allocation2 + $0x1a8] sm:$0xff] }
 0x380   : > { %3707 = vst [vmem:[#allocation2 + $0xf8] sm:$0xff] %v3643_v29  ;;  %v2768_v29 = vld [vmem:[#allocation2 + $0x1b0] sm:$0xff] }
 0x385   : > { %v3533_v61 = vpop.f32.mrb[32].mxu0 }
 0x386   : > { %v3644_v24 = vadd.f32 %v3533_v61, %v2746_v9  ;;  %v3535_v6 = vpop.f32.mrb[33].mxu0  ;;  %v2769_v61 = vld [vmem:[#allocation2 + $0x1b8] sm:$0xff] }
 0x387   : > { %v3645_v22 = vadd.f32 %v3535_v6, %v2747_v2  ;;  %v3537_v10 = vpop.f32.mrb[34].mxu0 }
 0x388   : > { %3708 = vst [vmem:[#allocation2 + $0x100] sm:$0xff] %v3644_v24  ;;  %v3646_v62 = vadd.f32 %v3537_v10, %v2748_v56  ;;  %v3539_v59 = vpop.f32.mrb[35].mxu0  ;;  %v2770_v10 = vld [vmem:[#allocation2 + $0x1c0] sm:$0xff] }
 0x389   : > { %3709 = vst [vmem:[#allocation2 + $0x108] sm:$0xff] %v3645_v22  ;;  %v3647_v27 = vadd.f32 %v3539_v59, %v2749_v54 }
 0x38a   : > { %3710 = vst [vmem:[#allocation2 + $0x110] sm:$0xff] %v3646_v62  ;;  %v2771_v62 = vld [vmem:[#allocation2 + $0x1c8] sm:$0xff] }
 0x38b   : > { %3711 = vst [vmem:[#allocation2 + $0x118] sm:$0xff] %v3647_v27  ;;  %v2772_v27 = vld [vmem:[#allocation2 + $0x1d0] sm:$0xff] }
 0x38f   : > { %v3543_v34 = vpop.f32.mrb[36].mxu0 }
 0x390   : > { %v3648_v18 = vadd.f32 %v3543_v34, %v2750_v37  ;;  %v3545_v51 = vpop.f32.mrb[37].mxu0  ;;  %v2773_v34 = vld [vmem:[#allocation2 + $0x1d8] sm:$0xff] }
 0x391   : > { %v3649_v14 = vadd.f32 %v3545_v51, %v2751_v36  ;;  %v3547_v60 = vpop.f32.mrb[38].mxu0 }
 0x392   : > { %3712 = vst [vmem:[#allocation2 + $0x120] sm:$0xff] %v3648_v18  ;;  %v3650_v0 = vadd.f32 %v3547_v60, %v2752_v45  ;;  %v3549_v17 = vpop.f32.mrb[39].mxu0  ;;  %v2774_v60 = vld [vmem:[#allocation2 + $0x1e0] sm:$0xff] }
 0x393   : > { %3713 = vst [vmem:[#allocation2 + $0x128] sm:$0xff] %v3649_v14  ;;  %v3651_v25 = vadd.f32 %v3549_v17, %v2753_v13 }
 0x394   : > { %3714 = vst [vmem:[#allocation2 + $0x130] sm:$0xff] %v3650_v0  ;;  %v2775_v0 = vld [vmem:[#allocation2 + $0x1e8] sm:$0xff] }
 0x395   : > { %3715 = vst [vmem:[#allocation2 + $0x138] sm:$0xff] %v3651_v25  ;;  %v2776_v25 = vld [vmem:[#allocation2 + $0x1f0] sm:$0xff] }
 0x39a   : > { %v3553_v40 = vpop.f32.mrb[40].mxu0 }
 0x39b   : > { %v3652_v21 = vadd.f32 %v3553_v40, %v2754_v4  ;;  %v3555_v50 = vpop.f32.mrb[41].mxu0  ;;  %v2777_v40 = vld [vmem:[#allocation2 + $0x1f8] sm:$0xff] }
 0x39c   : > { %v3653_v16 = vadd.f32 %v3555_v50, %v2755_v58  ;;  %v3557_v46 = vpop.f32.mrb[42].mxu0 }
 0x39d   : > { %3716 = vst [vmem:[#allocation2 + $0x140] sm:$0xff] %v3652_v21  ;;  %v3654_v42 = vadd.f32 %v3557_v46, %v2756_v53  ;;  %v3559_v20 = vpop.f32.mrb[43].mxu0 }
 0x39e   : > { %3717 = vst [vmem:[#allocation2 + $0x148] sm:$0xff] %v3653_v16  ;;  %v3655_v47 = vadd.f32 %v3559_v20, %v2757_v26 }
 0x39f   : > { %3718 = vst [vmem:[#allocation2 + $0x150] sm:$0xff] %v3654_v42 }
 0x3a0   : > { %3719 = vst [vmem:[#allocation2 + $0x158] sm:$0xff] %v3655_v47 }
 0x3a4   : > { %v3563_v49 = vpop.f32.mrb[44].mxu0 }
 0x3a5   : > { %v3656_v48 = vadd.f32 %v3563_v49, %v2758_v44  ;;  %v3565_v8 = vpop.f32.mrb[45].mxu0 }
 0x3a6   : > { %v3657_v38 = vadd.f32 %v3565_v8, %v2759_v43  ;;  %v3567_v1 = vpop.f32.mrb[46].mxu0 }
 0x3a7   : > { %3720 = vst [vmem:[#allocation2 + $0x160] sm:$0xff] %v3656_v48  ;;  %v3658_v35 = vadd.f32 %v3567_v1, %v2760_v32  ;;  %v3569_v15 = vpop.f32.mrb[47].mxu0 }
 0x3a8   : > { %3721 = vst [vmem:[#allocation2 + $0x168] sm:$0xff] %v3657_v38  ;;  %v3659_v33 = vadd.f32 %v3569_v15, %v2761_v31 }
 0x3a9   : > { %3722 = vst [vmem:[#allocation2 + $0x170] sm:$0xff] %v3658_v35 }
 0x3aa   : > { %3723 = vst [vmem:[#allocation2 + $0x178] sm:$0xff] %v3659_v33 }
 0x3ac   : > { %v3573_v57 = vpop.f32.mrb[48].mxu0 }
 0x3ad   : > { %v3660_v12 = vadd.f32 %v3573_v57, %v2762_v63  ;;  %v3575_v52 = vpop.f32.mrb[49].mxu0 }
 0x3ae   : > { %v3661_v41 = vadd.f32 %v3575_v52, %v2763_v7  ;;  %v3577_v39 = vpop.f32.mrb[50].mxu0 }
 0x3af   : > { %3724 = vst [vmem:[#allocation2 + $0x180] sm:$0xff] %v3660_v12  ;;  %v3662_v30 = vadd.f32 %v3577_v39, %v2764_v19  ;;  %v3579_v55 = vpop.f32.mrb[51].mxu0 }
 0x3b0   : > { %3725 = vst [vmem:[#allocation2 + $0x188] sm:$0xff] %v3661_v41  ;;  %v3663_v23 = vadd.f32 %v3579_v55, %v2765_v11 }
 0x3b1   : > { %3726 = vst [vmem:[#allocation2 + $0x190] sm:$0xff] %v3662_v30 }
 0x3b2   : > { %3727 = vst [vmem:[#allocation2 + $0x198] sm:$0xff] %v3663_v23 }
 0x3b4   : > { %v3583_v3 = vpop.f32.mrb[52].mxu0 }
 0x3b5   : > { %v3664_v9 = vadd.f32 %v3583_v3, %v2766_v28  ;;  %v3585_v2 = vpop.f32.mrb[53].mxu0 }
 0x3b6   : > { %v3665_v56 = vadd.f32 %v3585_v2, %v2767_v5  ;;  %v3587_v24 = vpop.f32.mrb[54].mxu0 }
 0x3b7   : > { %3728 = vst [vmem:[#allocation2 + $0x1a0] sm:$0xff] %v3664_v9  ;;  %v3666_v6 = vadd.f32 %v3587_v24, %v2768_v29  ;;  %v3589_v54 = vpop.f32.mrb[55].mxu0 }
 0x3b8   : > { %3729 = vst [vmem:[#allocation2 + $0x1a8] sm:$0xff] %v3665_v56  ;;  %v3667_v22 = vadd.f32 %v3589_v54, %v2769_v61 }
 0x3b9   : > { %3730 = vst [vmem:[#allocation2 + $0x1b0] sm:$0xff] %v3666_v6 }
 0x3ba   : > { %3731 = vst [vmem:[#allocation2 + $0x1b8] sm:$0xff] %v3667_v22 }
 0x3bc   : > { %v3593_v59 = vpop.f32.mrb[56].mxu0 }
 0x3bd   : > { %v3668_v37 = vadd.f32 %v3593_v59, %v2770_v10  ;;  %v3595_v36 = vpop.f32.mrb[57].mxu0 }
 0x3be   : > { %v3669_v45 = vadd.f32 %v3595_v36, %v2771_v62  ;;  %v3597_v18 = vpop.f32.mrb[58].mxu0 }
 0x3bf   : > { %3732 = vst [vmem:[#allocation2 + $0x1c0] sm:$0xff] %v3668_v37  ;;  %v3670_v51 = vadd.f32 %v3597_v18, %v2772_v27  ;;  %v3599_v13 = vpop.f32.mrb[59].mxu0 }
 0x3c0   : > { %3733 = vst [vmem:[#allocation2 + $0x1c8] sm:$0xff] %v3669_v45  ;;  %v3671_v14 = vadd.f32 %v3599_v13, %v2773_v34 }
 0x3c1   : > { %3734 = vst [vmem:[#allocation2 + $0x1d0] sm:$0xff] %v3670_v51 }
 0x3c2   : > { %3735 = vst [vmem:[#allocation2 + $0x1d8] sm:$0xff] %v3671_v14 }
 0x3c4   : > { %v3603_v17 = vpop.f32.mrb[60].mxu0  ;;  %3743 = sbr.rel (%p5190_p0) target bundleno = 1381 (0x565), region = 79 }
 0x3c5   : > { %v3672_v4 = vadd.f32 %v3603_v17, %v2774_v60  ;;  %v3605_v58 = vpop.f32.mrb[61].mxu0 }
 0x3c6   : > { %v3673_v53 = vadd.f32 %v3605_v58, %v2775_v0  ;;  %v3607_v21 = vpop.f32.mrb[62].mxu0 }
 0x3c7   : > { %3736 = vst [vmem:[#allocation2 + $0x1e0] sm:$0xff] %v3672_v4  ;;  %v3674_v50 = vadd.f32 %v3607_v21, %v2776_v25  ;;  %v3609_v26 = vpop.f32.mrb[63].mxu0 }
 0x3c8   : > { %3737 = vst [vmem:[#allocation2 + $0x1e8] sm:$0xff] %v3673_v53  ;;  %v3675_v16 = vadd.f32 %v3609_v26, %v2777_v40 }
 0x3c9   : > { %3738 = vst [vmem:[#allocation2 + $0x1f0] sm:$0xff] %v3674_v50 }
 0x3ca   : > { %3739 = vst [vmem:[#allocation2 + $0x1f8] sm:$0xff] %v3675_v16 }
 0x3cb   : > { %v3744_v46 = vld [vmem:[#allocation2] sm:$0xff]  ;;  %v3745_v42 = vld [vmem:[#allocation2 + $0x8] sm:$0xff]  ;;  %v9577_v49 = vld [vmem:[#allocation7_spill] sm:$0xff] }
 0x3cc   : > { %v3808_v20 = vld [vmem:[%s9354_s4] sm:$0x3]  ;;  %v3888_v32 = vunpack.c.l.bf16 %v9577_v49  ;;  %v3889_v48 = vunpack.c.h.bf16 %v9577_v49  ;;  %v9579_v38 = vld [vmem:[#allocation38_spill] sm:$0xff]  ;;  %v3746_v33 = vld [vmem:[#allocation2 + $0x10] sm:$0xff] }
 0x3cd   : > { %v9576_v47 = vld [vmem:[#allocation5_spill] sm:$0xff]  ;;  %v8437_v1 = vrot.slane %v3808_v20, %v9579_v38  ;;  %v3749_v15 = vld [vmem:[#allocation2 + $0x28] sm:$0xff]  ;;  %v3747_v19 = vld [vmem:[#allocation2 + $0x18] sm:$0xff] }
 0x3ce   : > { %v3884_v44 = vunpack.c.l.bf16 %v9576_v47  ;;  %v3885_v43 = vunpack.c.h.bf16 %v9576_v47  ;;  %v9578_v8 = vld [vmem:[#allocation37_spill] sm:$0xff]  ;;  %v9580_v63 = vld [vmem:[#allocation6_spill] sm:$0xff]  ;;  %v3750_v12 = vld [vmem:[#allocation2 + $0x30] sm:$0xff] }
 0x3cf   : > { %v8434_v31 = vrot.slane %v3808_v20, %v9578_v8  ;;  %v3748_v35 = vld [vmem:[#allocation2 + $0x20] sm:$0xff]  ;;  %v3886_v7 = vunpack.c.l.bf16 %v9580_v63  ;;  %v3887_v57 = vunpack.c.h.bf16 %v9580_v63  ;;  %v3751_v52 = vld [vmem:[#allocation2 + $0x38] sm:$0xff]  ;;  %v3821_v5 = vadd.f32 %v8437_v1, %v3745_v42  ;;  %v3753_v6 = vld [vmem:[#allocation2 + $0x48] sm:$0xff] }
 0x3d0   : > { %v9581_v11 = vld [vmem:[#allocation8_spill] sm:$0xff]  ;;  %v9582_v30 = vld [vmem:[#allocation9_spill] sm:$0xff]  ;;  %v3825_v29 = vadd.f32 %v8437_v1, %v3749_v15  ;;  %v3823_v2 = vadd.f32 %v8437_v1, %v3747_v19  ;;  %v3827_v56 = vadd.f32 %v8437_v1, %v3751_v52  ;;  %v3754_v59 = vld [vmem:[#allocation2 + $0x50] sm:$0xff]  ;;  %v3829_v14 = vadd.f32 %v8437_v1, %v3753_v6 }
 0x3d1   : > { %v3890_v41 = vunpack.c.l.bf16 %v9581_v11  ;;  %v3891_v39 = vunpack.c.h.bf16 %v9581_v11  ;;  %v3892_v55 = vunpack.c.l.bf16 %v9582_v30  ;;  %v3893_v23 = vunpack.c.h.bf16 %v9582_v30  ;;  %v3752_v24 = vld [vmem:[#allocation2 + $0x40] sm:$0xff]  ;;  %v3755_v27 = vld [vmem:[#allocation2 + $0x58] sm:$0xff]  ;;  %v3757_v0 = vld [vmem:[#allocation2 + $0x68] sm:$0xff] }
 0x3d2   : > { %v3820_v28 = vadd.f32 %v8434_v31, %v3744_v46  ;;  %v3824_v3 = vadd.f32 %v8434_v31, %v3748_v35  ;;  %v3822_v9 = vadd.f32 %v8434_v31, %v3746_v33  ;;  %v3826_v61 = vadd.f32 %v8434_v31, %v3750_v12  ;;  %v3756_v60 = vld [vmem:[#allocation2 + $0x60] sm:$0xff]  ;;  %v3758_v40 = vld [vmem:[#allocation2 + $0x70] sm:$0xff]  ;;  %v9583_v50 = vld [vmem:[#allocation10_spill] sm:$0xff] }
 0x3d3   : > { %v8455_v22 = vadd.f32 %v3885_v43, %v3821_v5  ;;  %v8459_v62 = vadd.f32 %v3889_v48, %v3825_v29  ;;  %v8463_v36 = vadd.f32 %v3887_v57, %v3823_v2  ;;  %v8467_v45 = vadd.f32 %v3891_v39, %v3827_v56  ;;  %v3759_v46 = vld [vmem:[#allocation2 + $0x78] sm:$0xff]  ;;  %v9584_v47 = vld [vmem:[#allocation11_spill] sm:$0xff]  ;;  %v3760_v49 = vld [vmem:[#allocation2 + $0x80] sm:$0xff] }
 0x3d4   : > { %v8453_v54 = vadd.f32 %v3884_v44, %v3820_v28  ;;  %v8457_v10 = vadd.f32 %v3888_v32, %v3824_v3  ;;  %v8461_v37 = vadd.f32 %v3886_v7, %v3822_v9  ;;  %v8465_v34 = vadd.f32 %v3890_v41, %v3826_v61  ;;  %v3761_v32 = vld [vmem:[#allocation2 + $0x88] sm:$0xff]  ;;  %v9585_v19 = vld [vmem:[#allocation12_spill] sm:$0xff]  ;;  %v3762_v52 = vld [vmem:[#allocation2 + $0x90] sm:$0xff] }
 0x3d5   : > { %v3828_v13 = vadd.f32 %v8434_v31, %v3752_v24  ;;  %v3830_v4 = vadd.f32 %v8434_v31, %v3754_v59  ;;  %v3831_v58 = vadd.f32 %v8437_v1, %v3755_v27  ;;  %v8483_v21 = vadd.f32 %v3893_v23, %v3829_v14  ;;  %v3763_v11 = vld [vmem:[#allocation2 + $0x98] sm:$0xff]  ;;  %v3764_v23 = vld [vmem:[#allocation2 + $0xa0] sm:$0xff]  ;;  %v3765_v2 = vld [vmem:[#allocation2 + $0xa8] sm:$0xff] }
 0x3d6   : > { %v4014_v18 = vadd.f32 %v8455_v22, %v8453_v54  ;;  %v4020_v51 = vadd.f32 %v8459_v62, %v8457_v10  ;;  %v4017_v17 = vadd.f32 %v8463_v36, %v8461_v37  ;;  %v4023_v25 = vadd.f32 %v8467_v45, %v8465_v34  ;;  %v9586_v3 = vld [vmem:[#allocation13_spill] sm:$0xff]  ;;  %v9587_v6 = vld [vmem:[#allocation14_spill] sm:$0xff]  ;;  %v3766_v27 = vld [vmem:[#allocation2 + $0xb0] sm:$0xff] }
 0x3d7   : > { %v8481_v53 = vadd.f32 %v3892_v55, %v3828_v13  ;;  %v3894_v26 = vunpack.c.l.bf16 %v9583_v50  ;;  %v3895_v16 = vunpack.c.h.bf16 %v9583_v50  ;;  %v3832_v42 = vadd.f32 %v8434_v31, %v3756_v60  ;;  %v3767_v60 = vld [vmem:[#allocation2 + $0xb8] sm:$0xff]  ;;  %v3769_v50 = vld [vmem:[#allocation2 + $0xc8] sm:$0xff] }
 0x3d8   : > { %4015 = vadd.xlane.f32.xlu0 %v4014_v18  ;;  %4021 = vadd.xlane.f32.xlu1 %v4020_v51  ;;  %v3833_v20 = vadd.f32 %v8437_v1, %v3757_v0  ;;  %v3896_v44 = vunpack.c.l.bf16 %v9584_v47  ;;  %v3897_v43 = vunpack.c.h.bf16 %v9584_v47  ;;  %v3834_v33 = vadd.f32 %v8434_v31, %v3758_v40  ;;  %v3768_v40 = vld [vmem:[#allocation2 + $0xc0] sm:$0xff]  ;;  %v3789_v38 = vld [vmem:[#allocation2 + $0x168] sm:$0xff] }
 0x3d9   : > { %v4026_v48 = vadd.f32 %v8483_v21, %v8481_v53  ;;  %v8493_v35 = vadd.f32 %v3894_v26, %v3830_v4  ;;  %v8495_v15 = vadd.f32 %v3895_v16, %v3831_v58  ;;  %v3835_v57 = vadd.f32 %v8437_v1, %v3759_v46  ;;  %v9588_v4 = vld [vmem:[#allocation15_spill] sm:$0xff] }
 0x3da   : > { %v8498_v63 = vadd.f32 %v3896_v44, %v3832_v42  ;;  %v8500_v7 = vadd.f32 %v3897_v43, %v3833_v20  ;;  %v3898_v12 = vunpack.c.l.bf16 %v9585_v19  ;;  %v3899_v39 = vunpack.c.h.bf16 %v9585_v19  ;;  %v9589_v44 = vld [vmem:[#allocation16_spill] sm:$0xff] }
 0x3db   : > { %v4029_v41 = vadd.f32 %v8495_v15, %v8493_v35  ;;  %v3836_v30 = vadd.f32 %v8434_v31, %v3760_v49  ;;  %v3837_v55 = vadd.f32 %v8437_v1, %v3761_v32  ;;  %v3900_v29 = vunpack.c.l.bf16 %v9586_v3  ;;  %v3770_v32 = vld [vmem:[#allocation2 + $0xd0] sm:$0xff] }
 0x3dc   : > { %4018 = vadd.xlane.f32.xlu0 %v4017_v17  ;;  %4024 = vadd.xlane.f32.xlu1 %v4023_v25  ;;  %v4032_v28 = vadd.f32 %v8500_v7, %v8498_v63  ;;  %v8511_v5 = vadd.f32 %v3898_v12, %v3834_v33  ;;  %v3901_v9 = vunpack.c.h.bf16 %v9586_v3  ;;  %v8515_v61 = vadd.f32 %v3899_v39, %v3835_v57 }
 0x3dd   : > { %v3838_v56 = vadd.f32 %v8434_v31, %v3762_v52  ;;  %v3839_v24 = vadd.f32 %v8437_v1, %v3763_v11  ;;  %v3902_v59 = vunpack.c.l.bf16 %v9587_v6  ;;  %v8520_v18 = vadd.f32 %v3900_v29, %v3836_v30 }
 0x3de   : > { %v8522_v51 = vadd.f32 %v3901_v9, %v3837_v55  ;;  %v3903_v13 = vunpack.c.h.bf16 %v9587_v6  ;;  %v3840_v14 = vadd.f32 %v8434_v31, %v3764_v23  ;;  %v4035_v0 = vadd.f32 %v8515_v61, %v8511_v5  ;;  %v3772_v55 = vld [vmem:[#allocation2 + $0xe0] sm:$0xff]  ;;  %v3773_v23 = vld [vmem:[#allocation2 + $0xe8] sm:$0xff] }
 0x3df   : > { %v8528_v17 = vadd.f32 %v3902_v59, %v3838_v56  ;;  %v3841_v25 = vadd.f32 %v8437_v1, %v3765_v2  ;;  %v3904_v58 = vunpack.c.l.bf16 %v9588_v4  ;;  %v3905_v46 = vunpack.c.h.bf16 %v9588_v4  ;;  %v9591_v9 = vld [vmem:[#allocation18_spill] sm:$0xff]  ;;  %v3774_v56 = vld [vmem:[#allocation2 + $0xf0] sm:$0xff]  ;;  %v3776_v4 = vld [vmem:[#allocation2 + $0x100] sm:$0xff] }
 0x3e0   : > { %4027 = vadd.xlane.f32.xlu0 %v4026_v48  ;;  %4030 = vadd.xlane.f32.xlu1 %v4029_v41  ;;  %v4038_v26 = vadd.f32 %v8522_v51, %v8520_v18  ;;  %v8534_v16 = vadd.f32 %v3903_v13, %v3839_v24  ;;  %v3842_v42 = vadd.f32 %v8434_v31, %v3766_v27  ;;  %v3906_v43 = vunpack.c.l.bf16 %v9589_v44  ;;  %v3771_v48 = vld [vmem:[#allocation2 + $0xd8] sm:$0xff]  ;;  %v9590_v41 = vld [vmem:[#allocation17_spill] sm:$0xff] }
 0x3e1   : > { %v8538_v20 = vadd.f32 %v3904_v58, %v3840_v14  ;;  %v3843_v47 = vadd.f32 %v8437_v1, %v3767_v60  ;;  %v3907_v49 = vunpack.c.h.bf16 %v9589_v44  ;;  %v8545_v57 = vadd.f32 %v3905_v46, %v3841_v25  ;;  %v3775_v27 = vld [vmem:[#allocation2 + $0xf8] sm:$0xff]  ;;  %v3777_v58 = vld [vmem:[#allocation2 + $0x108] sm:$0xff] }
 0x3e2   : > { %v4041_v33 = vadd.f32 %v8534_v16, %v8528_v17  ;;  %v3844_v19 = vadd.f32 %v8434_v31, %v3768_v40  ;;  %v3845_v12 = vadd.f32 %v8437_v1, %v3769_v50  ;;  %v8549_v52 = vadd.f32 %v3906_v43, %v3842_v42  ;;  %v9593_v43 = vld [vmem:[#allocation20_spill] sm:$0xff] }
 0x3e3   : > { %v8551_v11 = vadd.f32 %v3907_v49, %v3843_v47  ;;  %v3908_v39 = vunpack.c.l.bf16 %v9590_v41  ;;  %v3909_v30 = vunpack.c.h.bf16 %v9590_v41  ;;  %v3846_v3 = vadd.f32 %v8434_v31, %v3770_v32 }
 0x3e4   : > { %4033 = vadd.xlane.f32.xlu0 %v4032_v28  ;;  %4036 = vadd.xlane.f32.xlu1 %v4035_v0  ;;  %v3847_v29 = vadd.f32 %v8437_v1, %v3771_v48  ;;  %v3910_v2 = vunpack.c.l.bf16 %v9591_v9  ;;  %v4044_v28 = vadd.f32 %v8545_v57, %v8538_v20  ;;  %v3911_v59 = vunpack.c.h.bf16 %v9591_v9  ;;  %v9592_v0 = vld [vmem:[#allocation19_spill] sm:$0xff]  ;;  %v3779_v48 = vld [vmem:[#allocation2 + $0x118] sm:$0xff]  ;;  %v3781_v9 = vld [vmem:[#allocation2 + $0x128] sm:$0xff] }
 0x3e5   : > { %v8560_v24 = vadd.f32 %v3908_v39, %v3844_v19  ;;  %v8562_v6 = vadd.f32 %v3909_v30, %v3845_v12  ;;  %v3848_v14 = vadd.f32 %v8434_v31, %v3772_v55  ;;  %v3849_v60 = vadd.f32 %v8437_v1, %v3773_v23  ;;  %v9595_v55 = vld [vmem:[#allocation21_spill] sm:$0xff] }
 0x3e6   : > { %v8565_v13 = vadd.f32 %v3910_v2, %v3846_v3  ;;  %v3912_v25 = vunpack.c.l.bf16 %v9592_v0  ;;  %v4047_v40 = vadd.f32 %v8551_v11, %v8549_v52  ;;  %v8572_v50 = vadd.f32 %v3911_v59, %v3847_v29  ;;  %v3780_v29 = vld [vmem:[#allocation2 + $0x120] sm:$0xff] }
 0x3e7   : > { %v3913_v46 = vunpack.c.h.bf16 %v9592_v0  ;;  %v3850_v42 = vadd.f32 %v8434_v31, %v3774_v56  ;;  %v4050_v47 = vadd.f32 %v8562_v6, %v8560_v24  ;;  %v3851_v44 = vadd.f32 %v8437_v1, %v3775_v27  ;;  %v9597_v27 = vld [vmem:[#allocation22_spill] sm:$0xff] }
 0x3e8   : > { %4039 = vadd.xlane.f32.xlu0 %v4038_v26  ;;  %4042 = vadd.xlane.f32.xlu1 %v4041_v33  ;;  %v3914_v49 = vunpack.c.l.bf16 %v9593_v43  ;;  %v3915_v32 = vunpack.c.h.bf16 %v9593_v43  ;;  %v3778_v26 = vld [vmem:[#allocation2 + $0x110] sm:$0xff]  ;;  %v4053_v33 = vadd.f32 %v8572_v50, %v8565_v13  ;;  %v8583_v19 = vadd.f32 %v3912_v25, %v3848_v14  ;;  %v3784_v43 = vld [vmem:[#allocation2 + $0x140] sm:$0xff] }
 0x3e9   : > { %v3852_v12 = vadd.f32 %v8434_v31, %v3776_v4  ;;  %v3853_v41 = vadd.f32 %v8437_v1, %v3777_v58  ;;  %v8587_v39 = vadd.f32 %v3913_v46, %v3849_v60  ;;  %v3916_v23 = vunpack.c.l.bf16 %v9595_v55  ;;  %v3782_v60 = vld [vmem:[#allocation2 + $0x130] sm:$0xff]  ;;  %v3783_v58 = vld [vmem:[#allocation2 + $0x138] sm:$0xff] }
 0x3ea   : > { %v8589_v30 = vadd.f32 %v3914_v49, %v3850_v42  ;;  %v3917_v3 = vunpack.c.h.bf16 %v9595_v55  ;;  %v8593_v2 = vadd.f32 %v3915_v32, %v3851_v44  ;;  %v3854_v56 = vadd.f32 %v8434_v31, %v3778_v26  ;;  %v9601_v42 = vld [vmem:[#allocation23_spill] sm:$0xff]  ;;  %v3785_v49 = vld [vmem:[#allocation2 + $0x148] sm:$0xff] }
 0x3eb   : > { %v3855_v59 = vadd.f32 %v8437_v1, %v3779_v48  ;;  %v3918_v14 = vunpack.c.l.bf16 %v9597_v27  ;;  %v8598_v0 = vadd.f32 %v3916_v23, %v3852_v12  ;;  %v3919_v4 = vunpack.c.h.bf16 %v9597_v27  ;;  %v9603_v23 = vld [vmem:[#allocation24_spill] sm:$0xff] }
 0x3ec   : > { %9594 = vst [vmem:[#allocation57_spill] sm:$0xff] %v8589_v30  ;;  %4045 = vadd.xlane.f32.xlu0 %v4044_v28  ;;  %4048 = vadd.xlane.f32.xlu1 %v4047_v40  ;;  %9596 = vst [vmem:[#allocation58_spill] sm:$0xff] %v8593_v2  ;;  %v8600_v25 = vadd.f32 %v3917_v3, %v3853_v41  ;;  %v3856_v28 = vadd.f32 %v8434_v31, %v3780_v29  ;;  %v3920_v44 = vunpack.c.l.bf16 %v9601_v42 }
 0x3ed   : > { %9598 = vst [vmem:[#allocation59_spill] sm:$0xff] %v8598_v0  ;;  %v8603_v46 = vadd.f32 %v3918_v14, %v3854_v56  ;;  %v3857_v40 = vadd.f32 %v8437_v1, %v3781_v9  ;;  %v4056_v32 = vadd.f32 %v8587_v39, %v8583_v19  ;;  %v8610_v26 = vadd.f32 %v3919_v4, %v3855_v59  ;;  %v3786_v9 = vld [vmem:[#allocation2 + $0x150] sm:$0xff]  ;;  %v3787_v56 = vld [vmem:[#allocation2 + $0x158] sm:$0xff]  ;;  %v9606_v4 = vld [vmem:[#allocation25_spill] sm:$0xff] }
 0x3ee   : > { %9599 = vst [vmem:[#allocation60_spill] sm:$0xff] %v8600_v25  ;;  %v3921_v48 = vunpack.c.h.bf16 %v9601_v42  ;;  %v3858_v12 = vadd.f32 %v8434_v31, %v3782_v60  ;;  %v4059_v41 = vadd.f32 %v8593_v2, %v8589_v30  ;;  %v3859_v55 = vadd.f32 %v8437_v1, %v3783_v58 }
 0x3ef   : > { %9600 = vst [vmem:[#allocation61_spill] sm:$0xff] %v8603_v46  ;;  %9602 = vst [vmem:[#allocation62_spill] sm:$0xff] %v8610_v26  ;;  %v3922_v3 = vunpack.c.l.bf16 %v9603_v23  ;;  %v3923_v29 = vunpack.c.h.bf16 %v9603_v23  ;;  %v4062_v59 = vadd.f32 %v8600_v25, %v8598_v0  ;;  %v8621_v27 = vadd.f32 %v3920_v44, %v3856_v28  ;;  %v3788_v23 = vld [vmem:[#allocation2 + $0x160] sm:$0xff] }
 0x3f0   : > { %4051 = vadd.xlane.f32.xlu0 %v4050_v47  ;;  %4054 = vadd.xlane.f32.xlu1 %v4053_v33  ;;  %v3860_v14 = vadd.f32 %v8434_v31, %v3784_v43  ;;  %v3861_v47 = vadd.f32 %v8437_v1, %v3785_v49  ;;  %v4065_v33 = vadd.f32 %v8610_v26, %v8603_v46  ;;  %v3924_v58 = vunpack.c.l.bf16 %v9606_v4  ;;  %v9608_v43 = vld [vmem:[#allocation26_spill] sm:$0xff]  ;;  %v3790_v49 = vld [vmem:[#allocation2 + $0x170] sm:$0xff]  ;;  %v3791_v46 = vld [vmem:[#allocation2 + $0x178] sm:$0xff] }
 0x3f1   : > { %9604 = vst [vmem:[#allocation63_spill] sm:$0xff] %v8621_v27  ;;  %v8627_v60 = vadd.f32 %v3921_v48, %v3857_v40  ;;  %v3925_v42 = vunpack.c.h.bf16 %v9606_v4  ;;  %v8631_v8 = vadd.f32 %v3922_v3, %v3858_v12  ;;  %v3862_v28 = vadd.f32 %v8434_v31, %v3786_v9 }
 0x3f2   : > { %v3863_v44 = vadd.f32 %v8437_v1, %v3787_v56  ;;  %v3926_v25 = vunpack.c.l.bf16 %v9608_v43  ;;  %v8636_v26 = vadd.f32 %v3923_v29, %v3859_v55  ;;  %v8638_v40 = vadd.f32 %v3924_v58, %v3860_v14  ;;  %v9613_v56 = vld [vmem:[#allocation27_spill] sm:$0xff]  ;;  %v3792_v55 = vld [vmem:[#allocation2 + $0x180] sm:$0xff] }
 0x3f3   : > { %9605 = vst [vmem:[#allocation64_spill] sm:$0xff] %v8627_v60  ;;  %9607 = vst [vmem:[#allocation65_spill] sm:$0xff] %v8631_v8  ;;  %v8640_v48 = vadd.f32 %v3925_v42, %v3861_v47  ;;  %v3927_v4 = vunpack.c.h.bf16 %v9608_v43  ;;  %v3864_v3 = vadd.f32 %v8434_v31, %v3788_v23  ;;  %v3865_v9 = vadd.f32 %v8437_v1, %v3789_v38  ;;  %v3793_v42 = vld [vmem:[#allocation2 + $0x188] sm:$0xff]  ;;  %v3795_v43 = vld [vmem:[#allocation2 + $0x198] sm:$0xff] }
 0x3f4   : > { %4057 = vadd.xlane.f32.xlu0 %v4056_v32  ;;  %4060 = vadd.xlane.f32.xlu1 %v4059_v41  ;;  %9609 = vst [vmem:[#allocation66_spill] sm:$0xff] %v8636_v26  ;;  %9610 = vst [vmem:[#allocation67_spill] sm:$0xff] %v8638_v40  ;;  %v8643_v12 = vadd.f32 %v3926_v25, %v3862_v28  ;;  %v3928_v0 = vunpack.c.l.bf16 %v9613_v56  ;;  %v3929_v32 = vunpack.c.h.bf16 %v9613_v56  ;;  %v9615_v25 = vld [vmem:[#allocation28_spill] sm:$0xff]  ;;  %v9618_v56 = vld [vmem:[#allocation29_spill] sm:$0xff] }
 0x3f5   : > { %9611 = vst [vmem:[#allocation68_spill] sm:$0xff] %v8640_v48  ;;  %v8648_v2 = vadd.f32 %v3927_v4, %v3863_v44  ;;  %v3866_v41 = vadd.f32 %v8434_v31, %v3790_v49  ;;  %v4068_v29 = vadd.f32 %v8627_v60, %v8621_v27  ;;  %v3867_v14 = vadd.f32 %v8437_v1, %v3791_v46  ;;  %v3794_v44 = vld [vmem:[#allocation2 + $0x190] sm:$0xff]  ;;  %v3801_v27 = vld [vmem:[#allocation2 + $0x1c8] sm:$0xff] }
 0x3f6   : > { %9612 = vst [vmem:[#allocation69_spill] sm:$0xff] %v8643_v12  ;;  %v3930_v47 = vunpack.c.l.bf16 %v9615_v25  ;;  %v3931_v58 = vunpack.c.h.bf16 %v9615_v25  ;;  %v4071_v38 = vadd.f32 %v8636_v26, %v8631_v8  ;;  %v4074_v23 = vadd.f32 %v8640_v48, %v8638_v40  ;;  %v3797_v25 = vld [vmem:[#allocation2 + $0x1a8] sm:$0xff]  ;;  %v3798_v48 = vld [vmem:[#allocation2 + $0x1b0] sm:$0xff]  ;;  %v9622_v8 = vld [vmem:[#allocation32_spill] sm:$0xff] }
 0x3f7   : > { %9614 = vst [vmem:[#allocation70_spill] sm:$0xff] %v8648_v2  ;;  %v8661_v28 = vadd.f32 %v3928_v0, %v3864_v3  ;;  %v4077_v46 = vadd.f32 %v8648_v2, %v8643_v12  ;;  %v8665_v49 = vadd.f32 %v3929_v32, %v3865_v9  ;;  %v3868_v4 = vadd.f32 %v8434_v31, %v3792_v55  ;;  %v9620_v32 = vld [vmem:[#allocation30_spill] sm:$0xff]  ;;  %v3799_v12 = vld [vmem:[#allocation2 + $0x1b8] sm:$0xff] }
 0x3f8   : > { %4063 = vadd.xlane.f32.xlu0 %v4062_v59  ;;  %4066 = vadd.xlane.f32.xlu1 %v4065_v33  ;;  %v3932_v59 = vunpack.c.l.bf16 %v9618_v56  ;;  %v3796_v33 = vld [vmem:[#allocation2 + $0x1a0] sm:$0xff]  ;;  %v8669_v60 = vadd.f32 %v3930_v47, %v3866_v41  ;;  %v8671_v26 = vadd.f32 %v3931_v58, %v3867_v14  ;;  %v3869_v0 = vadd.f32 %v8437_v1, %v3793_v42  ;;  %v9621_v47 = vld [vmem:[#allocation31_spill] sm:$0xff] }
 0x3f9   : > { %9616 = vst [vmem:[#allocation71_spill] sm:$0xff] %v8661_v28  ;;  %9617 = vst [vmem:[#allocation72_spill] sm:$0xff] %v8665_v49  ;;  %v3933_v3 = vunpack.c.h.bf16 %v9618_v56  ;;  %v3870_v40 = vadd.f32 %v8434_v31, %v3794_v44  ;;  %v3871_v9 = vadd.f32 %v8437_v1, %v3795_v43  ;;  %v3934_v2 = vunpack.c.l.bf16 %v9620_v32 }
 0x3fa   : > { %9619 = vst [vmem:[#allocation73_spill] sm:$0xff] %v8671_v26  ;;  %v3935_v55 = vunpack.c.h.bf16 %v9620_v32  ;;  %v3872_v41 = vadd.f32 %v8434_v31, %v3796_v33  ;;  %v3873_v14 = vadd.f32 %v8437_v1, %v3797_v25  ;;  %v3936_v58 = vunpack.c.l.bf16 %v9621_v47 }
 0x3fb   : > { %v3937_v42 = vunpack.c.h.bf16 %v9621_v47  ;;  %v3874_v56 = vadd.f32 %v8434_v31, %v3798_v48  ;;  %v4080_v44 = vadd.f32 %v8665_v49, %v8661_v28  ;;  %v8686_v43 = vadd.f32 %v3932_v59, %v3868_v4  ;;  %v3802_v47 = vld [vmem:[#allocation2 + $0x1d0] sm:$0xff]  ;;  %v3803_v49 = vld [vmem:[#allocation2 + $0x1d8] sm:$0xff] }
 0x3fc   : > { %4069 = vadd.xlane.f32.xlu0 %v4068_v29  ;;  %4072 = vadd.xlane.f32.xlu1 %v4071_v38  ;;  %v3875_v32 = vadd.f32 %v8437_v1, %v3799_v12  ;;  %v3938_v29 = vunpack.c.l.bf16 %v9622_v8  ;;  %v3800_v38 = vld [vmem:[#allocation2 + $0x1c0] sm:$0xff]  ;;  %v4083_v33 = vadd.f32 %v8671_v26, %v8669_v60  ;;  %v8692_v25 = vadd.f32 %v3933_v3, %v3869_v0 }
 0x3fd   : > { %v8694_v30 = vadd.f32 %v3934_v2, %v3870_v40  ;;  %v3939_v48 = vunpack.c.h.bf16 %v9622_v8  ;;  %v8697_v4 = vadd.f32 %v3935_v55, %v3871_v9  ;;  %v8699_v59 = vadd.f32 %v3936_v58, %v3872_v41  ;;  %v9624_v2 = vld [vmem:[#allocation33_spill] sm:$0xff] }
 0x3fe   : > { %v8701_v12 = vadd.f32 %v3937_v42, %v3873_v14  ;;  %v8703_v28 = vadd.f32 %v3938_v29, %v3874_v56  ;;  %v3876_v26 = vadd.f32 %v8434_v31, %v3800_v38  ;;  %v3877_v0 = vadd.f32 %v8437_v1, %v3801_v27  ;;  %v3804_v14 = vld [vmem:[#allocation2 + $0x1e0] sm:$0xff]  ;;  %v3805_v42 = vld [vmem:[#allocation2 + $0x1e8] sm:$0xff]  ;;  %v3806_v29 = vld [vmem:[#allocation2 + $0x1f0] sm:$0xff] }
 0x3ff   : > { %9623 = vst [vmem:[#allocation74_spill] sm:$0xff] %v8697_v4  ;;  %v3940_v40 = vunpack.c.l.bf16 %v9624_v2  ;;  %v8708_v3 = vadd.f32 %v3939_v48, %v3875_v32  ;;  %v3941_v8 = vunpack.c.h.bf16 %v9624_v2  ;;  %v3879_v55 = vadd.f32 %v8437_v1, %v3803_v49  ;;  %v3807_v38 = vld [vmem:[#allocation2 + $0x1f8] sm:$0xff] }
 0x400   : > { %4075 = vadd.xlane.f32.xlu0 %v4074_v23  ;;  %4078 = vadd.xlane.f32.xlu1 %v4077_v46  ;;  %v3878_v23 = vadd.f32 %v8434_v31, %v3802_v47  ;;  %v9626_v46 = vld [vmem:[#allocation34_spill] sm:$0xff]  ;;  %v4086_v27 = vadd.f32 %v8692_v25, %v8686_v43  ;;  %v4089_v58 = vadd.f32 %v8697_v4, %v8694_v30 }
 0x401   : > { %9625 = vst [vmem:[#allocation75_spill] sm:$0xff] %v8708_v3  ;;  %v3942_v9 = vunpack.c.l.bf16 %v9626_v46  ;;  %v3943_v41 = vunpack.c.h.bf16 %v9626_v46  ;;  %v4092_v56 = vadd.f32 %v8701_v12, %v8699_v59  ;;  %v8721_v32 = vadd.f32 %v3940_v40, %v3876_v26  ;;  %v9627_v46 = vld [vmem:[#allocation35_spill] sm:$0xff] }
 0x402   : > { %v4095_v49 = vadd.f32 %v8708_v3, %v8703_v28  ;;  %v8725_v48 = vadd.f32 %v3941_v8, %v3877_v0  ;;  %v3881_v2 = vadd.f32 %v8437_v1, %v3805_v42  ;;  %v3944_v4 = vunpack.c.l.bf16 %v9627_v46  ;;  %v9628_v0 = vld [vmem:[#allocation36_spill] sm:$0xff] }
 0x403   : > { %v8730_v47 = vadd.f32 %v3943_v41, %v3879_v55  ;;  %v3945_v26 = vunpack.c.h.bf16 %v9627_v46  ;;  %v3882_v40 = vadd.f32 %v8434_v31, %v3806_v29  ;;  %v3883_v3 = vadd.f32 %v8437_v1, %v3807_v38 }
 0x404   : > { %4081 = vadd.xlane.f32.xlu0 %v4080_v44  ;;  %4084 = vadd.xlane.f32.xlu1 %v4083_v33  ;;  %v8727_v44 = vadd.f32 %v3942_v9, %v3878_v23  ;;  %v3880_v33 = vadd.f32 %v8434_v31, %v3804_v14  ;;  %v3946_v8 = vunpack.c.l.bf16 %v9628_v0  ;;  %v3947_v23 = vunpack.c.h.bf16 %v9628_v0 }
 0x405   : > { %v4098_v9 = vadd.f32 %v8725_v48, %v8721_v32  ;;  %v8745_v14 = vadd.f32 %v3945_v26, %v3881_v2 }
 0x406   : > { %v4101_v55 = vadd.f32 %v8730_v47, %v8727_v44  ;;  %v8743_v41 = vadd.f32 %v3944_v4, %v3880_v33  ;;  %v8749_v31 = vadd.f32 %v3947_v23, %v3883_v3 }
 0x408   : > { %4087 = vadd.xlane.f32.xlu0 %v4086_v27  ;;  %4090 = vadd.xlane.f32.xlu1 %v4089_v58  ;;  %v8747_v27 = vadd.f32 %v3946_v8, %v3882_v40  ;;  %v4104_v1 = vadd.f32 %v8745_v14, %v8743_v41 }
 0x40a   : > { %v4107_v58 = vadd.f32 %v8749_v31, %v8747_v27 }
 0x40c   : > { %4093 = vadd.xlane.f32.xlu0 %v4092_v56  ;;  %4096 = vadd.xlane.f32.xlu1 %v4095_v49 }
 0x410   : > { %4099 = vadd.xlane.f32.xlu0 %v4098_v9  ;;  %4102 = vadd.xlane.f32.xlu1 %v4101_v55 }
 0x414   : > { %4105 = vadd.xlane.f32.xlu0 %v4104_v1  ;;  %4108 = vadd.xlane.f32.xlu1 %v4107_v58 }
 0x465   : > { %v4016_v4 = vpop.xlane.xlu0 %4015  ;;  %v4022_v42 = vpop.xlane.xlu1 %4021 }
 0x466   : > { %v4111_v56 = vmul.f32 0.00390625, %v4016_v4  ;;  %v4113_v29 = vmul.f32 0.00390625, %v4022_v42 }
 0x468   : > { %v8756_v38 = vsub.f32 %v8453_v54, %v4111_v56  ;;  %v8759_v3 = vsub.f32 %v8455_v22, %v4111_v56  ;;  %v8762_v49 = vsub.f32 %v8457_v10, %v4113_v29  ;;  %v8765_v33 = vsub.f32 %v8459_v62, %v4113_v29 }
 0x469   : > { %v4019_v2 = vpop.xlane.xlu0 %4018  ;;  %v4025_v46 = vpop.xlane.xlu1 %4024 }
 0x46a   : > { %v4112_v26 = vmul.f32 0.00390625, %v4019_v2  ;;  %v4114_v40 = vmul.f32 0.00390625, %v4025_v46  ;;  %v4207_v0 = vmul.f32 %v8756_v38, %v8756_v38  ;;  %v4208_v54 = vmul.f32 %v8759_v3, %v8759_v3 }
 0x46b   : > { %v4211_v22 = vmul.f32 %v8762_v49, %v8762_v49  ;;  %v4212_v10 = vmul.f32 %v8765_v33, %v8765_v33 }
 0x46c   : > { %v8776_v8 = vsub.f32 %v8461_v37, %v4112_v26  ;;  %v8779_v62 = vsub.f32 %v8463_v36, %v4112_v26  ;;  %v8782_v23 = vsub.f32 %v8465_v34, %v4114_v40  ;;  %v8785_v9 = vsub.f32 %v8467_v45, %v4114_v40 }
 0x46d   : > { %v4028_v55 = vpop.xlane.xlu0 %4027  ;;  %v4271_v1 = vadd.f32 %v4208_v54, %v4207_v0  ;;  %v4031_v58 = vpop.xlane.xlu1 %4030  ;;  %v4277_v36 = vadd.f32 %v4212_v10, %v4211_v22 }
 0x46e   : > { %v4115_v4 = vmul.f32 0.00390625, %v4028_v55  ;;  %v4116_v42 = vmul.f32 0.00390625, %v4031_v58  ;;  %v4209_v56 = vmul.f32 %v8776_v8, %v8776_v8  ;;  %v4210_v37 = vmul.f32 %v8779_v62, %v8779_v62 }
 0x46f   : > { %4272 = vadd.xlane.f32.xlu0 %v4271_v1  ;;  %v4213_v34 = vmul.f32 %v8782_v23, %v8782_v23  ;;  %v4214_v45 = vmul.f32 %v8785_v9, %v8785_v9 }
 0x470   : > { %v8796_v29 = vsub.f32 %v8481_v53, %v4115_v4  ;;  %v8799_v2 = vsub.f32 %v8483_v21, %v4115_v4  ;;  %v8802_v46 = vsub.f32 %v8493_v35, %v4116_v42  ;;  %v8805_v26 = vsub.f32 %v8495_v15, %v4116_v42 }
 0x471   : > { %v4034_v40 = vpop.xlane.xlu0 %4033  ;;  %v4274_v0 = vadd.f32 %v4210_v37, %v4209_v56  ;;  %v4037_v54 = vpop.xlane.xlu1 %4036  ;;  %v4280_v21 = vadd.f32 %v4214_v45, %v4213_v34 }
 0x472   : > { %v4117_v22 = vmul.f32 0.00390625, %v4034_v40  ;;  %v4118_v10 = vmul.f32 0.00390625, %v4037_v54  ;;  %v4215_v55 = vmul.f32 %v8796_v29, %v8796_v29  ;;  %v4216_v53 = vmul.f32 %v8799_v2, %v8799_v2 }
 0x473   : > { %4278 = vadd.xlane.f32.xlu0 %v4277_v36  ;;  %4275 = vadd.xlane.f32.xlu1 %v4274_v0  ;;  %v4217_v35 = vmul.f32 %v8802_v46, %v8802_v46  ;;  %v4218_v15 = vmul.f32 %v8805_v26, %v8805_v26 }
 0x474   : > { %v8816_v1 = vsub.f32 %v8498_v63, %v4117_v22  ;;  %v8819_v58 = vsub.f32 %v8500_v7, %v4117_v22  ;;  %v8822_v4 = vsub.f32 %v8511_v5, %v4118_v10  ;;  %v8825_v42 = vsub.f32 %v8515_v61, %v4118_v10 }
 0x475   : > { %v4040_v56 = vpop.xlane.xlu0 %4039  ;;  %v4283_v37 = vadd.f32 %v4216_v53, %v4215_v55  ;;  %v4043_v36 = vpop.xlane.xlu1 %4042  ;;  %v4286_v7 = vadd.f32 %v4218_v15, %v4217_v35 }
 0x476   : > { %v4119_v34 = vmul.f32 0.00390625, %v4040_v56  ;;  %v4120_v45 = vmul.f32 0.00390625, %v4043_v36  ;;  %v4219_v40 = vmul.f32 %v8816_v1, %v8816_v1  ;;  %v4220_v63 = vmul.f32 %v8819_v58, %v8819_v58 }
 0x477   : > { %4281 = vadd.xlane.f32.xlu1 %v4280_v21  ;;  %4284 = vadd.xlane.f32.xlu0 %v4283_v37  ;;  %v4221_v5 = vmul.f32 %v8822_v4, %v8822_v4  ;;  %v4222_v61 = vmul.f32 %v8825_v42, %v8825_v42 }
 0x478   : > { %v8836_v0 = vsub.f32 %v8520_v18, %v4119_v34  ;;  %v8839_v54 = vsub.f32 %v8522_v51, %v4119_v34  ;;  %v8842_v22 = vsub.f32 %v8528_v17, %v4120_v45  ;;  %v8845_v10 = vsub.f32 %v8534_v16, %v4120_v45 }
 0x479   : > { %v4046_v55 = vpop.xlane.xlu0 %4045  ;;  %v4289_v53 = vadd.f32 %v4220_v63, %v4219_v40  ;;  %v4049_v21 = vpop.xlane.xlu1 %4048  ;;  %v4292_v51 = vadd.f32 %v4222_v61, %v4221_v5 }
 0x47a   : > { %v4121_v35 = vmul.f32 0.00390625, %v4046_v55  ;;  %v4122_v15 = vmul.f32 0.00390625, %v4049_v21  ;;  %v4223_v56 = vmul.f32 %v8836_v0, %v8836_v0  ;;  %v4224_v18 = vmul.f32 %v8839_v54, %v8839_v54 }
 0x47b   : > { %4287 = vadd.xlane.f32.xlu1 %v4286_v7  ;;  %4290 = vadd.xlane.f32.xlu0 %v4289_v53  ;;  %v4225_v17 = vmul.f32 %v8842_v22, %v8842_v22  ;;  %v4226_v16 = vmul.f32 %v8845_v10, %v8845_v10 }
 0x47c   : > { %v8856_v37 = vsub.f32 %v8538_v20, %v4121_v35  ;;  %v8859_v36 = vsub.f32 %v8545_v57, %v4121_v35  ;;  %v8862_v34 = vsub.f32 %v8549_v52, %v4122_v15  ;;  %v8865_v45 = vsub.f32 %v8551_v11, %v4122_v15 }
 0x47d   : > { %v4052_v40 = vpop.xlane.xlu0 %4051  ;;  %v4295_v63 = vadd.f32 %v4224_v18, %v4223_v56  ;;  %v4055_v7 = vpop.xlane.xlu1 %4054  ;;  %v4298_v57 = vadd.f32 %v4226_v16, %v4225_v17 }
 0x47e   : > { %v4123_v5 = vmul.f32 0.00390625, %v4052_v40  ;;  %v4124_v61 = vmul.f32 0.00390625, %v4055_v7  ;;  %v4227_v55 = vmul.f32 %v8856_v37, %v8856_v37  ;;  %v4228_v20 = vmul.f32 %v8859_v36, %v8859_v36 }
 0x47f   : > { %4293 = vadd.xlane.f32.xlu1 %v4292_v51  ;;  %4296 = vadd.xlane.f32.xlu0 %v4295_v63  ;;  %v4229_v52 = vmul.f32 %v8862_v34, %v8862_v34  ;;  %v4230_v11 = vmul.f32 %v8865_v45, %v8865_v45 }
 0x480   : > { %v8876_v53 = vsub.f32 %v8560_v24, %v4123_v5  ;;  %v8879_v21 = vsub.f32 %v8562_v6, %v4123_v5  ;;  %v8882_v35 = vsub.f32 %v8565_v13, %v4124_v61  ;;  %v8885_v15 = vsub.f32 %v8572_v50, %v4124_v61  ;;  %v9631_v5 = vld [vmem:[#allocation57_spill] sm:$0xff] }
 0x481   : > { %v4058_v56 = vpop.xlane.xlu0 %4057  ;;  %v4301_v18 = vadd.f32 %v4228_v20, %v4227_v55  ;;  %v4061_v51 = vpop.xlane.xlu1 %4060  ;;  %v4304_v6 = vadd.f32 %v4230_v11, %v4229_v52  ;;  %v9633_v55 = vld [vmem:[#allocation58_spill] sm:$0xff] }
 0x482   : > { %v4125_v17 = vmul.f32 0.00390625, %v4058_v56  ;;  %v4126_v16 = vmul.f32 0.00390625, %v4061_v51  ;;  %v4231_v40 = vmul.f32 %v8876_v53, %v8876_v53  ;;  %v4232_v24 = vmul.f32 %v8879_v21, %v8879_v21 }
 0x483   : > { %4299 = vadd.xlane.f32.xlu1 %v4298_v57  ;;  %4302 = vadd.xlane.f32.xlu0 %v4301_v18  ;;  %v4233_v13 = vmul.f32 %v8882_v35, %v8882_v35  ;;  %v4234_v50 = vmul.f32 %v8885_v15, %v8885_v15 }
 0x484   : > { %v8896_v63 = vsub.f32 %v8583_v19, %v4125_v17  ;;  %v8899_v7 = vsub.f32 %v8587_v39, %v4125_v17  ;;  %v8902_v61 = vsub.f32 %v9631_v5, %v4126_v16  ;;  %v8905_v20 = vsub.f32 %v9633_v55, %v4126_v16  ;;  %v9635_v5 = vld [vmem:[#allocation59_spill] sm:$0xff] }
 0x485   : > { %v4064_v57 = vpop.xlane.xlu0 %4063  ;;  %v4307_v52 = vadd.f32 %v4232_v24, %v4231_v40  ;;  %v4067_v11 = vpop.xlane.xlu1 %4066  ;;  %v4310_v39 = vadd.f32 %v4234_v50, %v4233_v13  ;;  %v9637_v24 = vld [vmem:[#allocation60_spill] sm:$0xff] }
 0x486   : > { %9629 = vst [vmem:[#allocation76_spill] sm:$0xff] %v8896_v63  ;;  %9630 = vst [vmem:[#allocation77_spill] sm:$0xff] %v8899_v7  ;;  %v4127_v56 = vmul.f32 0.00390625, %v4064_v57  ;;  %v4128_v18 = vmul.f32 0.00390625, %v4067_v11  ;;  %v4235_v51 = vmul.f32 %v8896_v63, %v8896_v63  ;;  %v4236_v19 = vmul.f32 %v8899_v7, %v8899_v7  ;;  %v9639_v57 = vld [vmem:[#allocation61_spill] sm:$0xff]  ;;  %v9641_v63 = vld [vmem:[#allocation62_spill] sm:$0xff] }
 0x487   : > { %9632 = vst [vmem:[#allocation57_spill] sm:$0xff] %v8902_v61  ;;  %9634 = vst [vmem:[#allocation58_spill] sm:$0xff] %v8905_v20  ;;  %4305 = vadd.xlane.f32.xlu1 %v4304_v6  ;;  %4308 = vadd.xlane.f32.xlu0 %v4307_v52  ;;  %v4237_v17 = vmul.f32 %v8902_v61, %v8902_v61  ;;  %v4238_v16 = vmul.f32 %v8905_v20, %v8905_v20 }
 0x488   : > { %v8916_v40 = vsub.f32 %v9635_v5, %v4127_v56  ;;  %v8919_v55 = vsub.f32 %v9637_v24, %v4127_v56  ;;  %v8922_v11 = vsub.f32 %v9639_v57, %v4128_v18  ;;  %v8925_v7 = vsub.f32 %v9641_v63, %v4128_v18  ;;  %v9643_v18 = vld [vmem:[#allocation63_spill] sm:$0xff] }
 0x489   : > { %v4070_v6 = vpop.xlane.xlu0 %4069  ;;  %v4313_v13 = vadd.f32 %v4236_v19, %v4235_v51  ;;  %v4073_v50 = vpop.xlane.xlu1 %4072  ;;  %v4316_v56 = vadd.f32 %v4238_v16, %v4237_v17  ;;  %v9645_v19 = vld [vmem:[#allocation64_spill] sm:$0xff] }
 0x48a   : > { %9636 = vst [vmem:[#allocation59_spill] sm:$0xff] %v8916_v40  ;;  %9638 = vst [vmem:[#allocation60_spill] sm:$0xff] %v8919_v55  ;;  %v4129_v52 = vmul.f32 0.00390625, %v4070_v6  ;;  %v4130_v61 = vmul.f32 0.00390625, %v4073_v50  ;;  %v4239_v20 = vmul.f32 %v8916_v40, %v8916_v40  ;;  %v4240_v5 = vmul.f32 %v8919_v55, %v8919_v55  ;;  %v9647_v6 = vld [vmem:[#allocation65_spill] sm:$0xff]  ;;  %v9649_v40 = vld [vmem:[#allocation66_spill] sm:$0xff] }
 0x48b   : > { %9640 = vst [vmem:[#allocation61_spill] sm:$0xff] %v8922_v11  ;;  %9642 = vst [vmem:[#allocation62_spill] sm:$0xff] %v8925_v7  ;;  %4311 = vadd.xlane.f32.xlu1 %v4310_v39  ;;  %4314 = vadd.xlane.f32.xlu0 %v4313_v13  ;;  %v4241_v24 = vmul.f32 %v8922_v11, %v8922_v11  ;;  %v4242_v63 = vmul.f32 %v8925_v7, %v8925_v7 }
 0x48c   : > { %v8936_v51 = vsub.f32 %v9643_v18, %v4129_v52  ;;  %v8939_v57 = vsub.f32 %v9645_v19, %v4129_v52  ;;  %v8942_v50 = vsub.f32 %v9647_v6, %v4130_v61  ;;  %v8945_v55 = vsub.f32 %v9649_v40, %v4130_v61  ;;  %v9651_v40 = vld [vmem:[#allocation67_spill] sm:$0xff] }
 0x48d   : > { %v4076_v39 = vpop.xlane.xlu0 %4075  ;;  %v4319_v17 = vadd.f32 %v4240_v5, %v4239_v20  ;;  %v4079_v16 = vpop.xlane.xlu1 %4078  ;;  %v4322_v52 = vadd.f32 %v4242_v63, %v4241_v24  ;;  %v9652_v5 = vld [vmem:[#allocation68_spill] sm:$0xff] }
 0x48e   : > { %9644 = vst [vmem:[#allocation63_spill] sm:$0xff] %v8936_v51  ;;  %9646 = vst [vmem:[#allocation64_spill] sm:$0xff] %v8939_v57  ;;  %v4131_v13 = vmul.f32 0.00390625, %v4076_v39  ;;  %v4132_v11 = vmul.f32 0.00390625, %v4079_v16  ;;  %v4243_v7 = vmul.f32 %v8936_v51, %v8936_v51  ;;  %v4244_v18 = vmul.f32 %v8939_v57, %v8939_v57  ;;  %v9654_v39 = vld [vmem:[#allocation69_spill] sm:$0xff]  ;;  %v9656_v51 = vld [vmem:[#allocation70_spill] sm:$0xff] }
 0x48f   : > { %9648 = vst [vmem:[#allocation65_spill] sm:$0xff] %v8942_v50  ;;  %9650 = vst [vmem:[#allocation66_spill] sm:$0xff] %v8945_v55  ;;  %4317 = vadd.xlane.f32.xlu1 %v4316_v56  ;;  %4320 = vadd.xlane.f32.xlu0 %v4319_v17  ;;  %v4245_v19 = vmul.f32 %v8942_v50, %v8942_v50  ;;  %v4246_v61 = vmul.f32 %v8945_v55, %v8945_v55 }
 0x490   : > { %v8956_v20 = vsub.f32 %v9651_v40, %v4131_v13  ;;  %v8959_v6 = vsub.f32 %v9652_v5, %v4131_v13  ;;  %v8962_v16 = vsub.f32 %v9654_v39, %v4132_v11  ;;  %v8965_v57 = vsub.f32 %v9656_v51, %v4132_v11  ;;  %v9658_v51 = vld [vmem:[#allocation71_spill] sm:$0xff] }
 0x491   : > { %v4082_v56 = vpop.xlane.xlu0 %4081  ;;  %v4325_v24 = vadd.f32 %v4244_v18, %v4243_v7  ;;  %v4085_v63 = vpop.xlane.xlu1 %4084  ;;  %v4328_v13 = vadd.f32 %v4246_v61, %v4245_v19  ;;  %v9659_v18 = vld [vmem:[#allocation72_spill] sm:$0xff] }
 0x492   : > { %9653 = vst [vmem:[#allocation67_spill] sm:$0xff] %v8959_v6  ;;  %9655 = vst [vmem:[#allocation68_spill] sm:$0xff] %v8962_v16  ;;  %v4133_v17 = vmul.f32 0.00390625, %v4082_v56  ;;  %v4134_v50 = vmul.f32 0.00390625, %v4085_v63  ;;  %v4247_v55 = vmul.f32 %v8956_v20, %v8956_v20  ;;  %v4248_v40 = vmul.f32 %v8959_v6, %v8959_v6  ;;  %v9660_v63 = vld [vmem:[#allocation73_spill] sm:$0xff] }
 0x493   : > { %9657 = vst [vmem:[#allocation69_spill] sm:$0xff] %v8965_v57  ;;  %4323 = vadd.xlane.f32.xlu1 %v4322_v52  ;;  %4326 = vadd.xlane.f32.xlu0 %v4325_v24  ;;  %v4249_v5 = vmul.f32 %v8962_v16, %v8962_v16  ;;  %v4250_v11 = vmul.f32 %v8965_v57, %v8965_v57 }
 0x494   : > { %v8976_v7 = vsub.f32 %v9658_v51, %v4133_v17  ;;  %v8979_v39 = vsub.f32 %v9659_v18, %v4133_v17  ;;  %v8982_v56 = vsub.f32 %v8669_v60, %v4134_v50  ;;  %v8985_v6 = vsub.f32 %v9660_v63, %v4134_v50  ;;  %v9662_v63 = vld [vmem:[#allocation74_spill] sm:$0xff] }
 0x495   : > { %v4088_v52 = vpop.xlane.xlu0 %4087  ;;  %v4331_v19 = vadd.f32 %v4248_v40, %v4247_v55  ;;  %v4091_v61 = vpop.xlane.xlu1 %4090  ;;  %v4334_v17 = vadd.f32 %v4250_v11, %v4249_v5 }
 0x496   : > { %9661 = vst [vmem:[#allocation70_spill] sm:$0xff] %v8985_v6  ;;  %v4135_v24 = vmul.f32 0.00390625, %v4088_v52  ;;  %v4136_v16 = vmul.f32 0.00390625, %v4091_v61  ;;  %v4251_v57 = vmul.f32 %v8976_v7, %v8976_v7  ;;  %v4252_v51 = vmul.f32 %v8979_v39, %v8979_v39 }
 0x497   : > { %4329 = vadd.xlane.f32.xlu1 %v4328_v13  ;;  %4332 = vadd.xlane.f32.xlu0 %v4331_v19  ;;  %v4253_v60 = vmul.f32 %v8982_v56, %v8982_v56  ;;  %v4254_v50 = vmul.f32 %v8985_v6, %v8985_v6 }
 0x498   : > { %v8996_v55 = vsub.f32 %v8686_v43, %v4135_v24  ;;  %v8999_v40 = vsub.f32 %v8692_v25, %v4135_v24  ;;  %v9002_v18 = vsub.f32 %v8694_v30, %v4136_v16  ;;  %v9005_v52 = vsub.f32 %v9662_v63, %v4136_v16  ;;  %v9664_v63 = vld [vmem:[#allocation75_spill] sm:$0xff] }
 0x499   : > { %v4094_v13 = vpop.xlane.xlu0 %4093  ;;  %v4337_v5 = vadd.f32 %v4252_v51, %v4251_v57  ;;  %v4097_v11 = vpop.xlane.xlu1 %4096  ;;  %v4340_v25 = vadd.f32 %v4254_v50, %v4253_v60 }
 0x49a   : > { %9663 = vst [vmem:[#allocation71_spill] sm:$0xff] %v9005_v52  ;;  %v4137_v19 = vmul.f32 0.00390625, %v4094_v13  ;;  %v4138_v61 = vmul.f32 0.00390625, %v4097_v11  ;;  %v4255_v6 = vmul.f32 %v8996_v55, %v8996_v55  ;;  %v4256_v43 = vmul.f32 %v8999_v40, %v8999_v40 }
 0x49b   : > { %4335 = vadd.xlane.f32.xlu1 %v4334_v17  ;;  %4338 = vadd.xlane.f32.xlu0 %v4337_v5  ;;  %v4257_v30 = vmul.f32 %v9002_v18, %v9002_v18  ;;  %v4258_v16 = vmul.f32 %v9005_v52, %v9005_v52 }
 0x49c   : > { %v9016_v57 = vsub.f32 %v8699_v59, %v4137_v19  ;;  %v9019_v24 = vsub.f32 %v8701_v12, %v4137_v19  ;;  %v9022_v51 = vsub.f32 %v8703_v28, %v4138_v61  ;;  %v9025_v13 = vsub.f32 %v9664_v63, %v4138_v61 }
 0x49d   : > { %v4100_v17 = vpop.xlane.xlu0 %4099  ;;  %v4343_v60 = vadd.f32 %v4256_v43, %v4255_v6  ;;  %v4103_v50 = vpop.xlane.xlu1 %4102  ;;  %v4346_v12 = vadd.f32 %v4258_v16, %v4257_v30 }
 0x49e   : > { %v4139_v5 = vmul.f32 0.00390625, %v4100_v17  ;;  %v4140_v11 = vmul.f32 0.00390625, %v4103_v50  ;;  %v4259_v52 = vmul.f32 %v9016_v57, %v9016_v57  ;;  %v4260_v59 = vmul.f32 %v9019_v24, %v9019_v24 }
 0x49f   : > { %4341 = vadd.xlane.f32.xlu1 %v4340_v25  ;;  %4344 = vadd.xlane.f32.xlu0 %v4343_v60  ;;  %v4261_v28 = vmul.f32 %v9022_v51, %v9022_v51  ;;  %v4262_v19 = vmul.f32 %v9025_v13, %v9025_v13 }
 0x4a0   : > { %v9036_v6 = vsub.f32 %v8721_v32, %v4139_v5  ;;  %v9039_v61 = vsub.f32 %v8725_v48, %v4139_v5  ;;  %v9042_v43 = vsub.f32 %v8727_v44, %v4140_v11  ;;  %v9045_v63 = vsub.f32 %v8730_v47, %v4140_v11 }
 0x4a1   : > { %v4106_v25 = vpop.xlane.xlu0 %4105  ;;  %v4349_v30 = vadd.f32 %v4260_v59, %v4259_v52  ;;  %v4109_v16 = vpop.xlane.xlu1 %4108  ;;  %v4352_v48 = vadd.f32 %v4262_v19, %v4261_v28 }
 0x4a2   : > { %v4141_v17 = vmul.f32 0.00390625, %v4106_v25  ;;  %v4142_v60 = vmul.f32 0.00390625, %v4109_v16  ;;  %v4263_v50 = vmul.f32 %v9036_v6, %v9036_v6  ;;  %v4264_v32 = vmul.f32 %v9039_v61, %v9039_v61 }
 0x4a3   : > { %4347 = vadd.xlane.f32.xlu1 %v4346_v12  ;;  %4350 = vadd.xlane.f32.xlu0 %v4349_v30  ;;  %v4265_v44 = vmul.f32 %v9042_v43, %v9042_v43  ;;  %v4266_v47 = vmul.f32 %v9045_v63, %v9045_v63 }
 0x4a4   : > { %v9056_v52 = vsub.f32 %v8743_v41, %v4141_v17  ;;  %v9059_v5 = vsub.f32 %v8745_v14, %v4141_v17  ;;  %v9062_v11 = vsub.f32 %v8747_v27, %v4142_v60  ;;  %v9065_v59 = vsub.f32 %v8749_v31, %v4142_v60 }
 0x4a5   : > { %v4355_v12 = vadd.f32 %v4264_v32, %v4263_v50  ;;  %v4358_v41 = vadd.f32 %v4266_v47, %v4265_v44 }
 0x4a6   : > { %9665 = vst [vmem:[#allocation72_spill] sm:$0xff] %v9056_v52  ;;  %9666 = vst [vmem:[#allocation73_spill] sm:$0xff] %v9059_v5  ;;  %v4267_v28 = vmul.f32 %v9056_v52, %v9056_v52  ;;  %v4268_v19 = vmul.f32 %v9059_v5, %v9059_v5  ;;  %v4269_v14 = vmul.f32 %v9062_v11, %v9062_v11 }
 0x4a7   : > { %9667 = vst [vmem:[#allocation74_spill] sm:$0xff] %v9062_v11  ;;  %9668 = vst [vmem:[#allocation75_spill] sm:$0xff] %v9065_v59  ;;  %4353 = vadd.xlane.f32.xlu1 %v4352_v48  ;;  %4356 = vadd.xlane.f32.xlu0 %v4355_v12  ;;  %v4270_v27 = vmul.f32 %v9065_v59, %v9065_v59 }
 0x4a8   : > { %v4361_v25 = vadd.f32 %v4268_v19, %v4267_v28  ;;  %v4012_v28 = vld [vmem:[%s9355_s5] sm:$0x3] }
 0x4a9   : > { %v4364_v31 = vadd.f32 %v4270_v27, %v4269_v14 }
 0x4ab   : > { %4359 = vadd.xlane.f32.xlu1 %v4358_v41  ;;  %4362 = vadd.xlane.f32.xlu0 %v4361_v25  ;;  %v4013_v25 = vld [vmem:[%s9356_s6] sm:$0x3] }
 0x4af   : > { %4365 = vadd.xlane.f32.xlu1 %v4364_v31 }
 0x4fc   : > { %v4273_v30 = vpop.xlane.xlu0 %4272 }
 0x4fd   : > { %v4367_v16 = vmul.f32 0.00390625, %v4273_v30 }
 0x4ff   : > { %v4399_v17 = vadd.f32 1e-12, %v4367_v16  ;;  %v9669_v16 = vld [vmem:[#allocation37_spill] sm:$0xff] }
 0x500   : > { %v4276_v60 = vpop.xlane.xlu1 %4275  ;;  %v4279_v50 = vpop.xlane.xlu0 %4278 }
 0x501   : > { %5863 = vrsqrt.f32 %v4399_v17  ;;  %v4368_v32 = vmul.f32 0.00390625, %v4276_v60  ;;  %v4369_v48 = vmul.f32 0.00390625, %v4279_v50  ;;  %v9082_v17 = vrot.slane %v4012_v28, %v9669_v16 }
 0x503   : > { %v4400_v44 = vadd.f32 1e-12, %v4368_v32  ;;  %v4401_v47 = vadd.f32 1e-12, %v4369_v48 }
 0x504   : > { %v4282_v12 = vpop.xlane.xlu1 %4281  ;;  %v4285_v11 = vpop.xlane.xlu0 %4284 }
 0x505   : > { %5865 = vrsqrt.f32 %v4400_v44  ;;  %v4370_v5 = vmul.f32 0.00390625, %v4282_v12  ;;  %v4371_v59 = vmul.f32 0.00390625, %v4285_v11  ;;  %v9670_v11 = vld [vmem:[#allocation38_spill] sm:$0xff] }
 0x506   : > { %5867 = vrsqrt.f32 %v4401_v47  ;;  %v9085_v60 = vrot.slane %v4012_v28, %v9670_v11  ;;  %v9091_v48 = vrot.slane %v4013_v25, %v9670_v11 }
 0x507   : > { %v4402_v19 = vadd.f32 1e-12, %v4370_v5  ;;  %v4403_v41 = vadd.f32 1e-12, %v4371_v59  ;;  %v9088_v59 = vrot.slane %v4013_v25, %v9669_v16 }
 0x508   : > { %v4288_v14 = vpop.xlane.xlu1 %4287  ;;  %v4291_v27 = vpop.xlane.xlu0 %4290 }
 0x509   : > { %5869 = vrsqrt.f32 %v4402_v19  ;;  %v4372_v31 = vmul.f32 0.00390625, %v4288_v14  ;;  %v4373_v30 = vmul.f32 0.00390625, %v4291_v27 }
 0x50a   : > { %5871 = vrsqrt.f32 %v4403_v41 }
 0x50b   : > { %v5864_v50 = vpop.eup %5863  ;;  %v4404_v32 = vadd.f32 1e-12, %v4372_v31  ;;  %v4405_v5 = vadd.f32 1e-12, %v4373_v30 }
 0x50c   : > { %v4463_v44 = vmul.f32 %v5864_v50, %v8756_v38  ;;  %v4464_v47 = vmul.f32 %v5864_v50, %v8759_v3  ;;  %v4294_v12 = vpop.xlane.xlu1 %4293  ;;  %v4297_v19 = vpop.xlane.xlu0 %4296 }
 0x50d   : > { %5873 = vrsqrt.f32 %v4404_v32  ;;  %v4374_v14 = vmul.f32 0.00390625, %v4294_v12  ;;  %v4375_v28 = vmul.f32 0.00390625, %v4297_v19 }
 0x50e   : > { %v4538_v41 = vmul.f32 %v9082_v17, %v4463_v44  ;;  %v4539_v27 = vmul.f32 %v9085_v60, %v4464_v47  ;;  %5875 = vrsqrt.f32 %v4405_v5 }
 0x50f   : > { %v5866_v31 = vpop.eup %5865  ;;  %v4406_v30 = vadd.f32 1e-12, %v4374_v14  ;;  %v4407_v16 = vadd.f32 1e-12, %v4375_v28 }
 0x510   : > { %v5868_v52 = vpop.eup %5867  ;;  %v4613_v25 = vadd.f32 %v9088_v59, %v4538_v41  ;;  %v4614_v38 = vadd.f32 %v9091_v48, %v4539_v27  ;;  %v4465_v3 = vmul.f32 %v5866_v31, %v8776_v8  ;;  %v4466_v11 = vmul.f32 %v5866_v31, %v8779_v62  ;;  %v4300_v50 = vpop.xlane.xlu1 %4299 }
 0x511   : > { %v4303_v32 = vpop.xlane.xlu0 %4302  ;;  %v4467_v44 = vmul.f32 %v5868_v52, %v8762_v49  ;;  %v4468_v47 = vmul.f32 %v5868_v52, %v8765_v33  ;;  %5877 = vrsqrt.f32 %v4406_v30  ;;  %v4376_v5 = vmul.f32 0.00390625, %v4300_v50 }
 0x512   : > { %v5229_v12 = vpack.c.bf16 %v4614_v38, %v4613_v25  ;;  %v4540_v19 = vmul.f32 %v9082_v17, %v4465_v3  ;;  %v4541_v14 = vmul.f32 %v9085_v60, %v4466_v11  ;;  %5879 = vrsqrt.f32 %v4407_v16 }
 0x513   : > { %v5870_v28 = vpop.eup %5869  ;;  %v4542_v8 = vmul.f32 %v9082_v17, %v4467_v44  ;;  %v4543_v62 = vmul.f32 %v9085_v60, %v4468_v47  ;;  %v4408_v41 = vadd.f32 1e-12, %v4376_v5  ;;  %v4377_v27 = vmul.f32 0.00390625, %v4303_v32 }
 0x514   : > { %v5872_v31 = vpop.eup %5871  ;;  %4869 = vst [vmem:[%s6227_s18] sm:$0xff] %v5229_v12  ;;  %v4615_v49 = vadd.f32 %v9088_v59, %v4540_v19  ;;  %v4616_v33 = vadd.f32 %v9091_v48, %v4541_v14  ;;  %v4469_v52 = vmul.f32 %v5870_v28, %v8782_v23  ;;  %v4470_v30 = vmul.f32 %v5870_v28, %v8785_v9  ;;  %v4306_v25 = vpop.xlane.xlu1 %4305 }
 0x515   : > { %v4309_v16 = vpop.xlane.xlu0 %4308  ;;  %v4617_v38 = vadd.f32 %v9088_v59, %v4542_v8  ;;  %v4618_v3 = vadd.f32 %v9091_v48, %v4543_v62  ;;  %v4471_v11 = vmul.f32 %v5872_v31, %v8796_v29  ;;  %v4472_v50 = vmul.f32 %v5872_v31, %v8799_v2 }
 0x516   : > { %v5230_v32 = vpack.c.bf16 %v4616_v33, %v4615_v49  ;;  %v4544_v44 = vmul.f32 %v9082_v17, %v4469_v52  ;;  %v4545_v47 = vmul.f32 %v9085_v60, %v4470_v30  ;;  %5881 = vrsqrt.f32 %v4408_v41 }
 0x517   : > { %v5874_v23 = vpop.eup %5873  ;;  %v5231_v9 = vpack.c.bf16 %v4618_v3, %v4617_v38  ;;  %v4546_v5 = vmul.f32 %v9082_v17, %v4471_v11  ;;  %v4547_v12 = vmul.f32 %v9085_v60, %v4472_v50  ;;  %v4409_v19 = vadd.f32 1e-12, %v4377_v27 }
 0x518   : > { %v5876_v14 = vpop.eup %5875  ;;  %4870 = vst [vmem:[%s6227_s18 + $0x8] sm:$0xff] %v5230_v32  ;;  %v4619_v29 = vadd.f32 %v9088_v59, %v4544_v44  ;;  %v4620_v2 = vadd.f32 %v9091_v48, %v4545_v47  ;;  %v4473_v28 = vmul.f32 %v5874_v23, %v8802_v46  ;;  %v4474_v8 = vmul.f32 %v5874_v23, %v8805_v26  ;;  %v4312_v62 = vpop.xlane.xlu1 %4311 }
 0x519   : > { %v4315_v31 = vpop.xlane.xlu0 %4314  ;;  %4871 = vst [vmem:[%s6227_s18 + $0x10] sm:$0xff] %v5231_v9  ;;  %v4621_v41 = vadd.f32 %v9088_v59, %v4546_v5  ;;  %v4622_v49 = vadd.f32 %v9091_v48, %v4547_v12  ;;  %v4475_v27 = vmul.f32 %v5876_v14, %v8816_v1  ;;  %v4476_v33 = vmul.f32 %v5876_v14, %v8819_v58 }
 0x51a   : > { %v5232_v52 = vpack.c.bf16 %v4620_v2, %v4619_v29  ;;  %v4548_v30 = vmul.f32 %v9082_v17, %v4473_v28  ;;  %v4549_v46 = vmul.f32 %v9085_v60, %v4474_v8  ;;  %5883 = vrsqrt.f32 %v4409_v19 }
 0x51b   : > { %v5878_v26 = vpop.eup %5877  ;;  %v5233_v38 = vpack.c.bf16 %v4622_v49, %v4621_v41  ;;  %v4550_v3 = vmul.f32 %v9082_v17, %v4475_v27  ;;  %v4551_v11 = vmul.f32 %v9085_v60, %v4476_v33  ;;  %v4378_v50 = vmul.f32 0.00390625, %v4306_v25 }
 0x51c   : > { %v5880_v32 = vpop.eup %5879  ;;  %4872 = vst [vmem:[%s6227_s18 + $0x18] sm:$0xff] %v5232_v52  ;;  %v4623_v1 = vadd.f32 %v9088_v59, %v4548_v30  ;;  %v4624_v58 = vadd.f32 %v9091_v48, %v4549_v46  ;;  %v4477_v44 = vmul.f32 %v5878_v26, %v8822_v4  ;;  %v4478_v47 = vmul.f32 %v5878_v26, %v8825_v42  ;;  %v4318_v23 = vpop.xlane.xlu1 %4317 }
 0x51d   : > { %v4321_v9 = vpop.xlane.xlu0 %4320  ;;  %4873 = vst [vmem:[%s6227_s18 + $0x20] sm:$0xff] %v5233_v38  ;;  %v4625_v5 = vadd.f32 %v9088_v59, %v4550_v3  ;;  %v4626_v12 = vadd.f32 %v9091_v48, %v4551_v11  ;;  %v4479_v25 = vmul.f32 %v5880_v32, %v8836_v0  ;;  %v4480_v19 = vmul.f32 %v5880_v32, %v8839_v54 }
 0x51e   : > { %v5234_v14 = vpack.c.bf16 %v4624_v58, %v4623_v1  ;;  %v4552_v29 = vmul.f32 %v9082_v17, %v4477_v44  ;;  %v4553_v4 = vmul.f32 %v9085_v60, %v4478_v47  ;;  %v4410_v2 = vadd.f32 1e-12, %v4378_v50 }
 0x51f   : > { %v5235_v42 = vpack.c.bf16 %v4626_v12, %v4625_v5  ;;  %v4554_v28 = vmul.f32 %v9082_v17, %v4479_v25  ;;  %v4555_v8 = vmul.f32 %v9085_v60, %v4480_v19  ;;  %v4379_v41 = vmul.f32 0.00390625, %v4309_v16 }
 0x520   : > { %v5882_v49 = vpop.eup %5881  ;;  %4874 = vst [vmem:[%s6227_s18 + $0x28] sm:$0xff] %v5234_v14  ;;  %v4627_v27 = vadd.f32 %v9088_v59, %v4552_v29  ;;  %v4628_v0 = vadd.f32 %v9091_v48, %v4553_v4  ;;  %5885 = vrsqrt.f32 %v4410_v2  ;;  %v4380_v54 = vmul.f32 0.00390625, %v4312_v62  ;;  %v4324_v33 = vpop.xlane.xlu1 %4323 }
 0x521   : > { %v4327_v52 = vpop.xlane.xlu0 %4326  ;;  %4875 = vst [vmem:[%s6227_s18 + $0x30] sm:$0xff] %v5235_v42  ;;  %v4629_v30 = vadd.f32 %v9088_v59, %v4554_v28  ;;  %v4630_v46 = vadd.f32 %v9091_v48, %v4555_v8  ;;  %v4481_v26 = vmul.f32 %v5882_v49, %v8842_v22  ;;  %v4482_v16 = vmul.f32 %v5882_v49, %v8845_v10 }
 0x522   : > { %v5236_v38 = vpack.c.bf16 %v4628_v0, %v4627_v27  ;;  %v4411_v3 = vadd.f32 1e-12, %v4379_v41  ;;  %v4412_v11 = vadd.f32 1e-12, %v4380_v54  ;;  %v4381_v50 = vmul.f32 0.00390625, %v4315_v31 }
 0x523   : > { %v5237_v32 = vpack.c.bf16 %v4630_v46, %v4629_v30  ;;  %v4556_v62 = vmul.f32 %v9082_v17, %v4481_v26  ;;  %v4557_v1 = vmul.f32 %v9085_v60, %v4482_v16  ;;  %v4382_v58 = vmul.f32 0.00390625, %v4318_v23 }
 0x524   : > { %v5884_v44 = vpop.eup %5883  ;;  %4876 = vst [vmem:[%s6227_s18 + $0x38] sm:$0xff] %v5236_v38  ;;  %5887 = vrsqrt.f32 %v4411_v3  ;;  %v4413_v47 = vadd.f32 1e-12, %v4381_v50  ;;  %v4383_v5 = vmul.f32 0.00390625, %v4321_v9  ;;  %v4384_v12 = vmul.f32 0.00390625, %v4324_v33  ;;  %v4330_v22 = vpop.xlane.xlu1 %4329 }
 0x525   : > { %v4333_v25 = vpop.xlane.xlu0 %4332  ;;  %4877 = vst [vmem:[%s6227_s18 + $0x40] sm:$0xff] %v5237_v32  ;;  %v4631_v10 = vadd.f32 %v9088_v59, %v4556_v62  ;;  %v4632_v19 = vadd.f32 %v9091_v48, %v4557_v1  ;;  %v4483_v31 = vmul.f32 %v5884_v44, %v8856_v37  ;;  %v4484_v14 = vmul.f32 %v5884_v44, %v8859_v36 }
 0x526   : > { %5889 = vrsqrt.f32 %v4412_v11  ;;  %v4414_v23 = vadd.f32 1e-12, %v4382_v58  ;;  %v4415_v29 = vadd.f32 1e-12, %v4383_v5  ;;  %v4416_v4 = vadd.f32 1e-12, %v4384_v12 }
 0x527   : > { %v5238_v2 = vpack.c.bf16 %v4632_v19, %v4631_v10  ;;  %v4558_v9 = vmul.f32 %v9082_v17, %v4483_v31  ;;  %v4559_v42 = vmul.f32 %v9085_v60, %v4484_v14  ;;  %5891 = vrsqrt.f32 %v4413_v47 }
 0x528   : > { %5893 = vrsqrt.f32 %v4414_v23  ;;  %v4385_v28 = vmul.f32 0.00390625, %v4327_v52  ;;  %v4386_v8 = vmul.f32 0.00390625, %v4330_v22  ;;  %v4387_v41 = vmul.f32 0.00390625, %v4333_v25  ;;  %v4336_v49 = vpop.xlane.xlu1 %4335 }
 0x529   : > { %v4339_v27 = vpop.xlane.xlu0 %4338  ;;  %4878 = vst [vmem:[%s6227_s18 + $0x48] sm:$0xff] %v5238_v2  ;;  %v4633_v37 = vadd.f32 %v9088_v59, %v4558_v9  ;;  %v4634_v36 = vadd.f32 %v9091_v48, %v4559_v42  ;;  %5895 = vrsqrt.f32 %v4415_v29  ;;  %v4388_v0 = vmul.f32 0.00390625, %v4336_v49  ;;  %v9671_v2 = vld [vmem:[#allocation76_spill] sm:$0xff]  ;;  %v9672_v9 = vld [vmem:[#allocation77_spill] sm:$0xff] }
 0x52a   : > { %v5886_v54 = vpop.eup %5885  ;;  %5897 = vrsqrt.f32 %v4416_v4  ;;  %v4417_v33 = vadd.f32 1e-12, %v4385_v28  ;;  %v4418_v30 = vadd.f32 1e-12, %v4386_v8  ;;  %v4419_v46 = vadd.f32 1e-12, %v4387_v41 }
 0x52b   : > { %v5239_v26 = vpack.c.bf16 %v4634_v36, %v4633_v37  ;;  %v4485_v52 = vmul.f32 %v5886_v54, %v8862_v34  ;;  %v4486_v16 = vmul.f32 %v5886_v54, %v8865_v45  ;;  %v4420_v38 = vadd.f32 1e-12, %v4388_v0 }
 0x52c   : > { %5899 = vrsqrt.f32 %v4417_v33  ;;  %v4389_v3 = vmul.f32 0.00390625, %v4339_v27  ;;  %v4342_v11 = vpop.xlane.xlu1 %4341  ;;  %v9673_v27 = vld [vmem:[#allocation57_spill] sm:$0xff]  ;;  %v9674_v33 = vld [vmem:[#allocation58_spill] sm:$0xff] }
 0x52d   : > { %v4345_v50 = vpop.xlane.xlu0 %4344  ;;  %4879 = vst [vmem:[%s6227_s18 + $0x50] sm:$0xff] %v5239_v26  ;;  %v4560_v32 = vmul.f32 %v9082_v17, %v4485_v52  ;;  %v4561_v62 = vmul.f32 %v9085_v60, %v4486_v16  ;;  %5901 = vrsqrt.f32 %v4418_v30  ;;  %v4390_v1 = vmul.f32 0.00390625, %v4342_v11  ;;  %v9675_v16 = vld [vmem:[#allocation59_spill] sm:$0xff] }
 0x52e   : > { %v5888_v58 = vpop.eup %5887  ;;  %5903 = vrsqrt.f32 %v4419_v46  ;;  %v4421_v44 = vadd.f32 1e-12, %v4389_v3  ;;  %v4391_v47 = vmul.f32 0.00390625, %v4345_v50 }
 0x52f   : > { %v4635_v34 = vadd.f32 %v9088_v59, %v4560_v32  ;;  %v4636_v45 = vadd.f32 %v9091_v48, %v4561_v62  ;;  %v4487_v5 = vmul.f32 %v5888_v58, %v8876_v53  ;;  %v4488_v12 = vmul.f32 %v5888_v58, %v8879_v21 }
 0x530   : > { %v5890_v22 = vpop.eup %5889  ;;  %5905 = vrsqrt.f32 %v4420_v38  ;;  %v9178_v25 = vadd.f32 1e-12, %v4390_v1  ;;  %v9180_v10 = vadd.f32 1e-12, %v4391_v47  ;;  %v9193_v36 = vpop.xlane.xlu1 %4347 }
 0x531   : > { %v5892_v19 = vpop.eup %5891  ;;  %v5240_v31 = vpack.c.bf16 %v4636_v45, %v4635_v34  ;;  %v4562_v14 = vmul.f32 %v9082_v17, %v4487_v5  ;;  %v4563_v23 = vmul.f32 %v9085_v60, %v4488_v12  ;;  %v4489_v29 = vmul.f32 %v5890_v22, %v8882_v35  ;;  %v9677_v45 = vld [vmem:[#allocation61_spill] sm:$0xff]  ;;  %v9211_v12 = vpop.xlane.xlu0 %4350 }
 0x532   : > { %v5894_v4 = vpop.eup %5893  ;;  %v4490_v53 = vmul.f32 %v5890_v22, %v8885_v15  ;;  %v4491_v21 = vmul.f32 %v5892_v19, %v9671_v2  ;;  %v4492_v42 = vmul.f32 %v5892_v19, %v9672_v9  ;;  %5907 = vrsqrt.f32 %v4421_v44  ;;  %v9676_v44 = vld [vmem:[#allocation60_spill] sm:$0xff] }
 0x533   : > { %v5896_v28 = vpop.eup %5895  ;;  %4880 = vst [vmem:[%s6227_s18 + $0x58] sm:$0xff] %v5240_v31  ;;  %v4637_v8 = vadd.f32 %v9088_v59, %v4562_v14  ;;  %v4638_v41 = vadd.f32 %v9091_v48, %v4563_v23  ;;  %v4564_v49 = vmul.f32 %v9082_v17, %v4489_v29  ;;  %v4493_v37 = vmul.f32 %v5894_v4, %v9673_v27  ;;  %v9678_v23 = vld [vmem:[#allocation62_spill] sm:$0xff] }
 0x534   : > { %v5898_v35 = vpop.eup %5897  ;;  %v4565_v15 = vmul.f32 %v9085_v60, %v4490_v53  ;;  %v4566_v0 = vmul.f32 %v9082_v17, %v4491_v21  ;;  %v4567_v54 = vmul.f32 %v9085_v60, %v4492_v42  ;;  %v4494_v30 = vmul.f32 %v5894_v4, %v9674_v33  ;;  %v9679_v21 = vld [vmem:[#allocation63_spill] sm:$0xff]  ;;  %v4354_v42 = vpop.xlane.xlu1 %4353  ;;  %v9682_v33 = vld [vmem:[#allocation66_spill] sm:$0xff] }
 0x535   : > { %v5241_v46 = vpack.c.bf16 %v4638_v41, %v4637_v8  ;;  %v4639_v26 = vadd.f32 %v9088_v59, %v4564_v49  ;;  %v4568_v52 = vmul.f32 %v9082_v17, %v4493_v37  ;;  %v4495_v38 = vmul.f32 %v5896_v28, %v9675_v16  ;;  %v9680_v49 = vld [vmem:[#allocation64_spill] sm:$0xff]  ;;  %v9681_v37 = vld [vmem:[#allocation65_spill] sm:$0xff] }
 0x536   : > { %v5900_v3 = vpop.eup %5899  ;;  %v4640_v11 = vadd.f32 %v9091_v48, %v4565_v15  ;;  %v4641_v50 = vadd.f32 %v9088_v59, %v4566_v0  ;;  %v4642_v32 = vadd.f32 %v9091_v48, %v4567_v54  ;;  %v4569_v62 = vmul.f32 %v9085_v60, %v4494_v30 }
 0x537   : > { %v5902_v1 = vpop.eup %5901  ;;  %4881 = vst [vmem:[%s6227_s18 + $0x60] sm:$0xff] %v5241_v46  ;;  %v4643_v58 = vadd.f32 %v9088_v59, %v4568_v52  ;;  %v4496_v47 = vmul.f32 %v5896_v28, %v9676_v44  ;;  %v4570_v34 = vmul.f32 %v9082_v17, %v4495_v38  ;;  %v4497_v5 = vmul.f32 %v5898_v35, %v9677_v45 }
 0x538   : > { %v5904_v22 = vpop.eup %5903  ;;  %v5242_v19 = vpack.c.bf16 %v4640_v11, %v4639_v26  ;;  %v5243_v31 = vpack.c.bf16 %v4642_v32, %v4641_v50  ;;  %v4644_v14 = vadd.f32 %v9091_v48, %v4569_v62  ;;  %v4498_v29 = vmul.f32 %v5898_v35, %v9678_v23  ;;  %v9683_v32 = vld [vmem:[#allocation67_spill] sm:$0xff] }
 0x539   : > { %v4571_v4 = vmul.f32 %v9085_v60, %v4496_v47  ;;  %v4645_v53 = vadd.f32 %v9088_v59, %v4570_v34  ;;  %v4572_v2 = vmul.f32 %v9082_v17, %v4497_v5  ;;  %v4499_v9 = vmul.f32 %v5900_v3, %v9679_v21  ;;  %v9684_v5 = vld [vmem:[#allocation68_spill] sm:$0xff] }
 0x53a   : > { %v5906_v28 = vpop.eup %5905  ;;  %4882 = vst [vmem:[%s6227_s18 + $0x68] sm:$0xff] %v5242_v19  ;;  %4883 = vst [vmem:[%s6227_s18 + $0x70] sm:$0xff] %v5243_v31  ;;  %v5244_v8 = vpack.c.bf16 %v4644_v14, %v4643_v58  ;;  %v4573_v41 = vmul.f32 %v9085_v60, %v4498_v29  ;;  %v4500_v27 = vmul.f32 %v5900_v3, %v9680_v49  ;;  %v9685_v31 = vld [vmem:[#allocation69_spill] sm:$0xff]  ;;  %5909 = vrsqrt.f32 %v9178_v25 }
 0x53b   : > { %v4501_v35 = vmul.f32 %v5902_v1, %v9681_v37  ;;  %v4646_v15 = vadd.f32 %v9091_v48, %v4571_v4  ;;  %v4647_v0 = vadd.f32 %v9088_v59, %v4572_v2  ;;  %v4574_v54 = vmul.f32 %v9082_v17, %v4499_v9 }
 0x53c   : > { %v4502_v30 = vmul.f32 %v5902_v1, %v9682_v33  ;;  %v5908_v46 = vpop.eup %5907  ;;  %4884 = vst [vmem:[%s6227_s18 + $0x78] sm:$0xff] %v5244_v8  ;;  %v4648_v26 = vadd.f32 %v9091_v48, %v4573_v41  ;;  %v4575_v52 = vmul.f32 %v9085_v60, %v4500_v27  ;;  %v4503_v38 = vmul.f32 %v5904_v22, %v8956_v20  ;;  %v4357_v1 = vpop.xlane.xlu0 %4356 }
 0x53d   : > { %v4576_v16 = vmul.f32 %v9082_v17, %v4501_v35  ;;  %v5245_v3 = vpack.c.bf16 %v4646_v15, %v4645_v53  ;;  %v4649_v11 = vadd.f32 %v9088_v59, %v4574_v54  ;;  %v4504_v62 = vmul.f32 %v5904_v22, %v9683_v32  ;;  %v4360_v22 = vpop.xlane.xlu1 %4359 }
 0x53e   : > { %v4577_v50 = vmul.f32 %v9085_v60, %v4502_v30  ;;  %v5246_v58 = vpack.c.bf16 %v4648_v26, %v4647_v0  ;;  %v4650_v44 = vadd.f32 %v9091_v48, %v4575_v52  ;;  %v4578_v34 = vmul.f32 %v9082_v17, %v4503_v38 }
 0x53f   : > { %v4651_v47 = vadd.f32 %v9088_v59, %v4576_v16  ;;  %4885 = vst [vmem:[%s6227_s18 + $0x80] sm:$0xff] %v5245_v3  ;;  %v4579_v45 = vmul.f32 %v9085_v60, %v4504_v62  ;;  %v4505_v19 = vmul.f32 %v5906_v28, %v9684_v5  ;;  %v4506_v14 = vmul.f32 %v5906_v28, %v9685_v31 }
 0x540   : > { %v4652_v20 = vadd.f32 %v9091_v48, %v4577_v50  ;;  %4886 = vst [vmem:[%s6227_s18 + $0x88] sm:$0xff] %v5246_v58  ;;  %v5247_v23 = vpack.c.bf16 %v4650_v44, %v4649_v11  ;;  %v4653_v29 = vadd.f32 %v9088_v59, %v4578_v34  ;;  %v4507_v4 = vmul.f32 %v5908_v46, %v8976_v7  ;;  %v4363_v37 = vpop.xlane.xlu0 %4362 }
 0x541   : > { %v4508_v53 = vmul.f32 %v5908_v46, %v8979_v39  ;;  %v4654_v21 = vadd.f32 %v9091_v48, %v4579_v45  ;;  %v4580_v9 = vmul.f32 %v9082_v17, %v4505_v19  ;;  %v4581_v8 = vmul.f32 %v9085_v60, %v4506_v14  ;;  %v4366_v46 = vpop.xlane.xlu1 %4365 }
 0x542   : > { %v5248_v2 = vpack.c.bf16 %v4652_v20, %v4651_v47  ;;  %4887 = vst [vmem:[%s6227_s18 + $0x90] sm:$0xff] %v5247_v23  ;;  %v4582_v28 = vmul.f32 %v9082_v17, %v4507_v4  ;;  %v4392_v49 = vmul.f32 0.00390625, %v9193_v36  ;;  %5911 = vrsqrt.f32 %v9180_v10 }
 0x543   : > { %v4583_v41 = vmul.f32 %v9085_v60, %v4508_v53  ;;  %v5249_v7 = vpack.c.bf16 %v4654_v21, %v4653_v29  ;;  %v4655_v39 = vadd.f32 %v9088_v59, %v4580_v9  ;;  %v4656_v27 = vadd.f32 %v9091_v48, %v4581_v8 }
 0x544   : > { %4888 = vst [vmem:[%s6227_s18 + $0x98] sm:$0xff] %v5248_v2  ;;  %v4657_v35 = vadd.f32 %v9088_v59, %v4582_v28  ;;  %v4424_v0 = vadd.f32 1e-12, %v4392_v49  ;;  %v4393_v25 = vmul.f32 0.00390625, %v9211_v12  ;;  %v4394_v54 = vmul.f32 0.00390625, %v4354_v42  ;;  %v5910_v42 = vpop.eup %5909 }
 0x545   : > { %v4658_v15 = vadd.f32 %v9091_v48, %v4583_v41  ;;  %4889 = vst [vmem:[%s6227_s18 + $0xa0] sm:$0xff] %v5249_v7  ;;  %v5250_v36 = vpack.c.bf16 %v4656_v27, %v4655_v39  ;;  %v4395_v33 = vmul.f32 0.00390625, %v4357_v1  ;;  %v4396_v30 = vmul.f32 0.00390625, %v4360_v22  ;;  %v9686_v1 = vld [vmem:[#allocation70_spill] sm:$0xff]  ;;  %v9687_v22 = vld [vmem:[#allocation71_spill] sm:$0xff] }
 0x546   : > { %5913 = vrsqrt.f32 %v4424_v0  ;;  %v4425_v52 = vadd.f32 1e-12, %v4393_v25  ;;  %v4397_v10 = vmul.f32 0.00390625, %v4363_v37  ;;  %v4426_v16 = vadd.f32 1e-12, %v4394_v54 }
 0x547   : > { %v5251_v26 = vpack.c.bf16 %v4658_v15, %v4657_v35  ;;  %4890 = vst [vmem:[%s6227_s18 + $0xa8] sm:$0xff] %v5250_v36  ;;  %v4427_v38 = vadd.f32 1e-12, %v4395_v33  ;;  %v4428_v3 = vadd.f32 1e-12, %v4396_v30  ;;  %v4398_v50 = vmul.f32 0.00390625, %v4366_v46 }
 0x548   : > { %5915 = vrsqrt.f32 %v4425_v52  ;;  %v4429_v11 = vadd.f32 1e-12, %v4397_v10  ;;  %v4509_v62 = vmul.f32 %v5910_v42, %v8982_v56  ;;  %v4510_v58 = vmul.f32 %v5910_v42, %v9686_v1  ;;  %v9690_v1 = vld [vmem:[#allocation74_spill] sm:$0xff] }
 0x549   : > { %4891 = vst [vmem:[%s6227_s18 + $0xb0] sm:$0xff] %v5251_v26  ;;  %5917 = vrsqrt.f32 %v4426_v16  ;;  %v4430_v12 = vadd.f32 1e-12, %v4398_v50  ;;  %v9688_v16 = vld [vmem:[#allocation72_spill] sm:$0xff]  ;;  %v9689_v50 = vld [vmem:[#allocation73_spill] sm:$0xff] }
 0x54a   : > { %5919 = vrsqrt.f32 %v4427_v38  ;;  %v4584_v34 = vmul.f32 %v9082_v17, %v4509_v62  ;;  %v4585_v20 = vmul.f32 %v9085_v60, %v4510_v58 }
 0x54b   : > { %5921 = vrsqrt.f32 %v4428_v3 }
 0x54c   : > { %5923 = vrsqrt.f32 %v4429_v11  ;;  %v5912_v32 = vpop.eup %5911  ;;  %v4659_v31 = vadd.f32 %v9088_v59, %v4584_v34  ;;  %v4660_v56 = vadd.f32 %v9091_v48, %v4585_v20 }
 0x54d   : > { %v4511_v44 = vmul.f32 %v5912_v32, %v8996_v55  ;;  %v4512_v47 = vmul.f32 %v5912_v32, %v8999_v40  ;;  %5925 = vrsqrt.f32 %v4430_v12 }
 0x54e   : > { %v5252_v53 = vpack.c.bf16 %v4660_v56, %v4659_v31 }
 0x54f   : > { %v4586_v5 = vmul.f32 %v9082_v17, %v4511_v44  ;;  %v4587_v19 = vmul.f32 %v9085_v60, %v4512_v47  ;;  %v9691_v47 = vld [vmem:[#allocation75_spill] sm:$0xff] }
 0x550   : > { %v5914_v45 = vpop.eup %5913  ;;  %4892 = vst [vmem:[%s6227_s18 + $0xb8] sm:$0xff] %v5252_v53 }
 0x551   : > { %v4513_v14 = vmul.f32 %v5914_v45, %v9002_v18  ;;  %v4514_v55 = vmul.f32 %v5914_v45, %v9687_v22  ;;  %v4661_v23 = vadd.f32 %v9088_v59, %v4586_v5  ;;  %v4662_v29 = vadd.f32 %v9091_v48, %v4587_v19 }
 0x552   : > { %v5916_v40 = vpop.eup %5915 }
 0x553   : > { %v5918_v4 = vpop.eup %5917  ;;  %v4588_v2 = vmul.f32 %v9082_v17, %v4513_v14  ;;  %v4589_v21 = vmul.f32 %v9085_v60, %v4514_v55  ;;  %v4515_v9 = vmul.f32 %v5916_v40, %v9016_v57  ;;  %v5253_v28 = vpack.c.bf16 %v4662_v29, %v4661_v23 }
 0x554   : > { %v5920_v8 = vpop.eup %5919  ;;  %v4516_v18 = vmul.f32 %v5916_v40, %v9019_v24  ;;  %v4517_v41 = vmul.f32 %v5918_v4, %v9022_v51  ;;  %v4518_v49 = vmul.f32 %v5918_v4, %v9025_v13 }
 0x555   : > { %v5922_v7 = vpop.eup %5921  ;;  %v4663_v39 = vadd.f32 %v9088_v59, %v4588_v2  ;;  %v4664_v27 = vadd.f32 %v9091_v48, %v4589_v21  ;;  %v4590_v37 = vmul.f32 %v9082_v17, %v4515_v9  ;;  %v4519_v35 = vmul.f32 %v5920_v8, %v9036_v6  ;;  %4893 = vst [vmem:[%s6227_s18 + $0xc0] sm:$0xff] %v5253_v28 }
 0x556   : > { %v5924_v57 = vpop.eup %5923  ;;  %v4591_v15 = vmul.f32 %v9085_v60, %v4516_v18  ;;  %v4592_v24 = vmul.f32 %v9082_v17, %v4517_v41  ;;  %v4593_v51 = vmul.f32 %v9085_v60, %v4518_v49  ;;  %v4520_v13 = vmul.f32 %v5920_v8, %v9039_v61 }
 0x557   : > { %v5254_v0 = vpack.c.bf16 %v4664_v27, %v4663_v39  ;;  %v4665_v25 = vadd.f32 %v9088_v59, %v4590_v37  ;;  %v4594_v36 = vmul.f32 %v9082_v17, %v4519_v35  ;;  %v4521_v54 = vmul.f32 %v5922_v7, %v9042_v43  ;;  %v5926_v33 = vpop.eup %5925 }
 0x558   : > { %v4666_v6 = vadd.f32 %v9091_v48, %v4591_v15  ;;  %v4667_v30 = vadd.f32 %v9088_v59, %v4592_v24  ;;  %v4668_v46 = vadd.f32 %v9091_v48, %v4593_v51  ;;  %v4595_v26 = vmul.f32 %v9085_v60, %v4520_v13 }
 0x559   : > { %4894 = vst [vmem:[%s6227_s18 + $0xc8] sm:$0xff] %v5254_v0  ;;  %v4669_v61 = vadd.f32 %v9088_v59, %v4594_v36  ;;  %v4522_v52 = vmul.f32 %v5922_v7, %v9045_v63  ;;  %v4596_v10 = vmul.f32 %v9082_v17, %v4521_v54  ;;  %v4523_v43 = vmul.f32 %v5924_v57, %v9688_v16 }
 0x55a   : > { %v5255_v38 = vpack.c.bf16 %v4666_v6, %v4665_v25  ;;  %v5256_v3 = vpack.c.bf16 %v4668_v46, %v4667_v30  ;;  %v4670_v11 = vadd.f32 %v9091_v48, %v4595_v26  ;;  %v4524_v12 = vmul.f32 %v5924_v57, %v9689_v50 }
 0x55b   : > { %v4597_v42 = vmul.f32 %v9085_v60, %v4522_v52  ;;  %v4671_v32 = vadd.f32 %v9088_v59, %v4596_v10  ;;  %v4598_v62 = vmul.f32 %v9082_v17, %v4523_v43  ;;  %v4525_v58 = vmul.f32 %v5926_v33, %v9690_v1 }
 0x55c   : > { %4895 = vst [vmem:[%s6227_s18 + $0xd0] sm:$0xff] %v5255_v38  ;;  %4896 = vst [vmem:[%s6227_s18 + $0xd8] sm:$0xff] %v5256_v3  ;;  %v5257_v63 = vpack.c.bf16 %v4670_v11, %v4669_v61  ;;  %v4599_v44 = vmul.f32 %v9085_v60, %v4524_v12  ;;  %v4526_v34 = vmul.f32 %v5926_v33, %v9691_v47 }
 0x55d   : > { %v4672_v20 = vadd.f32 %v9091_v48, %v4597_v42  ;;  %v4673_v45 = vadd.f32 %v9088_v59, %v4598_v62  ;;  %v4600_v5 = vmul.f32 %v9082_v17, %v4525_v58 }
 0x55e   : > { %4897 = vst [vmem:[%s6227_s18 + $0xe0] sm:$0xff] %v5257_v63  ;;  %v4674_v19 = vadd.f32 %v9091_v48, %v4599_v44  ;;  %v4601_v31 = vmul.f32 %v9085_v60, %v4526_v34 }
 0x55f   : > { %v5258_v56 = vpack.c.bf16 %v4672_v20, %v4671_v32  ;;  %v4675_v14 = vadd.f32 %v9088_v59, %v4600_v5 }
 0x560   : > { %v5259_v22 = vpack.c.bf16 %v4674_v19, %v4673_v45  ;;  %v4676_v55 = vadd.f32 %v9091_v48, %v4601_v31 }
 0x561   : > { %4898 = vst [vmem:[%s6227_s18 + $0xe8] sm:$0xff] %v5258_v56 }
 0x562   : > { %4899 = vst [vmem:[%s6227_s18 + $0xf0] sm:$0xff] %v5259_v22  ;;  %v5260_v40 = vpack.c.bf16 %v4676_v55, %v4675_v14 }
 0x564   : > { %4900 = vst [vmem:[%s6227_s18 + $0xf8] sm:$0xff] %v5260_v40 }
 0x565 PF: > { %s17_s30 = sadd.s32 1, %s5981_s30   ;;  %s9692_s11 = sld [smem:[#allocation4_spill]] }
 0x566   : > { %p14_p1 = scmp.ge.s32.totalorder %s17_s30, 6   ;;  %s9693_s24 = smov %s5961_s25 }
 0x567   : > { %s9694_s25 = smov %s6073_s12  ;;  %s9695_s26 = smov %s5973_s28 }
 0x568   : > { %s9696_s27 = smov %s5977_s29  ;;  %s9697_s28 = smov %s9700_s8 }
 0x569   :  { %16 = sbr.rel (!%p14_p1) target bundleno = 6 (0x6), region = 123 }
 0x56b   : > { %s9698_s29 = smov %s9692_s11 }

</bundles_post_ra>
